<compile_context>
chip_gen: v6e
topology: v6e:2x2x1
jax: 0.10.0
libtpu: 0.0.40
codegen_flags: <defaults>
</compile_context>

<pallas_src>
import functools
import math

import jax
import jax.numpy as jnp
from jax.experimental import pallas as pl
from jax.experimental.pallas import tpu as pltpu

_NUM_MP_STEPS = 3     # MPNNGNN num_step_message_passing
_LEAKY_SLOPE = 0.01   # nn.LeakyReLU default


# ------------------------------------------------------------------ Pallas kernel

def _gnn_mt_kernel(nf_ref, ef_ref, src_ref, dst_ref, M_ref, R_ref, S_ref,
                   Wp_ref, bp_ref, We1_ref, be1_ref, We2_ref, be2_ref, bconv_ref,
                   mW4_ref, mb4_ref, Wn_ref, bn_ref, Wln_ref, Wlg_ref, bl_ref,
                   rW4_ref, rb4_ref, mc_ref,
                   syW1_ref, syb1_ref, syW2_ref, syb2_ref,
                   saW1_ref, sab1_ref, saW2_ref, sab2_ref,
                   fsW1_ref, fsb1_ref, fsW2_ref, fsb2_ref,
                   o1_ref, o2_ref, o3_ref):
    """Both MPNNGNN+AttentiveFP branches plus the 3 MLPPredictor heads, fused."""
    f32 = jnp.float32
    nb = nf_ref.shape[0]          # number of branches (2)
    D = Wp_ref.shape[-1]          # node feature size
    T = bl_ref.shape[-1]          # readout timesteps
    G = M_ref.shape[0]            # graphs per branch
    N = M_ref.shape[1] // G       # nodes per graph

    def mm(a, b):
        return jnp.dot(a, b, preferred_element_type=f32)

    def relu(v):
        return jnp.maximum(v, 0.0)

    def gru(x, hprev, W4, b4):
        # PyTorch GRU/GRUCell with gates fused along lanes as [r | z | n_x | n_h];
        # one MXU matmul on concat([x, h]) instead of two dependent matmuls.
        g = mm(jnp.concatenate([x, hprev], axis=-1), W4) + b4
        r = jax.nn.sigmoid(g[:, :D])
        z = jax.nn.sigmoid(g[:, D:2 * D])
        n = jnp.tanh(g[:, 2 * D:3 * D] + r * g[:, 3 * D:4 * D])
        return (1.0 - z) * n + z * hprev

    # Constants hoisted once (no re-load per unrolled iteration).
    M = M_ref[...]                # (G, G*N) graph membership (sum_nodes as matmul)
    R = R_ref[...]                # (D, D*D) replicate matrix for the einsum rewrite
    S = S_ref[...]                # (D*D, D) reduce matrix

    gf = []                       # per-branch graph readouts -> [x1, x2]
    for b in range(nb):
        nf = nf_ref[b]            # (G*N, D)   batched node features
        ef = ef_ref[b]            # (G*E, DE)  batched edge features
        src = src_ref[b]          # (G*E, G*N) block-diag one-hot gather (edge <- src)
        dst = dst_ref[b]          # (G*N, G*E) block-diag one-hot scatter (node <- edge)

        # ---------------- MPNNGNN ----------------
        h = relu(mm(nf, Wp_ref[b]) + bp_ref[b])                 # project_node_feats
        e_hid = relu(mm(ef, We1_ref[b]) + be1_ref[b])           # edge network layer 1
        we_flat = mm(e_hid, We2_ref[b]) + be2_ref[b]            # (G*E, D*D) per-edge mats
        mW4 = mW4_ref[b]
        mb4 = mb4_ref[b]
        bconv = bconv_ref[b]
        for _ in range(_NUM_MP_STEPS):
            h_src = mm(src, h)                                  # (G*E, D) gather src feats
            # einsum('ed,edf->ef') as two MXU matmuls; no (E,D,D) temporary:
            #   (h_src @ R)[e, d*D+f] = h_src[e, d];  (Q @ S)[e, f] = sum_d Q[e, d*D+f]
            msgs = mm(mm(h_src, R) * we_flat, S)                # (G*E, D)
            m = relu(mm(dst, msgs) + bconv)                     # scatter-sum + bias + ReLU
            h = gru(m, h, mW4, mb4)                             # shared GRU across steps

        # ---------------- AttentiveFP readout ----------------
        Wlg = Wlg_ref[b]          # (D, T) graph-side logit weights, all timesteps
        bl = bl_ref[b]            # (1, T) logit biases
        g_feats = mm(M, h)                                      # (G, D) sum_nodes (MXU)
        hv_all = mm(h, Wn_ref[b]) + bn_ref[b]                   # (G*N, T*D) all projections
        zn_all = mm(h, Wln_ref[b])                              # (G*N, T) node logit parts
        for t in range(T):
            zg = mm(relu(g_feats), Wlg) + bl                    # (G, T) graph logit parts
            rows = []
            for g in range(G):                                  # per-graph segment softmax
                z = zn_all[g * N:(g + 1) * N, t:t + 1] + zg[g:g + 1, t:t + 1]
                z = jnp.where(z > 0, z, _LEAKY_SLOPE * z)       # LeakyReLU
                z_max = jnp.max(z, axis=0, keepdims=True)
                ez = jnp.exp(z - z_max)
                a = ez * pl.reciprocal(jnp.sum(ez, axis=0, keepdims=True), approx=True)
                hv = hv_all[g * N:(g + 1) * N, t * D:(t + 1) * D]   # (N, D)
                rows.append(jnp.sum(a * hv, axis=0, keepdims=True))  # (1, D) weighted sum
            g_sum = jnp.concatenate(rows, axis=0)               # (G, D)
            ctx = jnp.where(g_sum > 0, g_sum,
                            jnp.exp(jnp.minimum(g_sum, 0.0)) - 1.0)  # ELU (overflow-safe)
            g_feats = relu(gru(ctx, g_feats, rW4_ref[b, t], rb4_ref[b, t]))
        gf.append(g_feats)

    # ---------------- MLPPredictor heads (fused, no HBM round-trip) ----------------
    x12 = jnp.concatenate([gf[0], gf[1]], axis=-1)              # (G, 2D)  cat([x1, x2])
    x12m = jnp.concatenate([x12, mc_ref[...]], axis=-1)         # (G, 2D+4) cat([.., mc])

    def head(x, W1, b1, W2, b2):
        hdn = relu(mm(x, W1) + b1)                              # Dropout(noop)+Linear+ReLU
        return mm(hdn, W2) + b2                                 # BatchNorm(eval) folded in W2

    o1_ref[...] = head(x12, syW1_ref[...], syb1_ref[...], syW2_ref[...], syb2_ref[...])
    o2_ref[...] = head(x12, saW1_ref[...], sab1_ref[...], saW2_ref[...], sab2_ref[...])
    o3_ref[...] = head(x12m, fsW1_ref[...], fsb1_ref[...], fsW2_ref[...], fsb2_ref[...])


# ------------------------------------------------------------------ driver

def gnn_mt_forward(params, nf, ef, src_bd, dst_bd, mc):
    """Full GNN_MT forward in a single pallas_call (inputs pre-stacked per branch)."""
    br = params["branch"]
    c = params["consts"]
    sy, sa, fs = params["syn"], params["sa"], params["fsa"]
    G = mc.shape[0]
    out_shape = (jax.ShapeDtypeStruct((G, sy["W2"].shape[-1]), jnp.float32),
                 jax.ShapeDtypeStruct((G, sa["W2"].shape[-1]), jnp.float32),
                 jax.ShapeDtypeStruct((G, fs["W2"].shape[-1]), jnp.float32))
    o1, o2, o3 = pl.pallas_call(
        _gnn_mt_kernel,
        out_shape=out_shape,
        compiler_params=pltpu.CompilerParams(vmem_limit_bytes=32 * 1024 * 1024),
    )(nf, ef, src_bd, dst_bd, c["M"], c["R"], c["S"],
      br["Wp"], br["bp"], br["We1"], br["be1"], br["We2"], br["be2"], br["b_conv"],
      br["m_W4"], br["m_b4"], br["Wn"], br["bn"], br["Wl_n"], br["Wl_g"], br["bl"],
      br["r_W4"], br["r_b4"],
      mc,
      sy["W1"], sy["b1"], sy["W2"], sy["b2"],
      sa["W1"], sa["b1"], sa["W2"], sa["b2"],
      fs["W1"], fs["b1"], fs["W2"], fs["b2"])
    return jnp.squeeze(o1), jnp.squeeze(o2), jnp.squeeze(o3)


def make_constants(G, N, D):
    """Shared in-kernel constants (built once, host-side)."""
    eye = jnp.eye(D, dtype=jnp.float32)
    return dict(
        R=jnp.repeat(eye, D, axis=1),                 # (D, D*D): R[d, j] = (j // D == d)
        S=jnp.tile(eye, (D, 1)),                      # (D*D, D): S[j, f] = (j %  D == f)
        M=jnp.kron(jnp.eye(G, dtype=jnp.float32),
                   jnp.ones((1, N), jnp.float32)),    # (G, G*N) graph membership
    )


# ------------------------------------------------------------------ parameter init

def _uniform(key, shape, bound):
    return jax.random.uniform(key, shape, jnp.float32, -bound, bound)


def _fused_gru(key, d, bound):
    """PyTorch GRU params fused into one (2d, 4d) weight with columns [r | z | n_x | n_h]."""
    k = jax.random.split(key, 4)
    wih = _uniform(k[0], (d, 3 * d), bound)           # [r | z | n] along lanes
    whh = _uniform(k[1], (d, 3 * d), bound)
    bih = _uniform(k[2], (1, 3 * d), bound)
    bhh = _uniform(k[3], (1, 3 * d), bound)
    zero = jnp.zeros((d, d), jnp.float32)
    W4 = jnp.concatenate([
        jnp.concatenate([wih[:, :2 * d], wih[:, 2 * d:], zero], axis=1),   # x rows
        jnp.concatenate([whh[:, :2 * d], zero, whh[:, 2 * d:]], axis=1),   # h rows
    ], axis=0)
    b4 = jnp.concatenate(
        [bih[:, :2 * d] + bhh[:, :2 * d], bih[:, 2 * d:], bhh[:, 2 * d:]], axis=1)
    return W4, b4


def init_branch(key, dn, de, eh=12, T=6):
    """One MPNNGNN + AttentiveFPReadout branch, weights in fused TPU layout."""
    ks = jax.random.split(key, 14 + T)
    bn_ = 1.0 / math.sqrt(dn)
    be_ = 1.0 / math.sqrt(de)
    bh_ = 1.0 / math.sqrt(eh)
    bl_ = 1.0 / math.sqrt(2 * dn)
    m_W4, m_b4 = _fused_gru(ks[7], dn, bn_)
    r = [_fused_gru(ks[14 + t], dn, bn_) for t in range(T)]
    return dict(
        Wp=_uniform(ks[0], (dn, dn), bn_),
        bp=_uniform(ks[1], (1, dn), bn_),
        We1=_uniform(ks[2], (de, eh), be_),
        be1=_uniform(ks[3], (1, eh), be_),
        We2=_uniform(ks[4], (eh, dn * dn), bh_),
        be2=_uniform(ks[5], (1, dn * dn), bh_),
        b_conv=_uniform(ks[6], (1, dn), 0.1),
        m_W4=m_W4, m_b4=m_b4,
        Wn=_uniform(ks[8], (dn, T * dn), bn_),        # T project_nodes Linears stacked
        bn=_uniform(ks[9], (1, T * dn), bn_),
        Wl_n=_uniform(ks[10], (dn, T), bl_),          # node half of compute_logits
        Wl_g=_uniform(ks[11], (dn, T), bl_),          # graph half of compute_logits
        bl=_uniform(ks[12], (1, T), bl_),
        r_W4=jnp.stack([w for w, _ in r]),            # (T, 2dn, 4dn) readout GRUCells
        r_b4=jnp.stack([b for _, b in r]),            # (T, 1, 4dn)
    )


def init_head(key, in_feats, hidden, n_tasks):
    """MLPPredictor: Dropout(noop) -> Linear -> ReLU -> BatchNorm(eval, folded) -> Linear."""
    ks = jax.random.split(key, 4)
    b1 = 1.0 / math.sqrt(in_feats)
    b2 = 1.0 / math.sqrt(hidden)
    bn_fold = 1.0 / math.sqrt(1.0 + 1e-5)   # BatchNorm1d eval with default running stats
    return dict(
        W1=_uniform(ks[0], (in_feats, hidden), b1),
        b1=_uniform(ks[1], (1, hidden), b1),
        W2=_uniform(ks[2], (hidden, n_tasks), b2) * bn_fold,
        b2=_uniform(ks[3], (1, n_tasks), b2),
    )


# ------------------------------------------------------------------ main

if __name__ == "__main__":
    G, N, E = 2, 8, 16          # graphs per branch, nodes per graph, edges per graph
    DN, DE, H = 16, 8, 32       # node_size, edge_size, hidden_size
    EH, T = 12, 6               # edge_hidden_feats, readout timesteps
    GN, GE = G * N, G * E

    key = jax.random.PRNGKey(0)
    keys = jax.random.split(key, 12)

    # Deterministic connectivity (ring + skip-3), same topology per graph, expressed
    # as block-diagonal one-hot gather/scatter matrices so DGL message passing
    # becomes batched MXU matmuls inside the kernel.  Built OUTSIDE the jitted path.
    src = jnp.array(list(range(N)) * 2, dtype=jnp.int32)
    dst = jnp.array([(i + 1) % N for i in range(N)] + [(i + 3) % N for i in range(N)],
                    dtype=jnp.int32)
    src_oh = jax.nn.one_hot(src, N, dtype=jnp.float32)          # (E, N)
    dst_oh = jax.nn.one_hot(dst, N, dtype=jnp.float32).T        # (N, E)
    eye_g = jnp.eye(G, dtype=jnp.float32)
    src_bd1 = jnp.kron(eye_g, src_oh)                           # (GE, GN) block-diag gather
    dst_bd1 = jnp.kron(eye_g, dst_oh)                           # (GN, GE) block-diag scatter
    src_bd = jnp.stack([src_bd1, src_bd1])                      # (2, GE, GN) both branches
    dst_bd = jnp.stack([dst_bd1, dst_bd1])                      # (2, GN, GE)

    h1 = jax.random.normal(keys[0], (GN, DN), jnp.float32)
    e1 = jax.random.normal(keys[1], (GE, DE), jnp.float32)
    h2 = jax.random.normal(keys[2], (GN, DN), jnp.float32)
    e2 = jax.random.normal(keys[3], (GE, DE), jnp.float32)
    mc = jax.random.normal(keys[4], (G, 4), jnp.float32)

    nf = jnp.stack([h1, h2])    # (2, GN, DN)  pre-stacked branch inputs (no in-jit concat)
    ef = jnp.stack([e1, e2])    # (2, GE, DE)

    branch1 = init_branch(keys[5], DN, DE, EH, T)   # mpnn_layer1 + readout1
    branch2 = init_branch(keys[6], DN, DE, EH, T)   # mpnn_layer2 + readout2
    params = dict(
        branch={k: jnp.stack([branch1[k], branch2[k]], axis=0) for k in branch1},
        consts=make_constants(G, N, DN),
        syn=init_head(keys[7], 2 * DN, H, 4),
        sa=init_head(keys[8], 2 * DN, H, 2),
        fsa=init_head(keys[9], 2 * DN + 4, H, 2),
    )

    fwd = jax.jit(gnn_mt_forward)
    o1, o2, o3 = fwd(params, nf, ef, src_bd, dst_bd, mc)
    jax.block_until_ready((o1, o2, o3))
    assert o1.shape == (G, 4) and o2.shape == (G, 2) and o3.shape == (G, 2)
    print("KERNEL_OK")
</pallas_src>

<mosaic_0001>
module attributes {stable_mosaic.version = 11 : i64} {
  func.func @_gnn_mt_kernel(%arg0: memref<2x16x16xf32, #tpu.memory_space<vmem>>, %arg1: memref<2x32x8xf32, #tpu.memory_space<vmem>>, %arg2: memref<2x32x16xf32, #tpu.memory_space<vmem>>, %arg3: memref<2x16x32xf32, #tpu.memory_space<vmem>>, %arg4: memref<2x16xf32, #tpu.memory_space<vmem>>, %arg5: memref<16x256xf32, #tpu.memory_space<vmem>>, %arg6: memref<256x16xf32, #tpu.memory_space<vmem>>, %arg7: memref<2x16x16xf32, #tpu.memory_space<vmem>>, %arg8: memref<2x1x16xf32, #tpu.memory_space<vmem>>, %arg9: memref<2x8x12xf32, #tpu.memory_space<vmem>>, %arg10: memref<2x1x12xf32, #tpu.memory_space<vmem>>, %arg11: memref<2x12x256xf32, #tpu.memory_space<vmem>>, %arg12: memref<2x1x256xf32, #tpu.memory_space<vmem>>, %arg13: memref<2x1x16xf32, #tpu.memory_space<vmem>>, %arg14: memref<2x32x64xf32, #tpu.memory_space<vmem>>, %arg15: memref<2x1x64xf32, #tpu.memory_space<vmem>>, %arg16: memref<2x16x96xf32, #tpu.memory_space<vmem>>, %arg17: memref<2x1x96xf32, #tpu.memory_space<vmem>>, %arg18: memref<2x16x6xf32, #tpu.memory_space<vmem>>, %arg19: memref<2x16x6xf32, #tpu.memory_space<vmem>>, %arg20: memref<2x1x6xf32, #tpu.memory_space<vmem>>, %arg21: memref<2x6x32x64xf32, #tpu.memory_space<vmem>>, %arg22: memref<2x6x1x64xf32, #tpu.memory_space<vmem>>, %arg23: memref<2x4xf32, #tpu.memory_space<vmem>>, %arg24: memref<32x32xf32, #tpu.memory_space<vmem>>, %arg25: memref<1x32xf32, #tpu.memory_space<vmem>>, %arg26: memref<32x4xf32, #tpu.memory_space<vmem>>, %arg27: memref<1x4xf32, #tpu.memory_space<vmem>>, %arg28: memref<32x32xf32, #tpu.memory_space<vmem>>, %arg29: memref<1x32xf32, #tpu.memory_space<vmem>>, %arg30: memref<32x2xf32, #tpu.memory_space<vmem>>, %arg31: memref<1x2xf32, #tpu.memory_space<vmem>>, %arg32: memref<36x32xf32, #tpu.memory_space<vmem>>, %arg33: memref<1x32xf32, #tpu.memory_space<vmem>>, %arg34: memref<32x2xf32, #tpu.memory_space<vmem>>, %arg35: memref<1x2xf32, #tpu.memory_space<vmem>>, %arg36: memref<2x4xf32, #tpu.memory_space<vmem>>, %arg37: memref<2x2xf32, #tpu.memory_space<vmem>>, %arg38: memref<2x2xf32, #tpu.memory_space<vmem>>) attributes {dimension_semantics = [], scalar_prefetch = 0 : i64, scratch_operands = 0 : i64, tpu.core_type = #tpu.core_type<tc>} {
    %c0 = arith.constant 0 : index
    %c0_0 = arith.constant 0 : index
    %0 = vector.load %arg4[%c0, %c0_0] : memref<2x16xf32, #tpu.memory_space<vmem>>, vector<2x16xf32>
    %c0_1 = arith.constant 0 : index
    %c0_2 = arith.constant 0 : index
    %1 = vector.load %arg5[%c0_1, %c0_2] : memref<16x256xf32, #tpu.memory_space<vmem>>, vector<16x256xf32>
    %c0_3 = arith.constant 0 : index
    %c0_4 = arith.constant 0 : index
    %2 = vector.load %arg6[%c0_3, %c0_4] : memref<256x16xf32, #tpu.memory_space<vmem>>, vector<256x16xf32>
    %c0_5 = arith.constant 0 : index
    %c0_6 = arith.constant 0 : index
    %c0_7 = arith.constant 0 : index
    %3 = vector.load %arg0[%c0_5, %c0_6, %c0_7] : memref<2x16x16xf32, #tpu.memory_space<vmem>>, vector<1x16x16xf32>
    %4 = vector.shape_cast %3 : vector<1x16x16xf32> to vector<16x16xf32>
    %c0_8 = arith.constant 0 : index
    %c0_9 = arith.constant 0 : index
    %c0_10 = arith.constant 0 : index
    %5 = vector.load %arg1[%c0_8, %c0_9, %c0_10] : memref<2x32x8xf32, #tpu.memory_space<vmem>>, vector<1x32x8xf32>
    %6 = vector.shape_cast %5 : vector<1x32x8xf32> to vector<32x8xf32>
    %c0_11 = arith.constant 0 : index
    %c0_12 = arith.constant 0 : index
    %c0_13 = arith.constant 0 : index
    %7 = vector.load %arg2[%c0_11, %c0_12, %c0_13] : memref<2x32x16xf32, #tpu.memory_space<vmem>>, vector<1x32x16xf32>
    %8 = vector.shape_cast %7 : vector<1x32x16xf32> to vector<32x16xf32>
    %c0_14 = arith.constant 0 : index
    %c0_15 = arith.constant 0 : index
    %c0_16 = arith.constant 0 : index
    %9 = vector.load %arg3[%c0_14, %c0_15, %c0_16] : memref<2x16x32xf32, #tpu.memory_space<vmem>>, vector<1x16x32xf32>
    %10 = vector.shape_cast %9 : vector<1x16x32xf32> to vector<16x32xf32>
    %c0_17 = arith.constant 0 : index
    %c0_18 = arith.constant 0 : index
    %c0_19 = arith.constant 0 : index
    %11 = vector.load %arg7[%c0_17, %c0_18, %c0_19] : memref<2x16x16xf32, #tpu.memory_space<vmem>>, vector<1x16x16xf32>
    %12 = vector.shape_cast %11 : vector<1x16x16xf32> to vector<16x16xf32>
    %cst = arith.constant dense<0.000000e+00> : vector<16x16xf32>
    %13 = tpu.matmul %4, %12, %cst {dimension_numbers = #tpu.dot_dimension_numbers<[1], [0], [0], [1], [0, 0, 1, 1], [], []>} : vector<16x16xf32>, vector<16x16xf32>, vector<16x16xf32> -> vector<16x16xf32>
    %c0_20 = arith.constant 0 : index
    %c0_21 = arith.constant 0 : index
    %c0_22 = arith.constant 0 : index
    %14 = vector.load %arg8[%c0_20, %c0_21, %c0_22] : memref<2x1x16xf32, #tpu.memory_space<vmem>>, vector<1x1x16xf32>
    %15 = vector.shape_cast %14 : vector<1x1x16xf32> to vector<1x16xf32>
    %16 = vector.broadcast %15 : vector<1x16xf32> to vector<16x16xf32>
    %17 = arith.addf %13, %16 : vector<16x16xf32>
    %cst_23 = arith.constant 0.000000e+00 : f32
    %18 = vector.broadcast %cst_23 : f32 to vector<16x16xf32>
    %19 = arith.maximumf %17, %18 : vector<16x16xf32>
    %c0_24 = arith.constant 0 : index
    %c0_25 = arith.constant 0 : index
    %c0_26 = arith.constant 0 : index
    %20 = vector.load %arg9[%c0_24, %c0_25, %c0_26] : memref<2x8x12xf32, #tpu.memory_space<vmem>>, vector<1x8x12xf32>
    %21 = vector.shape_cast %20 : vector<1x8x12xf32> to vector<8x12xf32>
    %cst_27 = arith.constant dense<0.000000e+00> : vector<32x12xf32>
    %22 = tpu.matmul %6, %21, %cst_27 {dimension_numbers = #tpu.dot_dimension_numbers<[1], [0], [0], [1], [0, 0, 1, 1], [], []>} : vector<32x8xf32>, vector<8x12xf32>, vector<32x12xf32> -> vector<32x12xf32>
    %c0_28 = arith.constant 0 : index
    %c0_29 = arith.constant 0 : index
    %c0_30 = arith.constant 0 : index
    %23 = vector.load %arg10[%c0_28, %c0_29, %c0_30] : memref<2x1x12xf32, #tpu.memory_space<vmem>>, vector<1x1x12xf32>
    %24 = vector.shape_cast %23 : vector<1x1x12xf32> to vector<1x12xf32>
    %25 = vector.broadcast %24 : vector<1x12xf32> to vector<32x12xf32>
    %26 = arith.addf %22, %25 : vector<32x12xf32>
    %cst_31 = arith.constant 0.000000e+00 : f32
    %27 = vector.broadcast %cst_31 : f32 to vector<32x12xf32>
    %28 = arith.maximumf %26, %27 : vector<32x12xf32>
    %c0_32 = arith.constant 0 : index
    %c0_33 = arith.constant 0 : index
    %c0_34 = arith.constant 0 : index
    %29 = vector.load %arg11[%c0_32, %c0_33, %c0_34] : memref<2x12x256xf32, #tpu.memory_space<vmem>>, vector<1x12x256xf32>
    %30 = vector.shape_cast %29 : vector<1x12x256xf32> to vector<12x256xf32>
    %cst_35 = arith.constant dense<0.000000e+00> : vector<32x256xf32>
    %31 = tpu.matmul %28, %30, %cst_35 {dimension_numbers = #tpu.dot_dimension_numbers<[1], [0], [0], [1], [0, 0, 1, 1], [], []>} : vector<32x12xf32>, vector<12x256xf32>, vector<32x256xf32> -> vector<32x256xf32>
    %c0_36 = arith.constant 0 : index
    %c0_37 = arith.constant 0 : index
    %c0_38 = arith.constant 0 : index
    %32 = vector.load %arg12[%c0_36, %c0_37, %c0_38] : memref<2x1x256xf32, #tpu.memory_space<vmem>>, vector<1x1x256xf32>
    %33 = vector.shape_cast %32 : vector<1x1x256xf32> to vector<1x256xf32>
    %34 = vector.broadcast %33 : vector<1x256xf32> to vector<32x256xf32>
    %35 = arith.addf %31, %34 : vector<32x256xf32>
    %c0_39 = arith.constant 0 : index
    %c0_40 = arith.constant 0 : index
    %c0_41 = arith.constant 0 : index
    %36 = vector.load %arg14[%c0_39, %c0_40, %c0_41] : memref<2x32x64xf32, #tpu.memory_space<vmem>>, vector<1x32x64xf32>
    %37 = vector.shape_cast %36 : vector<1x32x64xf32> to vector<32x64xf32>
    %c0_42 = arith.constant 0 : index
    %c0_43 = arith.constant 0 : index
    %c0_44 = arith.constant 0 : index
    %38 = vector.load %arg15[%c0_42, %c0_43, %c0_44] : memref<2x1x64xf32, #tpu.memory_space<vmem>>, vector<1x1x64xf32>
    %39 = vector.shape_cast %38 : vector<1x1x64xf32> to vector<1x64xf32>
    %c0_45 = arith.constant 0 : index
    %c0_46 = arith.constant 0 : index
    %c0_47 = arith.constant 0 : index
    %40 = vector.load %arg13[%c0_45, %c0_46, %c0_47] : memref<2x1x16xf32, #tpu.memory_space<vmem>>, vector<1x1x16xf32>
    %41 = vector.shape_cast %40 : vector<1x1x16xf32> to vector<1x16xf32>
    %cst_48 = arith.constant dense<0.000000e+00> : vector<32x16xf32>
    %42 = tpu.matmul %8, %19, %cst_48 {dimension_numbers = #tpu.dot_dimension_numbers<[1], [0], [0], [1], [0, 0, 1, 1], [], []>} : vector<32x16xf32>, vector<16x16xf32>, vector<32x16xf32> -> vector<32x16xf32>
    %cst_49 = arith.constant dense<0.000000e+00> : vector<32x256xf32>
    %43 = tpu.matmul %42, %1, %cst_49 {dimension_numbers = #tpu.dot_dimension_numbers<[1], [0], [0], [1], [0, 0, 1, 1], [], []>} : vector<32x16xf32>, vector<16x256xf32>, vector<32x256xf32> -> vector<32x256xf32>
    %44 = arith.mulf %43, %35 : vector<32x256xf32>
    %cst_50 = arith.constant dense<0.000000e+00> : vector<32x16xf32>
    %45 = tpu.matmul %44, %2, %cst_50 {dimension_numbers = #tpu.dot_dimension_numbers<[1], [0], [0], [1], [0, 0, 1, 1], [], []>} : vector<32x256xf32>, vector<256x16xf32>, vector<32x16xf32> -> vector<32x16xf32>
    %cst_51 = arith.constant dense<0.000000e+00> : vector<16x16xf32>
    %46 = tpu.matmul %10, %45, %cst_51 {dimension_numbers = #tpu.dot_dimension_numbers<[1], [0], [0], [1], [0, 0, 1, 1], [], []>} : vector<16x32xf32>, vector<32x16xf32>, vector<16x16xf32> -> vector<16x16xf32>
    %47 = vector.broadcast %41 : vector<1x16xf32> to vector<16x16xf32>
    %48 = arith.addf %46, %47 : vector<16x16xf32>
    %cst_52 = arith.constant 0.000000e+00 : f32
    %49 = vector.broadcast %cst_52 : f32 to vector<16x16xf32>
    %50 = arith.maximumf %48, %49 : vector<16x16xf32>
    %51 = tpu.concatenate %50, %19 in 1 : vector<16x16xf32>, vector<16x16xf32> -> vector<16x32xf32>
    %cst_53 = arith.constant dense<0.000000e+00> : vector<16x64xf32>
    %52 = tpu.matmul %51, %37, %cst_53 {dimension_numbers = #tpu.dot_dimension_numbers<[1], [0], [0], [1], [0, 0, 1, 1], [], []>} : vector<16x32xf32>, vector<32x64xf32>, vector<16x64xf32> -> vector<16x64xf32>
    %53 = vector.broadcast %39 : vector<1x64xf32> to vector<16x64xf32>
    %54 = arith.addf %52, %53 : vector<16x64xf32>
    %55 = vector.extract_strided_slice %54 {offsets = [0, 0], sizes = [16, 16], strides = [1, 1]} : vector<16x64xf32> to vector<16x16xf32>
    %56 = arith.negf %55 : vector<16x16xf32>
    %57 = math.exp %56 : vector<16x16xf32>
    %cst_54 = arith.constant 1.000000e+00 : f32
    %58 = vector.broadcast %cst_54 : f32 to vector<16x16xf32>
    %59 = arith.addf %58, %57 : vector<16x16xf32>
    %60 = arith.divf %58, %59 : vector<16x16xf32>
    %61 = vector.extract_strided_slice %54 {offsets = [0, 16], sizes = [16, 16], strides = [1, 1]} : vector<16x64xf32> to vector<16x16xf32>
    %62 = arith.negf %61 : vector<16x16xf32>
    %63 = math.exp %62 : vector<16x16xf32>
    %cst_55 = arith.constant 1.000000e+00 : f32
    %64 = vector.broadcast %cst_55 : f32 to vector<16x16xf32>
    %65 = arith.addf %64, %63 : vector<16x16xf32>
    %66 = arith.divf %64, %65 : vector<16x16xf32>
    %67 = vector.extract_strided_slice %54 {offsets = [0, 32], sizes = [16, 16], strides = [1, 1]} : vector<16x64xf32> to vector<16x16xf32>
    %68 = vector.extract_strided_slice %54 {offsets = [0, 48], sizes = [16, 16], strides = [1, 1]} : vector<16x64xf32> to vector<16x16xf32>
    %69 = arith.mulf %60, %68 : vector<16x16xf32>
    %70 = arith.addf %67, %69 : vector<16x16xf32>
    %71 = math.tanh %70 : vector<16x16xf32>
    %cst_56 = arith.constant 1.000000e+00 : f32
    %72 = vector.broadcast %cst_56 : f32 to vector<16x16xf32>
    %73 = arith.subf %72, %66 : vector<16x16xf32>
    %74 = arith.mulf %73, %71 : vector<16x16xf32>
    %75 = arith.mulf %66, %19 : vector<16x16xf32>
    %76 = arith.addf %74, %75 : vector<16x16xf32>
    %cst_57 = arith.constant dense<0.000000e+00> : vector<32x16xf32>
    %77 = tpu.matmul %8, %76, %cst_57 {dimension_numbers = #tpu.dot_dimension_numbers<[1], [0], [0], [1], [0, 0, 1, 1], [], []>} : vector<32x16xf32>, vector<16x16xf32>, vector<32x16xf32> -> vector<32x16xf32>
    %cst_58 = arith.constant dense<0.000000e+00> : vector<32x256xf32>
    %78 = tpu.matmul %77, %1, %cst_58 {dimension_numbers = #tpu.dot_dimension_numbers<[1], [0], [0], [1], [0, 0, 1, 1], [], []>} : vector<32x16xf32>, vector<16x256xf32>, vector<32x256xf32> -> vector<32x256xf32>
    %79 = arith.mulf %78, %35 : vector<32x256xf32>
    %cst_59 = arith.constant dense<0.000000e+00> : vector<32x16xf32>
    %80 = tpu.matmul %79, %2, %cst_59 {dimension_numbers = #tpu.dot_dimension_numbers<[1], [0], [0], [1], [0, 0, 1, 1], [], []>} : vector<32x256xf32>, vector<256x16xf32>, vector<32x16xf32> -> vector<32x16xf32>
    %cst_60 = arith.constant dense<0.000000e+00> : vector<16x16xf32>
    %81 = tpu.matmul %10, %80, %cst_60 {dimension_numbers = #tpu.dot_dimension_numbers<[1], [0], [0], [1], [0, 0, 1, 1], [], []>} : vector<16x32xf32>, vector<32x16xf32>, vector<16x16xf32> -> vector<16x16xf32>
    %82 = vector.broadcast %41 : vector<1x16xf32> to vector<16x16xf32>
    %83 = arith.addf %81, %82 : vector<16x16xf32>
    %cst_61 = arith.constant 0.000000e+00 : f32
    %84 = vector.broadcast %cst_61 : f32 to vector<16x16xf32>
    %85 = arith.maximumf %83, %84 : vector<16x16xf32>
    %86 = tpu.concatenate %85, %76 in 1 : vector<16x16xf32>, vector<16x16xf32> -> vector<16x32xf32>
    %cst_62 = arith.constant dense<0.000000e+00> : vector<16x64xf32>
    %87 = tpu.matmul %86, %37, %cst_62 {dimension_numbers = #tpu.dot_dimension_numbers<[1], [0], [0], [1], [0, 0, 1, 1], [], []>} : vector<16x32xf32>, vector<32x64xf32>, vector<16x64xf32> -> vector<16x64xf32>
    %88 = vector.broadcast %39 : vector<1x64xf32> to vector<16x64xf32>
    %89 = arith.addf %87, %88 : vector<16x64xf32>
    %90 = vector.extract_strided_slice %89 {offsets = [0, 0], sizes = [16, 16], strides = [1, 1]} : vector<16x64xf32> to vector<16x16xf32>
    %91 = arith.negf %90 : vector<16x16xf32>
    %92 = math.exp %91 : vector<16x16xf32>
    %cst_63 = arith.constant 1.000000e+00 : f32
    %93 = vector.broadcast %cst_63 : f32 to vector<16x16xf32>
    %94 = arith.addf %93, %92 : vector<16x16xf32>
    %95 = arith.divf %93, %94 : vector<16x16xf32>
    %96 = vector.extract_strided_slice %89 {offsets = [0, 16], sizes = [16, 16], strides = [1, 1]} : vector<16x64xf32> to vector<16x16xf32>
    %97 = arith.negf %96 : vector<16x16xf32>
    %98 = math.exp %97 : vector<16x16xf32>
    %cst_64 = arith.constant 1.000000e+00 : f32
    %99 = vector.broadcast %cst_64 : f32 to vector<16x16xf32>
    %100 = arith.addf %99, %98 : vector<16x16xf32>
    %101 = arith.divf %99, %100 : vector<16x16xf32>
    %102 = vector.extract_strided_slice %89 {offsets = [0, 32], sizes = [16, 16], strides = [1, 1]} : vector<16x64xf32> to vector<16x16xf32>
    %103 = vector.extract_strided_slice %89 {offsets = [0, 48], sizes = [16, 16], strides = [1, 1]} : vector<16x64xf32> to vector<16x16xf32>
    %104 = arith.mulf %95, %103 : vector<16x16xf32>
    %105 = arith.addf %102, %104 : vector<16x16xf32>
    %106 = math.tanh %105 : vector<16x16xf32>
    %cst_65 = arith.constant 1.000000e+00 : f32
    %107 = vector.broadcast %cst_65 : f32 to vector<16x16xf32>
    %108 = arith.subf %107, %101 : vector<16x16xf32>
    %109 = arith.mulf %108, %106 : vector<16x16xf32>
    %110 = arith.mulf %101, %76 : vector<16x16xf32>
    %111 = arith.addf %109, %110 : vector<16x16xf32>
    %cst_66 = arith.constant dense<0.000000e+00> : vector<32x16xf32>
    %112 = tpu.matmul %8, %111, %cst_66 {dimension_numbers = #tpu.dot_dimension_numbers<[1], [0], [0], [1], [0, 0, 1, 1], [], []>} : vector<32x16xf32>, vector<16x16xf32>, vector<32x16xf32> -> vector<32x16xf32>
    %cst_67 = arith.constant dense<0.000000e+00> : vector<32x256xf32>
    %113 = tpu.matmul %112, %1, %cst_67 {dimension_numbers = #tpu.dot_dimension_numbers<[1], [0], [0], [1], [0, 0, 1, 1], [], []>} : vector<32x16xf32>, vector<16x256xf32>, vector<32x256xf32> -> vector<32x256xf32>
    %114 = arith.mulf %113, %35 : vector<32x256xf32>
    %cst_68 = arith.constant dense<0.000000e+00> : vector<32x16xf32>
    %115 = tpu.matmul %114, %2, %cst_68 {dimension_numbers = #tpu.dot_dimension_numbers<[1], [0], [0], [1], [0, 0, 1, 1], [], []>} : vector<32x256xf32>, vector<256x16xf32>, vector<32x16xf32> -> vector<32x16xf32>
    %cst_69 = arith.constant dense<0.000000e+00> : vector<16x16xf32>
    %116 = tpu.matmul %10, %115, %cst_69 {dimension_numbers = #tpu.dot_dimension_numbers<[1], [0], [0], [1], [0, 0, 1, 1], [], []>} : vector<16x32xf32>, vector<32x16xf32>, vector<16x16xf32> -> vector<16x16xf32>
    %117 = vector.broadcast %41 : vector<1x16xf32> to vector<16x16xf32>
    %118 = arith.addf %116, %117 : vector<16x16xf32>
    %cst_70 = arith.constant 0.000000e+00 : f32
    %119 = vector.broadcast %cst_70 : f32 to vector<16x16xf32>
    %120 = arith.maximumf %118, %119 : vector<16x16xf32>
    %121 = tpu.concatenate %120, %111 in 1 : vector<16x16xf32>, vector<16x16xf32> -> vector<16x32xf32>
    %cst_71 = arith.constant dense<0.000000e+00> : vector<16x64xf32>
    %122 = tpu.matmul %121, %37, %cst_71 {dimension_numbers = #tpu.dot_dimension_numbers<[1], [0], [0], [1], [0, 0, 1, 1], [], []>} : vector<16x32xf32>, vector<32x64xf32>, vector<16x64xf32> -> vector<16x64xf32>
    %123 = vector.broadcast %39 : vector<1x64xf32> to vector<16x64xf32>
    %124 = arith.addf %122, %123 : vector<16x64xf32>
    %125 = vector.extract_strided_slice %124 {offsets = [0, 0], sizes = [16, 16], strides = [1, 1]} : vector<16x64xf32> to vector<16x16xf32>
    %126 = arith.negf %125 : vector<16x16xf32>
    %127 = math.exp %126 : vector<16x16xf32>
    %cst_72 = arith.constant 1.000000e+00 : f32
    %128 = vector.broadcast %cst_72 : f32 to vector<16x16xf32>
    %129 = arith.addf %128, %127 : vector<16x16xf32>
    %130 = arith.divf %128, %129 : vector<16x16xf32>
    %131 = vector.extract_strided_slice %124 {offsets = [0, 16], sizes = [16, 16], strides = [1, 1]} : vector<16x64xf32> to vector<16x16xf32>
    %132 = arith.negf %131 : vector<16x16xf32>
    %133 = math.exp %132 : vector<16x16xf32>
    %cst_73 = arith.constant 1.000000e+00 : f32
    %134 = vector.broadcast %cst_73 : f32 to vector<16x16xf32>
    %135 = arith.addf %134, %133 : vector<16x16xf32>
    %136 = arith.divf %134, %135 : vector<16x16xf32>
    %137 = vector.extract_strided_slice %124 {offsets = [0, 32], sizes = [16, 16], strides = [1, 1]} : vector<16x64xf32> to vector<16x16xf32>
    %138 = vector.extract_strided_slice %124 {offsets = [0, 48], sizes = [16, 16], strides = [1, 1]} : vector<16x64xf32> to vector<16x16xf32>
    %139 = arith.mulf %130, %138 : vector<16x16xf32>
    %140 = arith.addf %137, %139 : vector<16x16xf32>
    %141 = math.tanh %140 : vector<16x16xf32>
    %cst_74 = arith.constant 1.000000e+00 : f32
    %142 = vector.broadcast %cst_74 : f32 to vector<16x16xf32>
    %143 = arith.subf %142, %136 : vector<16x16xf32>
    %144 = arith.mulf %143, %141 : vector<16x16xf32>
    %145 = arith.mulf %136, %111 : vector<16x16xf32>
    %146 = arith.addf %144, %145 : vector<16x16xf32>
    %c0_75 = arith.constant 0 : index
    %c0_76 = arith.constant 0 : index
    %c0_77 = arith.constant 0 : index
    %147 = vector.load %arg19[%c0_75, %c0_76, %c0_77] : memref<2x16x6xf32, #tpu.memory_space<vmem>>, vector<1x16x6xf32>
    %148 = vector.shape_cast %147 : vector<1x16x6xf32> to vector<16x6xf32>
    %c0_78 = arith.constant 0 : index
    %c0_79 = arith.constant 0 : index
    %c0_80 = arith.constant 0 : index
    %149 = vector.load %arg20[%c0_78, %c0_79, %c0_80] : memref<2x1x6xf32, #tpu.memory_space<vmem>>, vector<1x1x6xf32>
    %150 = vector.shape_cast %149 : vector<1x1x6xf32> to vector<1x6xf32>
    %cst_81 = arith.constant dense<0.000000e+00> : vector<2x16xf32>
    %151 = tpu.matmul %0, %146, %cst_81 {dimension_numbers = #tpu.dot_dimension_numbers<[1], [0], [0], [1], [0, 0, 1, 1], [], []>} : vector<2x16xf32>, vector<16x16xf32>, vector<2x16xf32> -> vector<2x16xf32>
    %c0_82 = arith.constant 0 : index
    %c0_83 = arith.constant 0 : index
    %c0_84 = arith.constant 0 : index
    %152 = vector.load %arg16[%c0_82, %c0_83, %c0_84] : memref<2x16x96xf32, #tpu.memory_space<vmem>>, vector<1x16x96xf32>
    %153 = vector.shape_cast %152 : vector<1x16x96xf32> to vector<16x96xf32>
    %cst_85 = arith.constant dense<0.000000e+00> : vector<16x96xf32>
    %154 = tpu.matmul %146, %153, %cst_85 {dimension_numbers = #tpu.dot_dimension_numbers<[1], [0], [0], [1], [0, 0, 1, 1], [], []>} : vector<16x16xf32>, vector<16x96xf32>, vector<16x96xf32> -> vector<16x96xf32>
    %c0_86 = arith.constant 0 : index
    %c0_87 = arith.constant 0 : index
    %c0_88 = arith.constant 0 : index
    %155 = vector.load %arg17[%c0_86, %c0_87, %c0_88] : memref<2x1x96xf32, #tpu.memory_space<vmem>>, vector<1x1x96xf32>
    %156 = vector.shape_cast %155 : vector<1x1x96xf32> to vector<1x96xf32>
    %157 = vector.broadcast %156 : vector<1x96xf32> to vector<16x96xf32>
    %158 = arith.addf %154, %157 : vector<16x96xf32>
    %c0_89 = arith.constant 0 : index
    %c0_90 = arith.constant 0 : index
    %c0_91 = arith.constant 0 : index
    %159 = vector.load %arg18[%c0_89, %c0_90, %c0_91] : memref<2x16x6xf32, #tpu.memory_space<vmem>>, vector<1x16x6xf32>
    %160 = vector.shape_cast %159 : vector<1x16x6xf32> to vector<16x6xf32>
    %cst_92 = arith.constant dense<0.000000e+00> : vector<16x6xf32>
    %161 = tpu.matmul %146, %160, %cst_92 {dimension_numbers = #tpu.dot_dimension_numbers<[1], [0], [0], [1], [0, 0, 1, 1], [], []>} : vector<16x16xf32>, vector<16x6xf32>, vector<16x6xf32> -> vector<16x6xf32>
    %cst_93 = arith.constant 0.000000e+00 : f32
    %162 = vector.broadcast %cst_93 : f32 to vector<2x16xf32>
    %163 = arith.maximumf %151, %162 : vector<2x16xf32>
    %cst_94 = arith.constant dense<0.000000e+00> : vector<2x6xf32>
    %164 = tpu.matmul %163, %148, %cst_94 {dimension_numbers = #tpu.dot_dimension_numbers<[1], [0], [0], [1], [0, 0, 1, 1], [], []>} : vector<2x16xf32>, vector<16x6xf32>, vector<2x6xf32> -> vector<2x6xf32>
    %165 = vector.broadcast %150 : vector<1x6xf32> to vector<2x6xf32>
    %166 = arith.addf %164, %165 : vector<2x6xf32>
    %167 = vector.extract_strided_slice %161 {offsets = [0, 0], sizes = [8, 1], strides = [1, 1]} : vector<16x6xf32> to vector<8x1xf32>
    %168 = vector.extract_strided_slice %166 {offsets = [0, 0], sizes = [1, 1], strides = [1, 1]} : vector<2x6xf32> to vector<1x1xf32>
    %169 = vector.broadcast %168 : vector<1x1xf32> to vector<8x1xf32>
    %170 = arith.addf %167, %169 : vector<8x1xf32>
    %cst_95 = arith.constant 0.000000e+00 : f32
    %171 = vector.broadcast %cst_95 : f32 to vector<8x1xf32>
    %172 = arith.cmpf ogt, %170, %171 : vector<8x1xf32>
    %cst_96 = arith.constant 0.00999999977 : f32
    %173 = vector.broadcast %cst_96 : f32 to vector<8x1xf32>
    %174 = arith.mulf %173, %170 : vector<8x1xf32>
    %175 = arith.select %172, %170, %174 : vector<8x1xi1>, vector<8x1xf32>
    %cst_97 = arith.constant dense<0xFF800000> : vector<1xf32>
    %176 = vector.multi_reduction <maximumf>, %175, %cst_97 [0] : vector<8x1xf32> to vector<1xf32>
    %177 = vector.shape_cast %176 : vector<1xf32> to vector<1x1xf32>
    %178 = vector.broadcast %177 : vector<1x1xf32> to vector<8x1xf32>
    %179 = arith.subf %175, %178 : vector<8x1xf32>
    %180 = math.exp %179 : vector<8x1xf32>
    %cst_98 = arith.constant dense<0.000000e+00> : vector<1xf32>
    %181 = vector.multi_reduction <add>, %180, %cst_98 [0] : vector<8x1xf32> to vector<1xf32>
    %182 = vector.shape_cast %181 : vector<1xf32> to vector<1x1xf32>
    %183 = tpu.reciprocal %182 {approx = true} : vector<1x1xf32> -> vector<1x1xf32>
    %184 = vector.broadcast %183 : vector<1x1xf32> to vector<8x1xf32>
    %185 = arith.mulf %180, %184 : vector<8x1xf32>
    %186 = vector.extract_strided_slice %158 {offsets = [0, 0], sizes = [8, 16], strides = [1, 1]} : vector<16x96xf32> to vector<8x16xf32>
    %187 = vector.broadcast %185 : vector<8x1xf32> to vector<8x16xf32>
    %188 = arith.mulf %187, %186 : vector<8x16xf32>
    %cst_99 = arith.constant dense<0.000000e+00> : vector<16xf32>
    %189 = vector.multi_reduction <add>, %188, %cst_99 [0] : vector<8x16xf32> to vector<16xf32>
    %190 = vector.shape_cast %189 : vector<16xf32> to vector<1x16xf32>
    %191 = vector.extract_strided_slice %161 {offsets = [8, 0], sizes = [8, 1], strides = [1, 1]} : vector<16x6xf32> to vector<8x1xf32>
    %192 = vector.extract_strided_slice %166 {offsets = [1, 0], sizes = [1, 1], strides = [1, 1]} : vector<2x6xf32> to vector<1x1xf32>
    %193 = vector.broadcast %192 : vector<1x1xf32> to vector<8x1xf32>
    %194 = arith.addf %191, %193 : vector<8x1xf32>
    %cst_100 = arith.constant 0.000000e+00 : f32
    %195 = vector.broadcast %cst_100 : f32 to vector<8x1xf32>
    %196 = arith.cmpf ogt, %194, %195 : vector<8x1xf32>
    %cst_101 = arith.constant 0.00999999977 : f32
    %197 = vector.broadcast %cst_101 : f32 to vector<8x1xf32>
    %198 = arith.mulf %197, %194 : vector<8x1xf32>
    %199 = arith.select %196, %194, %198 : vector<8x1xi1>, vector<8x1xf32>
    %cst_102 = arith.constant dense<0xFF800000> : vector<1xf32>
    %200 = vector.multi_reduction <maximumf>, %199, %cst_102 [0] : vector<8x1xf32> to vector<1xf32>
    %201 = vector.shape_cast %200 : vector<1xf32> to vector<1x1xf32>
    %202 = vector.broadcast %201 : vector<1x1xf32> to vector<8x1xf32>
    %203 = arith.subf %199, %202 : vector<8x1xf32>
    %204 = math.exp %203 : vector<8x1xf32>
    %cst_103 = arith.constant dense<0.000000e+00> : vector<1xf32>
    %205 = vector.multi_reduction <add>, %204, %cst_103 [0] : vector<8x1xf32> to vector<1xf32>
    %206 = vector.shape_cast %205 : vector<1xf32> to vector<1x1xf32>
    %207 = tpu.reciprocal %206 {approx = true} : vector<1x1xf32> -> vector<1x1xf32>
    %208 = vector.broadcast %207 : vector<1x1xf32> to vector<8x1xf32>
    %209 = arith.mulf %204, %208 : vector<8x1xf32>
    %210 = vector.extract_strided_slice %158 {offsets = [8, 0], sizes = [8, 16], strides = [1, 1]} : vector<16x96xf32> to vector<8x16xf32>
    %211 = vector.broadcast %209 : vector<8x1xf32> to vector<8x16xf32>
    %212 = arith.mulf %211, %210 : vector<8x16xf32>
    %cst_104 = arith.constant dense<0.000000e+00> : vector<16xf32>
    %213 = vector.multi_reduction <add>, %212, %cst_104 [0] : vector<8x16xf32> to vector<16xf32>
    %214 = vector.shape_cast %213 : vector<16xf32> to vector<1x16xf32>
    %215 = tpu.concatenate %190, %214 in 0 : vector<1x16xf32>, vector<1x16xf32> -> vector<2x16xf32>
    %cst_105 = arith.constant 0.000000e+00 : f32
    %216 = vector.broadcast %cst_105 : f32 to vector<2x16xf32>
    %217 = arith.cmpf ogt, %215, %216 : vector<2x16xf32>
    %cst_106 = arith.constant 0.000000e+00 : f32
    %218 = vector.broadcast %cst_106 : f32 to vector<2x16xf32>
    %219 = arith.minimumf %215, %218 : vector<2x16xf32>
    %220 = math.exp %219 : vector<2x16xf32>
    %cst_107 = arith.constant 1.000000e+00 : f32
    %221 = vector.broadcast %cst_107 : f32 to vector<2x16xf32>
    %222 = arith.subf %220, %221 : vector<2x16xf32>
    %223 = arith.select %217, %215, %222 : vector<2x16xi1>, vector<2x16xf32>
    %c0_108 = arith.constant 0 : index
    %c0_109 = arith.constant 0 : index
    %c0_110 = arith.constant 0 : index
    %c0_111 = arith.constant 0 : index
    %224 = vector.load %arg21[%c0_108, %c0_109, %c0_110, %c0_111] : memref<2x6x32x64xf32, #tpu.memory_space<vmem>>, vector<1x1x32x64xf32>
    %225 = vector.shape_cast %224 : vector<1x1x32x64xf32> to vector<32x64xf32>
    %c0_112 = arith.constant 0 : index
    %c0_113 = arith.constant 0 : index
    %c0_114 = arith.constant 0 : index
    %c0_115 = arith.constant 0 : index
    %226 = vector.load %arg22[%c0_112, %c0_113, %c0_114, %c0_115] : memref<2x6x1x64xf32, #tpu.memory_space<vmem>>, vector<1x1x1x64xf32>
    %227 = vector.shape_cast %226 : vector<1x1x1x64xf32> to vector<1x64xf32>
    %228 = tpu.concatenate %223, %151 in 1 : vector<2x16xf32>, vector<2x16xf32> -> vector<2x32xf32>
    %cst_116 = arith.constant dense<0.000000e+00> : vector<2x64xf32>
    %229 = tpu.matmul %228, %225, %cst_116 {dimension_numbers = #tpu.dot_dimension_numbers<[1], [0], [0], [1], [0, 0, 1, 1], [], []>} : vector<2x32xf32>, vector<32x64xf32>, vector<2x64xf32> -> vector<2x64xf32>
    %230 = vector.broadcast %227 : vector<1x64xf32> to vector<2x64xf32>
    %231 = arith.addf %229, %230 : vector<2x64xf32>
    %232 = vector.extract_strided_slice %231 {offsets = [0, 0], sizes = [2, 16], strides = [1, 1]} : vector<2x64xf32> to vector<2x16xf32>
    %233 = arith.negf %232 : vector<2x16xf32>
    %234 = math.exp %233 : vector<2x16xf32>
    %cst_117 = arith.constant 1.000000e+00 : f32
    %235 = vector.broadcast %cst_117 : f32 to vector<2x16xf32>
    %236 = arith.addf %235, %234 : vector<2x16xf32>
    %237 = arith.divf %235, %236 : vector<2x16xf32>
    %238 = vector.extract_strided_slice %231 {offsets = [0, 16], sizes = [2, 16], strides = [1, 1]} : vector<2x64xf32> to vector<2x16xf32>
    %239 = arith.negf %238 : vector<2x16xf32>
    %240 = math.exp %239 : vector<2x16xf32>
    %cst_118 = arith.constant 1.000000e+00 : f32
    %241 = vector.broadcast %cst_118 : f32 to vector<2x16xf32>
    %242 = arith.addf %241, %240 : vector<2x16xf32>
    %243 = arith.divf %241, %242 : vector<2x16xf32>
    %244 = vector.extract_strided_slice %231 {offsets = [0, 32], sizes = [2, 16], strides = [1, 1]} : vector<2x64xf32> to vector<2x16xf32>
    %245 = vector.extract_strided_slice %231 {offsets = [0, 48], sizes = [2, 16], strides = [1, 1]} : vector<2x64xf32> to vector<2x16xf32>
    %246 = arith.mulf %237, %245 : vector<2x16xf32>
    %247 = arith.addf %244, %246 : vector<2x16xf32>
    %248 = math.tanh %247 : vector<2x16xf32>
    %cst_119 = arith.constant 1.000000e+00 : f32
    %249 = vector.broadcast %cst_119 : f32 to vector<2x16xf32>
    %250 = arith.subf %249, %243 : vector<2x16xf32>
    %251 = arith.mulf %250, %248 : vector<2x16xf32>
    %252 = arith.mulf %243, %151 : vector<2x16xf32>
    %253 = arith.addf %251, %252 : vector<2x16xf32>
    %cst_120 = arith.constant 0.000000e+00 : f32
    %254 = vector.broadcast %cst_120 : f32 to vector<2x16xf32>
    %255 = arith.maximumf %253, %254 : vector<2x16xf32>
    %cst_121 = arith.constant 0.000000e+00 : f32
    %256 = vector.broadcast %cst_121 : f32 to vector<2x16xf32>
    %257 = arith.maximumf %255, %256 : vector<2x16xf32>
    %cst_122 = arith.constant dense<0.000000e+00> : vector<2x6xf32>
    %258 = tpu.matmul %257, %148, %cst_122 {dimension_numbers = #tpu.dot_dimension_numbers<[1], [0], [0], [1], [0, 0, 1, 1], [], []>} : vector<2x16xf32>, vector<16x6xf32>, vector<2x6xf32> -> vector<2x6xf32>
    %259 = vector.broadcast %150 : vector<1x6xf32> to vector<2x6xf32>
    %260 = arith.addf %258, %259 : vector<2x6xf32>
    %261 = vector.extract_strided_slice %161 {offsets = [0, 1], sizes = [8, 1], strides = [1, 1]} : vector<16x6xf32> to vector<8x1xf32>
    %262 = vector.extract_strided_slice %260 {offsets = [0, 1], sizes = [1, 1], strides = [1, 1]} : vector<2x6xf32> to vector<1x1xf32>
    %263 = vector.broadcast %262 : vector<1x1xf32> to vector<8x1xf32>
    %264 = arith.addf %261, %263 : vector<8x1xf32>
    %cst_123 = arith.constant 0.000000e+00 : f32
    %265 = vector.broadcast %cst_123 : f32 to vector<8x1xf32>
    %266 = arith.cmpf ogt, %264, %265 : vector<8x1xf32>
    %cst_124 = arith.constant 0.00999999977 : f32
    %267 = vector.broadcast %cst_124 : f32 to vector<8x1xf32>
    %268 = arith.mulf %267, %264 : vector<8x1xf32>
    %269 = arith.select %266, %264, %268 : vector<8x1xi1>, vector<8x1xf32>
    %cst_125 = arith.constant dense<0xFF800000> : vector<1xf32>
    %270 = vector.multi_reduction <maximumf>, %269, %cst_125 [0] : vector<8x1xf32> to vector<1xf32>
    %271 = vector.shape_cast %270 : vector<1xf32> to vector<1x1xf32>
    %272 = vector.broadcast %271 : vector<1x1xf32> to vector<8x1xf32>
    %273 = arith.subf %269, %272 : vector<8x1xf32>
    %274 = math.exp %273 : vector<8x1xf32>
    %cst_126 = arith.constant dense<0.000000e+00> : vector<1xf32>
    %275 = vector.multi_reduction <add>, %274, %cst_126 [0] : vector<8x1xf32> to vector<1xf32>
    %276 = vector.shape_cast %275 : vector<1xf32> to vector<1x1xf32>
    %277 = tpu.reciprocal %276 {approx = true} : vector<1x1xf32> -> vector<1x1xf32>
    %278 = vector.broadcast %277 : vector<1x1xf32> to vector<8x1xf32>
    %279 = arith.mulf %274, %278 : vector<8x1xf32>
    %280 = vector.extract_strided_slice %158 {offsets = [0, 16], sizes = [8, 16], strides = [1, 1]} : vector<16x96xf32> to vector<8x16xf32>
    %281 = vector.broadcast %279 : vector<8x1xf32> to vector<8x16xf32>
    %282 = arith.mulf %281, %280 : vector<8x16xf32>
    %cst_127 = arith.constant dense<0.000000e+00> : vector<16xf32>
    %283 = vector.multi_reduction <add>, %282, %cst_127 [0] : vector<8x16xf32> to vector<16xf32>
    %284 = vector.shape_cast %283 : vector<16xf32> to vector<1x16xf32>
    %285 = vector.extract_strided_slice %161 {offsets = [8, 1], sizes = [8, 1], strides = [1, 1]} : vector<16x6xf32> to vector<8x1xf32>
    %286 = vector.extract_strided_slice %260 {offsets = [1, 1], sizes = [1, 1], strides = [1, 1]} : vector<2x6xf32> to vector<1x1xf32>
    %287 = vector.broadcast %286 : vector<1x1xf32> to vector<8x1xf32>
    %288 = arith.addf %285, %287 : vector<8x1xf32>
    %cst_128 = arith.constant 0.000000e+00 : f32
    %289 = vector.broadcast %cst_128 : f32 to vector<8x1xf32>
    %290 = arith.cmpf ogt, %288, %289 : vector<8x1xf32>
    %cst_129 = arith.constant 0.00999999977 : f32
    %291 = vector.broadcast %cst_129 : f32 to vector<8x1xf32>
    %292 = arith.mulf %291, %288 : vector<8x1xf32>
    %293 = arith.select %290, %288, %292 : vector<8x1xi1>, vector<8x1xf32>
    %cst_130 = arith.constant dense<0xFF800000> : vector<1xf32>
    %294 = vector.multi_reduction <maximumf>, %293, %cst_130 [0] : vector<8x1xf32> to vector<1xf32>
    %295 = vector.shape_cast %294 : vector<1xf32> to vector<1x1xf32>
    %296 = vector.broadcast %295 : vector<1x1xf32> to vector<8x1xf32>
    %297 = arith.subf %293, %296 : vector<8x1xf32>
    %298 = math.exp %297 : vector<8x1xf32>
    %cst_131 = arith.constant dense<0.000000e+00> : vector<1xf32>
    %299 = vector.multi_reduction <add>, %298, %cst_131 [0] : vector<8x1xf32> to vector<1xf32>
    %300 = vector.shape_cast %299 : vector<1xf32> to vector<1x1xf32>
    %301 = tpu.reciprocal %300 {approx = true} : vector<1x1xf32> -> vector<1x1xf32>
    %302 = vector.broadcast %301 : vector<1x1xf32> to vector<8x1xf32>
    %303 = arith.mulf %298, %302 : vector<8x1xf32>
    %304 = vector.extract_strided_slice %158 {offsets = [8, 16], sizes = [8, 16], strides = [1, 1]} : vector<16x96xf32> to vector<8x16xf32>
    %305 = vector.broadcast %303 : vector<8x1xf32> to vector<8x16xf32>
    %306 = arith.mulf %305, %304 : vector<8x16xf32>
    %cst_132 = arith.constant dense<0.000000e+00> : vector<16xf32>
    %307 = vector.multi_reduction <add>, %306, %cst_132 [0] : vector<8x16xf32> to vector<16xf32>
    %308 = vector.shape_cast %307 : vector<16xf32> to vector<1x16xf32>
    %309 = tpu.concatenate %284, %308 in 0 : vector<1x16xf32>, vector<1x16xf32> -> vector<2x16xf32>
    %cst_133 = arith.constant 0.000000e+00 : f32
    %310 = vector.broadcast %cst_133 : f32 to vector<2x16xf32>
    %311 = arith.cmpf ogt, %309, %310 : vector<2x16xf32>
    %cst_134 = arith.constant 0.000000e+00 : f32
    %312 = vector.broadcast %cst_134 : f32 to vector<2x16xf32>
    %313 = arith.minimumf %309, %312 : vector<2x16xf32>
    %314 = math.exp %313 : vector<2x16xf32>
    %cst_135 = arith.constant 1.000000e+00 : f32
    %315 = vector.broadcast %cst_135 : f32 to vector<2x16xf32>
    %316 = arith.subf %314, %315 : vector<2x16xf32>
    %317 = arith.select %311, %309, %316 : vector<2x16xi1>, vector<2x16xf32>
    %c0_136 = arith.constant 0 : index
    %c1 = arith.constant 1 : index
    %c0_137 = arith.constant 0 : index
    %c0_138 = arith.constant 0 : index
    %318 = vector.load %arg21[%c0_136, %c1, %c0_137, %c0_138] : memref<2x6x32x64xf32, #tpu.memory_space<vmem>>, vector<1x1x32x64xf32>
    %319 = vector.shape_cast %318 : vector<1x1x32x64xf32> to vector<32x64xf32>
    %c0_139 = arith.constant 0 : index
    %c1_140 = arith.constant 1 : index
    %c0_141 = arith.constant 0 : index
    %c0_142 = arith.constant 0 : index
    %320 = vector.load %arg22[%c0_139, %c1_140, %c0_141, %c0_142] : memref<2x6x1x64xf32, #tpu.memory_space<vmem>>, vector<1x1x1x64xf32>
    %321 = vector.shape_cast %320 : vector<1x1x1x64xf32> to vector<1x64xf32>
    %322 = tpu.concatenate %317, %255 in 1 : vector<2x16xf32>, vector<2x16xf32> -> vector<2x32xf32>
    %cst_143 = arith.constant dense<0.000000e+00> : vector<2x64xf32>
    %323 = tpu.matmul %322, %319, %cst_143 {dimension_numbers = #tpu.dot_dimension_numbers<[1], [0], [0], [1], [0, 0, 1, 1], [], []>} : vector<2x32xf32>, vector<32x64xf32>, vector<2x64xf32> -> vector<2x64xf32>
    %324 = vector.broadcast %321 : vector<1x64xf32> to vector<2x64xf32>
    %325 = arith.addf %323, %324 : vector<2x64xf32>
    %326 = vector.extract_strided_slice %325 {offsets = [0, 0], sizes = [2, 16], strides = [1, 1]} : vector<2x64xf32> to vector<2x16xf32>
    %327 = arith.negf %326 : vector<2x16xf32>
    %328 = math.exp %327 : vector<2x16xf32>
    %cst_144 = arith.constant 1.000000e+00 : f32
    %329 = vector.broadcast %cst_144 : f32 to vector<2x16xf32>
    %330 = arith.addf %329, %328 : vector<2x16xf32>
    %331 = arith.divf %329, %330 : vector<2x16xf32>
    %332 = vector.extract_strided_slice %325 {offsets = [0, 16], sizes = [2, 16], strides = [1, 1]} : vector<2x64xf32> to vector<2x16xf32>
    %333 = arith.negf %332 : vector<2x16xf32>
    %334 = math.exp %333 : vector<2x16xf32>
    %cst_145 = arith.constant 1.000000e+00 : f32
    %335 = vector.broadcast %cst_145 : f32 to vector<2x16xf32>
    %336 = arith.addf %335, %334 : vector<2x16xf32>
    %337 = arith.divf %335, %336 : vector<2x16xf32>
    %338 = vector.extract_strided_slice %325 {offsets = [0, 32], sizes = [2, 16], strides = [1, 1]} : vector<2x64xf32> to vector<2x16xf32>
    %339 = vector.extract_strided_slice %325 {offsets = [0, 48], sizes = [2, 16], strides = [1, 1]} : vector<2x64xf32> to vector<2x16xf32>
    %340 = arith.mulf %331, %339 : vector<2x16xf32>
    %341 = arith.addf %338, %340 : vector<2x16xf32>
    %342 = math.tanh %341 : vector<2x16xf32>
    %cst_146 = arith.constant 1.000000e+00 : f32
    %343 = vector.broadcast %cst_146 : f32 to vector<2x16xf32>
    %344 = arith.subf %343, %337 : vector<2x16xf32>
    %345 = arith.mulf %344, %342 : vector<2x16xf32>
    %346 = arith.mulf %337, %255 : vector<2x16xf32>
    %347 = arith.addf %345, %346 : vector<2x16xf32>
    %cst_147 = arith.constant 0.000000e+00 : f32
    %348 = vector.broadcast %cst_147 : f32 to vector<2x16xf32>
    %349 = arith.maximumf %347, %348 : vector<2x16xf32>
    %cst_148 = arith.constant 0.000000e+00 : f32
    %350 = vector.broadcast %cst_148 : f32 to vector<2x16xf32>
    %351 = arith.maximumf %349, %350 : vector<2x16xf32>
    %cst_149 = arith.constant dense<0.000000e+00> : vector<2x6xf32>
    %352 = tpu.matmul %351, %148, %cst_149 {dimension_numbers = #tpu.dot_dimension_numbers<[1], [0], [0], [1], [0, 0, 1, 1], [], []>} : vector<2x16xf32>, vector<16x6xf32>, vector<2x6xf32> -> vector<2x6xf32>
    %353 = vector.broadcast %150 : vector<1x6xf32> to vector<2x6xf32>
    %354 = arith.addf %352, %353 : vector<2x6xf32>
    %355 = vector.extract_strided_slice %161 {offsets = [0, 2], sizes = [8, 1], strides = [1, 1]} : vector<16x6xf32> to vector<8x1xf32>
    %356 = vector.extract_strided_slice %354 {offsets = [0, 2], sizes = [1, 1], strides = [1, 1]} : vector<2x6xf32> to vector<1x1xf32>
    %357 = vector.broadcast %356 : vector<1x1xf32> to vector<8x1xf32>
    %358 = arith.addf %355, %357 : vector<8x1xf32>
    %cst_150 = arith.constant 0.000000e+00 : f32
    %359 = vector.broadcast %cst_150 : f32 to vector<8x1xf32>
    %360 = arith.cmpf ogt, %358, %359 : vector<8x1xf32>
    %cst_151 = arith.constant 0.00999999977 : f32
    %361 = vector.broadcast %cst_151 : f32 to vector<8x1xf32>
    %362 = arith.mulf %361, %358 : vector<8x1xf32>
    %363 = arith.select %360, %358, %362 : vector<8x1xi1>, vector<8x1xf32>
    %cst_152 = arith.constant dense<0xFF800000> : vector<1xf32>
    %364 = vector.multi_reduction <maximumf>, %363, %cst_152 [0] : vector<8x1xf32> to vector<1xf32>
    %365 = vector.shape_cast %364 : vector<1xf32> to vector<1x1xf32>
    %366 = vector.broadcast %365 : vector<1x1xf32> to vector<8x1xf32>
    %367 = arith.subf %363, %366 : vector<8x1xf32>
    %368 = math.exp %367 : vector<8x1xf32>
    %cst_153 = arith.constant dense<0.000000e+00> : vector<1xf32>
    %369 = vector.multi_reduction <add>, %368, %cst_153 [0] : vector<8x1xf32> to vector<1xf32>
    %370 = vector.shape_cast %369 : vector<1xf32> to vector<1x1xf32>
    %371 = tpu.reciprocal %370 {approx = true} : vector<1x1xf32> -> vector<1x1xf32>
    %372 = vector.broadcast %371 : vector<1x1xf32> to vector<8x1xf32>
    %373 = arith.mulf %368, %372 : vector<8x1xf32>
    %374 = vector.extract_strided_slice %158 {offsets = [0, 32], sizes = [8, 16], strides = [1, 1]} : vector<16x96xf32> to vector<8x16xf32>
    %375 = vector.broadcast %373 : vector<8x1xf32> to vector<8x16xf32>
    %376 = arith.mulf %375, %374 : vector<8x16xf32>
    %cst_154 = arith.constant dense<0.000000e+00> : vector<16xf32>
    %377 = vector.multi_reduction <add>, %376, %cst_154 [0] : vector<8x16xf32> to vector<16xf32>
    %378 = vector.shape_cast %377 : vector<16xf32> to vector<1x16xf32>
    %379 = vector.extract_strided_slice %161 {offsets = [8, 2], sizes = [8, 1], strides = [1, 1]} : vector<16x6xf32> to vector<8x1xf32>
    %380 = vector.extract_strided_slice %354 {offsets = [1, 2], sizes = [1, 1], strides = [1, 1]} : vector<2x6xf32> to vector<1x1xf32>
    %381 = vector.broadcast %380 : vector<1x1xf32> to vector<8x1xf32>
    %382 = arith.addf %379, %381 : vector<8x1xf32>
    %cst_155 = arith.constant 0.000000e+00 : f32
    %383 = vector.broadcast %cst_155 : f32 to vector<8x1xf32>
    %384 = arith.cmpf ogt, %382, %383 : vector<8x1xf32>
    %cst_156 = arith.constant 0.00999999977 : f32
    %385 = vector.broadcast %cst_156 : f32 to vector<8x1xf32>
    %386 = arith.mulf %385, %382 : vector<8x1xf32>
    %387 = arith.select %384, %382, %386 : vector<8x1xi1>, vector<8x1xf32>
    %cst_157 = arith.constant dense<0xFF800000> : vector<1xf32>
    %388 = vector.multi_reduction <maximumf>, %387, %cst_157 [0] : vector<8x1xf32> to vector<1xf32>
    %389 = vector.shape_cast %388 : vector<1xf32> to vector<1x1xf32>
    %390 = vector.broadcast %389 : vector<1x1xf32> to vector<8x1xf32>
    %391 = arith.subf %387, %390 : vector<8x1xf32>
    %392 = math.exp %391 : vector<8x1xf32>
    %cst_158 = arith.constant dense<0.000000e+00> : vector<1xf32>
    %393 = vector.multi_reduction <add>, %392, %cst_158 [0] : vector<8x1xf32> to vector<1xf32>
    %394 = vector.shape_cast %393 : vector<1xf32> to vector<1x1xf32>
    %395 = tpu.reciprocal %394 {approx = true} : vector<1x1xf32> -> vector<1x1xf32>
    %396 = vector.broadcast %395 : vector<1x1xf32> to vector<8x1xf32>
    %397 = arith.mulf %392, %396 : vector<8x1xf32>
    %398 = vector.extract_strided_slice %158 {offsets = [8, 32], sizes = [8, 16], strides = [1, 1]} : vector<16x96xf32> to vector<8x16xf32>
    %399 = vector.broadcast %397 : vector<8x1xf32> to vector<8x16xf32>
    %400 = arith.mulf %399, %398 : vector<8x16xf32>
    %cst_159 = arith.constant dense<0.000000e+00> : vector<16xf32>
    %401 = vector.multi_reduction <add>, %400, %cst_159 [0] : vector<8x16xf32> to vector<16xf32>
    %402 = vector.shape_cast %401 : vector<16xf32> to vector<1x16xf32>
    %403 = tpu.concatenate %378, %402 in 0 : vector<1x16xf32>, vector<1x16xf32> -> vector<2x16xf32>
    %cst_160 = arith.constant 0.000000e+00 : f32
    %404 = vector.broadcast %cst_160 : f32 to vector<2x16xf32>
    %405 = arith.cmpf ogt, %403, %404 : vector<2x16xf32>
    %cst_161 = arith.constant 0.000000e+00 : f32
    %406 = vector.broadcast %cst_161 : f32 to vector<2x16xf32>
    %407 = arith.minimumf %403, %406 : vector<2x16xf32>
    %408 = math.exp %407 : vector<2x16xf32>
    %cst_162 = arith.constant 1.000000e+00 : f32
    %409 = vector.broadcast %cst_162 : f32 to vector<2x16xf32>
    %410 = arith.subf %408, %409 : vector<2x16xf32>
    %411 = arith.select %405, %403, %410 : vector<2x16xi1>, vector<2x16xf32>
    %c0_163 = arith.constant 0 : index
    %c2 = arith.constant 2 : index
    %c0_164 = arith.constant 0 : index
    %c0_165 = arith.constant 0 : index
    %412 = vector.load %arg21[%c0_163, %c2, %c0_164, %c0_165] : memref<2x6x32x64xf32, #tpu.memory_space<vmem>>, vector<1x1x32x64xf32>
    %413 = vector.shape_cast %412 : vector<1x1x32x64xf32> to vector<32x64xf32>
    %c0_166 = arith.constant 0 : index
    %c2_167 = arith.constant 2 : index
    %c0_168 = arith.constant 0 : index
    %c0_169 = arith.constant 0 : index
    %414 = vector.load %arg22[%c0_166, %c2_167, %c0_168, %c0_169] : memref<2x6x1x64xf32, #tpu.memory_space<vmem>>, vector<1x1x1x64xf32>
    %415 = vector.shape_cast %414 : vector<1x1x1x64xf32> to vector<1x64xf32>
    %416 = tpu.concatenate %411, %349 in 1 : vector<2x16xf32>, vector<2x16xf32> -> vector<2x32xf32>
    %cst_170 = arith.constant dense<0.000000e+00> : vector<2x64xf32>
    %417 = tpu.matmul %416, %413, %cst_170 {dimension_numbers = #tpu.dot_dimension_numbers<[1], [0], [0], [1], [0, 0, 1, 1], [], []>} : vector<2x32xf32>, vector<32x64xf32>, vector<2x64xf32> -> vector<2x64xf32>
    %418 = vector.broadcast %415 : vector<1x64xf32> to vector<2x64xf32>
    %419 = arith.addf %417, %418 : vector<2x64xf32>
    %420 = vector.extract_strided_slice %419 {offsets = [0, 0], sizes = [2, 16], strides = [1, 1]} : vector<2x64xf32> to vector<2x16xf32>
    %421 = arith.negf %420 : vector<2x16xf32>
    %422 = math.exp %421 : vector<2x16xf32>
    %cst_171 = arith.constant 1.000000e+00 : f32
    %423 = vector.broadcast %cst_171 : f32 to vector<2x16xf32>
    %424 = arith.addf %423, %422 : vector<2x16xf32>
    %425 = arith.divf %423, %424 : vector<2x16xf32>
    %426 = vector.extract_strided_slice %419 {offsets = [0, 16], sizes = [2, 16], strides = [1, 1]} : vector<2x64xf32> to vector<2x16xf32>
    %427 = arith.negf %426 : vector<2x16xf32>
    %428 = math.exp %427 : vector<2x16xf32>
    %cst_172 = arith.constant 1.000000e+00 : f32
    %429 = vector.broadcast %cst_172 : f32 to vector<2x16xf32>
    %430 = arith.addf %429, %428 : vector<2x16xf32>
    %431 = arith.divf %429, %430 : vector<2x16xf32>
    %432 = vector.extract_strided_slice %419 {offsets = [0, 32], sizes = [2, 16], strides = [1, 1]} : vector<2x64xf32> to vector<2x16xf32>
    %433 = vector.extract_strided_slice %419 {offsets = [0, 48], sizes = [2, 16], strides = [1, 1]} : vector<2x64xf32> to vector<2x16xf32>
    %434 = arith.mulf %425, %433 : vector<2x16xf32>
    %435 = arith.addf %432, %434 : vector<2x16xf32>
    %436 = math.tanh %435 : vector<2x16xf32>
    %cst_173 = arith.constant 1.000000e+00 : f32
    %437 = vector.broadcast %cst_173 : f32 to vector<2x16xf32>
    %438 = arith.subf %437, %431 : vector<2x16xf32>
    %439 = arith.mulf %438, %436 : vector<2x16xf32>
    %440 = arith.mulf %431, %349 : vector<2x16xf32>
    %441 = arith.addf %439, %440 : vector<2x16xf32>
    %cst_174 = arith.constant 0.000000e+00 : f32
    %442 = vector.broadcast %cst_174 : f32 to vector<2x16xf32>
    %443 = arith.maximumf %441, %442 : vector<2x16xf32>
    %cst_175 = arith.constant 0.000000e+00 : f32
    %444 = vector.broadcast %cst_175 : f32 to vector<2x16xf32>
    %445 = arith.maximumf %443, %444 : vector<2x16xf32>
    %cst_176 = arith.constant dense<0.000000e+00> : vector<2x6xf32>
    %446 = tpu.matmul %445, %148, %cst_176 {dimension_numbers = #tpu.dot_dimension_numbers<[1], [0], [0], [1], [0, 0, 1, 1], [], []>} : vector<2x16xf32>, vector<16x6xf32>, vector<2x6xf32> -> vector<2x6xf32>
    %447 = vector.broadcast %150 : vector<1x6xf32> to vector<2x6xf32>
    %448 = arith.addf %446, %447 : vector<2x6xf32>
    %449 = vector.extract_strided_slice %161 {offsets = [0, 3], sizes = [8, 1], strides = [1, 1]} : vector<16x6xf32> to vector<8x1xf32>
    %450 = vector.extract_strided_slice %448 {offsets = [0, 3], sizes = [1, 1], strides = [1, 1]} : vector<2x6xf32> to vector<1x1xf32>
    %451 = vector.broadcast %450 : vector<1x1xf32> to vector<8x1xf32>
    %452 = arith.addf %449, %451 : vector<8x1xf32>
    %cst_177 = arith.constant 0.000000e+00 : f32
    %453 = vector.broadcast %cst_177 : f32 to vector<8x1xf32>
    %454 = arith.cmpf ogt, %452, %453 : vector<8x1xf32>
    %cst_178 = arith.constant 0.00999999977 : f32
    %455 = vector.broadcast %cst_178 : f32 to vector<8x1xf32>
    %456 = arith.mulf %455, %452 : vector<8x1xf32>
    %457 = arith.select %454, %452, %456 : vector<8x1xi1>, vector<8x1xf32>
    %cst_179 = arith.constant dense<0xFF800000> : vector<1xf32>
    %458 = vector.multi_reduction <maximumf>, %457, %cst_179 [0] : vector<8x1xf32> to vector<1xf32>
    %459 = vector.shape_cast %458 : vector<1xf32> to vector<1x1xf32>
    %460 = vector.broadcast %459 : vector<1x1xf32> to vector<8x1xf32>
    %461 = arith.subf %457, %460 : vector<8x1xf32>
    %462 = math.exp %461 : vector<8x1xf32>
    %cst_180 = arith.constant dense<0.000000e+00> : vector<1xf32>
    %463 = vector.multi_reduction <add>, %462, %cst_180 [0] : vector<8x1xf32> to vector<1xf32>
    %464 = vector.shape_cast %463 : vector<1xf32> to vector<1x1xf32>
    %465 = tpu.reciprocal %464 {approx = true} : vector<1x1xf32> -> vector<1x1xf32>
    %466 = vector.broadcast %465 : vector<1x1xf32> to vector<8x1xf32>
    %467 = arith.mulf %462, %466 : vector<8x1xf32>
    %468 = vector.extract_strided_slice %158 {offsets = [0, 48], sizes = [8, 16], strides = [1, 1]} : vector<16x96xf32> to vector<8x16xf32>
    %469 = vector.broadcast %467 : vector<8x1xf32> to vector<8x16xf32>
    %470 = arith.mulf %469, %468 : vector<8x16xf32>
    %cst_181 = arith.constant dense<0.000000e+00> : vector<16xf32>
    %471 = vector.multi_reduction <add>, %470, %cst_181 [0] : vector<8x16xf32> to vector<16xf32>
    %472 = vector.shape_cast %471 : vector<16xf32> to vector<1x16xf32>
    %473 = vector.extract_strided_slice %161 {offsets = [8, 3], sizes = [8, 1], strides = [1, 1]} : vector<16x6xf32> to vector<8x1xf32>
    %474 = vector.extract_strided_slice %448 {offsets = [1, 3], sizes = [1, 1], strides = [1, 1]} : vector<2x6xf32> to vector<1x1xf32>
    %475 = vector.broadcast %474 : vector<1x1xf32> to vector<8x1xf32>
    %476 = arith.addf %473, %475 : vector<8x1xf32>
    %cst_182 = arith.constant 0.000000e+00 : f32
    %477 = vector.broadcast %cst_182 : f32 to vector<8x1xf32>
    %478 = arith.cmpf ogt, %476, %477 : vector<8x1xf32>
    %cst_183 = arith.constant 0.00999999977 : f32
    %479 = vector.broadcast %cst_183 : f32 to vector<8x1xf32>
    %480 = arith.mulf %479, %476 : vector<8x1xf32>
    %481 = arith.select %478, %476, %480 : vector<8x1xi1>, vector<8x1xf32>
    %cst_184 = arith.constant dense<0xFF800000> : vector<1xf32>
    %482 = vector.multi_reduction <maximumf>, %481, %cst_184 [0] : vector<8x1xf32> to vector<1xf32>
    %483 = vector.shape_cast %482 : vector<1xf32> to vector<1x1xf32>
    %484 = vector.broadcast %483 : vector<1x1xf32> to vector<8x1xf32>
    %485 = arith.subf %481, %484 : vector<8x1xf32>
    %486 = math.exp %485 : vector<8x1xf32>
    %cst_185 = arith.constant dense<0.000000e+00> : vector<1xf32>
    %487 = vector.multi_reduction <add>, %486, %cst_185 [0] : vector<8x1xf32> to vector<1xf32>
    %488 = vector.shape_cast %487 : vector<1xf32> to vector<1x1xf32>
    %489 = tpu.reciprocal %488 {approx = true} : vector<1x1xf32> -> vector<1x1xf32>
    %490 = vector.broadcast %489 : vector<1x1xf32> to vector<8x1xf32>
    %491 = arith.mulf %486, %490 : vector<8x1xf32>
    %492 = vector.extract_strided_slice %158 {offsets = [8, 48], sizes = [8, 16], strides = [1, 1]} : vector<16x96xf32> to vector<8x16xf32>
    %493 = vector.broadcast %491 : vector<8x1xf32> to vector<8x16xf32>
    %494 = arith.mulf %493, %492 : vector<8x16xf32>
    %cst_186 = arith.constant dense<0.000000e+00> : vector<16xf32>
    %495 = vector.multi_reduction <add>, %494, %cst_186 [0] : vector<8x16xf32> to vector<16xf32>
    %496 = vector.shape_cast %495 : vector<16xf32> to vector<1x16xf32>
    %497 = tpu.concatenate %472, %496 in 0 : vector<1x16xf32>, vector<1x16xf32> -> vector<2x16xf32>
    %cst_187 = arith.constant 0.000000e+00 : f32
    %498 = vector.broadcast %cst_187 : f32 to vector<2x16xf32>
    %499 = arith.cmpf ogt, %497, %498 : vector<2x16xf32>
    %cst_188 = arith.constant 0.000000e+00 : f32
    %500 = vector.broadcast %cst_188 : f32 to vector<2x16xf32>
    %501 = arith.minimumf %497, %500 : vector<2x16xf32>
    %502 = math.exp %501 : vector<2x16xf32>
    %cst_189 = arith.constant 1.000000e+00 : f32
    %503 = vector.broadcast %cst_189 : f32 to vector<2x16xf32>
    %504 = arith.subf %502, %503 : vector<2x16xf32>
    %505 = arith.select %499, %497, %504 : vector<2x16xi1>, vector<2x16xf32>
    %c0_190 = arith.constant 0 : index
    %c3 = arith.constant 3 : index
    %c0_191 = arith.constant 0 : index
    %c0_192 = arith.constant 0 : index
    %506 = vector.load %arg21[%c0_190, %c3, %c0_191, %c0_192] : memref<2x6x32x64xf32, #tpu.memory_space<vmem>>, vector<1x1x32x64xf32>
    %507 = vector.shape_cast %506 : vector<1x1x32x64xf32> to vector<32x64xf32>
    %c0_193 = arith.constant 0 : index
    %c3_194 = arith.constant 3 : index
    %c0_195 = arith.constant 0 : index
    %c0_196 = arith.constant 0 : index
    %508 = vector.load %arg22[%c0_193, %c3_194, %c0_195, %c0_196] : memref<2x6x1x64xf32, #tpu.memory_space<vmem>>, vector<1x1x1x64xf32>
    %509 = vector.shape_cast %508 : vector<1x1x1x64xf32> to vector<1x64xf32>
    %510 = tpu.concatenate %505, %443 in 1 : vector<2x16xf32>, vector<2x16xf32> -> vector<2x32xf32>
    %cst_197 = arith.constant dense<0.000000e+00> : vector<2x64xf32>
    %511 = tpu.matmul %510, %507, %cst_197 {dimension_numbers = #tpu.dot_dimension_numbers<[1], [0], [0], [1], [0, 0, 1, 1], [], []>} : vector<2x32xf32>, vector<32x64xf32>, vector<2x64xf32> -> vector<2x64xf32>
    %512 = vector.broadcast %509 : vector<1x64xf32> to vector<2x64xf32>
    %513 = arith.addf %511, %512 : vector<2x64xf32>
    %514 = vector.extract_strided_slice %513 {offsets = [0, 0], sizes = [2, 16], strides = [1, 1]} : vector<2x64xf32> to vector<2x16xf32>
    %515 = arith.negf %514 : vector<2x16xf32>
    %516 = math.exp %515 : vector<2x16xf32>
    %cst_198 = arith.constant 1.000000e+00 : f32
    %517 = vector.broadcast %cst_198 : f32 to vector<2x16xf32>
    %518 = arith.addf %517, %516 : vector<2x16xf32>
    %519 = arith.divf %517, %518 : vector<2x16xf32>
    %520 = vector.extract_strided_slice %513 {offsets = [0, 16], sizes = [2, 16], strides = [1, 1]} : vector<2x64xf32> to vector<2x16xf32>
    %521 = arith.negf %520 : vector<2x16xf32>
    %522 = math.exp %521 : vector<2x16xf32>
    %cst_199 = arith.constant 1.000000e+00 : f32
    %523 = vector.broadcast %cst_199 : f32 to vector<2x16xf32>
    %524 = arith.addf %523, %522 : vector<2x16xf32>
    %525 = arith.divf %523, %524 : vector<2x16xf32>
    %526 = vector.extract_strided_slice %513 {offsets = [0, 32], sizes = [2, 16], strides = [1, 1]} : vector<2x64xf32> to vector<2x16xf32>
    %527 = vector.extract_strided_slice %513 {offsets = [0, 48], sizes = [2, 16], strides = [1, 1]} : vector<2x64xf32> to vector<2x16xf32>
    %528 = arith.mulf %519, %527 : vector<2x16xf32>
    %529 = arith.addf %526, %528 : vector<2x16xf32>
    %530 = math.tanh %529 : vector<2x16xf32>
    %cst_200 = arith.constant 1.000000e+00 : f32
    %531 = vector.broadcast %cst_200 : f32 to vector<2x16xf32>
    %532 = arith.subf %531, %525 : vector<2x16xf32>
    %533 = arith.mulf %532, %530 : vector<2x16xf32>
    %534 = arith.mulf %525, %443 : vector<2x16xf32>
    %535 = arith.addf %533, %534 : vector<2x16xf32>
    %cst_201 = arith.constant 0.000000e+00 : f32
    %536 = vector.broadcast %cst_201 : f32 to vector<2x16xf32>
    %537 = arith.maximumf %535, %536 : vector<2x16xf32>
    %cst_202 = arith.constant 0.000000e+00 : f32
    %538 = vector.broadcast %cst_202 : f32 to vector<2x16xf32>
    %539 = arith.maximumf %537, %538 : vector<2x16xf32>
    %cst_203 = arith.constant dense<0.000000e+00> : vector<2x6xf32>
    %540 = tpu.matmul %539, %148, %cst_203 {dimension_numbers = #tpu.dot_dimension_numbers<[1], [0], [0], [1], [0, 0, 1, 1], [], []>} : vector<2x16xf32>, vector<16x6xf32>, vector<2x6xf32> -> vector<2x6xf32>
    %541 = vector.broadcast %150 : vector<1x6xf32> to vector<2x6xf32>
    %542 = arith.addf %540, %541 : vector<2x6xf32>
    %543 = vector.extract_strided_slice %161 {offsets = [0, 4], sizes = [8, 1], strides = [1, 1]} : vector<16x6xf32> to vector<8x1xf32>
    %544 = vector.extract_strided_slice %542 {offsets = [0, 4], sizes = [1, 1], strides = [1, 1]} : vector<2x6xf32> to vector<1x1xf32>
    %545 = vector.broadcast %544 : vector<1x1xf32> to vector<8x1xf32>
    %546 = arith.addf %543, %545 : vector<8x1xf32>
    %cst_204 = arith.constant 0.000000e+00 : f32
    %547 = vector.broadcast %cst_204 : f32 to vector<8x1xf32>
    %548 = arith.cmpf ogt, %546, %547 : vector<8x1xf32>
    %cst_205 = arith.constant 0.00999999977 : f32
    %549 = vector.broadcast %cst_205 : f32 to vector<8x1xf32>
    %550 = arith.mulf %549, %546 : vector<8x1xf32>
    %551 = arith.select %548, %546, %550 : vector<8x1xi1>, vector<8x1xf32>
    %cst_206 = arith.constant dense<0xFF800000> : vector<1xf32>
    %552 = vector.multi_reduction <maximumf>, %551, %cst_206 [0] : vector<8x1xf32> to vector<1xf32>
    %553 = vector.shape_cast %552 : vector<1xf32> to vector<1x1xf32>
    %554 = vector.broadcast %553 : vector<1x1xf32> to vector<8x1xf32>
    %555 = arith.subf %551, %554 : vector<8x1xf32>
    %556 = math.exp %555 : vector<8x1xf32>
    %cst_207 = arith.constant dense<0.000000e+00> : vector<1xf32>
    %557 = vector.multi_reduction <add>, %556, %cst_207 [0] : vector<8x1xf32> to vector<1xf32>
    %558 = vector.shape_cast %557 : vector<1xf32> to vector<1x1xf32>
    %559 = tpu.reciprocal %558 {approx = true} : vector<1x1xf32> -> vector<1x1xf32>
    %560 = vector.broadcast %559 : vector<1x1xf32> to vector<8x1xf32>
    %561 = arith.mulf %556, %560 : vector<8x1xf32>
    %562 = vector.extract_strided_slice %158 {offsets = [0, 64], sizes = [8, 16], strides = [1, 1]} : vector<16x96xf32> to vector<8x16xf32>
    %563 = vector.broadcast %561 : vector<8x1xf32> to vector<8x16xf32>
    %564 = arith.mulf %563, %562 : vector<8x16xf32>
    %cst_208 = arith.constant dense<0.000000e+00> : vector<16xf32>
    %565 = vector.multi_reduction <add>, %564, %cst_208 [0] : vector<8x16xf32> to vector<16xf32>
    %566 = vector.shape_cast %565 : vector<16xf32> to vector<1x16xf32>
    %567 = vector.extract_strided_slice %161 {offsets = [8, 4], sizes = [8, 1], strides = [1, 1]} : vector<16x6xf32> to vector<8x1xf32>
    %568 = vector.extract_strided_slice %542 {offsets = [1, 4], sizes = [1, 1], strides = [1, 1]} : vector<2x6xf32> to vector<1x1xf32>
    %569 = vector.broadcast %568 : vector<1x1xf32> to vector<8x1xf32>
    %570 = arith.addf %567, %569 : vector<8x1xf32>
    %cst_209 = arith.constant 0.000000e+00 : f32
    %571 = vector.broadcast %cst_209 : f32 to vector<8x1xf32>
    %572 = arith.cmpf ogt, %570, %571 : vector<8x1xf32>
    %cst_210 = arith.constant 0.00999999977 : f32
    %573 = vector.broadcast %cst_210 : f32 to vector<8x1xf32>
    %574 = arith.mulf %573, %570 : vector<8x1xf32>
    %575 = arith.select %572, %570, %574 : vector<8x1xi1>, vector<8x1xf32>
    %cst_211 = arith.constant dense<0xFF800000> : vector<1xf32>
    %576 = vector.multi_reduction <maximumf>, %575, %cst_211 [0] : vector<8x1xf32> to vector<1xf32>
    %577 = vector.shape_cast %576 : vector<1xf32> to vector<1x1xf32>
    %578 = vector.broadcast %577 : vector<1x1xf32> to vector<8x1xf32>
    %579 = arith.subf %575, %578 : vector<8x1xf32>
    %580 = math.exp %579 : vector<8x1xf32>
    %cst_212 = arith.constant dense<0.000000e+00> : vector<1xf32>
    %581 = vector.multi_reduction <add>, %580, %cst_212 [0] : vector<8x1xf32> to vector<1xf32>
    %582 = vector.shape_cast %581 : vector<1xf32> to vector<1x1xf32>
    %583 = tpu.reciprocal %582 {approx = true} : vector<1x1xf32> -> vector<1x1xf32>
    %584 = vector.broadcast %583 : vector<1x1xf32> to vector<8x1xf32>
    %585 = arith.mulf %580, %584 : vector<8x1xf32>
    %586 = vector.extract_strided_slice %158 {offsets = [8, 64], sizes = [8, 16], strides = [1, 1]} : vector<16x96xf32> to vector<8x16xf32>
    %587 = vector.broadcast %585 : vector<8x1xf32> to vector<8x16xf32>
    %588 = arith.mulf %587, %586 : vector<8x16xf32>
    %cst_213 = arith.constant dense<0.000000e+00> : vector<16xf32>
    %589 = vector.multi_reduction <add>, %588, %cst_213 [0] : vector<8x16xf32> to vector<16xf32>
    %590 = vector.shape_cast %589 : vector<16xf32> to vector<1x16xf32>
    %591 = tpu.concatenate %566, %590 in 0 : vector<1x16xf32>, vector<1x16xf32> -> vector<2x16xf32>
    %cst_214 = arith.constant 0.000000e+00 : f32
    %592 = vector.broadcast %cst_214 : f32 to vector<2x16xf32>
    %593 = arith.cmpf ogt, %591, %592 : vector<2x16xf32>
    %cst_215 = arith.constant 0.000000e+00 : f32
    %594 = vector.broadcast %cst_215 : f32 to vector<2x16xf32>
    %595 = arith.minimumf %591, %594 : vector<2x16xf32>
    %596 = math.exp %595 : vector<2x16xf32>
    %cst_216 = arith.constant 1.000000e+00 : f32
    %597 = vector.broadcast %cst_216 : f32 to vector<2x16xf32>
    %598 = arith.subf %596, %597 : vector<2x16xf32>
    %599 = arith.select %593, %591, %598 : vector<2x16xi1>, vector<2x16xf32>
    %c0_217 = arith.constant 0 : index
    %c4 = arith.constant 4 : index
    %c0_218 = arith.constant 0 : index
    %c0_219 = arith.constant 0 : index
    %600 = vector.load %arg21[%c0_217, %c4, %c0_218, %c0_219] : memref<2x6x32x64xf32, #tpu.memory_space<vmem>>, vector<1x1x32x64xf32>
    %601 = vector.shape_cast %600 : vector<1x1x32x64xf32> to vector<32x64xf32>
    %c0_220 = arith.constant 0 : index
    %c4_221 = arith.constant 4 : index
    %c0_222 = arith.constant 0 : index
    %c0_223 = arith.constant 0 : index
    %602 = vector.load %arg22[%c0_220, %c4_221, %c0_222, %c0_223] : memref<2x6x1x64xf32, #tpu.memory_space<vmem>>, vector<1x1x1x64xf32>
    %603 = vector.shape_cast %602 : vector<1x1x1x64xf32> to vector<1x64xf32>
    %604 = tpu.concatenate %599, %537 in 1 : vector<2x16xf32>, vector<2x16xf32> -> vector<2x32xf32>
    %cst_224 = arith.constant dense<0.000000e+00> : vector<2x64xf32>
    %605 = tpu.matmul %604, %601, %cst_224 {dimension_numbers = #tpu.dot_dimension_numbers<[1], [0], [0], [1], [0, 0, 1, 1], [], []>} : vector<2x32xf32>, vector<32x64xf32>, vector<2x64xf32> -> vector<2x64xf32>
    %606 = vector.broadcast %603 : vector<1x64xf32> to vector<2x64xf32>
    %607 = arith.addf %605, %606 : vector<2x64xf32>
    %608 = vector.extract_strided_slice %607 {offsets = [0, 0], sizes = [2, 16], strides = [1, 1]} : vector<2x64xf32> to vector<2x16xf32>
    %609 = arith.negf %608 : vector<2x16xf32>
    %610 = math.exp %609 : vector<2x16xf32>
    %cst_225 = arith.constant 1.000000e+00 : f32
    %611 = vector.broadcast %cst_225 : f32 to vector<2x16xf32>
    %612 = arith.addf %611, %610 : vector<2x16xf32>
    %613 = arith.divf %611, %612 : vector<2x16xf32>
    %614 = vector.extract_strided_slice %607 {offsets = [0, 16], sizes = [2, 16], strides = [1, 1]} : vector<2x64xf32> to vector<2x16xf32>
    %615 = arith.negf %614 : vector<2x16xf32>
    %616 = math.exp %615 : vector<2x16xf32>
    %cst_226 = arith.constant 1.000000e+00 : f32
    %617 = vector.broadcast %cst_226 : f32 to vector<2x16xf32>
    %618 = arith.addf %617, %616 : vector<2x16xf32>
    %619 = arith.divf %617, %618 : vector<2x16xf32>
    %620 = vector.extract_strided_slice %607 {offsets = [0, 32], sizes = [2, 16], strides = [1, 1]} : vector<2x64xf32> to vector<2x16xf32>
    %621 = vector.extract_strided_slice %607 {offsets = [0, 48], sizes = [2, 16], strides = [1, 1]} : vector<2x64xf32> to vector<2x16xf32>
    %622 = arith.mulf %613, %621 : vector<2x16xf32>
    %623 = arith.addf %620, %622 : vector<2x16xf32>
    %624 = math.tanh %623 : vector<2x16xf32>
    %cst_227 = arith.constant 1.000000e+00 : f32
    %625 = vector.broadcast %cst_227 : f32 to vector<2x16xf32>
    %626 = arith.subf %625, %619 : vector<2x16xf32>
    %627 = arith.mulf %626, %624 : vector<2x16xf32>
    %628 = arith.mulf %619, %537 : vector<2x16xf32>
    %629 = arith.addf %627, %628 : vector<2x16xf32>
    %cst_228 = arith.constant 0.000000e+00 : f32
    %630 = vector.broadcast %cst_228 : f32 to vector<2x16xf32>
    %631 = arith.maximumf %629, %630 : vector<2x16xf32>
    %cst_229 = arith.constant 0.000000e+00 : f32
    %632 = vector.broadcast %cst_229 : f32 to vector<2x16xf32>
    %633 = arith.maximumf %631, %632 : vector<2x16xf32>
    %cst_230 = arith.constant dense<0.000000e+00> : vector<2x6xf32>
    %634 = tpu.matmul %633, %148, %cst_230 {dimension_numbers = #tpu.dot_dimension_numbers<[1], [0], [0], [1], [0, 0, 1, 1], [], []>} : vector<2x16xf32>, vector<16x6xf32>, vector<2x6xf32> -> vector<2x6xf32>
    %635 = vector.broadcast %150 : vector<1x6xf32> to vector<2x6xf32>
    %636 = arith.addf %634, %635 : vector<2x6xf32>
    %637 = vector.extract_strided_slice %161 {offsets = [0, 5], sizes = [8, 1], strides = [1, 1]} : vector<16x6xf32> to vector<8x1xf32>
    %638 = vector.extract_strided_slice %636 {offsets = [0, 5], sizes = [1, 1], strides = [1, 1]} : vector<2x6xf32> to vector<1x1xf32>
    %639 = vector.broadcast %638 : vector<1x1xf32> to vector<8x1xf32>
    %640 = arith.addf %637, %639 : vector<8x1xf32>
    %cst_231 = arith.constant 0.000000e+00 : f32
    %641 = vector.broadcast %cst_231 : f32 to vector<8x1xf32>
    %642 = arith.cmpf ogt, %640, %641 : vector<8x1xf32>
    %cst_232 = arith.constant 0.00999999977 : f32
    %643 = vector.broadcast %cst_232 : f32 to vector<8x1xf32>
    %644 = arith.mulf %643, %640 : vector<8x1xf32>
    %645 = arith.select %642, %640, %644 : vector<8x1xi1>, vector<8x1xf32>
    %cst_233 = arith.constant dense<0xFF800000> : vector<1xf32>
    %646 = vector.multi_reduction <maximumf>, %645, %cst_233 [0] : vector<8x1xf32> to vector<1xf32>
    %647 = vector.shape_cast %646 : vector<1xf32> to vector<1x1xf32>
    %648 = vector.broadcast %647 : vector<1x1xf32> to vector<8x1xf32>
    %649 = arith.subf %645, %648 : vector<8x1xf32>
    %650 = math.exp %649 : vector<8x1xf32>
    %cst_234 = arith.constant dense<0.000000e+00> : vector<1xf32>
    %651 = vector.multi_reduction <add>, %650, %cst_234 [0] : vector<8x1xf32> to vector<1xf32>
    %652 = vector.shape_cast %651 : vector<1xf32> to vector<1x1xf32>
    %653 = tpu.reciprocal %652 {approx = true} : vector<1x1xf32> -> vector<1x1xf32>
    %654 = vector.broadcast %653 : vector<1x1xf32> to vector<8x1xf32>
    %655 = arith.mulf %650, %654 : vector<8x1xf32>
    %656 = vector.extract_strided_slice %158 {offsets = [0, 80], sizes = [8, 16], strides = [1, 1]} : vector<16x96xf32> to vector<8x16xf32>
    %657 = vector.broadcast %655 : vector<8x1xf32> to vector<8x16xf32>
    %658 = arith.mulf %657, %656 : vector<8x16xf32>
    %cst_235 = arith.constant dense<0.000000e+00> : vector<16xf32>
    %659 = vector.multi_reduction <add>, %658, %cst_235 [0] : vector<8x16xf32> to vector<16xf32>
    %660 = vector.shape_cast %659 : vector<16xf32> to vector<1x16xf32>
    %661 = vector.extract_strided_slice %161 {offsets = [8, 5], sizes = [8, 1], strides = [1, 1]} : vector<16x6xf32> to vector<8x1xf32>
    %662 = vector.extract_strided_slice %636 {offsets = [1, 5], sizes = [1, 1], strides = [1, 1]} : vector<2x6xf32> to vector<1x1xf32>
    %663 = vector.broadcast %662 : vector<1x1xf32> to vector<8x1xf32>
    %664 = arith.addf %661, %663 : vector<8x1xf32>
    %cst_236 = arith.constant 0.000000e+00 : f32
    %665 = vector.broadcast %cst_236 : f32 to vector<8x1xf32>
    %666 = arith.cmpf ogt, %664, %665 : vector<8x1xf32>
    %cst_237 = arith.constant 0.00999999977 : f32
    %667 = vector.broadcast %cst_237 : f32 to vector<8x1xf32>
    %668 = arith.mulf %667, %664 : vector<8x1xf32>
    %669 = arith.select %666, %664, %668 : vector<8x1xi1>, vector<8x1xf32>
    %cst_238 = arith.constant dense<0xFF800000> : vector<1xf32>
    %670 = vector.multi_reduction <maximumf>, %669, %cst_238 [0] : vector<8x1xf32> to vector<1xf32>
    %671 = vector.shape_cast %670 : vector<1xf32> to vector<1x1xf32>
    %672 = vector.broadcast %671 : vector<1x1xf32> to vector<8x1xf32>
    %673 = arith.subf %669, %672 : vector<8x1xf32>
    %674 = math.exp %673 : vector<8x1xf32>
    %cst_239 = arith.constant dense<0.000000e+00> : vector<1xf32>
    %675 = vector.multi_reduction <add>, %674, %cst_239 [0] : vector<8x1xf32> to vector<1xf32>
    %676 = vector.shape_cast %675 : vector<1xf32> to vector<1x1xf32>
    %677 = tpu.reciprocal %676 {approx = true} : vector<1x1xf32> -> vector<1x1xf32>
    %678 = vector.broadcast %677 : vector<1x1xf32> to vector<8x1xf32>
    %679 = arith.mulf %674, %678 : vector<8x1xf32>
    %680 = vector.extract_strided_slice %158 {offsets = [8, 80], sizes = [8, 16], strides = [1, 1]} : vector<16x96xf32> to vector<8x16xf32>
    %681 = vector.broadcast %679 : vector<8x1xf32> to vector<8x16xf32>
    %682 = arith.mulf %681, %680 : vector<8x16xf32>
    %cst_240 = arith.constant dense<0.000000e+00> : vector<16xf32>
    %683 = vector.multi_reduction <add>, %682, %cst_240 [0] : vector<8x16xf32> to vector<16xf32>
    %684 = vector.shape_cast %683 : vector<16xf32> to vector<1x16xf32>
    %685 = tpu.concatenate %660, %684 in 0 : vector<1x16xf32>, vector<1x16xf32> -> vector<2x16xf32>
    %cst_241 = arith.constant 0.000000e+00 : f32
    %686 = vector.broadcast %cst_241 : f32 to vector<2x16xf32>
    %687 = arith.cmpf ogt, %685, %686 : vector<2x16xf32>
    %cst_242 = arith.constant 0.000000e+00 : f32
    %688 = vector.broadcast %cst_242 : f32 to vector<2x16xf32>
    %689 = arith.minimumf %685, %688 : vector<2x16xf32>
    %690 = math.exp %689 : vector<2x16xf32>
    %cst_243 = arith.constant 1.000000e+00 : f32
    %691 = vector.broadcast %cst_243 : f32 to vector<2x16xf32>
    %692 = arith.subf %690, %691 : vector<2x16xf32>
    %693 = arith.select %687, %685, %692 : vector<2x16xi1>, vector<2x16xf32>
    %c0_244 = arith.constant 0 : index
    %c5 = arith.constant 5 : index
    %c0_245 = arith.constant 0 : index
    %c0_246 = arith.constant 0 : index
    %694 = vector.load %arg21[%c0_244, %c5, %c0_245, %c0_246] : memref<2x6x32x64xf32, #tpu.memory_space<vmem>>, vector<1x1x32x64xf32>
    %695 = vector.shape_cast %694 : vector<1x1x32x64xf32> to vector<32x64xf32>
    %c0_247 = arith.constant 0 : index
    %c5_248 = arith.constant 5 : index
    %c0_249 = arith.constant 0 : index
    %c0_250 = arith.constant 0 : index
    %696 = vector.load %arg22[%c0_247, %c5_248, %c0_249, %c0_250] : memref<2x6x1x64xf32, #tpu.memory_space<vmem>>, vector<1x1x1x64xf32>
    %697 = vector.shape_cast %696 : vector<1x1x1x64xf32> to vector<1x64xf32>
    %698 = tpu.concatenate %693, %631 in 1 : vector<2x16xf32>, vector<2x16xf32> -> vector<2x32xf32>
    %cst_251 = arith.constant dense<0.000000e+00> : vector<2x64xf32>
    %699 = tpu.matmul %698, %695, %cst_251 {dimension_numbers = #tpu.dot_dimension_numbers<[1], [0], [0], [1], [0, 0, 1, 1], [], []>} : vector<2x32xf32>, vector<32x64xf32>, vector<2x64xf32> -> vector<2x64xf32>
    %700 = vector.broadcast %697 : vector<1x64xf32> to vector<2x64xf32>
    %701 = arith.addf %699, %700 : vector<2x64xf32>
    %702 = vector.extract_strided_slice %701 {offsets = [0, 0], sizes = [2, 16], strides = [1, 1]} : vector<2x64xf32> to vector<2x16xf32>
    %703 = arith.negf %702 : vector<2x16xf32>
    %704 = math.exp %703 : vector<2x16xf32>
    %cst_252 = arith.constant 1.000000e+00 : f32
    %705 = vector.broadcast %cst_252 : f32 to vector<2x16xf32>
    %706 = arith.addf %705, %704 : vector<2x16xf32>
    %707 = arith.divf %705, %706 : vector<2x16xf32>
    %708 = vector.extract_strided_slice %701 {offsets = [0, 16], sizes = [2, 16], strides = [1, 1]} : vector<2x64xf32> to vector<2x16xf32>
    %709 = arith.negf %708 : vector<2x16xf32>
    %710 = math.exp %709 : vector<2x16xf32>
    %cst_253 = arith.constant 1.000000e+00 : f32
    %711 = vector.broadcast %cst_253 : f32 to vector<2x16xf32>
    %712 = arith.addf %711, %710 : vector<2x16xf32>
    %713 = arith.divf %711, %712 : vector<2x16xf32>
    %714 = vector.extract_strided_slice %701 {offsets = [0, 32], sizes = [2, 16], strides = [1, 1]} : vector<2x64xf32> to vector<2x16xf32>
    %715 = vector.extract_strided_slice %701 {offsets = [0, 48], sizes = [2, 16], strides = [1, 1]} : vector<2x64xf32> to vector<2x16xf32>
    %716 = arith.mulf %707, %715 : vector<2x16xf32>
    %717 = arith.addf %714, %716 : vector<2x16xf32>
    %718 = math.tanh %717 : vector<2x16xf32>
    %cst_254 = arith.constant 1.000000e+00 : f32
    %719 = vector.broadcast %cst_254 : f32 to vector<2x16xf32>
    %720 = arith.subf %719, %713 : vector<2x16xf32>
    %721 = arith.mulf %720, %718 : vector<2x16xf32>
    %722 = arith.mulf %713, %631 : vector<2x16xf32>
    %723 = arith.addf %721, %722 : vector<2x16xf32>
    %cst_255 = arith.constant 0.000000e+00 : f32
    %724 = vector.broadcast %cst_255 : f32 to vector<2x16xf32>
    %725 = arith.maximumf %723, %724 : vector<2x16xf32>
    %c1_256 = arith.constant 1 : index
    %c0_257 = arith.constant 0 : index
    %c0_258 = arith.constant 0 : index
    %726 = vector.load %arg0[%c1_256, %c0_257, %c0_258] : memref<2x16x16xf32, #tpu.memory_space<vmem>>, vector<1x16x16xf32>
    %727 = vector.shape_cast %726 : vector<1x16x16xf32> to vector<16x16xf32>
    %c1_259 = arith.constant 1 : index
    %c0_260 = arith.constant 0 : index
    %c0_261 = arith.constant 0 : index
    %728 = vector.load %arg1[%c1_259, %c0_260, %c0_261] : memref<2x32x8xf32, #tpu.memory_space<vmem>>, vector<1x32x8xf32>
    %729 = vector.shape_cast %728 : vector<1x32x8xf32> to vector<32x8xf32>
    %c1_262 = arith.constant 1 : index
    %c0_263 = arith.constant 0 : index
    %c0_264 = arith.constant 0 : index
    %730 = vector.load %arg2[%c1_262, %c0_263, %c0_264] : memref<2x32x16xf32, #tpu.memory_space<vmem>>, vector<1x32x16xf32>
    %731 = vector.shape_cast %730 : vector<1x32x16xf32> to vector<32x16xf32>
    %c1_265 = arith.constant 1 : index
    %c0_266 = arith.constant 0 : index
    %c0_267 = arith.constant 0 : index
    %732 = vector.load %arg3[%c1_265, %c0_266, %c0_267] : memref<2x16x32xf32, #tpu.memory_space<vmem>>, vector<1x16x32xf32>
    %733 = vector.shape_cast %732 : vector<1x16x32xf32> to vector<16x32xf32>
    %c1_268 = arith.constant 1 : index
    %c0_269 = arith.constant 0 : index
    %c0_270 = arith.constant 0 : index
    %734 = vector.load %arg7[%c1_268, %c0_269, %c0_270] : memref<2x16x16xf32, #tpu.memory_space<vmem>>, vector<1x16x16xf32>
    %735 = vector.shape_cast %734 : vector<1x16x16xf32> to vector<16x16xf32>
    %cst_271 = arith.constant dense<0.000000e+00> : vector<16x16xf32>
    %736 = tpu.matmul %727, %735, %cst_271 {dimension_numbers = #tpu.dot_dimension_numbers<[1], [0], [0], [1], [0, 0, 1, 1], [], []>} : vector<16x16xf32>, vector<16x16xf32>, vector<16x16xf32> -> vector<16x16xf32>
    %c1_272 = arith.constant 1 : index
    %c0_273 = arith.constant 0 : index
    %c0_274 = arith.constant 0 : index
    %737 = vector.load %arg8[%c1_272, %c0_273, %c0_274] : memref<2x1x16xf32, #tpu.memory_space<vmem>>, vector<1x1x16xf32>
    %738 = vector.shape_cast %737 : vector<1x1x16xf32> to vector<1x16xf32>
    %739 = vector.broadcast %738 : vector<1x16xf32> to vector<16x16xf32>
    %740 = arith.addf %736, %739 : vector<16x16xf32>
    %cst_275 = arith.constant 0.000000e+00 : f32
    %741 = vector.broadcast %cst_275 : f32 to vector<16x16xf32>
    %742 = arith.maximumf %740, %741 : vector<16x16xf32>
    %c1_276 = arith.constant 1 : index
    %c0_277 = arith.constant 0 : index
    %c0_278 = arith.constant 0 : index
    %743 = vector.load %arg9[%c1_276, %c0_277, %c0_278] : memref<2x8x12xf32, #tpu.memory_space<vmem>>, vector<1x8x12xf32>
    %744 = vector.shape_cast %743 : vector<1x8x12xf32> to vector<8x12xf32>
    %cst_279 = arith.constant dense<0.000000e+00> : vector<32x12xf32>
    %745 = tpu.matmul %729, %744, %cst_279 {dimension_numbers = #tpu.dot_dimension_numbers<[1], [0], [0], [1], [0, 0, 1, 1], [], []>} : vector<32x8xf32>, vector<8x12xf32>, vector<32x12xf32> -> vector<32x12xf32>
    %c1_280 = arith.constant 1 : index
    %c0_281 = arith.constant 0 : index
    %c0_282 = arith.constant 0 : index
    %746 = vector.load %arg10[%c1_280, %c0_281, %c0_282] : memref<2x1x12xf32, #tpu.memory_space<vmem>>, vector<1x1x12xf32>
    %747 = vector.shape_cast %746 : vector<1x1x12xf32> to vector<1x12xf32>
    %748 = vector.broadcast %747 : vector<1x12xf32> to vector<32x12xf32>
    %749 = arith.addf %745, %748 : vector<32x12xf32>
    %cst_283 = arith.constant 0.000000e+00 : f32
    %750 = vector.broadcast %cst_283 : f32 to vector<32x12xf32>
    %751 = arith.maximumf %749, %750 : vector<32x12xf32>
    %c1_284 = arith.constant 1 : index
    %c0_285 = arith.constant 0 : index
    %c0_286 = arith.constant 0 : index
    %752 = vector.load %arg11[%c1_284, %c0_285, %c0_286] : memref<2x12x256xf32, #tpu.memory_space<vmem>>, vector<1x12x256xf32>
    %753 = vector.shape_cast %752 : vector<1x12x256xf32> to vector<12x256xf32>
    %cst_287 = arith.constant dense<0.000000e+00> : vector<32x256xf32>
    %754 = tpu.matmul %751, %753, %cst_287 {dimension_numbers = #tpu.dot_dimension_numbers<[1], [0], [0], [1], [0, 0, 1, 1], [], []>} : vector<32x12xf32>, vector<12x256xf32>, vector<32x256xf32> -> vector<32x256xf32>
    %c1_288 = arith.constant 1 : index
    %c0_289 = arith.constant 0 : index
    %c0_290 = arith.constant 0 : index
    %755 = vector.load %arg12[%c1_288, %c0_289, %c0_290] : memref<2x1x256xf32, #tpu.memory_space<vmem>>, vector<1x1x256xf32>
    %756 = vector.shape_cast %755 : vector<1x1x256xf32> to vector<1x256xf32>
    %757 = vector.broadcast %756 : vector<1x256xf32> to vector<32x256xf32>
    %758 = arith.addf %754, %757 : vector<32x256xf32>
    %c1_291 = arith.constant 1 : index
    %c0_292 = arith.constant 0 : index
    %c0_293 = arith.constant 0 : index
    %759 = vector.load %arg14[%c1_291, %c0_292, %c0_293] : memref<2x32x64xf32, #tpu.memory_space<vmem>>, vector<1x32x64xf32>
    %760 = vector.shape_cast %759 : vector<1x32x64xf32> to vector<32x64xf32>
    %c1_294 = arith.constant 1 : index
    %c0_295 = arith.constant 0 : index
    %c0_296 = arith.constant 0 : index
    %761 = vector.load %arg15[%c1_294, %c0_295, %c0_296] : memref<2x1x64xf32, #tpu.memory_space<vmem>>, vector<1x1x64xf32>
    %762 = vector.shape_cast %761 : vector<1x1x64xf32> to vector<1x64xf32>
    %c1_297 = arith.constant 1 : index
    %c0_298 = arith.constant 0 : index
    %c0_299 = arith.constant 0 : index
    %763 = vector.load %arg13[%c1_297, %c0_298, %c0_299] : memref<2x1x16xf32, #tpu.memory_space<vmem>>, vector<1x1x16xf32>
    %764 = vector.shape_cast %763 : vector<1x1x16xf32> to vector<1x16xf32>
    %cst_300 = arith.constant dense<0.000000e+00> : vector<32x16xf32>
    %765 = tpu.matmul %731, %742, %cst_300 {dimension_numbers = #tpu.dot_dimension_numbers<[1], [0], [0], [1], [0, 0, 1, 1], [], []>} : vector<32x16xf32>, vector<16x16xf32>, vector<32x16xf32> -> vector<32x16xf32>
    %cst_301 = arith.constant dense<0.000000e+00> : vector<32x256xf32>
    %766 = tpu.matmul %765, %1, %cst_301 {dimension_numbers = #tpu.dot_dimension_numbers<[1], [0], [0], [1], [0, 0, 1, 1], [], []>} : vector<32x16xf32>, vector<16x256xf32>, vector<32x256xf32> -> vector<32x256xf32>
    %767 = arith.mulf %766, %758 : vector<32x256xf32>
    %cst_302 = arith.constant dense<0.000000e+00> : vector<32x16xf32>
    %768 = tpu.matmul %767, %2, %cst_302 {dimension_numbers = #tpu.dot_dimension_numbers<[1], [0], [0], [1], [0, 0, 1, 1], [], []>} : vector<32x256xf32>, vector<256x16xf32>, vector<32x16xf32> -> vector<32x16xf32>
    %cst_303 = arith.constant dense<0.000000e+00> : vector<16x16xf32>
    %769 = tpu.matmul %733, %768, %cst_303 {dimension_numbers = #tpu.dot_dimension_numbers<[1], [0], [0], [1], [0, 0, 1, 1], [], []>} : vector<16x32xf32>, vector<32x16xf32>, vector<16x16xf32> -> vector<16x16xf32>
    %770 = vector.broadcast %764 : vector<1x16xf32> to vector<16x16xf32>
    %771 = arith.addf %769, %770 : vector<16x16xf32>
    %cst_304 = arith.constant 0.000000e+00 : f32
    %772 = vector.broadcast %cst_304 : f32 to vector<16x16xf32>
    %773 = arith.maximumf %771, %772 : vector<16x16xf32>
    %774 = tpu.concatenate %773, %742 in 1 : vector<16x16xf32>, vector<16x16xf32> -> vector<16x32xf32>
    %cst_305 = arith.constant dense<0.000000e+00> : vector<16x64xf32>
    %775 = tpu.matmul %774, %760, %cst_305 {dimension_numbers = #tpu.dot_dimension_numbers<[1], [0], [0], [1], [0, 0, 1, 1], [], []>} : vector<16x32xf32>, vector<32x64xf32>, vector<16x64xf32> -> vector<16x64xf32>
    %776 = vector.broadcast %762 : vector<1x64xf32> to vector<16x64xf32>
    %777 = arith.addf %775, %776 : vector<16x64xf32>
    %778 = vector.extract_strided_slice %777 {offsets = [0, 0], sizes = [16, 16], strides = [1, 1]} : vector<16x64xf32> to vector<16x16xf32>
    %779 = arith.negf %778 : vector<16x16xf32>
    %780 = math.exp %779 : vector<16x16xf32>
    %cst_306 = arith.constant 1.000000e+00 : f32
    %781 = vector.broadcast %cst_306 : f32 to vector<16x16xf32>
    %782 = arith.addf %781, %780 : vector<16x16xf32>
    %783 = arith.divf %781, %782 : vector<16x16xf32>
    %784 = vector.extract_strided_slice %777 {offsets = [0, 16], sizes = [16, 16], strides = [1, 1]} : vector<16x64xf32> to vector<16x16xf32>
    %785 = arith.negf %784 : vector<16x16xf32>
    %786 = math.exp %785 : vector<16x16xf32>
    %cst_307 = arith.constant 1.000000e+00 : f32
    %787 = vector.broadcast %cst_307 : f32 to vector<16x16xf32>
    %788 = arith.addf %787, %786 : vector<16x16xf32>
    %789 = arith.divf %787, %788 : vector<16x16xf32>
    %790 = vector.extract_strided_slice %777 {offsets = [0, 32], sizes = [16, 16], strides = [1, 1]} : vector<16x64xf32> to vector<16x16xf32>
    %791 = vector.extract_strided_slice %777 {offsets = [0, 48], sizes = [16, 16], strides = [1, 1]} : vector<16x64xf32> to vector<16x16xf32>
    %792 = arith.mulf %783, %791 : vector<16x16xf32>
    %793 = arith.addf %790, %792 : vector<16x16xf32>
    %794 = math.tanh %793 : vector<16x16xf32>
    %cst_308 = arith.constant 1.000000e+00 : f32
    %795 = vector.broadcast %cst_308 : f32 to vector<16x16xf32>
    %796 = arith.subf %795, %789 : vector<16x16xf32>
    %797 = arith.mulf %796, %794 : vector<16x16xf32>
    %798 = arith.mulf %789, %742 : vector<16x16xf32>
    %799 = arith.addf %797, %798 : vector<16x16xf32>
    %cst_309 = arith.constant dense<0.000000e+00> : vector<32x16xf32>
    %800 = tpu.matmul %731, %799, %cst_309 {dimension_numbers = #tpu.dot_dimension_numbers<[1], [0], [0], [1], [0, 0, 1, 1], [], []>} : vector<32x16xf32>, vector<16x16xf32>, vector<32x16xf32> -> vector<32x16xf32>
    %cst_310 = arith.constant dense<0.000000e+00> : vector<32x256xf32>
    %801 = tpu.matmul %800, %1, %cst_310 {dimension_numbers = #tpu.dot_dimension_numbers<[1], [0], [0], [1], [0, 0, 1, 1], [], []>} : vector<32x16xf32>, vector<16x256xf32>, vector<32x256xf32> -> vector<32x256xf32>
    %802 = arith.mulf %801, %758 : vector<32x256xf32>
    %cst_311 = arith.constant dense<0.000000e+00> : vector<32x16xf32>
    %803 = tpu.matmul %802, %2, %cst_311 {dimension_numbers = #tpu.dot_dimension_numbers<[1], [0], [0], [1], [0, 0, 1, 1], [], []>} : vector<32x256xf32>, vector<256x16xf32>, vector<32x16xf32> -> vector<32x16xf32>
    %cst_312 = arith.constant dense<0.000000e+00> : vector<16x16xf32>
    %804 = tpu.matmul %733, %803, %cst_312 {dimension_numbers = #tpu.dot_dimension_numbers<[1], [0], [0], [1], [0, 0, 1, 1], [], []>} : vector<16x32xf32>, vector<32x16xf32>, vector<16x16xf32> -> vector<16x16xf32>
    %805 = vector.broadcast %764 : vector<1x16xf32> to vector<16x16xf32>
    %806 = arith.addf %804, %805 : vector<16x16xf32>
    %cst_313 = arith.constant 0.000000e+00 : f32
    %807 = vector.broadcast %cst_313 : f32 to vector<16x16xf32>
    %808 = arith.maximumf %806, %807 : vector<16x16xf32>
    %809 = tpu.concatenate %808, %799 in 1 : vector<16x16xf32>, vector<16x16xf32> -> vector<16x32xf32>
    %cst_314 = arith.constant dense<0.000000e+00> : vector<16x64xf32>
    %810 = tpu.matmul %809, %760, %cst_314 {dimension_numbers = #tpu.dot_dimension_numbers<[1], [0], [0], [1], [0, 0, 1, 1], [], []>} : vector<16x32xf32>, vector<32x64xf32>, vector<16x64xf32> -> vector<16x64xf32>
    %811 = vector.broadcast %762 : vector<1x64xf32> to vector<16x64xf32>
    %812 = arith.addf %810, %811 : vector<16x64xf32>
    %813 = vector.extract_strided_slice %812 {offsets = [0, 0], sizes = [16, 16], strides = [1, 1]} : vector<16x64xf32> to vector<16x16xf32>
    %814 = arith.negf %813 : vector<16x16xf32>
    %815 = math.exp %814 : vector<16x16xf32>
    %cst_315 = arith.constant 1.000000e+00 : f32
    %816 = vector.broadcast %cst_315 : f32 to vector<16x16xf32>
    %817 = arith.addf %816, %815 : vector<16x16xf32>
    %818 = arith.divf %816, %817 : vector<16x16xf32>
    %819 = vector.extract_strided_slice %812 {offsets = [0, 16], sizes = [16, 16], strides = [1, 1]} : vector<16x64xf32> to vector<16x16xf32>
    %820 = arith.negf %819 : vector<16x16xf32>
    %821 = math.exp %820 : vector<16x16xf32>
    %cst_316 = arith.constant 1.000000e+00 : f32
    %822 = vector.broadcast %cst_316 : f32 to vector<16x16xf32>
    %823 = arith.addf %822, %821 : vector<16x16xf32>
    %824 = arith.divf %822, %823 : vector<16x16xf32>
    %825 = vector.extract_strided_slice %812 {offsets = [0, 32], sizes = [16, 16], strides = [1, 1]} : vector<16x64xf32> to vector<16x16xf32>
    %826 = vector.extract_strided_slice %812 {offsets = [0, 48], sizes = [16, 16], strides = [1, 1]} : vector<16x64xf32> to vector<16x16xf32>
    %827 = arith.mulf %818, %826 : vector<16x16xf32>
    %828 = arith.addf %825, %827 : vector<16x16xf32>
    %829 = math.tanh %828 : vector<16x16xf32>
    %cst_317 = arith.constant 1.000000e+00 : f32
    %830 = vector.broadcast %cst_317 : f32 to vector<16x16xf32>
    %831 = arith.subf %830, %824 : vector<16x16xf32>
    %832 = arith.mulf %831, %829 : vector<16x16xf32>
    %833 = arith.mulf %824, %799 : vector<16x16xf32>
    %834 = arith.addf %832, %833 : vector<16x16xf32>
    %cst_318 = arith.constant dense<0.000000e+00> : vector<32x16xf32>
    %835 = tpu.matmul %731, %834, %cst_318 {dimension_numbers = #tpu.dot_dimension_numbers<[1], [0], [0], [1], [0, 0, 1, 1], [], []>} : vector<32x16xf32>, vector<16x16xf32>, vector<32x16xf32> -> vector<32x16xf32>
    %cst_319 = arith.constant dense<0.000000e+00> : vector<32x256xf32>
    %836 = tpu.matmul %835, %1, %cst_319 {dimension_numbers = #tpu.dot_dimension_numbers<[1], [0], [0], [1], [0, 0, 1, 1], [], []>} : vector<32x16xf32>, vector<16x256xf32>, vector<32x256xf32> -> vector<32x256xf32>
    %837 = arith.mulf %836, %758 : vector<32x256xf32>
    %cst_320 = arith.constant dense<0.000000e+00> : vector<32x16xf32>
    %838 = tpu.matmul %837, %2, %cst_320 {dimension_numbers = #tpu.dot_dimension_numbers<[1], [0], [0], [1], [0, 0, 1, 1], [], []>} : vector<32x256xf32>, vector<256x16xf32>, vector<32x16xf32> -> vector<32x16xf32>
    %cst_321 = arith.constant dense<0.000000e+00> : vector<16x16xf32>
    %839 = tpu.matmul %733, %838, %cst_321 {dimension_numbers = #tpu.dot_dimension_numbers<[1], [0], [0], [1], [0, 0, 1, 1], [], []>} : vector<16x32xf32>, vector<32x16xf32>, vector<16x16xf32> -> vector<16x16xf32>
    %840 = vector.broadcast %764 : vector<1x16xf32> to vector<16x16xf32>
    %841 = arith.addf %839, %840 : vector<16x16xf32>
    %cst_322 = arith.constant 0.000000e+00 : f32
    %842 = vector.broadcast %cst_322 : f32 to vector<16x16xf32>
    %843 = arith.maximumf %841, %842 : vector<16x16xf32>
    %844 = tpu.concatenate %843, %834 in 1 : vector<16x16xf32>, vector<16x16xf32> -> vector<16x32xf32>
    %cst_323 = arith.constant dense<0.000000e+00> : vector<16x64xf32>
    %845 = tpu.matmul %844, %760, %cst_323 {dimension_numbers = #tpu.dot_dimension_numbers<[1], [0], [0], [1], [0, 0, 1, 1], [], []>} : vector<16x32xf32>, vector<32x64xf32>, vector<16x64xf32> -> vector<16x64xf32>
    %846 = vector.broadcast %762 : vector<1x64xf32> to vector<16x64xf32>
    %847 = arith.addf %845, %846 : vector<16x64xf32>
    %848 = vector.extract_strided_slice %847 {offsets = [0, 0], sizes = [16, 16], strides = [1, 1]} : vector<16x64xf32> to vector<16x16xf32>
    %849 = arith.negf %848 : vector<16x16xf32>
    %850 = math.exp %849 : vector<16x16xf32>
    %cst_324 = arith.constant 1.000000e+00 : f32
    %851 = vector.broadcast %cst_324 : f32 to vector<16x16xf32>
    %852 = arith.addf %851, %850 : vector<16x16xf32>
    %853 = arith.divf %851, %852 : vector<16x16xf32>
    %854 = vector.extract_strided_slice %847 {offsets = [0, 16], sizes = [16, 16], strides = [1, 1]} : vector<16x64xf32> to vector<16x16xf32>
    %855 = arith.negf %854 : vector<16x16xf32>
    %856 = math.exp %855 : vector<16x16xf32>
    %cst_325 = arith.constant 1.000000e+00 : f32
    %857 = vector.broadcast %cst_325 : f32 to vector<16x16xf32>
    %858 = arith.addf %857, %856 : vector<16x16xf32>
    %859 = arith.divf %857, %858 : vector<16x16xf32>
    %860 = vector.extract_strided_slice %847 {offsets = [0, 32], sizes = [16, 16], strides = [1, 1]} : vector<16x64xf32> to vector<16x16xf32>
    %861 = vector.extract_strided_slice %847 {offsets = [0, 48], sizes = [16, 16], strides = [1, 1]} : vector<16x64xf32> to vector<16x16xf32>
    %862 = arith.mulf %853, %861 : vector<16x16xf32>
    %863 = arith.addf %860, %862 : vector<16x16xf32>
    %864 = math.tanh %863 : vector<16x16xf32>
    %cst_326 = arith.constant 1.000000e+00 : f32
    %865 = vector.broadcast %cst_326 : f32 to vector<16x16xf32>
    %866 = arith.subf %865, %859 : vector<16x16xf32>
    %867 = arith.mulf %866, %864 : vector<16x16xf32>
    %868 = arith.mulf %859, %834 : vector<16x16xf32>
    %869 = arith.addf %867, %868 : vector<16x16xf32>
    %c1_327 = arith.constant 1 : index
    %c0_328 = arith.constant 0 : index
    %c0_329 = arith.constant 0 : index
    %870 = vector.load %arg19[%c1_327, %c0_328, %c0_329] : memref<2x16x6xf32, #tpu.memory_space<vmem>>, vector<1x16x6xf32>
    %871 = vector.shape_cast %870 : vector<1x16x6xf32> to vector<16x6xf32>
    %c1_330 = arith.constant 1 : index
    %c0_331 = arith.constant 0 : index
    %c0_332 = arith.constant 0 : index
    %872 = vector.load %arg20[%c1_330, %c0_331, %c0_332] : memref<2x1x6xf32, #tpu.memory_space<vmem>>, vector<1x1x6xf32>
    %873 = vector.shape_cast %872 : vector<1x1x6xf32> to vector<1x6xf32>
    %cst_333 = arith.constant dense<0.000000e+00> : vector<2x16xf32>
    %874 = tpu.matmul %0, %869, %cst_333 {dimension_numbers = #tpu.dot_dimension_numbers<[1], [0], [0], [1], [0, 0, 1, 1], [], []>} : vector<2x16xf32>, vector<16x16xf32>, vector<2x16xf32> -> vector<2x16xf32>
    %c1_334 = arith.constant 1 : index
    %c0_335 = arith.constant 0 : index
    %c0_336 = arith.constant 0 : index
    %875 = vector.load %arg16[%c1_334, %c0_335, %c0_336] : memref<2x16x96xf32, #tpu.memory_space<vmem>>, vector<1x16x96xf32>
    %876 = vector.shape_cast %875 : vector<1x16x96xf32> to vector<16x96xf32>
    %cst_337 = arith.constant dense<0.000000e+00> : vector<16x96xf32>
    %877 = tpu.matmul %869, %876, %cst_337 {dimension_numbers = #tpu.dot_dimension_numbers<[1], [0], [0], [1], [0, 0, 1, 1], [], []>} : vector<16x16xf32>, vector<16x96xf32>, vector<16x96xf32> -> vector<16x96xf32>
    %c1_338 = arith.constant 1 : index
    %c0_339 = arith.constant 0 : index
    %c0_340 = arith.constant 0 : index
    %878 = vector.load %arg17[%c1_338, %c0_339, %c0_340] : memref<2x1x96xf32, #tpu.memory_space<vmem>>, vector<1x1x96xf32>
    %879 = vector.shape_cast %878 : vector<1x1x96xf32> to vector<1x96xf32>
    %880 = vector.broadcast %879 : vector<1x96xf32> to vector<16x96xf32>
    %881 = arith.addf %877, %880 : vector<16x96xf32>
    %c1_341 = arith.constant 1 : index
    %c0_342 = arith.constant 0 : index
    %c0_343 = arith.constant 0 : index
    %882 = vector.load %arg18[%c1_341, %c0_342, %c0_343] : memref<2x16x6xf32, #tpu.memory_space<vmem>>, vector<1x16x6xf32>
    %883 = vector.shape_cast %882 : vector<1x16x6xf32> to vector<16x6xf32>
    %cst_344 = arith.constant dense<0.000000e+00> : vector<16x6xf32>
    %884 = tpu.matmul %869, %883, %cst_344 {dimension_numbers = #tpu.dot_dimension_numbers<[1], [0], [0], [1], [0, 0, 1, 1], [], []>} : vector<16x16xf32>, vector<16x6xf32>, vector<16x6xf32> -> vector<16x6xf32>
    %cst_345 = arith.constant 0.000000e+00 : f32
    %885 = vector.broadcast %cst_345 : f32 to vector<2x16xf32>
    %886 = arith.maximumf %874, %885 : vector<2x16xf32>
    %cst_346 = arith.constant dense<0.000000e+00> : vector<2x6xf32>
    %887 = tpu.matmul %886, %871, %cst_346 {dimension_numbers = #tpu.dot_dimension_numbers<[1], [0], [0], [1], [0, 0, 1, 1], [], []>} : vector<2x16xf32>, vector<16x6xf32>, vector<2x6xf32> -> vector<2x6xf32>
    %888 = vector.broadcast %873 : vector<1x6xf32> to vector<2x6xf32>
    %889 = arith.addf %887, %888 : vector<2x6xf32>
    %890 = vector.extract_strided_slice %884 {offsets = [0, 0], sizes = [8, 1], strides = [1, 1]} : vector<16x6xf32> to vector<8x1xf32>
    %891 = vector.extract_strided_slice %889 {offsets = [0, 0], sizes = [1, 1], strides = [1, 1]} : vector<2x6xf32> to vector<1x1xf32>
    %892 = vector.broadcast %891 : vector<1x1xf32> to vector<8x1xf32>
    %893 = arith.addf %890, %892 : vector<8x1xf32>
    %cst_347 = arith.constant 0.000000e+00 : f32
    %894 = vector.broadcast %cst_347 : f32 to vector<8x1xf32>
    %895 = arith.cmpf ogt, %893, %894 : vector<8x1xf32>
    %cst_348 = arith.constant 0.00999999977 : f32
    %896 = vector.broadcast %cst_348 : f32 to vector<8x1xf32>
    %897 = arith.mulf %896, %893 : vector<8x1xf32>
    %898 = arith.select %895, %893, %897 : vector<8x1xi1>, vector<8x1xf32>
    %cst_349 = arith.constant dense<0xFF800000> : vector<1xf32>
    %899 = vector.multi_reduction <maximumf>, %898, %cst_349 [0] : vector<8x1xf32> to vector<1xf32>
    %900 = vector.shape_cast %899 : vector<1xf32> to vector<1x1xf32>
    %901 = vector.broadcast %900 : vector<1x1xf32> to vector<8x1xf32>
    %902 = arith.subf %898, %901 : vector<8x1xf32>
    %903 = math.exp %902 : vector<8x1xf32>
    %cst_350 = arith.constant dense<0.000000e+00> : vector<1xf32>
    %904 = vector.multi_reduction <add>, %903, %cst_350 [0] : vector<8x1xf32> to vector<1xf32>
    %905 = vector.shape_cast %904 : vector<1xf32> to vector<1x1xf32>
    %906 = tpu.reciprocal %905 {approx = true} : vector<1x1xf32> -> vector<1x1xf32>
    %907 = vector.broadcast %906 : vector<1x1xf32> to vector<8x1xf32>
    %908 = arith.mulf %903, %907 : vector<8x1xf32>
    %909 = vector.extract_strided_slice %881 {offsets = [0, 0], sizes = [8, 16], strides = [1, 1]} : vector<16x96xf32> to vector<8x16xf32>
    %910 = vector.broadcast %908 : vector<8x1xf32> to vector<8x16xf32>
    %911 = arith.mulf %910, %909 : vector<8x16xf32>
    %cst_351 = arith.constant dense<0.000000e+00> : vector<16xf32>
    %912 = vector.multi_reduction <add>, %911, %cst_351 [0] : vector<8x16xf32> to vector<16xf32>
    %913 = vector.shape_cast %912 : vector<16xf32> to vector<1x16xf32>
    %914 = vector.extract_strided_slice %884 {offsets = [8, 0], sizes = [8, 1], strides = [1, 1]} : vector<16x6xf32> to vector<8x1xf32>
    %915 = vector.extract_strided_slice %889 {offsets = [1, 0], sizes = [1, 1], strides = [1, 1]} : vector<2x6xf32> to vector<1x1xf32>
    %916 = vector.broadcast %915 : vector<1x1xf32> to vector<8x1xf32>
    %917 = arith.addf %914, %916 : vector<8x1xf32>
    %cst_352 = arith.constant 0.000000e+00 : f32
    %918 = vector.broadcast %cst_352 : f32 to vector<8x1xf32>
    %919 = arith.cmpf ogt, %917, %918 : vector<8x1xf32>
    %cst_353 = arith.constant 0.00999999977 : f32
    %920 = vector.broadcast %cst_353 : f32 to vector<8x1xf32>
    %921 = arith.mulf %920, %917 : vector<8x1xf32>
    %922 = arith.select %919, %917, %921 : vector<8x1xi1>, vector<8x1xf32>
    %cst_354 = arith.constant dense<0xFF800000> : vector<1xf32>
    %923 = vector.multi_reduction <maximumf>, %922, %cst_354 [0] : vector<8x1xf32> to vector<1xf32>
    %924 = vector.shape_cast %923 : vector<1xf32> to vector<1x1xf32>
    %925 = vector.broadcast %924 : vector<1x1xf32> to vector<8x1xf32>
    %926 = arith.subf %922, %925 : vector<8x1xf32>
    %927 = math.exp %926 : vector<8x1xf32>
    %cst_355 = arith.constant dense<0.000000e+00> : vector<1xf32>
    %928 = vector.multi_reduction <add>, %927, %cst_355 [0] : vector<8x1xf32> to vector<1xf32>
    %929 = vector.shape_cast %928 : vector<1xf32> to vector<1x1xf32>
    %930 = tpu.reciprocal %929 {approx = true} : vector<1x1xf32> -> vector<1x1xf32>
    %931 = vector.broadcast %930 : vector<1x1xf32> to vector<8x1xf32>
    %932 = arith.mulf %927, %931 : vector<8x1xf32>
    %933 = vector.extract_strided_slice %881 {offsets = [8, 0], sizes = [8, 16], strides = [1, 1]} : vector<16x96xf32> to vector<8x16xf32>
    %934 = vector.broadcast %932 : vector<8x1xf32> to vector<8x16xf32>
    %935 = arith.mulf %934, %933 : vector<8x16xf32>
    %cst_356 = arith.constant dense<0.000000e+00> : vector<16xf32>
    %936 = vector.multi_reduction <add>, %935, %cst_356 [0] : vector<8x16xf32> to vector<16xf32>
    %937 = vector.shape_cast %936 : vector<16xf32> to vector<1x16xf32>
    %938 = tpu.concatenate %913, %937 in 0 : vector<1x16xf32>, vector<1x16xf32> -> vector<2x16xf32>
    %cst_357 = arith.constant 0.000000e+00 : f32
    %939 = vector.broadcast %cst_357 : f32 to vector<2x16xf32>
    %940 = arith.cmpf ogt, %938, %939 : vector<2x16xf32>
    %cst_358 = arith.constant 0.000000e+00 : f32
    %941 = vector.broadcast %cst_358 : f32 to vector<2x16xf32>
    %942 = arith.minimumf %938, %941 : vector<2x16xf32>
    %943 = math.exp %942 : vector<2x16xf32>
    %cst_359 = arith.constant 1.000000e+00 : f32
    %944 = vector.broadcast %cst_359 : f32 to vector<2x16xf32>
    %945 = arith.subf %943, %944 : vector<2x16xf32>
    %946 = arith.select %940, %938, %945 : vector<2x16xi1>, vector<2x16xf32>
    %c1_360 = arith.constant 1 : index
    %c0_361 = arith.constant 0 : index
    %c0_362 = arith.constant 0 : index
    %c0_363 = arith.constant 0 : index
    %947 = vector.load %arg21[%c1_360, %c0_361, %c0_362, %c0_363] : memref<2x6x32x64xf32, #tpu.memory_space<vmem>>, vector<1x1x32x64xf32>
    %948 = vector.shape_cast %947 : vector<1x1x32x64xf32> to vector<32x64xf32>
    %c1_364 = arith.constant 1 : index
    %c0_365 = arith.constant 0 : index
    %c0_366 = arith.constant 0 : index
    %c0_367 = arith.constant 0 : index
    %949 = vector.load %arg22[%c1_364, %c0_365, %c0_366, %c0_367] : memref<2x6x1x64xf32, #tpu.memory_space<vmem>>, vector<1x1x1x64xf32>
    %950 = vector.shape_cast %949 : vector<1x1x1x64xf32> to vector<1x64xf32>
    %951 = tpu.concatenate %946, %874 in 1 : vector<2x16xf32>, vector<2x16xf32> -> vector<2x32xf32>
    %cst_368 = arith.constant dense<0.000000e+00> : vector<2x64xf32>
    %952 = tpu.matmul %951, %948, %cst_368 {dimension_numbers = #tpu.dot_dimension_numbers<[1], [0], [0], [1], [0, 0, 1, 1], [], []>} : vector<2x32xf32>, vector<32x64xf32>, vector<2x64xf32> -> vector<2x64xf32>
    %953 = vector.broadcast %950 : vector<1x64xf32> to vector<2x64xf32>
    %954 = arith.addf %952, %953 : vector<2x64xf32>
    %955 = vector.extract_strided_slice %954 {offsets = [0, 0], sizes = [2, 16], strides = [1, 1]} : vector<2x64xf32> to vector<2x16xf32>
    %956 = arith.negf %955 : vector<2x16xf32>
    %957 = math.exp %956 : vector<2x16xf32>
    %cst_369 = arith.constant 1.000000e+00 : f32
    %958 = vector.broadcast %cst_369 : f32 to vector<2x16xf32>
    %959 = arith.addf %958, %957 : vector<2x16xf32>
    %960 = arith.divf %958, %959 : vector<2x16xf32>
    %961 = vector.extract_strided_slice %954 {offsets = [0, 16], sizes = [2, 16], strides = [1, 1]} : vector<2x64xf32> to vector<2x16xf32>
    %962 = arith.negf %961 : vector<2x16xf32>
    %963 = math.exp %962 : vector<2x16xf32>
    %cst_370 = arith.constant 1.000000e+00 : f32
    %964 = vector.broadcast %cst_370 : f32 to vector<2x16xf32>
    %965 = arith.addf %964, %963 : vector<2x16xf32>
    %966 = arith.divf %964, %965 : vector<2x16xf32>
    %967 = vector.extract_strided_slice %954 {offsets = [0, 32], sizes = [2, 16], strides = [1, 1]} : vector<2x64xf32> to vector<2x16xf32>
    %968 = vector.extract_strided_slice %954 {offsets = [0, 48], sizes = [2, 16], strides = [1, 1]} : vector<2x64xf32> to vector<2x16xf32>
    %969 = arith.mulf %960, %968 : vector<2x16xf32>
    %970 = arith.addf %967, %969 : vector<2x16xf32>
    %971 = math.tanh %970 : vector<2x16xf32>
    %cst_371 = arith.constant 1.000000e+00 : f32
    %972 = vector.broadcast %cst_371 : f32 to vector<2x16xf32>
    %973 = arith.subf %972, %966 : vector<2x16xf32>
    %974 = arith.mulf %973, %971 : vector<2x16xf32>
    %975 = arith.mulf %966, %874 : vector<2x16xf32>
    %976 = arith.addf %974, %975 : vector<2x16xf32>
    %cst_372 = arith.constant 0.000000e+00 : f32
    %977 = vector.broadcast %cst_372 : f32 to vector<2x16xf32>
    %978 = arith.maximumf %976, %977 : vector<2x16xf32>
    %cst_373 = arith.constant 0.000000e+00 : f32
    %979 = vector.broadcast %cst_373 : f32 to vector<2x16xf32>
    %980 = arith.maximumf %978, %979 : vector<2x16xf32>
    %cst_374 = arith.constant dense<0.000000e+00> : vector<2x6xf32>
    %981 = tpu.matmul %980, %871, %cst_374 {dimension_numbers = #tpu.dot_dimension_numbers<[1], [0], [0], [1], [0, 0, 1, 1], [], []>} : vector<2x16xf32>, vector<16x6xf32>, vector<2x6xf32> -> vector<2x6xf32>
    %982 = vector.broadcast %873 : vector<1x6xf32> to vector<2x6xf32>
    %983 = arith.addf %981, %982 : vector<2x6xf32>
    %984 = vector.extract_strided_slice %884 {offsets = [0, 1], sizes = [8, 1], strides = [1, 1]} : vector<16x6xf32> to vector<8x1xf32>
    %985 = vector.extract_strided_slice %983 {offsets = [0, 1], sizes = [1, 1], strides = [1, 1]} : vector<2x6xf32> to vector<1x1xf32>
    %986 = vector.broadcast %985 : vector<1x1xf32> to vector<8x1xf32>
    %987 = arith.addf %984, %986 : vector<8x1xf32>
    %cst_375 = arith.constant 0.000000e+00 : f32
    %988 = vector.broadcast %cst_375 : f32 to vector<8x1xf32>
    %989 = arith.cmpf ogt, %987, %988 : vector<8x1xf32>
    %cst_376 = arith.constant 0.00999999977 : f32
    %990 = vector.broadcast %cst_376 : f32 to vector<8x1xf32>
    %991 = arith.mulf %990, %987 : vector<8x1xf32>
    %992 = arith.select %989, %987, %991 : vector<8x1xi1>, vector<8x1xf32>
    %cst_377 = arith.constant dense<0xFF800000> : vector<1xf32>
    %993 = vector.multi_reduction <maximumf>, %992, %cst_377 [0] : vector<8x1xf32> to vector<1xf32>
    %994 = vector.shape_cast %993 : vector<1xf32> to vector<1x1xf32>
    %995 = vector.broadcast %994 : vector<1x1xf32> to vector<8x1xf32>
    %996 = arith.subf %992, %995 : vector<8x1xf32>
    %997 = math.exp %996 : vector<8x1xf32>
    %cst_378 = arith.constant dense<0.000000e+00> : vector<1xf32>
    %998 = vector.multi_reduction <add>, %997, %cst_378 [0] : vector<8x1xf32> to vector<1xf32>
    %999 = vector.shape_cast %998 : vector<1xf32> to vector<1x1xf32>
    %1000 = tpu.reciprocal %999 {approx = true} : vector<1x1xf32> -> vector<1x1xf32>
    %1001 = vector.broadcast %1000 : vector<1x1xf32> to vector<8x1xf32>
    %1002 = arith.mulf %997, %1001 : vector<8x1xf32>
    %1003 = vector.extract_strided_slice %881 {offsets = [0, 16], sizes = [8, 16], strides = [1, 1]} : vector<16x96xf32> to vector<8x16xf32>
    %1004 = vector.broadcast %1002 : vector<8x1xf32> to vector<8x16xf32>
    %1005 = arith.mulf %1004, %1003 : vector<8x16xf32>
    %cst_379 = arith.constant dense<0.000000e+00> : vector<16xf32>
    %1006 = vector.multi_reduction <add>, %1005, %cst_379 [0] : vector<8x16xf32> to vector<16xf32>
    %1007 = vector.shape_cast %1006 : vector<16xf32> to vector<1x16xf32>
    %1008 = vector.extract_strided_slice %884 {offsets = [8, 1], sizes = [8, 1], strides = [1, 1]} : vector<16x6xf32> to vector<8x1xf32>
    %1009 = vector.extract_strided_slice %983 {offsets = [1, 1], sizes = [1, 1], strides = [1, 1]} : vector<2x6xf32> to vector<1x1xf32>
    %1010 = vector.broadcast %1009 : vector<1x1xf32> to vector<8x1xf32>
    %1011 = arith.addf %1008, %1010 : vector<8x1xf32>
    %cst_380 = arith.constant 0.000000e+00 : f32
    %1012 = vector.broadcast %cst_380 : f32 to vector<8x1xf32>
    %1013 = arith.cmpf ogt, %1011, %1012 : vector<8x1xf32>
    %cst_381 = arith.constant 0.00999999977 : f32
    %1014 = vector.broadcast %cst_381 : f32 to vector<8x1xf32>
    %1015 = arith.mulf %1014, %1011 : vector<8x1xf32>
    %1016 = arith.select %1013, %1011, %1015 : vector<8x1xi1>, vector<8x1xf32>
    %cst_382 = arith.constant dense<0xFF800000> : vector<1xf32>
    %1017 = vector.multi_reduction <maximumf>, %1016, %cst_382 [0] : vector<8x1xf32> to vector<1xf32>
    %1018 = vector.shape_cast %1017 : vector<1xf32> to vector<1x1xf32>
    %1019 = vector.broadcast %1018 : vector<1x1xf32> to vector<8x1xf32>
    %1020 = arith.subf %1016, %1019 : vector<8x1xf32>
    %1021 = math.exp %1020 : vector<8x1xf32>
    %cst_383 = arith.constant dense<0.000000e+00> : vector<1xf32>
    %1022 = vector.multi_reduction <add>, %1021, %cst_383 [0] : vector<8x1xf32> to vector<1xf32>
    %1023 = vector.shape_cast %1022 : vector<1xf32> to vector<1x1xf32>
    %1024 = tpu.reciprocal %1023 {approx = true} : vector<1x1xf32> -> vector<1x1xf32>
    %1025 = vector.broadcast %1024 : vector<1x1xf32> to vector<8x1xf32>
    %1026 = arith.mulf %1021, %1025 : vector<8x1xf32>
    %1027 = vector.extract_strided_slice %881 {offsets = [8, 16], sizes = [8, 16], strides = [1, 1]} : vector<16x96xf32> to vector<8x16xf32>
    %1028 = vector.broadcast %1026 : vector<8x1xf32> to vector<8x16xf32>
    %1029 = arith.mulf %1028, %1027 : vector<8x16xf32>
    %cst_384 = arith.constant dense<0.000000e+00> : vector<16xf32>
    %1030 = vector.multi_reduction <add>, %1029, %cst_384 [0] : vector<8x16xf32> to vector<16xf32>
    %1031 = vector.shape_cast %1030 : vector<16xf32> to vector<1x16xf32>
    %1032 = tpu.concatenate %1007, %1031 in 0 : vector<1x16xf32>, vector<1x16xf32> -> vector<2x16xf32>
    %cst_385 = arith.constant 0.000000e+00 : f32
    %1033 = vector.broadcast %cst_385 : f32 to vector<2x16xf32>
    %1034 = arith.cmpf ogt, %1032, %1033 : vector<2x16xf32>
    %cst_386 = arith.constant 0.000000e+00 : f32
    %1035 = vector.broadcast %cst_386 : f32 to vector<2x16xf32>
    %1036 = arith.minimumf %1032, %1035 : vector<2x16xf32>
    %1037 = math.exp %1036 : vector<2x16xf32>
    %cst_387 = arith.constant 1.000000e+00 : f32
    %1038 = vector.broadcast %cst_387 : f32 to vector<2x16xf32>
    %1039 = arith.subf %1037, %1038 : vector<2x16xf32>
    %1040 = arith.select %1034, %1032, %1039 : vector<2x16xi1>, vector<2x16xf32>
    %c1_388 = arith.constant 1 : index
    %c1_389 = arith.constant 1 : index
    %c0_390 = arith.constant 0 : index
    %c0_391 = arith.constant 0 : index
    %1041 = vector.load %arg21[%c1_388, %c1_389, %c0_390, %c0_391] : memref<2x6x32x64xf32, #tpu.memory_space<vmem>>, vector<1x1x32x64xf32>
    %1042 = vector.shape_cast %1041 : vector<1x1x32x64xf32> to vector<32x64xf32>
    %c1_392 = arith.constant 1 : index
    %c1_393 = arith.constant 1 : index
    %c0_394 = arith.constant 0 : index
    %c0_395 = arith.constant 0 : index
    %1043 = vector.load %arg22[%c1_392, %c1_393, %c0_394, %c0_395] : memref<2x6x1x64xf32, #tpu.memory_space<vmem>>, vector<1x1x1x64xf32>
    %1044 = vector.shape_cast %1043 : vector<1x1x1x64xf32> to vector<1x64xf32>
    %1045 = tpu.concatenate %1040, %978 in 1 : vector<2x16xf32>, vector<2x16xf32> -> vector<2x32xf32>
    %cst_396 = arith.constant dense<0.000000e+00> : vector<2x64xf32>
    %1046 = tpu.matmul %1045, %1042, %cst_396 {dimension_numbers = #tpu.dot_dimension_numbers<[1], [0], [0], [1], [0, 0, 1, 1], [], []>} : vector<2x32xf32>, vector<32x64xf32>, vector<2x64xf32> -> vector<2x64xf32>
    %1047 = vector.broadcast %1044 : vector<1x64xf32> to vector<2x64xf32>
    %1048 = arith.addf %1046, %1047 : vector<2x64xf32>
    %1049 = vector.extract_strided_slice %1048 {offsets = [0, 0], sizes = [2, 16], strides = [1, 1]} : vector<2x64xf32> to vector<2x16xf32>
    %1050 = arith.negf %1049 : vector<2x16xf32>
    %1051 = math.exp %1050 : vector<2x16xf32>
    %cst_397 = arith.constant 1.000000e+00 : f32
    %1052 = vector.broadcast %cst_397 : f32 to vector<2x16xf32>
    %1053 = arith.addf %1052, %1051 : vector<2x16xf32>
    %1054 = arith.divf %1052, %1053 : vector<2x16xf32>
    %1055 = vector.extract_strided_slice %1048 {offsets = [0, 16], sizes = [2, 16], strides = [1, 1]} : vector<2x64xf32> to vector<2x16xf32>
    %1056 = arith.negf %1055 : vector<2x16xf32>
    %1057 = math.exp %1056 : vector<2x16xf32>
    %cst_398 = arith.constant 1.000000e+00 : f32
    %1058 = vector.broadcast %cst_398 : f32 to vector<2x16xf32>
    %1059 = arith.addf %1058, %1057 : vector<2x16xf32>
    %1060 = arith.divf %1058, %1059 : vector<2x16xf32>
    %1061 = vector.extract_strided_slice %1048 {offsets = [0, 32], sizes = [2, 16], strides = [1, 1]} : vector<2x64xf32> to vector<2x16xf32>
    %1062 = vector.extract_strided_slice %1048 {offsets = [0, 48], sizes = [2, 16], strides = [1, 1]} : vector<2x64xf32> to vector<2x16xf32>
    %1063 = arith.mulf %1054, %1062 : vector<2x16xf32>
    %1064 = arith.addf %1061, %1063 : vector<2x16xf32>
    %1065 = math.tanh %1064 : vector<2x16xf32>
    %cst_399 = arith.constant 1.000000e+00 : f32
    %1066 = vector.broadcast %cst_399 : f32 to vector<2x16xf32>
    %1067 = arith.subf %1066, %1060 : vector<2x16xf32>
    %1068 = arith.mulf %1067, %1065 : vector<2x16xf32>
    %1069 = arith.mulf %1060, %978 : vector<2x16xf32>
    %1070 = arith.addf %1068, %1069 : vector<2x16xf32>
    %cst_400 = arith.constant 0.000000e+00 : f32
    %1071 = vector.broadcast %cst_400 : f32 to vector<2x16xf32>
    %1072 = arith.maximumf %1070, %1071 : vector<2x16xf32>
    %cst_401 = arith.constant 0.000000e+00 : f32
    %1073 = vector.broadcast %cst_401 : f32 to vector<2x16xf32>
    %1074 = arith.maximumf %1072, %1073 : vector<2x16xf32>
    %cst_402 = arith.constant dense<0.000000e+00> : vector<2x6xf32>
    %1075 = tpu.matmul %1074, %871, %cst_402 {dimension_numbers = #tpu.dot_dimension_numbers<[1], [0], [0], [1], [0, 0, 1, 1], [], []>} : vector<2x16xf32>, vector<16x6xf32>, vector<2x6xf32> -> vector<2x6xf32>
    %1076 = vector.broadcast %873 : vector<1x6xf32> to vector<2x6xf32>
    %1077 = arith.addf %1075, %1076 : vector<2x6xf32>
    %1078 = vector.extract_strided_slice %884 {offsets = [0, 2], sizes = [8, 1], strides = [1, 1]} : vector<16x6xf32> to vector<8x1xf32>
    %1079 = vector.extract_strided_slice %1077 {offsets = [0, 2], sizes = [1, 1], strides = [1, 1]} : vector<2x6xf32> to vector<1x1xf32>
    %1080 = vector.broadcast %1079 : vector<1x1xf32> to vector<8x1xf32>
    %1081 = arith.addf %1078, %1080 : vector<8x1xf32>
    %cst_403 = arith.constant 0.000000e+00 : f32
    %1082 = vector.broadcast %cst_403 : f32 to vector<8x1xf32>
    %1083 = arith.cmpf ogt, %1081, %1082 : vector<8x1xf32>
    %cst_404 = arith.constant 0.00999999977 : f32
    %1084 = vector.broadcast %cst_404 : f32 to vector<8x1xf32>
    %1085 = arith.mulf %1084, %1081 : vector<8x1xf32>
    %1086 = arith.select %1083, %1081, %1085 : vector<8x1xi1>, vector<8x1xf32>
    %cst_405 = arith.constant dense<0xFF800000> : vector<1xf32>
    %1087 = vector.multi_reduction <maximumf>, %1086, %cst_405 [0] : vector<8x1xf32> to vector<1xf32>
    %1088 = vector.shape_cast %1087 : vector<1xf32> to vector<1x1xf32>
    %1089 = vector.broadcast %1088 : vector<1x1xf32> to vector<8x1xf32>
    %1090 = arith.subf %1086, %1089 : vector<8x1xf32>
    %1091 = math.exp %1090 : vector<8x1xf32>
    %cst_406 = arith.constant dense<0.000000e+00> : vector<1xf32>
    %1092 = vector.multi_reduction <add>, %1091, %cst_406 [0] : vector<8x1xf32> to vector<1xf32>
    %1093 = vector.shape_cast %1092 : vector<1xf32> to vector<1x1xf32>
    %1094 = tpu.reciprocal %1093 {approx = true} : vector<1x1xf32> -> vector<1x1xf32>
    %1095 = vector.broadcast %1094 : vector<1x1xf32> to vector<8x1xf32>
    %1096 = arith.mulf %1091, %1095 : vector<8x1xf32>
    %1097 = vector.extract_strided_slice %881 {offsets = [0, 32], sizes = [8, 16], strides = [1, 1]} : vector<16x96xf32> to vector<8x16xf32>
    %1098 = vector.broadcast %1096 : vector<8x1xf32> to vector<8x16xf32>
    %1099 = arith.mulf %1098, %1097 : vector<8x16xf32>
    %cst_407 = arith.constant dense<0.000000e+00> : vector<16xf32>
    %1100 = vector.multi_reduction <add>, %1099, %cst_407 [0] : vector<8x16xf32> to vector<16xf32>
    %1101 = vector.shape_cast %1100 : vector<16xf32> to vector<1x16xf32>
    %1102 = vector.extract_strided_slice %884 {offsets = [8, 2], sizes = [8, 1], strides = [1, 1]} : vector<16x6xf32> to vector<8x1xf32>
    %1103 = vector.extract_strided_slice %1077 {offsets = [1, 2], sizes = [1, 1], strides = [1, 1]} : vector<2x6xf32> to vector<1x1xf32>
    %1104 = vector.broadcast %1103 : vector<1x1xf32> to vector<8x1xf32>
    %1105 = arith.addf %1102, %1104 : vector<8x1xf32>
    %cst_408 = arith.constant 0.000000e+00 : f32
    %1106 = vector.broadcast %cst_408 : f32 to vector<8x1xf32>
    %1107 = arith.cmpf ogt, %1105, %1106 : vector<8x1xf32>
    %cst_409 = arith.constant 0.00999999977 : f32
    %1108 = vector.broadcast %cst_409 : f32 to vector<8x1xf32>
    %1109 = arith.mulf %1108, %1105 : vector<8x1xf32>
    %1110 = arith.select %1107, %1105, %1109 : vector<8x1xi1>, vector<8x1xf32>
    %cst_410 = arith.constant dense<0xFF800000> : vector<1xf32>
    %1111 = vector.multi_reduction <maximumf>, %1110, %cst_410 [0] : vector<8x1xf32> to vector<1xf32>
    %1112 = vector.shape_cast %1111 : vector<1xf32> to vector<1x1xf32>
    %1113 = vector.broadcast %1112 : vector<1x1xf32> to vector<8x1xf32>
    %1114 = arith.subf %1110, %1113 : vector<8x1xf32>
    %1115 = math.exp %1114 : vector<8x1xf32>
    %cst_411 = arith.constant dense<0.000000e+00> : vector<1xf32>
    %1116 = vector.multi_reduction <add>, %1115, %cst_411 [0] : vector<8x1xf32> to vector<1xf32>
    %1117 = vector.shape_cast %1116 : vector<1xf32> to vector<1x1xf32>
    %1118 = tpu.reciprocal %1117 {approx = true} : vector<1x1xf32> -> vector<1x1xf32>
    %1119 = vector.broadcast %1118 : vector<1x1xf32> to vector<8x1xf32>
    %1120 = arith.mulf %1115, %1119 : vector<8x1xf32>
    %1121 = vector.extract_strided_slice %881 {offsets = [8, 32], sizes = [8, 16], strides = [1, 1]} : vector<16x96xf32> to vector<8x16xf32>
    %1122 = vector.broadcast %1120 : vector<8x1xf32> to vector<8x16xf32>
    %1123 = arith.mulf %1122, %1121 : vector<8x16xf32>
    %cst_412 = arith.constant dense<0.000000e+00> : vector<16xf32>
    %1124 = vector.multi_reduction <add>, %1123, %cst_412 [0] : vector<8x16xf32> to vector<16xf32>
    %1125 = vector.shape_cast %1124 : vector<16xf32> to vector<1x16xf32>
    %1126 = tpu.concatenate %1101, %1125 in 0 : vector<1x16xf32>, vector<1x16xf32> -> vector<2x16xf32>
    %cst_413 = arith.constant 0.000000e+00 : f32
    %1127 = vector.broadcast %cst_413 : f32 to vector<2x16xf32>
    %1128 = arith.cmpf ogt, %1126, %1127 : vector<2x16xf32>
    %cst_414 = arith.constant 0.000000e+00 : f32
    %1129 = vector.broadcast %cst_414 : f32 to vector<2x16xf32>
    %1130 = arith.minimumf %1126, %1129 : vector<2x16xf32>
    %1131 = math.exp %1130 : vector<2x16xf32>
    %cst_415 = arith.constant 1.000000e+00 : f32
    %1132 = vector.broadcast %cst_415 : f32 to vector<2x16xf32>
    %1133 = arith.subf %1131, %1132 : vector<2x16xf32>
    %1134 = arith.select %1128, %1126, %1133 : vector<2x16xi1>, vector<2x16xf32>
    %c1_416 = arith.constant 1 : index
    %c2_417 = arith.constant 2 : index
    %c0_418 = arith.constant 0 : index
    %c0_419 = arith.constant 0 : index
    %1135 = vector.load %arg21[%c1_416, %c2_417, %c0_418, %c0_419] : memref<2x6x32x64xf32, #tpu.memory_space<vmem>>, vector<1x1x32x64xf32>
    %1136 = vector.shape_cast %1135 : vector<1x1x32x64xf32> to vector<32x64xf32>
    %c1_420 = arith.constant 1 : index
    %c2_421 = arith.constant 2 : index
    %c0_422 = arith.constant 0 : index
    %c0_423 = arith.constant 0 : index
    %1137 = vector.load %arg22[%c1_420, %c2_421, %c0_422, %c0_423] : memref<2x6x1x64xf32, #tpu.memory_space<vmem>>, vector<1x1x1x64xf32>
    %1138 = vector.shape_cast %1137 : vector<1x1x1x64xf32> to vector<1x64xf32>
    %1139 = tpu.concatenate %1134, %1072 in 1 : vector<2x16xf32>, vector<2x16xf32> -> vector<2x32xf32>
    %cst_424 = arith.constant dense<0.000000e+00> : vector<2x64xf32>
    %1140 = tpu.matmul %1139, %1136, %cst_424 {dimension_numbers = #tpu.dot_dimension_numbers<[1], [0], [0], [1], [0, 0, 1, 1], [], []>} : vector<2x32xf32>, vector<32x64xf32>, vector<2x64xf32> -> vector<2x64xf32>
    %1141 = vector.broadcast %1138 : vector<1x64xf32> to vector<2x64xf32>
    %1142 = arith.addf %1140, %1141 : vector<2x64xf32>
    %1143 = vector.extract_strided_slice %1142 {offsets = [0, 0], sizes = [2, 16], strides = [1, 1]} : vector<2x64xf32> to vector<2x16xf32>
    %1144 = arith.negf %1143 : vector<2x16xf32>
    %1145 = math.exp %1144 : vector<2x16xf32>
    %cst_425 = arith.constant 1.000000e+00 : f32
    %1146 = vector.broadcast %cst_425 : f32 to vector<2x16xf32>
    %1147 = arith.addf %1146, %1145 : vector<2x16xf32>
    %1148 = arith.divf %1146, %1147 : vector<2x16xf32>
    %1149 = vector.extract_strided_slice %1142 {offsets = [0, 16], sizes = [2, 16], strides = [1, 1]} : vector<2x64xf32> to vector<2x16xf32>
    %1150 = arith.negf %1149 : vector<2x16xf32>
    %1151 = math.exp %1150 : vector<2x16xf32>
    %cst_426 = arith.constant 1.000000e+00 : f32
    %1152 = vector.broadcast %cst_426 : f32 to vector<2x16xf32>
    %1153 = arith.addf %1152, %1151 : vector<2x16xf32>
    %1154 = arith.divf %1152, %1153 : vector<2x16xf32>
    %1155 = vector.extract_strided_slice %1142 {offsets = [0, 32], sizes = [2, 16], strides = [1, 1]} : vector<2x64xf32> to vector<2x16xf32>
    %1156 = vector.extract_strided_slice %1142 {offsets = [0, 48], sizes = [2, 16], strides = [1, 1]} : vector<2x64xf32> to vector<2x16xf32>
    %1157 = arith.mulf %1148, %1156 : vector<2x16xf32>
    %1158 = arith.addf %1155, %1157 : vector<2x16xf32>
    %1159 = math.tanh %1158 : vector<2x16xf32>
    %cst_427 = arith.constant 1.000000e+00 : f32
    %1160 = vector.broadcast %cst_427 : f32 to vector<2x16xf32>
    %1161 = arith.subf %1160, %1154 : vector<2x16xf32>
    %1162 = arith.mulf %1161, %1159 : vector<2x16xf32>
    %1163 = arith.mulf %1154, %1072 : vector<2x16xf32>
    %1164 = arith.addf %1162, %1163 : vector<2x16xf32>
    %cst_428 = arith.constant 0.000000e+00 : f32
    %1165 = vector.broadcast %cst_428 : f32 to vector<2x16xf32>
    %1166 = arith.maximumf %1164, %1165 : vector<2x16xf32>
    %cst_429 = arith.constant 0.000000e+00 : f32
    %1167 = vector.broadcast %cst_429 : f32 to vector<2x16xf32>
    %1168 = arith.maximumf %1166, %1167 : vector<2x16xf32>
    %cst_430 = arith.constant dense<0.000000e+00> : vector<2x6xf32>
    %1169 = tpu.matmul %1168, %871, %cst_430 {dimension_numbers = #tpu.dot_dimension_numbers<[1], [0], [0], [1], [0, 0, 1, 1], [], []>} : vector<2x16xf32>, vector<16x6xf32>, vector<2x6xf32> -> vector<2x6xf32>
    %1170 = vector.broadcast %873 : vector<1x6xf32> to vector<2x6xf32>
    %1171 = arith.addf %1169, %1170 : vector<2x6xf32>
    %1172 = vector.extract_strided_slice %884 {offsets = [0, 3], sizes = [8, 1], strides = [1, 1]} : vector<16x6xf32> to vector<8x1xf32>
    %1173 = vector.extract_strided_slice %1171 {offsets = [0, 3], sizes = [1, 1], strides = [1, 1]} : vector<2x6xf32> to vector<1x1xf32>
    %1174 = vector.broadcast %1173 : vector<1x1xf32> to vector<8x1xf32>
    %1175 = arith.addf %1172, %1174 : vector<8x1xf32>
    %cst_431 = arith.constant 0.000000e+00 : f32
    %1176 = vector.broadcast %cst_431 : f32 to vector<8x1xf32>
    %1177 = arith.cmpf ogt, %1175, %1176 : vector<8x1xf32>
    %cst_432 = arith.constant 0.00999999977 : f32
    %1178 = vector.broadcast %cst_432 : f32 to vector<8x1xf32>
    %1179 = arith.mulf %1178, %1175 : vector<8x1xf32>
    %1180 = arith.select %1177, %1175, %1179 : vector<8x1xi1>, vector<8x1xf32>
    %cst_433 = arith.constant dense<0xFF800000> : vector<1xf32>
    %1181 = vector.multi_reduction <maximumf>, %1180, %cst_433 [0] : vector<8x1xf32> to vector<1xf32>
    %1182 = vector.shape_cast %1181 : vector<1xf32> to vector<1x1xf32>
    %1183 = vector.broadcast %1182 : vector<1x1xf32> to vector<8x1xf32>
    %1184 = arith.subf %1180, %1183 : vector<8x1xf32>
    %1185 = math.exp %1184 : vector<8x1xf32>
    %cst_434 = arith.constant dense<0.000000e+00> : vector<1xf32>
    %1186 = vector.multi_reduction <add>, %1185, %cst_434 [0] : vector<8x1xf32> to vector<1xf32>
    %1187 = vector.shape_cast %1186 : vector<1xf32> to vector<1x1xf32>
    %1188 = tpu.reciprocal %1187 {approx = true} : vector<1x1xf32> -> vector<1x1xf32>
    %1189 = vector.broadcast %1188 : vector<1x1xf32> to vector<8x1xf32>
    %1190 = arith.mulf %1185, %1189 : vector<8x1xf32>
    %1191 = vector.extract_strided_slice %881 {offsets = [0, 48], sizes = [8, 16], strides = [1, 1]} : vector<16x96xf32> to vector<8x16xf32>
    %1192 = vector.broadcast %1190 : vector<8x1xf32> to vector<8x16xf32>
    %1193 = arith.mulf %1192, %1191 : vector<8x16xf32>
    %cst_435 = arith.constant dense<0.000000e+00> : vector<16xf32>
    %1194 = vector.multi_reduction <add>, %1193, %cst_435 [0] : vector<8x16xf32> to vector<16xf32>
    %1195 = vector.shape_cast %1194 : vector<16xf32> to vector<1x16xf32>
    %1196 = vector.extract_strided_slice %884 {offsets = [8, 3], sizes = [8, 1], strides = [1, 1]} : vector<16x6xf32> to vector<8x1xf32>
    %1197 = vector.extract_strided_slice %1171 {offsets = [1, 3], sizes = [1, 1], strides = [1, 1]} : vector<2x6xf32> to vector<1x1xf32>
    %1198 = vector.broadcast %1197 : vector<1x1xf32> to vector<8x1xf32>
    %1199 = arith.addf %1196, %1198 : vector<8x1xf32>
    %cst_436 = arith.constant 0.000000e+00 : f32
    %1200 = vector.broadcast %cst_436 : f32 to vector<8x1xf32>
    %1201 = arith.cmpf ogt, %1199, %1200 : vector<8x1xf32>
    %cst_437 = arith.constant 0.00999999977 : f32
    %1202 = vector.broadcast %cst_437 : f32 to vector<8x1xf32>
    %1203 = arith.mulf %1202, %1199 : vector<8x1xf32>
    %1204 = arith.select %1201, %1199, %1203 : vector<8x1xi1>, vector<8x1xf32>
    %cst_438 = arith.constant dense<0xFF800000> : vector<1xf32>
    %1205 = vector.multi_reduction <maximumf>, %1204, %cst_438 [0] : vector<8x1xf32> to vector<1xf32>
    %1206 = vector.shape_cast %1205 : vector<1xf32> to vector<1x1xf32>
    %1207 = vector.broadcast %1206 : vector<1x1xf32> to vector<8x1xf32>
    %1208 = arith.subf %1204, %1207 : vector<8x1xf32>
    %1209 = math.exp %1208 : vector<8x1xf32>
    %cst_439 = arith.constant dense<0.000000e+00> : vector<1xf32>
    %1210 = vector.multi_reduction <add>, %1209, %cst_439 [0] : vector<8x1xf32> to vector<1xf32>
    %1211 = vector.shape_cast %1210 : vector<1xf32> to vector<1x1xf32>
    %1212 = tpu.reciprocal %1211 {approx = true} : vector<1x1xf32> -> vector<1x1xf32>
    %1213 = vector.broadcast %1212 : vector<1x1xf32> to vector<8x1xf32>
    %1214 = arith.mulf %1209, %1213 : vector<8x1xf32>
    %1215 = vector.extract_strided_slice %881 {offsets = [8, 48], sizes = [8, 16], strides = [1, 1]} : vector<16x96xf32> to vector<8x16xf32>
    %1216 = vector.broadcast %1214 : vector<8x1xf32> to vector<8x16xf32>
    %1217 = arith.mulf %1216, %1215 : vector<8x16xf32>
    %cst_440 = arith.constant dense<0.000000e+00> : vector<16xf32>
    %1218 = vector.multi_reduction <add>, %1217, %cst_440 [0] : vector<8x16xf32> to vector<16xf32>
    %1219 = vector.shape_cast %1218 : vector<16xf32> to vector<1x16xf32>
    %1220 = tpu.concatenate %1195, %1219 in 0 : vector<1x16xf32>, vector<1x16xf32> -> vector<2x16xf32>
    %cst_441 = arith.constant 0.000000e+00 : f32
    %1221 = vector.broadcast %cst_441 : f32 to vector<2x16xf32>
    %1222 = arith.cmpf ogt, %1220, %1221 : vector<2x16xf32>
    %cst_442 = arith.constant 0.000000e+00 : f32
    %1223 = vector.broadcast %cst_442 : f32 to vector<2x16xf32>
    %1224 = arith.minimumf %1220, %1223 : vector<2x16xf32>
    %1225 = math.exp %1224 : vector<2x16xf32>
    %cst_443 = arith.constant 1.000000e+00 : f32
    %1226 = vector.broadcast %cst_443 : f32 to vector<2x16xf32>
    %1227 = arith.subf %1225, %1226 : vector<2x16xf32>
    %1228 = arith.select %1222, %1220, %1227 : vector<2x16xi1>, vector<2x16xf32>
    %c1_444 = arith.constant 1 : index
    %c3_445 = arith.constant 3 : index
    %c0_446 = arith.constant 0 : index
    %c0_447 = arith.constant 0 : index
    %1229 = vector.load %arg21[%c1_444, %c3_445, %c0_446, %c0_447] : memref<2x6x32x64xf32, #tpu.memory_space<vmem>>, vector<1x1x32x64xf32>
    %1230 = vector.shape_cast %1229 : vector<1x1x32x64xf32> to vector<32x64xf32>
    %c1_448 = arith.constant 1 : index
    %c3_449 = arith.constant 3 : index
    %c0_450 = arith.constant 0 : index
    %c0_451 = arith.constant 0 : index
    %1231 = vector.load %arg22[%c1_448, %c3_449, %c0_450, %c0_451] : memref<2x6x1x64xf32, #tpu.memory_space<vmem>>, vector<1x1x1x64xf32>
    %1232 = vector.shape_cast %1231 : vector<1x1x1x64xf32> to vector<1x64xf32>
    %1233 = tpu.concatenate %1228, %1166 in 1 : vector<2x16xf32>, vector<2x16xf32> -> vector<2x32xf32>
    %cst_452 = arith.constant dense<0.000000e+00> : vector<2x64xf32>
    %1234 = tpu.matmul %1233, %1230, %cst_452 {dimension_numbers = #tpu.dot_dimension_numbers<[1], [0], [0], [1], [0, 0, 1, 1], [], []>} : vector<2x32xf32>, vector<32x64xf32>, vector<2x64xf32> -> vector<2x64xf32>
    %1235 = vector.broadcast %1232 : vector<1x64xf32> to vector<2x64xf32>
    %1236 = arith.addf %1234, %1235 : vector<2x64xf32>
    %1237 = vector.extract_strided_slice %1236 {offsets = [0, 0], sizes = [2, 16], strides = [1, 1]} : vector<2x64xf32> to vector<2x16xf32>
    %1238 = arith.negf %1237 : vector<2x16xf32>
    %1239 = math.exp %1238 : vector<2x16xf32>
    %cst_453 = arith.constant 1.000000e+00 : f32
    %1240 = vector.broadcast %cst_453 : f32 to vector<2x16xf32>
    %1241 = arith.addf %1240, %1239 : vector<2x16xf32>
    %1242 = arith.divf %1240, %1241 : vector<2x16xf32>
    %1243 = vector.extract_strided_slice %1236 {offsets = [0, 16], sizes = [2, 16], strides = [1, 1]} : vector<2x64xf32> to vector<2x16xf32>
    %1244 = arith.negf %1243 : vector<2x16xf32>
    %1245 = math.exp %1244 : vector<2x16xf32>
    %cst_454 = arith.constant 1.000000e+00 : f32
    %1246 = vector.broadcast %cst_454 : f32 to vector<2x16xf32>
    %1247 = arith.addf %1246, %1245 : vector<2x16xf32>
    %1248 = arith.divf %1246, %1247 : vector<2x16xf32>
    %1249 = vector.extract_strided_slice %1236 {offsets = [0, 32], sizes = [2, 16], strides = [1, 1]} : vector<2x64xf32> to vector<2x16xf32>
    %1250 = vector.extract_strided_slice %1236 {offsets = [0, 48], sizes = [2, 16], strides = [1, 1]} : vector<2x64xf32> to vector<2x16xf32>
    %1251 = arith.mulf %1242, %1250 : vector<2x16xf32>
    %1252 = arith.addf %1249, %1251 : vector<2x16xf32>
    %1253 = math.tanh %1252 : vector<2x16xf32>
    %cst_455 = arith.constant 1.000000e+00 : f32
    %1254 = vector.broadcast %cst_455 : f32 to vector<2x16xf32>
    %1255 = arith.subf %1254, %1248 : vector<2x16xf32>
    %1256 = arith.mulf %1255, %1253 : vector<2x16xf32>
    %1257 = arith.mulf %1248, %1166 : vector<2x16xf32>
    %1258 = arith.addf %1256, %1257 : vector<2x16xf32>
    %cst_456 = arith.constant 0.000000e+00 : f32
    %1259 = vector.broadcast %cst_456 : f32 to vector<2x16xf32>
    %1260 = arith.maximumf %1258, %1259 : vector<2x16xf32>
    %cst_457 = arith.constant 0.000000e+00 : f32
    %1261 = vector.broadcast %cst_457 : f32 to vector<2x16xf32>
    %1262 = arith.maximumf %1260, %1261 : vector<2x16xf32>
    %cst_458 = arith.constant dense<0.000000e+00> : vector<2x6xf32>
    %1263 = tpu.matmul %1262, %871, %cst_458 {dimension_numbers = #tpu.dot_dimension_numbers<[1], [0], [0], [1], [0, 0, 1, 1], [], []>} : vector<2x16xf32>, vector<16x6xf32>, vector<2x6xf32> -> vector<2x6xf32>
    %1264 = vector.broadcast %873 : vector<1x6xf32> to vector<2x6xf32>
    %1265 = arith.addf %1263, %1264 : vector<2x6xf32>
    %1266 = vector.extract_strided_slice %884 {offsets = [0, 4], sizes = [8, 1], strides = [1, 1]} : vector<16x6xf32> to vector<8x1xf32>
    %1267 = vector.extract_strided_slice %1265 {offsets = [0, 4], sizes = [1, 1], strides = [1, 1]} : vector<2x6xf32> to vector<1x1xf32>
    %1268 = vector.broadcast %1267 : vector<1x1xf32> to vector<8x1xf32>
    %1269 = arith.addf %1266, %1268 : vector<8x1xf32>
    %cst_459 = arith.constant 0.000000e+00 : f32
    %1270 = vector.broadcast %cst_459 : f32 to vector<8x1xf32>
    %1271 = arith.cmpf ogt, %1269, %1270 : vector<8x1xf32>
    %cst_460 = arith.constant 0.00999999977 : f32
    %1272 = vector.broadcast %cst_460 : f32 to vector<8x1xf32>
    %1273 = arith.mulf %1272, %1269 : vector<8x1xf32>
    %1274 = arith.select %1271, %1269, %1273 : vector<8x1xi1>, vector<8x1xf32>
    %cst_461 = arith.constant dense<0xFF800000> : vector<1xf32>
    %1275 = vector.multi_reduction <maximumf>, %1274, %cst_461 [0] : vector<8x1xf32> to vector<1xf32>
    %1276 = vector.shape_cast %1275 : vector<1xf32> to vector<1x1xf32>
    %1277 = vector.broadcast %1276 : vector<1x1xf32> to vector<8x1xf32>
    %1278 = arith.subf %1274, %1277 : vector<8x1xf32>
    %1279 = math.exp %1278 : vector<8x1xf32>
    %cst_462 = arith.constant dense<0.000000e+00> : vector<1xf32>
    %1280 = vector.multi_reduction <add>, %1279, %cst_462 [0] : vector<8x1xf32> to vector<1xf32>
    %1281 = vector.shape_cast %1280 : vector<1xf32> to vector<1x1xf32>
    %1282 = tpu.reciprocal %1281 {approx = true} : vector<1x1xf32> -> vector<1x1xf32>
    %1283 = vector.broadcast %1282 : vector<1x1xf32> to vector<8x1xf32>
    %1284 = arith.mulf %1279, %1283 : vector<8x1xf32>
    %1285 = vector.extract_strided_slice %881 {offsets = [0, 64], sizes = [8, 16], strides = [1, 1]} : vector<16x96xf32> to vector<8x16xf32>
    %1286 = vector.broadcast %1284 : vector<8x1xf32> to vector<8x16xf32>
    %1287 = arith.mulf %1286, %1285 : vector<8x16xf32>
    %cst_463 = arith.constant dense<0.000000e+00> : vector<16xf32>
    %1288 = vector.multi_reduction <add>, %1287, %cst_463 [0] : vector<8x16xf32> to vector<16xf32>
    %1289 = vector.shape_cast %1288 : vector<16xf32> to vector<1x16xf32>
    %1290 = vector.extract_strided_slice %884 {offsets = [8, 4], sizes = [8, 1], strides = [1, 1]} : vector<16x6xf32> to vector<8x1xf32>
    %1291 = vector.extract_strided_slice %1265 {offsets = [1, 4], sizes = [1, 1], strides = [1, 1]} : vector<2x6xf32> to vector<1x1xf32>
    %1292 = vector.broadcast %1291 : vector<1x1xf32> to vector<8x1xf32>
    %1293 = arith.addf %1290, %1292 : vector<8x1xf32>
    %cst_464 = arith.constant 0.000000e+00 : f32
    %1294 = vector.broadcast %cst_464 : f32 to vector<8x1xf32>
    %1295 = arith.cmpf ogt, %1293, %1294 : vector<8x1xf32>
    %cst_465 = arith.constant 0.00999999977 : f32
    %1296 = vector.broadcast %cst_465 : f32 to vector<8x1xf32>
    %1297 = arith.mulf %1296, %1293 : vector<8x1xf32>
    %1298 = arith.select %1295, %1293, %1297 : vector<8x1xi1>, vector<8x1xf32>
    %cst_466 = arith.constant dense<0xFF800000> : vector<1xf32>
    %1299 = vector.multi_reduction <maximumf>, %1298, %cst_466 [0] : vector<8x1xf32> to vector<1xf32>
    %1300 = vector.shape_cast %1299 : vector<1xf32> to vector<1x1xf32>
    %1301 = vector.broadcast %1300 : vector<1x1xf32> to vector<8x1xf32>
    %1302 = arith.subf %1298, %1301 : vector<8x1xf32>
    %1303 = math.exp %1302 : vector<8x1xf32>
    %cst_467 = arith.constant dense<0.000000e+00> : vector<1xf32>
    %1304 = vector.multi_reduction <add>, %1303, %cst_467 [0] : vector<8x1xf32> to vector<1xf32>
    %1305 = vector.shape_cast %1304 : vector<1xf32> to vector<1x1xf32>
    %1306 = tpu.reciprocal %1305 {approx = true} : vector<1x1xf32> -> vector<1x1xf32>
    %1307 = vector.broadcast %1306 : vector<1x1xf32> to vector<8x1xf32>
    %1308 = arith.mulf %1303, %1307 : vector<8x1xf32>
    %1309 = vector.extract_strided_slice %881 {offsets = [8, 64], sizes = [8, 16], strides = [1, 1]} : vector<16x96xf32> to vector<8x16xf32>
    %1310 = vector.broadcast %1308 : vector<8x1xf32> to vector<8x16xf32>
    %1311 = arith.mulf %1310, %1309 : vector<8x16xf32>
    %cst_468 = arith.constant dense<0.000000e+00> : vector<16xf32>
    %1312 = vector.multi_reduction <add>, %1311, %cst_468 [0] : vector<8x16xf32> to vector<16xf32>
    %1313 = vector.shape_cast %1312 : vector<16xf32> to vector<1x16xf32>
    %1314 = tpu.concatenate %1289, %1313 in 0 : vector<1x16xf32>, vector<1x16xf32> -> vector<2x16xf32>
    %cst_469 = arith.constant 0.000000e+00 : f32
    %1315 = vector.broadcast %cst_469 : f32 to vector<2x16xf32>
    %1316 = arith.cmpf ogt, %1314, %1315 : vector<2x16xf32>
    %cst_470 = arith.constant 0.000000e+00 : f32
    %1317 = vector.broadcast %cst_470 : f32 to vector<2x16xf32>
    %1318 = arith.minimumf %1314, %1317 : vector<2x16xf32>
    %1319 = math.exp %1318 : vector<2x16xf32>
    %cst_471 = arith.constant 1.000000e+00 : f32
    %1320 = vector.broadcast %cst_471 : f32 to vector<2x16xf32>
    %1321 = arith.subf %1319, %1320 : vector<2x16xf32>
    %1322 = arith.select %1316, %1314, %1321 : vector<2x16xi1>, vector<2x16xf32>
    %c1_472 = arith.constant 1 : index
    %c4_473 = arith.constant 4 : index
    %c0_474 = arith.constant 0 : index
    %c0_475 = arith.constant 0 : index
    %1323 = vector.load %arg21[%c1_472, %c4_473, %c0_474, %c0_475] : memref<2x6x32x64xf32, #tpu.memory_space<vmem>>, vector<1x1x32x64xf32>
    %1324 = vector.shape_cast %1323 : vector<1x1x32x64xf32> to vector<32x64xf32>
    %c1_476 = arith.constant 1 : index
    %c4_477 = arith.constant 4 : index
    %c0_478 = arith.constant 0 : index
    %c0_479 = arith.constant 0 : index
    %1325 = vector.load %arg22[%c1_476, %c4_477, %c0_478, %c0_479] : memref<2x6x1x64xf32, #tpu.memory_space<vmem>>, vector<1x1x1x64xf32>
    %1326 = vector.shape_cast %1325 : vector<1x1x1x64xf32> to vector<1x64xf32>
    %1327 = tpu.concatenate %1322, %1260 in 1 : vector<2x16xf32>, vector<2x16xf32> -> vector<2x32xf32>
    %cst_480 = arith.constant dense<0.000000e+00> : vector<2x64xf32>
    %1328 = tpu.matmul %1327, %1324, %cst_480 {dimension_numbers = #tpu.dot_dimension_numbers<[1], [0], [0], [1], [0, 0, 1, 1], [], []>} : vector<2x32xf32>, vector<32x64xf32>, vector<2x64xf32> -> vector<2x64xf32>
    %1329 = vector.broadcast %1326 : vector<1x64xf32> to vector<2x64xf32>
    %1330 = arith.addf %1328, %1329 : vector<2x64xf32>
    %1331 = vector.extract_strided_slice %1330 {offsets = [0, 0], sizes = [2, 16], strides = [1, 1]} : vector<2x64xf32> to vector<2x16xf32>
    %1332 = arith.negf %1331 : vector<2x16xf32>
    %1333 = math.exp %1332 : vector<2x16xf32>
    %cst_481 = arith.constant 1.000000e+00 : f32
    %1334 = vector.broadcast %cst_481 : f32 to vector<2x16xf32>
    %1335 = arith.addf %1334, %1333 : vector<2x16xf32>
    %1336 = arith.divf %1334, %1335 : vector<2x16xf32>
    %1337 = vector.extract_strided_slice %1330 {offsets = [0, 16], sizes = [2, 16], strides = [1, 1]} : vector<2x64xf32> to vector<2x16xf32>
    %1338 = arith.negf %1337 : vector<2x16xf32>
    %1339 = math.exp %1338 : vector<2x16xf32>
    %cst_482 = arith.constant 1.000000e+00 : f32
    %1340 = vector.broadcast %cst_482 : f32 to vector<2x16xf32>
    %1341 = arith.addf %1340, %1339 : vector<2x16xf32>
    %1342 = arith.divf %1340, %1341 : vector<2x16xf32>
    %1343 = vector.extract_strided_slice %1330 {offsets = [0, 32], sizes = [2, 16], strides = [1, 1]} : vector<2x64xf32> to vector<2x16xf32>
    %1344 = vector.extract_strided_slice %1330 {offsets = [0, 48], sizes = [2, 16], strides = [1, 1]} : vector<2x64xf32> to vector<2x16xf32>
    %1345 = arith.mulf %1336, %1344 : vector<2x16xf32>
    %1346 = arith.addf %1343, %1345 : vector<2x16xf32>
    %1347 = math.tanh %1346 : vector<2x16xf32>
    %cst_483 = arith.constant 1.000000e+00 : f32
    %1348 = vector.broadcast %cst_483 : f32 to vector<2x16xf32>
    %1349 = arith.subf %1348, %1342 : vector<2x16xf32>
    %1350 = arith.mulf %1349, %1347 : vector<2x16xf32>
    %1351 = arith.mulf %1342, %1260 : vector<2x16xf32>
    %1352 = arith.addf %1350, %1351 : vector<2x16xf32>
    %cst_484 = arith.constant 0.000000e+00 : f32
    %1353 = vector.broadcast %cst_484 : f32 to vector<2x16xf32>
    %1354 = arith.maximumf %1352, %1353 : vector<2x16xf32>
    %cst_485 = arith.constant 0.000000e+00 : f32
    %1355 = vector.broadcast %cst_485 : f32 to vector<2x16xf32>
    %1356 = arith.maximumf %1354, %1355 : vector<2x16xf32>
    %cst_486 = arith.constant dense<0.000000e+00> : vector<2x6xf32>
    %1357 = tpu.matmul %1356, %871, %cst_486 {dimension_numbers = #tpu.dot_dimension_numbers<[1], [0], [0], [1], [0, 0, 1, 1], [], []>} : vector<2x16xf32>, vector<16x6xf32>, vector<2x6xf32> -> vector<2x6xf32>
    %1358 = vector.broadcast %873 : vector<1x6xf32> to vector<2x6xf32>
    %1359 = arith.addf %1357, %1358 : vector<2x6xf32>
    %1360 = vector.extract_strided_slice %884 {offsets = [0, 5], sizes = [8, 1], strides = [1, 1]} : vector<16x6xf32> to vector<8x1xf32>
    %1361 = vector.extract_strided_slice %1359 {offsets = [0, 5], sizes = [1, 1], strides = [1, 1]} : vector<2x6xf32> to vector<1x1xf32>
    %1362 = vector.broadcast %1361 : vector<1x1xf32> to vector<8x1xf32>
    %1363 = arith.addf %1360, %1362 : vector<8x1xf32>
    %cst_487 = arith.constant 0.000000e+00 : f32
    %1364 = vector.broadcast %cst_487 : f32 to vector<8x1xf32>
    %1365 = arith.cmpf ogt, %1363, %1364 : vector<8x1xf32>
    %cst_488 = arith.constant 0.00999999977 : f32
    %1366 = vector.broadcast %cst_488 : f32 to vector<8x1xf32>
    %1367 = arith.mulf %1366, %1363 : vector<8x1xf32>
    %1368 = arith.select %1365, %1363, %1367 : vector<8x1xi1>, vector<8x1xf32>
    %cst_489 = arith.constant dense<0xFF800000> : vector<1xf32>
    %1369 = vector.multi_reduction <maximumf>, %1368, %cst_489 [0] : vector<8x1xf32> to vector<1xf32>
    %1370 = vector.shape_cast %1369 : vector<1xf32> to vector<1x1xf32>
    %1371 = vector.broadcast %1370 : vector<1x1xf32> to vector<8x1xf32>
    %1372 = arith.subf %1368, %1371 : vector<8x1xf32>
    %1373 = math.exp %1372 : vector<8x1xf32>
    %cst_490 = arith.constant dense<0.000000e+00> : vector<1xf32>
    %1374 = vector.multi_reduction <add>, %1373, %cst_490 [0] : vector<8x1xf32> to vector<1xf32>
    %1375 = vector.shape_cast %1374 : vector<1xf32> to vector<1x1xf32>
    %1376 = tpu.reciprocal %1375 {approx = true} : vector<1x1xf32> -> vector<1x1xf32>
    %1377 = vector.broadcast %1376 : vector<1x1xf32> to vector<8x1xf32>
    %1378 = arith.mulf %1373, %1377 : vector<8x1xf32>
    %1379 = vector.extract_strided_slice %881 {offsets = [0, 80], sizes = [8, 16], strides = [1, 1]} : vector<16x96xf32> to vector<8x16xf32>
    %1380 = vector.broadcast %1378 : vector<8x1xf32> to vector<8x16xf32>
    %1381 = arith.mulf %1380, %1379 : vector<8x16xf32>
    %cst_491 = arith.constant dense<0.000000e+00> : vector<16xf32>
    %1382 = vector.multi_reduction <add>, %1381, %cst_491 [0] : vector<8x16xf32> to vector<16xf32>
    %1383 = vector.shape_cast %1382 : vector<16xf32> to vector<1x16xf32>
    %1384 = vector.extract_strided_slice %884 {offsets = [8, 5], sizes = [8, 1], strides = [1, 1]} : vector<16x6xf32> to vector<8x1xf32>
    %1385 = vector.extract_strided_slice %1359 {offsets = [1, 5], sizes = [1, 1], strides = [1, 1]} : vector<2x6xf32> to vector<1x1xf32>
    %1386 = vector.broadcast %1385 : vector<1x1xf32> to vector<8x1xf32>
    %1387 = arith.addf %1384, %1386 : vector<8x1xf32>
    %cst_492 = arith.constant 0.000000e+00 : f32
    %1388 = vector.broadcast %cst_492 : f32 to vector<8x1xf32>
    %1389 = arith.cmpf ogt, %1387, %1388 : vector<8x1xf32>
    %cst_493 = arith.constant 0.00999999977 : f32
    %1390 = vector.broadcast %cst_493 : f32 to vector<8x1xf32>
    %1391 = arith.mulf %1390, %1387 : vector<8x1xf32>
    %1392 = arith.select %1389, %1387, %1391 : vector<8x1xi1>, vector<8x1xf32>
    %cst_494 = arith.constant dense<0xFF800000> : vector<1xf32>
    %1393 = vector.multi_reduction <maximumf>, %1392, %cst_494 [0] : vector<8x1xf32> to vector<1xf32>
    %1394 = vector.shape_cast %1393 : vector<1xf32> to vector<1x1xf32>
    %1395 = vector.broadcast %1394 : vector<1x1xf32> to vector<8x1xf32>
    %1396 = arith.subf %1392, %1395 : vector<8x1xf32>
    %1397 = math.exp %1396 : vector<8x1xf32>
    %cst_495 = arith.constant dense<0.000000e+00> : vector<1xf32>
    %1398 = vector.multi_reduction <add>, %1397, %cst_495 [0] : vector<8x1xf32> to vector<1xf32>
    %1399 = vector.shape_cast %1398 : vector<1xf32> to vector<1x1xf32>
    %1400 = tpu.reciprocal %1399 {approx = true} : vector<1x1xf32> -> vector<1x1xf32>
    %1401 = vector.broadcast %1400 : vector<1x1xf32> to vector<8x1xf32>
    %1402 = arith.mulf %1397, %1401 : vector<8x1xf32>
    %1403 = vector.extract_strided_slice %881 {offsets = [8, 80], sizes = [8, 16], strides = [1, 1]} : vector<16x96xf32> to vector<8x16xf32>
    %1404 = vector.broadcast %1402 : vector<8x1xf32> to vector<8x16xf32>
    %1405 = arith.mulf %1404, %1403 : vector<8x16xf32>
    %cst_496 = arith.constant dense<0.000000e+00> : vector<16xf32>
    %1406 = vector.multi_reduction <add>, %1405, %cst_496 [0] : vector<8x16xf32> to vector<16xf32>
    %1407 = vector.shape_cast %1406 : vector<16xf32> to vector<1x16xf32>
    %1408 = tpu.concatenate %1383, %1407 in 0 : vector<1x16xf32>, vector<1x16xf32> -> vector<2x16xf32>
    %cst_497 = arith.constant 0.000000e+00 : f32
    %1409 = vector.broadcast %cst_497 : f32 to vector<2x16xf32>
    %1410 = arith.cmpf ogt, %1408, %1409 : vector<2x16xf32>
    %cst_498 = arith.constant 0.000000e+00 : f32
    %1411 = vector.broadcast %cst_498 : f32 to vector<2x16xf32>
    %1412 = arith.minimumf %1408, %1411 : vector<2x16xf32>
    %1413 = math.exp %1412 : vector<2x16xf32>
    %cst_499 = arith.constant 1.000000e+00 : f32
    %1414 = vector.broadcast %cst_499 : f32 to vector<2x16xf32>
    %1415 = arith.subf %1413, %1414 : vector<2x16xf32>
    %1416 = arith.select %1410, %1408, %1415 : vector<2x16xi1>, vector<2x16xf32>
    %c1_500 = arith.constant 1 : index
    %c5_501 = arith.constant 5 : index
    %c0_502 = arith.constant 0 : index
    %c0_503 = arith.constant 0 : index
    %1417 = vector.load %arg21[%c1_500, %c5_501, %c0_502, %c0_503] : memref<2x6x32x64xf32, #tpu.memory_space<vmem>>, vector<1x1x32x64xf32>
    %1418 = vector.shape_cast %1417 : vector<1x1x32x64xf32> to vector<32x64xf32>
    %c1_504 = arith.constant 1 : index
    %c5_505 = arith.constant 5 : index
    %c0_506 = arith.constant 0 : index
    %c0_507 = arith.constant 0 : index
    %1419 = vector.load %arg22[%c1_504, %c5_505, %c0_506, %c0_507] : memref<2x6x1x64xf32, #tpu.memory_space<vmem>>, vector<1x1x1x64xf32>
    %1420 = vector.shape_cast %1419 : vector<1x1x1x64xf32> to vector<1x64xf32>
    %1421 = tpu.concatenate %1416, %1354 in 1 : vector<2x16xf32>, vector<2x16xf32> -> vector<2x32xf32>
    %cst_508 = arith.constant dense<0.000000e+00> : vector<2x64xf32>
    %1422 = tpu.matmul %1421, %1418, %cst_508 {dimension_numbers = #tpu.dot_dimension_numbers<[1], [0], [0], [1], [0, 0, 1, 1], [], []>} : vector<2x32xf32>, vector<32x64xf32>, vector<2x64xf32> -> vector<2x64xf32>
    %1423 = vector.broadcast %1420 : vector<1x64xf32> to vector<2x64xf32>
    %1424 = arith.addf %1422, %1423 : vector<2x64xf32>
    %1425 = vector.extract_strided_slice %1424 {offsets = [0, 0], sizes = [2, 16], strides = [1, 1]} : vector<2x64xf32> to vector<2x16xf32>
    %1426 = arith.negf %1425 : vector<2x16xf32>
    %1427 = math.exp %1426 : vector<2x16xf32>
    %cst_509 = arith.constant 1.000000e+00 : f32
    %1428 = vector.broadcast %cst_509 : f32 to vector<2x16xf32>
    %1429 = arith.addf %1428, %1427 : vector<2x16xf32>
    %1430 = arith.divf %1428, %1429 : vector<2x16xf32>
    %1431 = vector.extract_strided_slice %1424 {offsets = [0, 16], sizes = [2, 16], strides = [1, 1]} : vector<2x64xf32> to vector<2x16xf32>
    %1432 = arith.negf %1431 : vector<2x16xf32>
    %1433 = math.exp %1432 : vector<2x16xf32>
    %cst_510 = arith.constant 1.000000e+00 : f32
    %1434 = vector.broadcast %cst_510 : f32 to vector<2x16xf32>
    %1435 = arith.addf %1434, %1433 : vector<2x16xf32>
    %1436 = arith.divf %1434, %1435 : vector<2x16xf32>
    %1437 = vector.extract_strided_slice %1424 {offsets = [0, 32], sizes = [2, 16], strides = [1, 1]} : vector<2x64xf32> to vector<2x16xf32>
    %1438 = vector.extract_strided_slice %1424 {offsets = [0, 48], sizes = [2, 16], strides = [1, 1]} : vector<2x64xf32> to vector<2x16xf32>
    %1439 = arith.mulf %1430, %1438 : vector<2x16xf32>
    %1440 = arith.addf %1437, %1439 : vector<2x16xf32>
    %1441 = math.tanh %1440 : vector<2x16xf32>
    %cst_511 = arith.constant 1.000000e+00 : f32
    %1442 = vector.broadcast %cst_511 : f32 to vector<2x16xf32>
    %1443 = arith.subf %1442, %1436 : vector<2x16xf32>
    %1444 = arith.mulf %1443, %1441 : vector<2x16xf32>
    %1445 = arith.mulf %1436, %1354 : vector<2x16xf32>
    %1446 = arith.addf %1444, %1445 : vector<2x16xf32>
    %cst_512 = arith.constant 0.000000e+00 : f32
    %1447 = vector.broadcast %cst_512 : f32 to vector<2x16xf32>
    %1448 = arith.maximumf %1446, %1447 : vector<2x16xf32>
    %1449 = tpu.concatenate %725, %1448 in 1 : vector<2x16xf32>, vector<2x16xf32> -> vector<2x32xf32>
    %c0_513 = arith.constant 0 : index
    %c0_514 = arith.constant 0 : index
    %1450 = vector.load %arg23[%c0_513, %c0_514] : memref<2x4xf32, #tpu.memory_space<vmem>>, vector<2x4xf32>
    %1451 = tpu.concatenate %1449, %1450 in 1 : vector<2x32xf32>, vector<2x4xf32> -> vector<2x36xf32>
    %c0_515 = arith.constant 0 : index
    %c0_516 = arith.constant 0 : index
    %1452 = vector.load %arg24[%c0_515, %c0_516] : memref<32x32xf32, #tpu.memory_space<vmem>>, vector<32x32xf32>
    %c0_517 = arith.constant 0 : index
    %c0_518 = arith.constant 0 : index
    %1453 = vector.load %arg25[%c0_517, %c0_518] : memref<1x32xf32, #tpu.memory_space<vmem>>, vector<1x32xf32>
    %c0_519 = arith.constant 0 : index
    %c0_520 = arith.constant 0 : index
    %1454 = vector.load %arg26[%c0_519, %c0_520] : memref<32x4xf32, #tpu.memory_space<vmem>>, vector<32x4xf32>
    %c0_521 = arith.constant 0 : index
    %c0_522 = arith.constant 0 : index
    %1455 = vector.load %arg27[%c0_521, %c0_522] : memref<1x4xf32, #tpu.memory_space<vmem>>, vector<1x4xf32>
    %cst_523 = arith.constant dense<0.000000e+00> : vector<2x32xf32>
    %1456 = tpu.matmul %1449, %1452, %cst_523 {dimension_numbers = #tpu.dot_dimension_numbers<[1], [0], [0], [1], [0, 0, 1, 1], [], []>} : vector<2x32xf32>, vector<32x32xf32>, vector<2x32xf32> -> vector<2x32xf32>
    %1457 = vector.broadcast %1453 : vector<1x32xf32> to vector<2x32xf32>
    %1458 = arith.addf %1456, %1457 : vector<2x32xf32>
    %cst_524 = arith.constant 0.000000e+00 : f32
    %1459 = vector.broadcast %cst_524 : f32 to vector<2x32xf32>
    %1460 = arith.maximumf %1458, %1459 : vector<2x32xf32>
    %cst_525 = arith.constant dense<0.000000e+00> : vector<2x4xf32>
    %1461 = tpu.matmul %1460, %1454, %cst_525 {dimension_numbers = #tpu.dot_dimension_numbers<[1], [0], [0], [1], [0, 0, 1, 1], [], []>} : vector<2x32xf32>, vector<32x4xf32>, vector<2x4xf32> -> vector<2x4xf32>
    %1462 = vector.broadcast %1455 : vector<1x4xf32> to vector<2x4xf32>
    %1463 = arith.addf %1461, %1462 : vector<2x4xf32>
    %c0_526 = arith.constant 0 : index
    %c0_527 = arith.constant 0 : index
    %1464 = vector.load %arg36[%c0_526, %c0_527] : memref<2x4xf32, #tpu.memory_space<vmem>>, vector<2x4xf32>
    tpu.vector_store %arg36[%c0_526, %c0_527], %1463 {strides = array<i32>} : memref<2x4xf32, #tpu.memory_space<vmem>>, vector<2x4xf32>,
    %c0_528 = arith.constant 0 : index
    %c0_529 = arith.constant 0 : index
    %1465 = vector.load %arg28[%c0_528, %c0_529] : memref<32x32xf32, #tpu.memory_space<vmem>>, vector<32x32xf32>
    %c0_530 = arith.constant 0 : index
    %c0_531 = arith.constant 0 : index
    %1466 = vector.load %arg29[%c0_530, %c0_531] : memref<1x32xf32, #tpu.memory_space<vmem>>, vector<1x32xf32>
    %c0_532 = arith.constant 0 : index
    %c0_533 = arith.constant 0 : index
    %1467 = vector.load %arg30[%c0_532, %c0_533] : memref<32x2xf32, #tpu.memory_space<vmem>>, vector<32x2xf32>
    %c0_534 = arith.constant 0 : index
    %c0_535 = arith.constant 0 : index
    %1468 = vector.load %arg31[%c0_534, %c0_535] : memref<1x2xf32, #tpu.memory_space<vmem>>, vector<1x2xf32>
    %cst_536 = arith.constant dense<0.000000e+00> : vector<2x32xf32>
    %1469 = tpu.matmul %1449, %1465, %cst_536 {dimension_numbers = #tpu.dot_dimension_numbers<[1], [0], [0], [1], [0, 0, 1, 1], [], []>} : vector<2x32xf32>, vector<32x32xf32>, vector<2x32xf32> -> vector<2x32xf32>
    %1470 = vector.broadcast %1466 : vector<1x32xf32> to vector<2x32xf32>
    %1471 = arith.addf %1469, %1470 : vector<2x32xf32>
    %cst_537 = arith.constant 0.000000e+00 : f32
    %1472 = vector.broadcast %cst_537 : f32 to vector<2x32xf32>
    %1473 = arith.maximumf %1471, %1472 : vector<2x32xf32>
    %cst_538 = arith.constant dense<0.000000e+00> : vector<2x2xf32>
    %1474 = tpu.matmul %1473, %1467, %cst_538 {dimension_numbers = #tpu.dot_dimension_numbers<[1], [0], [0], [1], [0, 0, 1, 1], [], []>} : vector<2x32xf32>, vector<32x2xf32>, vector<2x2xf32> -> vector<2x2xf32>
    %1475 = vector.broadcast %1468 : vector<1x2xf32> to vector<2x2xf32>
    %1476 = arith.addf %1474, %1475 : vector<2x2xf32>
    %c0_539 = arith.constant 0 : index
    %c0_540 = arith.constant 0 : index
    %1477 = vector.load %arg37[%c0_539, %c0_540] : memref<2x2xf32, #tpu.memory_space<vmem>>, vector<2x2xf32>
    tpu.vector_store %arg37[%c0_539, %c0_540], %1476 {strides = array<i32>} : memref<2x2xf32, #tpu.memory_space<vmem>>, vector<2x2xf32>,
    %c0_541 = arith.constant 0 : index
    %c0_542 = arith.constant 0 : index
    %1478 = vector.load %arg32[%c0_541, %c0_542] : memref<36x32xf32, #tpu.memory_space<vmem>>, vector<36x32xf32>
    %c0_543 = arith.constant 0 : index
    %c0_544 = arith.constant 0 : index
    %1479 = vector.load %arg33[%c0_543, %c0_544] : memref<1x32xf32, #tpu.memory_space<vmem>>, vector<1x32xf32>
    %c0_545 = arith.constant 0 : index
    %c0_546 = arith.constant 0 : index
    %1480 = vector.load %arg34[%c0_545, %c0_546] : memref<32x2xf32, #tpu.memory_space<vmem>>, vector<32x2xf32>
    %c0_547 = arith.constant 0 : index
    %c0_548 = arith.constant 0 : index
    %1481 = vector.load %arg35[%c0_547, %c0_548] : memref<1x2xf32, #tpu.memory_space<vmem>>, vector<1x2xf32>
    %cst_549 = arith.constant dense<0.000000e+00> : vector<2x32xf32>
    %1482 = tpu.matmul %1451, %1478, %cst_549 {dimension_numbers = #tpu.dot_dimension_numbers<[1], [0], [0], [1], [0, 0, 1, 1], [], []>} : vector<2x36xf32>, vector<36x32xf32>, vector<2x32xf32> -> vector<2x32xf32>
    %1483 = vector.broadcast %1479 : vector<1x32xf32> to vector<2x32xf32>
    %1484 = arith.addf %1482, %1483 : vector<2x32xf32>
    %cst_550 = arith.constant 0.000000e+00 : f32
    %1485 = vector.broadcast %cst_550 : f32 to vector<2x32xf32>
    %1486 = arith.maximumf %1484, %1485 : vector<2x32xf32>
    %cst_551 = arith.constant dense<0.000000e+00> : vector<2x2xf32>
    %1487 = tpu.matmul %1486, %1480, %cst_551 {dimension_numbers = #tpu.dot_dimension_numbers<[1], [0], [0], [1], [0, 0, 1, 1], [], []>} : vector<2x32xf32>, vector<32x2xf32>, vector<2x2xf32> -> vector<2x2xf32>
    %1488 = vector.broadcast %1481 : vector<1x2xf32> to vector<2x2xf32>
    %1489 = arith.addf %1487, %1488 : vector<2x2xf32>
    %c0_552 = arith.constant 0 : index
    %c0_553 = arith.constant 0 : index
    %1490 = vector.load %arg38[%c0_552, %c0_553] : memref<2x2xf32, #tpu.memory_space<vmem>>, vector<2x2xf32>
    tpu.vector_store %arg38[%c0_552, %c0_553], %1489 {strides = array<i32>} : memref<2x2xf32, #tpu.memory_space<vmem>>, vector<2x2xf32>,
    return
  }
}

</mosaic_0001>

<bundles_post_ra>
// kernel: gnn_mt_forward.1
= control target key start
LH: loop header
LB: loop body
LE: loop exit
PB: predicated region body
PF: predicated region fallthrough
CT: control target
= control target key end

     0   :  { %s10440_s6 = smov 1   ;;  %s10441_s10 = smov 2   ;;  %s12406_s0 = inlined_call_operand.smem [shape: u32[39], index: -1, kind: input, shape index: {}] }
   0x1   :  { %s10513_s5 = sld [smem:[%s12406_s0]]   ;;  %s10442_s14 = smov 3  }
   0x2   :  { %s10518_s9 = sld [smem:[%s12406_s0 + %s10440_s6]]   ;;  %s10443_s18 = smov 4  }
   0x3   :  { %s10523_s13 = sld [smem:[%s12406_s0 + %s10441_s10]]   ;;  %s10444_s22 = smov 5  }
   0x4   :  { %s10528_s17 = sld [smem:[%s12406_s0 + %s10442_s14]]   ;;  %s10445_s26 = smov 6  }
   0x5   :  { %s10533_s21 = sld [smem:[%s12406_s0 + %s10443_s18]]   ;;  %s10446_s30 = smov 7  }
   0x6   :  { %s10538_s25 = sld [smem:[%s12406_s0 + %s10444_s22]]   ;;  %s10447_s4 = smov 8  }
   0x7   :  { %s10543_s29 = sld [smem:[%s12406_s0 + %s10445_s26]]   ;;  %s10448_s10 = smov 9  }
   0x8   :  { %s10548_s3 = sld [smem:[%s12406_s0 + %s10446_s30]]   ;;  %s10449_s15 = smov 10  }
   0x9   :  { %s10553_s8 = sld [smem:[%s12406_s0 + %s10447_s4]]   ;;  %s10450_s20 = smov 11  }
   0xa   :  { %s10558_s14 = sld [smem:[%s12406_s0 + %s10448_s10]]   ;;  %s10451_s26 = smov 12  }
   0xb   :  { %12471 = sst [smem:[#allocation20_spill]] %s10533_s21  ;;  %s10452_s1 = smov 13  }
   0xc   :  { %s10563_s19 = sld [smem:[%s12406_s0 + %s10449_s15]]   ;;  %s10453_s7 = smov 14  }
   0xd   :  { %s10568_s24 = sld [smem:[%s12406_s0 + %s10450_s20]]   ;;  %s10454_s15 = smov 15  }
   0xe   :  { %s10573_s30 = sld [smem:[%s12406_s0 + %s10451_s26]]   ;;  %s10455_s22 = smov 16  }
   0xf   :  { %s10578_s6 = sld [smem:[%s12406_s0 + %s10452_s1]]   ;;  %s10456_s28 = smov 17  }
  0x10   :  { %s10583_s12 = sld [smem:[%s12406_s0 + %s10453_s7]]   ;;  %s10457_s7 = smov 18  }
  0x11   :  { %s10588_s20 = sld [smem:[%s12406_s0 + %s10454_s15]]   ;;  %s10458_s15 = smov 19  }
  0x12   :  { %s10593_s27 = sld [smem:[%s12406_s0 + %s10455_s22]]   ;;  %s10459_s22 = smov 20  }
  0x13   :  { %s10598_s4 = sld [smem:[%s12406_s0 + %s10456_s28]]   ;;  %s10460_s28 = smov 21  }
  0x14   :  { %s10603_s21 = sld [smem:[%s12406_s0 + %s10457_s7]]   ;;  %s10461_s7 = smov 22  }
  0x16   :  { %12472 = sst [smem:[#allocation21_spill]] %s10583_s12 }
  0x17   :  { %12473 = sst [smem:[#allocation22_spill]] %s10588_s20 }
  0x18   :  { %12474 = sst [smem:[#allocation23_spill]] %s10593_s27 }
  0x19   :  { %12475 = sst [smem:[#allocation24_spill]] %s10598_s4 }
  0x1a   :  { %12476 = sst [smem:[#allocation25_spill]] %s10603_s21 }
  0x1b   :  { %s10608_s20 = sld [smem:[%s12406_s0 + %s10458_s15]]   ;;  %s10462_s15 = smov 23  }
  0x1c   :  { %s10613_s27 = sld [smem:[%s12406_s0 + %s10459_s22]]   ;;  %s10463_s22 = smov 24  }
  0x1d   :  { %s10618_s4 = sld [smem:[%s12406_s0 + %s10460_s28]]   ;;  %s10464_s28 = smov 25  }
  0x1e   :  { %s10623_s21 = sld [smem:[%s12406_s0 + %s10461_s7]]   ;;  %s10465_s7 = smov 26  }
  0x1f   :  { %s10633_s12 = sld [smem:[%s12406_s0 + %s10463_s22]]   ;;  %s10467_s22 = smov 28  }
  0x21   :  { %12477 = sst [smem:[#allocation26_spill]] %s10608_s20 }
  0x22   :  { %s10628_s20 = sld [smem:[%s12406_s0 + %s10462_s15]]   ;;  %s10466_s15 = smov 27  }
  0x23   :  { %12478 = sst [smem:[#allocation27_spill]] %s10618_s4 }
  0x24   :  { %12479 = sst [smem:[#allocation28_spill]] %s10623_s21 }
  0x25   :  { %12481 = sst [smem:[#allocation30_spill]] %s10633_s12 }
  0x26   :  { %s10638_s4 = sld [smem:[%s12406_s0 + %s10464_s28]]   ;;  %s10468_s28 = smov 29  }
  0x27   :  { %s10643_s21 = sld [smem:[%s12406_s0 + %s10465_s7]]   ;;  %s10469_s7 = smov 30  }
  0x28   :  { %12480 = sst [smem:[#allocation29_spill]] %s10628_s20 }
  0x29   :  { %s10648_s20 = sld [smem:[%s12406_s0 + %s10466_s15]]   ;;  %s10470_s15 = smov 31  }
  0x2a   :  { %s10653_s12 = sld [smem:[%s12406_s0 + %s10467_s22]]   ;;  %s10471_s22 = smov 32  }
  0x2c   :  { %12482 = sst [smem:[#allocation31_spill]] %s10638_s4 }
  0x2d   :  { %12483 = sst [smem:[#allocation32_spill]] %s10643_s21 }
  0x2e   :  { %s10658_s4 = sld [smem:[%s12406_s0 + %s10468_s28]]   ;;  %s10472_s28 = smov 33  }
  0x2f   :  { %12484 = sst [smem:[#allocation33_spill]] %s10648_s20 }
  0x30   :  { %12485 = sst [smem:[#allocation34_spill]] %s10653_s12 }
  0x31   :  { %s10663_s21 = sld [smem:[%s12406_s0 + %s10469_s7]]   ;;  %s10473_s7 = smov 34  }
  0x32   :  { %s10668_s20 = sld [smem:[%s12406_s0 + %s10470_s15]]   ;;  %s10474_s15 = smov 35  }
  0x33   :  { %s10673_s12 = sld [smem:[%s12406_s0 + %s10471_s22]]   ;;  %s10475_s22 = smov 36  }
  0x34   :  { %12486 = sst [smem:[#allocation35_spill]] %s10658_s4 }
  0x35   :  { %s10678_s4 = sld [smem:[%s12406_s0 + %s10472_s28]]   ;;  %s10476_s28 = smov 37  }
  0x37   :  { %12487 = sst [smem:[#allocation36_spill]] %s10663_s21 }
  0x38   :  { %12488 = sst [smem:[#allocation37_spill]] %s10668_s20 }
  0x39   :  { %12489 = sst [smem:[#allocation38_spill]] %s10673_s12 }
  0x3a   :  { %s10683_s21 = sld [smem:[%s12406_s0 + %s10473_s7]]   ;;  %s10477_s7 = smov 38  }
  0x3b   :  { %12490 = sst [smem:[#allocation39_spill]] %s10678_s4 }
  0x3c   :  { %s10688_s20 = sld [smem:[%s12406_s0 + %s10474_s15]]  }
  0x3d   :  { %s10693_s12 = sld [smem:[%s12406_s0 + %s10475_s22]]  }
  0x3e   :  { %s10698_s4 = sld [smem:[%s12406_s0 + %s10476_s28]]  }
  0x40   :  { %12491 = sst [smem:[#allocation40_spill]] %s10683_s21 }
  0x41   :  { %s10703_s21 = sld [smem:[%s12406_s0 + %s10477_s7]]  }
  0x42   :  { %83 = vsyncpa [#allocation3], 0 }
  0x43   :  { %84 = vsyncpa [#allocation6], 0 }
  0x44   :  { %85 = vsyncpa [#allocation9], 0 }
  0x45   :  { %86 = vsyncpa [#allocation4], 0 }
  0x46   :  { %87 = vsyncpa [#allocation13], 0  ;;  %s10478_s15 = smov [#allocation5]  }
  0x47   :  { %s123_s16 = sshll.u32 %s10478_s15, 4  ;;  %s124_s16 = int_to_ptr.vmem [resolvable:$true] %s123_s16 }
  0x48   :  { %s10278_s18 = scalar_lea.vmem %s124_s16, 32  ;;  %p10283_p1 = scmp.lt.s32.totalorder %s124_s16, %s124_s16 }
  0x49   :  { %p10279_p0 = scmp.ne.s32.totalorder %s124_s16, %s10278_s18  ;;  %p10284_p2 = scmp.lt.s32.totalorder %s10278_s18, %s10278_s18 }
  0x4b   :  { %p10285_p3 = por %p10284_p2, %p10283_p1 }
  0x4d   :  { %p10286_p4 = pnand %p10285_p3, %p10279_p0 }
  0x4f   :  { %10289 = shalt.err (!%p10286_p4)
}
  0x50   :  { %s10479_s22 = smov 16   ;;  %s10480_s23 = smov 1  }
  0x51   :  { %129 = dma.hbm_to_vmem [thread:$0]  %s10563_s19, 32, %s124_s16, [#allocation6], %s10479_s22, %s10479_s22, %s10480_s23  }
  0x52   :  { %s10481_s0 = smov [#allocation8]   ;;  %s10482_s28 = smov [#allocation2]  }
  0x53   :  { %s149_s26 = sshll.u32 %s10481_s0, 4  ;;  %s111_s1 = sshll.u32 %s10482_s28, 4  ;;  %s150_s26 = int_to_ptr.vmem [resolvable:$true] %s149_s26  ;;  %s112_s1 = int_to_ptr.vmem [resolvable:$true] %s111_s1 }
  0x54   :  { %s10298_s2 = scalar_lea.vmem %s150_s26, 32  ;;  %p10303_p6 = scmp.lt.s32.totalorder %s150_s26, %s150_s26 }
  0x55   :  { %p10299_p5 = scmp.ne.s32.totalorder %s150_s26, %s10298_s2  ;;  %p10304_p7 = scmp.lt.s32.totalorder %s10298_s2, %s10298_s2 }
  0x57   :  { %p10305_p8 = por %p10304_p7, %p10303_p6 }
  0x59   :  { %p10306_p9 = pnand %p10305_p8, %p10299_p5 }
  0x5b   :  { %10309 = shalt.err (!%p10306_p9)
}
  0x5c   :  { %155 = dma.hbm_to_vmem [thread:$0]  %s10578_s6, 32, %s150_s26, [#allocation9], %s10479_s22, %s10479_s22, %s10480_s23  }
  0x5d   :  { %s10318_s7 = scalar_lea.vmem %s112_s1, 256  ;;  %p10323_p11 = scmp.lt.s32.totalorder %s112_s1, %s112_s1 }
  0x5e   :  { %p10319_p10 = scmp.ne.s32.totalorder %s112_s1, %s10318_s7  ;;  %p10324_p12 = scmp.lt.s32.totalorder %s10318_s7, %s10318_s7 }
  0x60   :  { %p10325_p13 = por %p10324_p12, %p10323_p11 }
  0x62   :  { %p10326_p0 = pnand %p10325_p13, %p10319_p10 }
  0x64   :  { %10329 = shalt.err (!%p10326_p0)
}
  0x65   :  { %s10483_s19 = smov 128   ;;  %s10484_s10 = smov 8  }
  0x66   :  { %117 = dma.hbm_to_vmem [thread:$0]  %s10558_s14, 256, %s112_s1, [#allocation3], %s10483_s19, %s10483_s19, %s10484_s10  }
  0x67   :  { %s10485_s11 = smov [#allocation7]  }
  0x68   :  { %s137_s15 = sshll.u32 %s10485_s11, 4  ;;  %s138_s15 = int_to_ptr.vmem [resolvable:$true] %s137_s15 }
  0x69   :  { %s10338_s16 = scalar_lea.vmem %s138_s15, 64  ;;  %p10343_p2 = scmp.lt.s32.totalorder %s138_s15, %s138_s15 }
  0x6a   :  { %p10339_p1 = scmp.ne.s32.totalorder %s138_s15, %s10338_s16  ;;  %p10344_p3 = scmp.lt.s32.totalorder %s10338_s16, %s10338_s16 }
  0x6c   :  { %p10345_p4 = por %p10344_p3, %p10343_p2 }
  0x6e   :  { %p10346_p5 = pnand %p10345_p4, %p10339_p1 }
  0x70   :  { %10349 = shalt.err (!%p10346_p5)
}
  0x71   :  { %s10486_s6 = smov 32   ;;  %s10487_s18 = smov 2  }
  0x72   :  { %143 = dma.hbm_to_vmem [thread:$0]  %s10573_s30, 64, %s138_s15, [#allocation6], %s10486_s6, %s10486_s6, %s10487_s18  }
  0x73   :  { %s10488_s0 = smov [#allocation10]  }
  0x74   :  { %s173_s26 = sshll.u32 %s10488_s0, 4  ;;  %s174_s26 = int_to_ptr.vmem [resolvable:$true] %s173_s26 }
  0x75   :  { %s10358_s14 = scalar_lea.vmem %s174_s26, 32  ;;  %p10363_p7 = scmp.lt.s32.totalorder %s174_s26, %s174_s26 }
  0x76   :  { %p10359_p6 = scmp.ne.s32.totalorder %s174_s26, %s10358_s14  ;;  %p10364_p8 = scmp.lt.s32.totalorder %s10358_s14, %s10358_s14 }
  0x78   :  { %p10365_p9 = por %p10364_p8, %p10363_p7 }
  0x7a   :  { %p10366_p10 = pnand %p10365_p9, %p10359_p6 }
  0x7c   :  { %10369 = shalt.err (!%p10366_p10)
}
  0x7d   :  { %179 = dma.hbm_to_vmem [thread:$0]  %s10613_s27, 32, %s174_s26, [#allocation9], %s10479_s22, %s10479_s22, %s10480_s23  }
  0x7e   :  { %10430 = dma.done.wait [#allocation3], 256  }
  0x7f   :  { %10431 = vsyncadd [#allocation3], 4294967040 }
  0x80   :  { %10432 = dma.done.wait [#allocation6], 96  }
  0x81   :  { %10433 = vsyncadd [#allocation6], 4294967200 }
  0x82   :  { %10434 = dma.done.wait [#allocation9], 64  }
  0x83   :  { %10435 = vsyncadd [#allocation9], 4294967232  ;;  %vm283_vm0 = vcmask 130048   ;;  %v275_v0 = vld [vmem:[%s10548_s3 + $0x8] sm:$0xff]  ;;  %v274_v1 = vld [vmem:[%s10548_s3] sm:$0xff]  ;;  %vm375_vm1 = vcmask 64512  }
  0x84   :  { %v262_v2 = vld [vmem:[%s10513_s5] sm:$0xff]  ;;  %9319 = vmatprep.subr.mxu0 %v275_v0  ;;  %v263_v5 = vld [vmem:[%s10513_s5 + $0x8] sm:$0xff]  ;;  %v266_v7 = vld [vmem:[%s10518_s9 + $0x10] sm:$0xff]  ;;  %vm506_vm2 = vcmask 1043456   ;;  %v12422_v15 = vmov 0.0   ;;  %vm493_vm3 = vcmask 97280  }
  0x85   :  { %9323 = vmatprep.mubr.msk.f32.mxu0 %vm283_vm0, %v262_v2  ;;  %v367_v3 = vld [vmem:[#allocation2] sm:$0xff]  ;;  %9320 = vmatpush3.msra.mxu0 %v275_v0  ;;  %v265_v6 = vld [vmem:[%s10518_s9 + $0x8] sm:$0xff]  ;;  %v267_v8 = vld [vmem:[%s10518_s9 + $0x18] sm:$0xff]  ;;  %vm905_vm4 = vcmask 261120   ;;  %s12505_s30 = sld [smem:[#allocation21_spill]]  ;;  %s10490_s23 = smov 80  }
  0x86   :  { %v264_v4 = vld [vmem:[%s10518_s9] sm:$0xff]  ;;  %9326 = vmatprep.subr.mxu1 %v367_v3  ;;  %9321 = vmatprep.subr.mxu0 %v274_v1  ;;  %v480_v10 = vld [vmem:[%s10568_s24 + $0x18] sm:$0xf]  ;;  %v478_v11 = vld [vmem:[%s10568_s24 + $0x8] sm:$0xff]  ;;  %s12506_s27 = sld [smem:[#allocation22_spill]]  ;;  %s10491_s28 = smov 112  }
  0x87   :  { %9327 = vmatpush3.msra.mxu1 %v367_v3  ;;  %9322 = vmatpush3.msra.mxu0 %v274_v1  ;;  %v10736_v9 = vld [vmem:[%s10523_s13] sm:$0xff]  ;;  %v479_v13 = vld [vmem:[%s10568_s24 + $0x10] sm:$0xf]  ;;  %v10749_v29 = vld [vmem:[%s10523_s13 + $0x8] sm:$0xff]  ;;  %vm10492_vm5 = vmmov 0   ;;  %s12519_s1 = sld [smem:[#allocation20_spill]] }
  0x88   :  { %9328 = vmatprep.mubr.msk.f32.mxu1 %vm375_vm1, %v264_v4  ;;  %9324 = vmatmul.mubr.msk.f32.vlgmr.msra.gmra.mxu0 %vm283_vm0, %v263_v5  ;;  %v8491_v12 = vld [vmem:[%s10553_s8] ss:$0 sm:$0xff]  ;;  %v8494_v18 = vld [vmem:[#allocation5] ss:$0 sm:$0xff]  ;;  %v10756_v32 = vld [vmem:[%s10538_s25 + $0x18] sm:$0xff]  ;;  %s12520_s2 = sld [smem:[#allocation23_spill]] }
  0x89   :  { %9329 = vmatmul.mubr.msk.f32.vlgmr.msra.gmra.mxu1 %vm375_vm1, %v265_v6  ;;  %8499 = vmatprep.subr.msk.mxu0 %vm506_vm2, %v480_v10  ;;  %v477_v14 = vld [vmem:[%s10568_s24] sm:$0xff]  ;;  %v10753_v31 = vld [vmem:[%s10523_s13 + $0x10] sm:$0xff]  ;;  %v10765_v35 = vld [vmem:[%s10523_s13 + $0x18] sm:$0xff]  ;;  %s12521_s7 = sld [smem:[#allocation25_spill]]  ;;  %vm2467_vm6 = vcmask 7168   ;;  %vm2540_vm9 = vcmask 1040384  }
  0x8a   :  { %9331 = vmatprep.mubr.msk.f32.mxu1 %vm375_vm1, %v266_v7  ;;  %8500 = vmatpush1.msk.msra.mxu0 %vm506_vm2, %v479_v13  ;;  %v10778_v39 = vld [vmem:[%s10538_s25 + $0x10] sm:$0xff]  ;;  %v10782_v40 = vld [vmem:[%s10538_s25 + $0x8] sm:$0xff]  ;;  %v10786_v41 = vld [vmem:[%s10538_s25] sm:$0xff]  ;;  %s12522_s19 = sld [smem:[#allocation26_spill]]  ;;  %vm2747_vm11 = vcmask 15368   ;;  %vm2773_vm14 = vcmask 261248  }
  0x8b   :  { %577 = vmatprep.mubr.f32.mxu0 %v12422_v15  ;;  %543 = vmatprep.subr.mxu0 %v478_v11  ;;  %v10790_v42 = vld [vmem:[%s10543_s29 + $0xf8] sm:$0xff]  ;;  %v10796_v44 = vld [vmem:[%s10543_s29 + $0xf0] sm:$0xff]  ;;  %v10804_v46 = vld [vmem:[%s10543_s29 + $0xe8] sm:$0xff]  ;;  %s12525_s10 = sld [smem:[#allocation27_spill]]  ;;  %s10496_s16 = smov 96  }
  0x8c   :  { %544 = vmatpush1.msra.mxu0 %v477_v14  ;;  %v10793_v43 = vld [vmem:[%s10543_s29 + $0x78] sm:$0xff]  ;;  %v10800_v45 = vld [vmem:[%s10543_s29 + $0x70] sm:$0xff]  ;;  %v10808_v47 = vld [vmem:[%s10543_s29 + $0x68] sm:$0xff]  ;;  %s12526_s11 = sld [smem:[#allocation24_spill]]  ;;  %s10499_s18 = smov 64  }
  0x8d   :  { %9332 = vmatmul.mubr.msk.f32.gmra.mxu1 %vm375_vm1, %v267_v8  ;;  %8795 = vmatprep.subr.mxu0 %v10790_v42  ;;  %v10812_v48 = vld [vmem:[%s10543_s29 + $0xe0] sm:$0xff]  ;;  %v10820_v50 = vld [vmem:[%s10543_s29 + $0xd8] sm:$0xff]  ;;  %v10828_v52 = vld [vmem:[%s10543_s29 + $0xd0] sm:$0xff]  ;;  %s12527_s15 = sld [smem:[#allocation28_spill]]  ;;  %s10502_s26 = smov [#allocation11]  }
  0x8e   :  { %9338 = vmatprep.mubr.msk.f32.mxu1 %vm283_vm0, %v10736_v9  ;;  %v10816_v49 = vld [vmem:[%s10543_s29 + $0x60] sm:$0xff]  ;;  %v10824_v51 = vld [vmem:[%s10543_s29 + $0x58] sm:$0xff]  ;;  %v10832_v53 = vld [vmem:[%s10543_s29 + $0x50] sm:$0xff]  ;;  %s12571_s0 = sld [smem:[#allocation33_spill]]  ;;  %s8415_s14 = sshll.u32 %s10502_s26, 4  ;;  %s8416_s14 = int_to_ptr.vmem [resolvable:$true] %s8415_s14 }
  0x8f   :  { %v10836_v54 = vld [vmem:[%s10543_s29 + $0xc8] sm:$0xff]  ;;  %v10844_v56 = vld [vmem:[%s10543_s29 + $0xc0] sm:$0xff]  ;;  %v10852_v58 = vld [vmem:[%s10543_s29 + $0xb8] sm:$0xff]  ;;  %p10375_p12 = scmp.lt.s32.totalorder %s8416_s14, %s8416_s14 }
  0x90   :  { %v10840_v55 = vld [vmem:[%s10543_s29 + $0x48] sm:$0xff]  ;;  %v10848_v57 = vld [vmem:[%s10543_s29 + $0x40] sm:$0xff]  ;;  %v10856_v59 = vld [vmem:[%s10543_s29 + $0x38] sm:$0xff] }
  0x91   :  { %v10860_v60 = vld [vmem:[%s10543_s29 + $0xb0] sm:$0xff]  ;;  %v10868_v62 = vld [vmem:[%s10543_s29 + $0xa8] sm:$0xff]  ;;  %v10876_v0 = vld [vmem:[%s10543_s29 + $0xa0] sm:$0xff] }
  0x92   :  { %v10864_v61 = vld [vmem:[%s10543_s29 + $0x30] sm:$0xff]  ;;  %v10872_v63 = vld [vmem:[%s10543_s29 + $0x28] sm:$0xff]  ;;  %12493 = vst [vmem:[#allocation42_spill] sm:$0xff] %v10876_v0  ;;  %v10880_v1 = vld [vmem:[%s10543_s29 + $0x20] sm:$0xff] }
  0x93   :  { %12492 = vst [vmem:[#allocation41_spill] sm:$0xff] %v10872_v63  ;;  %12494 = vst [vmem:[#allocation43_spill] sm:$0xff] %v10880_v1  ;;  %v10884_v2 = vld [vmem:[%s10543_s29 + $0x98] sm:$0xff]  ;;  %v10901_v8 = vld [vmem:[%s10543_s29 + $0x90] sm:$0xff] }
  0x94   :  { %12495 = vst [vmem:[#allocation44_spill] sm:$0xff] %v10884_v2  ;;  %v10888_v3 = vld [vmem:[%s10543_s29 + $0x18] sm:$0xff]  ;;  %12497 = vst [vmem:[#allocation46_spill] sm:$0xff] %v10901_v8  ;;  %v10905_v10 = vld [vmem:[%s10543_s29 + $0x10] sm:$0xff] }
  0x95   :  { %12496 = vst [vmem:[#allocation45_spill] sm:$0xff] %v10888_v3  ;;  %12498 = vst [vmem:[#allocation47_spill] sm:$0xff] %v10905_v10  ;;  %v10909_v11 = vld [vmem:[%s10543_s29 + $0x88] sm:$0xff]  ;;  %v10917_v13 = vld [vmem:[%s10543_s29 + $0x80] sm:$0xff] }
  0x96   :  { %12499 = vst [vmem:[#allocation48_spill] sm:$0xff] %v10909_v11  ;;  %12501 = vst [vmem:[#allocation50_spill] sm:$0xff] %v10917_v13  ;;  %v10921_v14 = vld [vmem:[%s10543_s29] sm:$0xff] }
  0x97   :  { %12502 = vst [vmem:[#allocation51_spill] sm:$0xff] %v10921_v14 }
 0x148   :  { %v9325_v16 = vpop.f32.mrf.mxu0 }
 0x149   :  { %v9330_v17 = vpop.f32.mrf.mxu1  ;;  %v362_v19 = vadd.f32 %v9325_v16, %v8491_v12 }
 0x14a   :  { %v356_v20 = vpop.f32.mrf.mxu0  ;;  %v460_v25 = vadd.f32 %v9330_v17, %v8494_v18  ;;  %v483_v17 = vlaneseq }
 0x14b   :  { %v454_v21 = vpop.f32.mrf.mxu1  ;;  %v366_v22 = vmax.f32 %v362_v19, 0.0  ;;  %v357_v23 = vadd.f32 %v8491_v12, %v356_v20  ;;  %v10913_v12 = vld [vmem:[%s10543_s29 + $0x8] sm:$0xff] }
 0x14c   :  { %v455_v24 = vadd.f32 %v8494_v18, %v454_v21  ;;  %v474_v33 = vmax.f32 %v460_v25, 0.0  ;;  %12500 = vst [vmem:[#allocation49_spill] sm:$0xff] %v10913_v12  ;;  %v484_v19 = vshrl.u32 %v483_v17, 7 }
 0x14d   :  { %v9333_v26 = vpop.f32.mrf.mxu1  ;;  %v365_v27 = vmax.f32 %v357_v23, 0.0  ;;  %9334 = vmatprep.subr.mxu1 %v366_v22 }
 0x14e   :  { %v473_v28 = vmax.f32 %v455_v24, 0.0  ;;  %9335 = vmatpush3.msra.mxu1 %v366_v22  ;;  %v470_v36 = vadd.f32 %v9333_v26, %v8494_v18  ;;  %v10925_v21 = vsub.s32 1, %v484_v19  ;;  %v10927_v23 = vsub.s32 0, %v484_v19 }
 0x14f   :  { %v464_v30 = vpop.f32.mrf.mxu1  ;;  %991 = vrot.lane.b32.xlu0 %v365_v27, %s10479_s22  ;;  %9336 = vmatprep.subr.mxu1 %v365_v27 }
 0x150   :  { %9337 = vmatpush3.msra.mxu1 %v365_v27  ;;  %8501 = vmatmul.mubr.msk.f32.vlgmr.msra.gmra.mxu0 %vm493_vm3, %v473_v28  ;;  %v465_v34 = vadd.f32 %v8494_v18, %v464_v30  ;;  %v476_v38 = vmax.f32 %v470_v36, 0.0  ;;  %12503 = vst [vmem:[#allocation52_spill] sm:$0xff] %v10925_v21  ;;  %12504 = vst [vmem:[#allocation53_spill] sm:$0xff] %v10927_v23 }
 0x151   :  { %9339 = vmatmul.mubr.msk.f32.vlgmr.msra.gmra.mxu1 %vm283_vm0, %v10749_v29  ;;  %583 = vmatprep.mubr.f32.mxu0 %v12422_v15 }
 0x152   :  { %9341 = vmatprep.mubr.msk.f32.mxu1 %vm283_vm0, %v10753_v31  ;;  %745 = vmatprep.subr.mxu1 %v10756_v32  ;;  %v475_v37 = vmax.f32 %v465_v34, 0.0 }
 0x153   :  { %993 = vrot.lane.b32.xlu0 %v366_v22, %s10479_s22  ;;  %746 = vmatpush1.msra.mxu1 %v10778_v39  ;;  %v481_v22 = vld [vmem:[#allocation7] sm:$0x3] }
 0x154   :  { %8502 = vmatmul.mubr.msk.f32.gmra.mxu0 %vm493_vm3, %v474_v33  ;;  %747 = vmatprep.subr.mxu1 %v10782_v40  ;;  %v490_v25 = vrot.slane %v481_v22, %v10925_v21  ;;  %v486_v26 = vrot.slane %v481_v22, %v10927_v23 }
 0x155   :  { %9342 = vmatmul.mubr.msk.f32.gmra.mxu1 %vm283_vm0, %v10765_v35  ;;  %589 = vmatprep.mubr.f32.mxu0 %v12422_v15 }
 0x156   :  { %781 = vmatprep.mubr.f32.mxu1 %v12422_v15  ;;  %748 = vmatpush1.msra.mxu1 %v10786_v41 }
 0x157   :  { %8796 = vmatpush3.msra.mxu0 %v10793_v43 }
 0x158   :  { %8503 = vmatmul.mubr.msk.f32.gmra.mxu0 %vm493_vm3, %v475_v37  ;;  %8797 = vmatprep.subr.mxu0 %v10796_v44 }
 0x159   :  { %595 = vmatprep.mubr.f32.mxu0 %v12422_v15  ;;  %8798 = vmatpush3.msra.mxu0 %v10800_v45 }
 0x15a   :  { %8799 = vmatprep.subr.mxu0 %v10804_v46 }
 0x15b   :  { %8800 = vmatpush3.msra.mxu0 %v10808_v47 }
 0x15c   :  { %8504 = vmatmul.mubr.msk.f32.gmra.mxu0 %vm493_vm3, %v476_v38  ;;  %8801 = vmatprep.subr.mxu0 %v10812_v48 }
 0x15d   :  { %8802 = vmatpush3.msra.mxu0 %v10816_v49 }
 0x15e   :  { %8803 = vmatprep.subr.mxu0 %v10820_v50 }
 0x15f   :  { %8804 = vmatpush3.msra.mxu0 %v10824_v51 }
 0x160   :  { %8805 = vmatprep.subr.mxu0 %v10828_v52 }
 0x161   :  { %8806 = vmatpush3.msra.mxu0 %v10832_v53 }
 0x162   :  { %8807 = vmatprep.subr.mxu0 %v10836_v54 }
 0x163   :  { %8808 = vmatpush3.msra.mxu0 %v10840_v55 }
 0x164   :  { %8809 = vmatprep.subr.mxu0 %v10844_v56 }
 0x165   :  { %8810 = vmatpush3.msra.mxu0 %v10848_v57 }
 0x166   :  { %8811 = vmatprep.subr.mxu0 %v10852_v58 }
 0x167   :  { %8812 = vmatpush3.msra.mxu0 %v10856_v59 }
 0x168   :  { %8813 = vmatprep.subr.mxu0 %v10860_v60 }
 0x169   :  { %8814 = vmatpush3.msra.mxu0 %v10864_v61 }
 0x16a   :  { %8815 = vmatprep.subr.mxu0 %v10868_v62 }
 0x16b   :  { %8816 = vmatpush3.msra.mxu0 %v10872_v63 }
 0x16c   :  { %8817 = vmatprep.subr.mxu0 %v10876_v0 }
 0x16d   :  { %8818 = vmatpush3.msra.mxu0 %v10880_v1 }
 0x16e   :  { %8819 = vmatprep.subr.mxu0 %v10884_v2 }
 0x16f   :  { %8820 = vmatpush3.msra.mxu0 %v10888_v3 }
 0x170   :  { %8821 = vmatprep.subr.mxu0 %v10901_v8 }
 0x171   :  { %8822 = vmatpush3.msra.mxu0 %v10905_v10 }
 0x172   :  { %8823 = vmatprep.subr.mxu0 %v10909_v11 }
 0x173   :  { %8824 = vmatpush3.msra.mxu0 %v10913_v12 }
 0x174   :  { %8825 = vmatprep.subr.mxu0 %v10917_v13 }
 0x175   :  { %8826 = vmatpush3.msra.mxu0 %v10921_v14 }
 0x176   :  { %8857 = vmatprep.subr.mxu0 %v10790_v42 }
 0x210   :  { %v579_v16 = vpop.f32.mrf.mxu0 }
 0x211   :  { %v9340_v4 = vpop.f32.mrf.mxu1  ;;  %v10933_v33 = vadd.f32 %v579_v16, %v486_v26 }
 0x212   :  { %v581_v18 = vpop.f32.mrf.mxu0 }
 0x213   :  { %v686_v5 = vpop.f32.mrf.mxu1  ;;  %v10931_v30 = vadd.f32 %v581_v18, %v490_v25 }
 0x214   :  { %8509 = vmatmul.mubr.msk.f32.vlgmr.msra.gmra.mxu1 %vm283_vm0, %v686_v5  ;;  %v585_v20 = vpop.f32.mrf.mxu0 }
 0x215   :  { %787 = vmatprep.mubr.f32.mxu1 %v12422_v15  ;;  %v9343_v6 = vpop.f32.mrf.mxu1 }
 0x216   :  { %v587_v24 = vpop.f32.mrf.mxu0 }
 0x217   :  { %v696_v7 = vpop.f32.mrf.mxu1  ;;  %v10937_v5 = vadd.f32 %v587_v24, %v490_v25 }
 0x218   :  { %8510 = vmatmul.mubr.msk.f32.gmra.mxu1 %vm283_vm0, %v9340_v4  ;;  %v591_v27 = vpop.f32.mrf.mxu0 }
 0x219   :  { %793 = vmatprep.mubr.f32.mxu1 %v12422_v15  ;;  %v10948_v24 = vadd.f32 %v591_v27, %v486_v26 }
 0x21a   :  { %v593_v34 = vpop.f32.mrf.mxu0 }
 0x21b   :  { %v10945_v22 = vadd.f32 %v593_v34, %v490_v25 }
 0x21c   :  { %8511 = vmatmul.mubr.msk.f32.gmra.mxu1 %vm283_vm0, %v696_v7  ;;  %v597_v7 = vpop.f32.mrf.mxu0 }
 0x21d   :  { %799 = vmatprep.mubr.f32.mxu1 %v12422_v15  ;;  %v10958_v27 = vadd.f32 %v597_v7, %v486_v26  ;;  %v10993_v15 = vld [vmem:[%s10528_s17 + $0x8] sm:$0xff] }
 0x220   :  { %8512 = vmatmul.mubr.msk.f32.gmra.mxu1 %vm283_vm0, %v9343_v6  ;;  %v10939_v6 = vadd.f32 %v585_v20, %v486_v26  ;;  %v599_v20 = vpop.f32.mrf.mxu0 }
 0x221   :  { %v10955_v34 = vadd.f32 %v599_v20, %v490_v25  ;;  %v10988_v25 = vld [vmem:[%s10528_s17] sm:$0xff] }
 0x222   :  { %9352 = vmatprep.mubr.msk.f32.mxu1 %vm905_vm4, %v10988_v25 }
 0x2d4   :  { %v783_v28 = vpop.f32.mrf.mxu1 }
 0x2d5   :  { %v806_v38 = vmul.f32 %v783_v28, %v10933_v33 }
 0x2d6   :  { %v785_v36 = vpop.f32.mrf.mxu1 }
 0x2d7   :  { %v807_v37 = vmul.f32 %v785_v36, %v10931_v30 }
 0x2d8   :  { %v789_v4 = vpop.f32.mrf.mxu1 }
 0x2d9   :  { %878 = vmatprep.mubr.f32.mxu0 %v807_v37  ;;  %v808_v16 = vmul.f32 %v789_v4, %v10939_v6 }
 0x2da   :  { %v791_v17 = vpop.f32.mrf.mxu1  ;;  %879 = vmatmul.mubr.f32.vlgmr.msra.gmra.mxu0 %v806_v38 }
 0x2db   :  { %v809_v18 = vmul.f32 %v791_v17, %v10937_v5  ;;  %8858 = vmatpush3.msra.mxu0 %v10793_v43 }
 0x2dc   :  { %v795_v19 = vpop.f32.mrf.mxu1  ;;  %8859 = vmatprep.subr.mxu0 %v10796_v44 }
 0x2dd   :  { %883 = vmatprep.mubr.f32.mxu0 %v809_v18  ;;  %8860 = vmatpush3.msra.mxu0 %v10800_v45  ;;  %v810_v37 = vmul.f32 %v795_v19, %v10948_v24 }
 0x2de   :  { %v797_v28 = vpop.f32.mrf.mxu1  ;;  %884 = vmatmul.mubr.f32.gmra.mxu0 %v808_v16  ;;  %8861 = vmatprep.subr.mxu0 %v10804_v46 }
 0x2df   :  { %v811_v36 = vmul.f32 %v797_v28, %v10945_v22  ;;  %8862 = vmatpush3.msra.mxu0 %v10808_v47 }
 0x2e0   :  { %v801_v38 = vpop.f32.mrf.mxu1  ;;  %8863 = vmatprep.subr.mxu0 %v10812_v48 }
 0x2e1   :  { %888 = vmatprep.mubr.f32.mxu0 %v811_v36  ;;  %8864 = vmatpush3.msra.mxu0 %v10816_v49  ;;  %v812_v18 = vmul.f32 %v801_v38, %v10958_v27 }
 0x2e2   :  { %v803_v4 = vpop.f32.mrf.mxu1  ;;  %889 = vmatmul.mubr.f32.gmra.mxu0 %v810_v37  ;;  %8865 = vmatprep.subr.mxu0 %v10820_v50 }
 0x2e3   :  { %v813_v17 = vmul.f32 %v803_v4, %v10955_v34  ;;  %8866 = vmatpush3.msra.mxu0 %v10824_v51 }
 0x2e4   :  { %8867 = vmatprep.subr.mxu0 %v10828_v52 }
 0x2e5   :  { %893 = vmatprep.mubr.f32.mxu0 %v813_v17  ;;  %8868 = vmatpush3.msra.mxu0 %v10832_v53 }
 0x2e6   :  { %894 = vmatmul.mubr.f32.gmra.mxu0 %v812_v18  ;;  %8869 = vmatprep.subr.mxu0 %v10836_v54 }
 0x2e7   :  { %8870 = vmatpush3.msra.mxu0 %v10840_v55 }
 0x2e8   :  { %8871 = vmatprep.subr.mxu0 %v10844_v56 }
 0x2e9   :  { %8872 = vmatpush3.msra.mxu0 %v10848_v57 }
 0x2ea   :  { %8873 = vmatprep.subr.mxu0 %v10852_v58 }
 0x2eb   :  { %8874 = vmatpush3.msra.mxu0 %v10856_v59 }
 0x2ec   :  { %8875 = vmatprep.subr.mxu0 %v10860_v60 }
 0x2ed   :  { %8876 = vmatpush3.msra.mxu0 %v10864_v61 }
 0x2ee   :  { %8877 = vmatprep.subr.mxu0 %v10868_v62 }
 0x2ef   :  { %8878 = vmatpush3.msra.mxu0 %v10872_v63 }
 0x2f0   :  { %8879 = vmatprep.subr.mxu0 %v10876_v0 }
 0x2f1   :  { %8880 = vmatpush3.msra.mxu0 %v10880_v1 }
 0x2f2   :  { %8881 = vmatprep.subr.mxu0 %v10884_v2 }
 0x2f3   :  { %8882 = vmatpush3.msra.mxu0 %v10888_v3 }
 0x2f4   :  { %8883 = vmatprep.subr.mxu0 %v10901_v8 }
 0x2f5   :  { %8884 = vmatpush3.msra.mxu0 %v10905_v10 }
 0x2f6   :  { %8885 = vmatprep.subr.mxu0 %v10909_v11 }
 0x2f7   :  { %8886 = vmatpush3.msra.mxu0 %v10913_v12 }
 0x2f8   :  { %8887 = vmatprep.subr.mxu0 %v10917_v13  ;;  %v11028_v13 = vld [vmem:[%s12506_s27] ss:$0 sm:$0xff] }
 0x2f9   :  { %8888 = vmatpush3.msra.mxu0 %v10921_v14 }
 0x2fa   :  { %1766 = vmatprep.subr.mxu0 %v10756_v32 }
 0x39a   :  { %v8827_v26 = vpop.f32.mrf.mxu0 }
 0x39c   :  { %v8828_v7 = vpop.f32.mrf.mxu0 }
 0x39d   :  { %v8829_v18 = vadd.f32 %v8828_v7, %v8827_v26  ;;  %v11008_v26 = vld [vmem:[%s12505_s30 + $0x8] sm:$0xff]  ;;  %v11012_v7 = vld [vmem:[%s12505_s30] sm:$0xff] }
 0x39e   :  { %v8830_v16 = vpop.f32.mrf.mxu0 }
 0x3a0   :  { %v8831_v19 = vpop.f32.mrf.mxu0 }
 0x3a1   :  { %v8832_v17 = vadd.f32 %v8831_v19, %v8830_v16  ;;  %v11003_v16 = vld [vmem:[%s12505_s30 + $0x10] sm:$0xff] }
 0x3a2   :  { %v8833_v20 = vpop.f32.mrf.mxu0  ;;  %v11017_v19 = vld [vmem:[#allocation8] ss:$0 sm:$0xff] }
 0x3a4   :  { %v8834_v28 = vpop.f32.mrf.mxu0 }
 0x3a5   :  { %v8835_v4 = vadd.f32 %v8834_v28, %v8833_v20  ;;  %v992_v28 = vpop.permute.xlu0 %991 }
 0x3a6   :  { %v8836_v36 = vpop.f32.mrf.mxu0 }
 0x3a8   :  { %v8837_v37 = vpop.f32.mrf.mxu0 }
 0x3a9   :  { %v8838_v38 = vadd.f32 %v8837_v37, %v8836_v36  ;;  %v10998_v36 = vld [vmem:[%s12505_s30 + $0x18] sm:$0xff]  ;;  %v994_v21 = vpop.permute.xlu0 %993 }
 0x3ab   :  { %9344 = vmatprep.subr.mxu1 %v8838_v38 }
 0x3ac   :  { %9345 = vmatpush3.msra.mxu1 %v8838_v38 }
 0x3ad   :  { %9346 = vmatprep.subr.mxu1 %v8835_v4 }
 0x3ae   :  { %9347 = vmatpush3.msra.mxu1 %v8835_v4 }
 0x3af   :  { %9348 = vmatprep.subr.mxu1 %v8832_v17 }
 0x3b0   :  { %9349 = vmatpush3.msra.mxu1 %v8832_v17 }
 0x3b1   :  { %9350 = vmatprep.subr.mxu1 %v8829_v18 }
 0x3b2   :  { %9351 = vmatpush3.msra.mxu1 %v8829_v18 }
 0x3b3   :  { %9353 = vmatmul.mubr.msk.f32.vlgmr.msra.gmra.mxu1 %vm905_vm4, %v10993_v15  ;;  %9355 = vmatprep.subr.mxu1 %v10998_v36 }
 0x3b4   :  { %9356 = vmatpush3.msra.mxu1 %v10998_v36 }
 0x3b5   :  { %9357 = vmatprep.subr.mxu1 %v11003_v16 }
 0x3b6   :  { %9358 = vmatpush3.msra.mxu1 %v11003_v16 }
 0x3b7   :  { %9359 = vmatprep.subr.mxu1 %v11008_v26 }
 0x3b8   :  { %9360 = vmatpush3.msra.mxu1 %v11008_v26 }
 0x3b9   :  { %9361 = vmatprep.subr.mxu1 %v11012_v7 }
 0x3ba   :  { %9362 = vmatpush3.msra.mxu1 %v11012_v7 }
 0x473   :  { %v9354_v20 = vpop.f32.mrf.mxu1 }
 0x474   :  { %v984_v37 = vadd.f32 %v9354_v20, %v11017_v19 }
 0x475   :  { %v978_v38 = vpop.f32.mrf.mxu1 }
 0x476   :  { %v979_v4 = vadd.f32 %v11017_v19, %v978_v38  ;;  %v988_v17 = vmax.f32 %v984_v37, 0.0 }
 0x478   :  { %v987_v18 = vmax.f32 %v979_v4, 0.0  ;;  %v998_v14 = vsel %vm283_vm0, %v988_v17, %v994_v21 }
 0x47a   :  { %v997_v23 = vsel %vm283_vm0, %v987_v18, %v992_v28 }
 0x47b   :  { %9363 = vmatprep.mubr.msk.f32.mxu1 %vm905_vm4, %v997_v23 }
 0x47c   :  { %9364 = vmatmul.mubr.msk.f32.vlgmr.msra.gmra.mxu1 %vm905_vm4, %v998_v14 }
 0x47d   :  { %9370 = vmatprep.mubr.msk.f32.mxu1 %vm283_vm0, %v10736_v9 }
 0x53c   :  { %v9365_v20 = vpop.f32.mrf.mxu1 }
 0x53d   :  { %v1083_v12 = vadd.f32 %v9365_v20, %v11028_v13 }
 0x53e   :  { %v1077_v38 = vpop.f32.mrf.mxu1 }
 0x53f   :  { %1102 = vrot.lane.b32.xlu1 %v1083_v12, %s10490_s23  ;;  %v1078_v37 = vadd.f32 %v11028_v13, %v1077_v38  ;;  %v8520_v4 = vmul.f32 -1.442695, %v1083_v12 }
 0x541   :  { %9956 = vpow2.f32 %v8520_v4  ;;  %v8519_v23 = vmul.f32 -1.442695, %v1078_v37 }
 0x543   :  { %1100 = vrot.lane.b32.xlu1 %v1078_v37, %s10490_s23  ;;  %9958 = vpow2.f32 %v8519_v23 }
 0x54e   :  { %v9957_v14 = vpop.eup %9956 }
 0x54f   :  { %v1093_v17 = vadd.f32 1.0, %v9957_v14 }
 0x550   :  { %v9959_v18 = vpop.eup %9958 }
 0x551   :  { %9960 = vrcp.f32 %v1093_v17  ;;  %v1092_v11 = vadd.f32 1.0, %v9959_v18 }
 0x553   :  { %9962 = vrcp.f32 %v1092_v11 }
 0x55e   :  { %v9961_v10 = vpop.eup %9960 }
 0x55f   :  { %v1121_v17 = vsub.f32 1.0, %v9961_v10  ;;  %v1133_v18 = vmul.f32 %v9961_v10, %v994_v21 }
 0x560   :  { %v9963_v3 = vpop.eup %9962 }
 0x5b1   :  { %v1103_v20 = vpop.permute.xlu1 %1102 }
 0x5b2   :  { %v1107_v8 = vmul.f32 %v9961_v10, %v1103_v20 }
 0x5b4   :  { %1112 = vrot.lane.b32.xlu0 %v1107_v8, %s10486_s6 }
 0x5b5   :  { %v1101_v2 = vpop.permute.xlu1 %1100 }
 0x5b6   :  { %v1106_v38 = vmul.f32 %v9963_v3, %v1101_v2 }
 0x5b8   :  { %1110 = vrot.lane.b32.xlu1 %v1106_v38, %s10486_s6  ;;  %v1120_v38 = vsub.f32 1.0, %v9963_v3 }
 0x626   :  { %v1113_v1 = vpop.permute.xlu0 %1112 }
 0x627   :  { %v1117_v4 = vadd.f32 %v1113_v1, %v1083_v12  ;;  %v1132_v1 = vmul.f32 %v9963_v3, %v992_v28 }
 0x629   :  { %9964 = vtanh.f32 %v1117_v4 }
 0x62a   :  { %v1111_v23 = vpop.permute.xlu1 %1110 }
 0x62b   :  { %v1116_v0 = vadd.f32 %v1111_v23, %v1078_v37 }
 0x62d   :  { %9966 = vtanh.f32 %v1116_v0 }
 0x636   :  { %v9965_v14 = vpop.eup %9964 }
 0x637   :  { %1126 = vrot.lane.b32.xlu0 %v9965_v14, %s10491_s28 }
 0x63a   :  { %v9967_v11 = vpop.eup %9966 }
 0x63b   :  { %1124 = vrot.lane.b32.xlu1 %v9967_v11, %s10491_s28 }
 0x6a9   :  { %v1127_v8 = vpop.permute.xlu0 %1126 }
 0x6aa   :  { %v1131_v20 = vmul.f32 %v1127_v8, %v1121_v17 }
 0x6ac   :  { %v11038_v2 = vadd.f32 %v1133_v18, %v1131_v20 }
 0x6ad   :  { %v1125_v63 = vpop.permute.xlu1 %1124 }
 0x6ae   :  { %v1130_v12 = vmul.f32 %v1125_v63, %v1120_v38  ;;  %1140 = vrot.lane.b32.xlu0 %v11038_v2, %s10491_s28  ;;  %v12507_v63 = vmov 0.0  }
 0x6b0   :  { %v11042_v0 = vadd.f32 %v1132_v1, %v1130_v12 }
 0x6b2   :  { %1138 = vrot.lane.b32.xlu1 %v11042_v0, %s10491_s28 }
 0x720   :  { %v1141_v37 = vpop.permute.xlu0 %1140 }
 0x721   :  { %9366 = vmatprep.subr.mxu1 %v1141_v37 }
 0x722   :  { %9367 = vmatpush3.msra.mxu1 %v1141_v37 }
 0x724   :  { %v1139_v4 = vpop.permute.xlu1 %1138 }
 0x725   :  { %9368 = vmatprep.subr.mxu1 %v1139_v4 }
 0x726   :  { %9369 = vmatpush3.msra.mxu1 %v1139_v4 }
 0x727   :  { %9371 = vmatmul.mubr.msk.f32.vlgmr.msra.gmra.mxu1 %vm283_vm0, %v10749_v29  ;;  %1269 = vmatprep.subr.mxu1 %v10756_v32 }
 0x728   :  { %9373 = vmatprep.mubr.msk.f32.mxu1 %vm283_vm0, %v10753_v31  ;;  %1270 = vmatpush1.msra.mxu1 %v10778_v39 }
 0x729   :  { %1271 = vmatprep.subr.mxu1 %v10782_v40 }
 0x72a   :  { %1272 = vmatpush1.msra.mxu1 %v10786_v41 }
 0x72b   :  { %9374 = vmatmul.mubr.msk.f32.gmra.mxu1 %vm283_vm0, %v10765_v35 }
 0x72c   :  { %1305 = vmatprep.mubr.f32.mxu1 %v12507_v63 }
 0x7e7   :  { %v9372_v3 = vpop.f32.mrf.mxu1 }
 0x7e9   :  { %v1210_v10 = vpop.f32.mrf.mxu1 }
 0x7ea   :  { %8525 = vmatmul.mubr.msk.f32.vlgmr.msra.gmra.mxu1 %vm283_vm0, %v1210_v10 }
 0x7eb   :  { %1311 = vmatprep.mubr.f32.mxu1 %v12507_v63  ;;  %v9375_v32 = vpop.f32.mrf.mxu1 }
 0x7ed   :  { %v1220_v21 = vpop.f32.mrf.mxu1 }
 0x7ee   :  { %8526 = vmatmul.mubr.msk.f32.gmra.mxu1 %vm283_vm0, %v9372_v3 }
 0x7ef   :  { %1317 = vmatprep.mubr.f32.mxu1 %v12507_v63 }
 0x7f2   :  { %8527 = vmatmul.mubr.msk.f32.gmra.mxu1 %vm283_vm0, %v1220_v21 }
 0x7f3   :  { %1323 = vmatprep.mubr.f32.mxu1 %v12507_v63 }
 0x7f6   :  { %8528 = vmatmul.mubr.msk.f32.gmra.mxu1 %vm283_vm0, %v9375_v32 }
 0x7f7   :  { %9384 = vmatprep.mubr.msk.f32.mxu1 %vm905_vm4, %v10988_v25 }
 0x8aa   :  { %v1307_v28 = vpop.f32.mrf.mxu1 }
 0x8ab   :  { %v1330_v11 = vmul.f32 %v1307_v28, %v10933_v33 }
 0x8ac   :  { %v1309_v23 = vpop.f32.mrf.mxu1 }
 0x8ad   :  { %v1331_v14 = vmul.f32 %v1309_v23, %v10931_v30 }
 0x8ae   :  { %v1313_v17 = vpop.f32.mrf.mxu1 }
 0x8af   :  { %1402 = vmatprep.mubr.f32.mxu0 %v1331_v14  ;;  %v1332_v20 = vmul.f32 %v1313_v17, %v10939_v6 }
 0x8b0   :  { %v1315_v8 = vpop.f32.mrf.mxu1  ;;  %1403 = vmatmul.mubr.f32.vlgmr.msra.gmra.mxu0 %v1330_v11 }
 0x8b1   :  { %v1333_v18 = vmul.f32 %v1315_v8, %v10937_v5  ;;  %1767 = vmatpush1.msra.mxu0 %v10778_v39 }
 0x8b2   :  { %v1319_v38 = vpop.f32.mrf.mxu1  ;;  %1768 = vmatprep.subr.mxu0 %v10782_v40 }
 0x8b3   :  { %1407 = vmatprep.mubr.f32.mxu0 %v1333_v18  ;;  %1769 = vmatpush1.msra.mxu0 %v10786_v41  ;;  %v1334_v37 = vmul.f32 %v1319_v38, %v10948_v24 }
 0x8b4   :  { %v1321_v1 = vpop.f32.mrf.mxu1  ;;  %1408 = vmatmul.mubr.f32.gmra.mxu0 %v1332_v20 }
 0x8b5   :  { %v1335_v12 = vmul.f32 %v1321_v1, %v10945_v22 }
 0x8b6   :  { %v1325_v4 = vpop.f32.mrf.mxu1 }
 0x8b7   :  { %1412 = vmatprep.mubr.f32.mxu0 %v1335_v12  ;;  %v1336_v10 = vmul.f32 %v1325_v4, %v10958_v27 }
 0x8b8   :  { %v1327_v3 = vpop.f32.mrf.mxu1  ;;  %1413 = vmatmul.mubr.f32.gmra.mxu0 %v1334_v37 }
 0x8b9   :  { %v1337_v39 = vmul.f32 %v1327_v3, %v10955_v34 }
 0x8bb   :  { %1417 = vmatprep.mubr.f32.mxu0 %v1337_v39 }
 0x8bc   :  { %1418 = vmatmul.mubr.f32.gmra.mxu0 %v1336_v10 }
 0x8bd   :  { %1802 = vmatprep.mubr.f32.mxu0 %v12507_v63 }
 0x970   :  { %v8889_v40 = vpop.f32.mrf.mxu0 }
 0x972   :  { %v8890_v41 = vpop.f32.mrf.mxu0 }
 0x973   :  { %v8891_v20 = vadd.f32 %v8890_v41, %v8889_v40 }
 0x974   :  { %v8892_v32 = vpop.f32.mrf.mxu0 }
 0x976   :  { %v8893_v21 = vpop.f32.mrf.mxu0 }
 0x977   :  { %v8894_v18 = vadd.f32 %v8893_v21, %v8892_v32 }
 0x978   :  { %v8895_v28 = vpop.f32.mrf.mxu0 }
 0x97a   :  { %v8896_v23 = vpop.f32.mrf.mxu0 }
 0x97b   :  { %v8897_v8 = vadd.f32 %v8896_v23, %v8895_v28 }
 0x97c   :  { %v8898_v14 = vpop.f32.mrf.mxu0 }
 0x97e   :  { %v8899_v11 = vpop.f32.mrf.mxu0 }
 0x97f   :  { %v8900_v17 = vadd.f32 %v8899_v11, %v8898_v14 }
 0x981   :  { %9376 = vmatprep.subr.mxu1 %v8900_v17 }
 0x982   :  { %9377 = vmatpush3.msra.mxu1 %v8900_v17 }
 0x983   :  { %9378 = vmatprep.subr.mxu1 %v8897_v8 }
 0x984   :  { %9379 = vmatpush3.msra.mxu1 %v8897_v8 }
 0x985   :  { %9380 = vmatprep.subr.mxu1 %v8894_v18 }
 0x986   :  { %9381 = vmatpush3.msra.mxu1 %v8894_v18 }
 0x987   :  { %9382 = vmatprep.subr.mxu1 %v8891_v20 }
 0x988   :  { %9383 = vmatpush3.msra.mxu1 %v8891_v20 }
 0x989   :  { %9385 = vmatmul.mubr.msk.f32.vlgmr.msra.gmra.mxu1 %vm905_vm4, %v10993_v15  ;;  %9387 = vmatprep.subr.mxu1 %v10998_v36 }
 0x98a   :  { %9388 = vmatpush3.msra.mxu1 %v10998_v36 }
 0x98b   :  { %9389 = vmatprep.subr.mxu1 %v11003_v16 }
 0x98c   :  { %9390 = vmatpush3.msra.mxu1 %v11003_v16 }
 0x98d   :  { %9391 = vmatprep.subr.mxu1 %v11008_v26 }
 0x98e   :  { %9392 = vmatpush3.msra.mxu1 %v11008_v26 }
 0x98f   :  { %9393 = vmatprep.subr.mxu1 %v11012_v7 }
 0x990   :  { %9394 = vmatpush3.msra.mxu1 %v11012_v7 }
 0xa49   :  { %v9386_v38 = vpop.f32.mrf.mxu1 }
 0xa4a   :  { %v1495_v1 = vadd.f32 %v9386_v38, %v11017_v19 }
 0xa4b   :  { %v1489_v12 = vpop.f32.mrf.mxu1 }
 0xa4c   :  { %v1490_v37 = vadd.f32 %v11017_v19, %v1489_v12  ;;  %v1499_v4 = vmax.f32 %v1495_v1, 0.0 }
 0xa4e   :  { %v1498_v3 = vmax.f32 %v1490_v37, 0.0  ;;  %v1501_v10 = vsel %vm283_vm0, %v1499_v4, %v11038_v2 }
 0xa50   :  { %v1500_v39 = vsel %vm283_vm0, %v1498_v3, %v11042_v0 }
 0xa51   :  { %9395 = vmatprep.mubr.msk.f32.mxu1 %vm905_vm4, %v1500_v39 }
 0xa52   :  { %9396 = vmatmul.mubr.msk.f32.vlgmr.msra.gmra.mxu1 %vm905_vm4, %v1501_v10 }
 0xa53   :  { %9402 = vmatprep.mubr.msk.f32.mxu1 %vm283_vm0, %v10736_v9 }
 0xb12   :  { %v9397_v40 = vpop.f32.mrf.mxu1 }
 0xb13   :  { %v1580_v41 = vadd.f32 %v9397_v40, %v11028_v13 }
 0xb14   :  { %v1574_v32 = vpop.f32.mrf.mxu1 }
 0xb15   :  { %v1575_v21 = vadd.f32 %v11028_v13, %v1574_v32  ;;  %1599 = vrot.lane.b32.xlu0 %v1580_v41, %s10490_s23  ;;  %v8534_v28 = vmul.f32 -1.442695, %v1580_v41 }
 0xb17   :  { %1597 = vrot.lane.b32.xlu1 %v1575_v21, %s10490_s23  ;;  %v8533_v23 = vmul.f32 -1.442695, %v1575_v21  ;;  %9968 = vpow2.f32 %v8534_v28 }
 0xb19   :  { %9970 = vpow2.f32 %v8533_v23 }
 0xb24   :  { %v9969_v14 = vpop.eup %9968 }
 0xb25   :  { %v1590_v17 = vadd.f32 1.0, %v9969_v14 }
 0xb26   :  { %v9971_v11 = vpop.eup %9970 }
 0xb27   :  { %v1589_v8 = vadd.f32 1.0, %v9971_v11  ;;  %9972 = vrcp.f32 %v1590_v17 }
 0xb29   :  { %9974 = vrcp.f32 %v1589_v8 }
 0xb34   :  { %v9973_v9 = vpop.eup %9972 }
 0xb35   :  { %v1618_v32 = vsub.f32 1.0, %v9973_v9  ;;  %v1630_v23 = vmul.f32 %v9973_v9, %v11038_v2 }
 0xb36   :  { %v9975_v38 = vpop.eup %9974 }
 0xb37   :  { %v1617_v11 = vsub.f32 1.0, %v9975_v38 }
 0xb87   :  { %v1600_v18 = vpop.permute.xlu0 %1599 }
 0xb88   :  { %v1604_v20 = vmul.f32 %v9973_v9, %v1600_v18 }
 0xb89   :  { %v1598_v1 = vpop.permute.xlu1 %1597 }
 0xb8a   :  { %1609 = vrot.lane.b32.xlu0 %v1604_v20, %s10486_s6  ;;  %v1603_v12 = vmul.f32 %v9975_v38, %v1598_v1 }
 0xb8c   :  { %1607 = vrot.lane.b32.xlu1 %v1603_v12, %s10486_s6 }
 0xbfc   :  { %v1610_v37 = vpop.permute.xlu0 %1609 }
 0xbfd   :  { %v1614_v4 = vadd.f32 %v1610_v37, %v1580_v41  ;;  %v1629_v41 = vmul.f32 %v9975_v38, %v11042_v0 }
 0xbfe   :  { %v1608_v3 = vpop.permute.xlu1 %1607 }
 0xbff   :  { %9976 = vtanh.f32 %v1614_v4  ;;  %v1613_v39 = vadd.f32 %v1608_v3, %v1575_v21 }
 0xc01   :  { %9978 = vtanh.f32 %v1613_v39 }
 0xc0c   :  { %v9977_v10 = vpop.eup %9976 }
 0xc0d   :  { %1623 = vrot.lane.b32.xlu0 %v9977_v10, %s10491_s28 }
 0xc0e   :  { %v9979_v40 = vpop.eup %9978 }
 0xc0f   :  { %1621 = vrot.lane.b32.xlu1 %v9979_v40, %s10491_s28 }
 0xc7f   :  { %v1624_v28 = vpop.permute.xlu0 %1623 }
 0xc80   :  { %v1628_v14 = vmul.f32 %v1624_v28, %v1618_v32 }
 0xc81   :  { %v1622_v17 = vpop.permute.xlu1 %1621 }
 0xc82   :  { %v11107_v8 = vadd.f32 %v1630_v23, %v1628_v14  ;;  %v1627_v18 = vmul.f32 %v1622_v17, %v1617_v11 }
 0xc84   :  { %v11110_v21 = vadd.f32 %v1629_v41, %v1627_v18  ;;  %1637 = vrot.lane.b32.xlu0 %v11107_v8, %s10491_s28 }
 0xc86   :  { %1635 = vrot.lane.b32.xlu1 %v11110_v21, %s10491_s28 }
 0xcf6   :  { %v1638_v20 = vpop.permute.xlu0 %1637 }
 0xcf7   :  { %9398 = vmatprep.subr.mxu1 %v1638_v20 }
 0xcf8   :  { %9399 = vmatpush3.msra.mxu1 %v1638_v20  ;;  %v1636_v2 = vpop.permute.xlu1 %1635 }
 0xcf9   :  { %9400 = vmatprep.subr.mxu1 %v1636_v2 }
 0xcfa   :  { %9401 = vmatpush3.msra.mxu1 %v1636_v2 }
 0xcfb   :  { %9403 = vmatmul.mubr.msk.f32.vlgmr.msra.gmra.mxu1 %vm283_vm0, %v10749_v29  ;;  %8919 = vmatprep.subr.mxu1 %v10790_v42  ;;  %v12508_v29 = vld [vmem:[#allocation41_spill] sm:$0xff]  ;;  %v12511_v42 = vld [vmem:[#allocation44_spill] sm:$0xff] }
 0xcfc   :  { %9405 = vmatprep.mubr.msk.f32.mxu1 %vm283_vm0, %v10753_v31  ;;  %8920 = vmatpush3.msra.mxu1 %v10793_v43  ;;  %v12509_v31 = vld [vmem:[#allocation42_spill] sm:$0xff]  ;;  %v12512_v43 = vld [vmem:[#allocation45_spill] sm:$0xff] }
 0xcfd   :  { %8921 = vmatprep.subr.mxu1 %v10796_v44  ;;  %v12513_v44 = vld [vmem:[#allocation46_spill] sm:$0xff] }
 0xcfe   :  { %8922 = vmatpush3.msra.mxu1 %v10800_v45  ;;  %v12514_v45 = vld [vmem:[#allocation47_spill] sm:$0xff] }
 0xcff   :  { %9406 = vmatmul.mubr.msk.f32.gmra.mxu1 %vm283_vm0, %v10765_v35  ;;  %8923 = vmatprep.subr.mxu1 %v10804_v46  ;;  %v12510_v35 = vld [vmem:[#allocation43_spill] sm:$0xff]  ;;  %v12515_v46 = vld [vmem:[#allocation48_spill] sm:$0xff] }
 0xd00   :  { %8924 = vmatpush3.msra.mxu1 %v10808_v47  ;;  %v12516_v47 = vld [vmem:[#allocation49_spill] sm:$0xff] }
 0xd01   :  { %8925 = vmatprep.subr.mxu1 %v10812_v48  ;;  %v12517_v48 = vld [vmem:[#allocation50_spill] sm:$0xff] }
 0xd02   :  { %8926 = vmatpush3.msra.mxu1 %v10816_v49  ;;  %v12518_v49 = vld [vmem:[#allocation51_spill] sm:$0xff] }
 0xd03   :  { %8927 = vmatprep.subr.mxu1 %v10820_v50 }
 0xd04   :  { %8928 = vmatpush3.msra.mxu1 %v10824_v51 }
 0xd05   :  { %8929 = vmatprep.subr.mxu1 %v10828_v52 }
 0xd06   :  { %8930 = vmatpush3.msra.mxu1 %v10832_v53 }
 0xd07   :  { %8931 = vmatprep.subr.mxu1 %v10836_v54 }
 0xd08   :  { %8932 = vmatpush3.msra.mxu1 %v10840_v55 }
 0xd09   :  { %8933 = vmatprep.subr.mxu1 %v10844_v56 }
 0xd0a   :  { %8934 = vmatpush3.msra.mxu1 %v10848_v57 }
 0xd0b   :  { %8935 = vmatprep.subr.mxu1 %v10852_v58 }
 0xd0c   :  { %8936 = vmatpush3.msra.mxu1 %v10856_v59 }
 0xd0d   :  { %8937 = vmatprep.subr.mxu1 %v10860_v60 }
 0xd0e   :  { %8938 = vmatpush3.msra.mxu1 %v10864_v61 }
 0xd0f   :  { %8939 = vmatprep.subr.mxu1 %v10868_v62 }
 0xd10   :  { %8940 = vmatpush3.msra.mxu1 %v12508_v29 }
 0xd11   :  { %8941 = vmatprep.subr.mxu1 %v12509_v31 }
 0xd12   :  { %8942 = vmatpush3.msra.mxu1 %v12510_v35 }
 0xd13   :  { %8943 = vmatprep.subr.mxu1 %v12511_v42 }
 0xd14   :  { %8944 = vmatpush3.msra.mxu1 %v12512_v43 }
 0xd15   :  { %8945 = vmatprep.subr.mxu1 %v12513_v44 }
 0xd16   :  { %8946 = vmatpush3.msra.mxu1 %v12514_v45 }
 0xd17   :  { %8947 = vmatprep.subr.mxu1 %v12515_v46 }
 0xd18   :  { %8948 = vmatpush3.msra.mxu1 %v12516_v47 }
 0xd19   :  { %8949 = vmatprep.subr.mxu1 %v12517_v48 }
 0xd1a   :  { %8950 = vmatpush3.msra.mxu1 %v12518_v49 }
 0xd1b   :  { %9458 = vmatprep.subr.mxu1 %v12507_v63 }
 0xdbb   :  { %v9404_v50 = vpop.f32.mrf.mxu1 }
 0xdbd   :  { %v1707_v51 = vpop.f32.mrf.mxu1 }
 0xdbe   :  { %8539 = vmatmul.mubr.msk.f32.vlgmr.msra.gmra.mxu0 %vm283_vm0, %v1707_v51 }
 0xdbf   :  { %1808 = vmatprep.mubr.f32.mxu0 %v12507_v63  ;;  %v9407_v52 = vpop.f32.mrf.mxu1 }
 0xdc1   :  { %v1717_v53 = vpop.f32.mrf.mxu1 }
 0xdc2   :  { %8540 = vmatmul.mubr.msk.f32.gmra.mxu0 %vm283_vm0, %v9404_v50 }
 0xdc3   :  { %1814 = vmatprep.mubr.f32.mxu0 %v12507_v63 }
 0xdc6   :  { %8541 = vmatmul.mubr.msk.f32.gmra.mxu0 %vm283_vm0, %v1717_v53 }
 0xdc7   :  { %1820 = vmatprep.mubr.f32.mxu0 %v12507_v63 }
 0xdca   :  { %8542 = vmatmul.mubr.msk.f32.gmra.mxu0 %vm283_vm0, %v9407_v52 }
 0xdcb   :  { %9416 = vmatprep.mubr.msk.f32.mxu0 %vm905_vm4, %v10988_v25 }
 0xe7e   :  { %v1804_v54 = vpop.f32.mrf.mxu0 }
 0xe7f   :  { %v1827_v57 = vmul.f32 %v1804_v54, %v10933_v33 }
 0xe80   :  { %v1806_v55 = vpop.f32.mrf.mxu0 }
 0xe81   :  { %v1828_v56 = vmul.f32 %v1806_v55, %v10931_v30 }
 0xe82   :  { %v1810_v58 = vpop.f32.mrf.mxu0 }
 0xe83   :  { %1899 = vmatprep.mubr.f32.mxu1 %v1828_v56  ;;  %v1829_v61 = vmul.f32 %v1810_v58, %v10939_v6 }
 0xe84   :  { %v1812_v59 = vpop.f32.mrf.mxu0  ;;  %1900 = vmatmul.mubr.f32.vlgmr.msra.gmra.mxu1 %v1827_v57 }
 0xe85   :  { %v1830_v60 = vmul.f32 %v1812_v59, %v10937_v5 }
 0xe86   :  { %v1816_v62 = vpop.f32.mrf.mxu0 }
 0xe87   :  { %1904 = vmatprep.mubr.f32.mxu1 %v1830_v60  ;;  %v1831_v9 = vmul.f32 %v1816_v62, %v10948_v24  ;;  %v225_v62 = vld [vmem:[%s12519_s1] sm:$0x3] }
 0xe88   :  { %v1818_v0 = vpop.f32.mrf.mxu0  ;;  %1905 = vmatmul.mubr.f32.gmra.mxu1 %v1829_v61 }
 0xe89   :  { %v1832_v25 = vmul.f32 %v1818_v0, %v10945_v22  ;;  %v2215_v0 = vld [vmem:[%s12520_s2 + $0x8] sm:$0xff] }
 0xe8a   :  { %v1822_v38 = vpop.f32.mrf.mxu0 }
 0xe8b   :  { %1909 = vmatprep.mubr.f32.mxu1 %v1832_v25  ;;  %v1833_v1 = vmul.f32 %v1822_v38, %v10958_v27  ;;  %v2214_v25 = vld [vmem:[%s12520_s2] sm:$0xff]  ;;  %v11222_v38 = vld [vmem:[%s12522_s19 + $0x8] sm:$0xff] }
 0xe8c   :  { %v1824_v30 = vpop.f32.mrf.mxu0  ;;  %1910 = vmatmul.mubr.f32.gmra.mxu1 %v1831_v9  ;;  %v2302_v9 = vld [vmem:[%s12521_s7] sm:$0xff] }
 0xe8d   :  { %v1834_v33 = vmul.f32 %v1824_v30, %v10955_v34  ;;  %v11227_v30 = vld [vmem:[%s12522_s19] sm:$0xff] }
 0xe8f   :  { %1914 = vmatprep.mubr.f32.mxu1 %v1834_v33 }
 0xe90   :  { %1915 = vmatmul.mubr.f32.gmra.mxu1 %v1833_v1 }
 0xe91   :  { %9466 = vmatprep.mubr.msk.f32.mxu1 %vm10492_vm5, %v12507_v63 }
 0xf44   :  { %v8951_v5 = vpop.f32.mrf.mxu1 }
 0xf46   :  { %v8952_v6 = vpop.f32.mrf.mxu1 }
 0xf47   :  { %v8953_v34 = vadd.f32 %v8952_v6, %v8951_v5  ;;  %v10493_v6 = vmov 0  }
 0xf48   :  { %v8954_v12 = vpop.f32.mrf.mxu1  ;;  %9933 = vset.pattern.permute.xlu1 %v10493_v6  ;;  %9932 = vset.pattern.permute.xlu0 %v10493_v6 }
 0xf4a   :  { %v8955_v37 = vpop.f32.mrf.mxu1 }
 0xf4b   :  { %v8956_v40 = vadd.f32 %v8955_v37, %v8954_v12 }
 0xf4c   :  { %v8957_v4 = vpop.f32.mrf.mxu1 }
 0xf4e   :  { %v8958_v3 = vpop.f32.mrf.mxu1 }
 0xf4f   :  { %v8959_v24 = vadd.f32 %v8958_v3, %v8957_v4 }
 0xf50   :  { %v8960_v39 = vpop.f32.mrf.mxu1 }
 0xf52   :  { %v8961_v22 = vpop.f32.mrf.mxu1 }
 0xf53   :  { %v8962_v10 = vadd.f32 %v8961_v22, %v8960_v39  ;;  %v11251_v39 = vld [vmem:[#allocation10] ss:$0 sm:$0xff] }
 0xf55   :  { %9408 = vmatprep.subr.mxu0 %v8962_v10 }
 0xf56   :  { %9409 = vmatpush3.msra.mxu0 %v8962_v10 }
 0xf57   :  { %9410 = vmatprep.subr.mxu0 %v8959_v24 }
 0xf58   :  { %9411 = vmatpush3.msra.mxu0 %v8959_v24 }
 0xf59   :  { %9412 = vmatprep.subr.mxu0 %v8956_v40 }
 0xf5a   :  { %9413 = vmatpush3.msra.mxu0 %v8956_v40  ;;  %v12523_v40 = vld [vmem:[#allocation53_spill] sm:$0xff] }
 0xf5b   :  { %9414 = vmatprep.subr.mxu0 %v8953_v34 }
 0xf5c   :  { %9415 = vmatpush3.msra.mxu0 %v8953_v34 }
 0xf5d   :  { %9417 = vmatmul.mubr.msk.f32.vlgmr.msra.gmra.mxu0 %vm905_vm4, %v10993_v15  ;;  %9419 = vmatprep.subr.mxu0 %v10998_v36 }
 0xf5e   :  { %9420 = vmatpush3.msra.mxu0 %v10998_v36 }
 0xf5f   :  { %9421 = vmatprep.subr.mxu0 %v11003_v16 }
 0xf60   :  { %9422 = vmatpush3.msra.mxu0 %v11003_v16 }
 0xf61   :  { %9423 = vmatprep.subr.mxu0 %v11008_v26 }
 0xf62   :  { %9424 = vmatpush3.msra.mxu0 %v11008_v26 }
 0xf63   :  { %9425 = vmatprep.subr.mxu0 %v11012_v7 }
 0xf64   :  { %9426 = vmatpush3.msra.mxu0 %v11012_v7 }
 0xf65   :  { %9430 = vmatprep.subr.mxu0 %v12507_v63 }
0x101d   :  { %v9418_v27 = vpop.f32.mrf.mxu0 }
0x101e   :  { %v1992_v15 = vadd.f32 %v9418_v27, %v11017_v19  ;;  %v12524_v27 = vld [vmem:[#allocation52_spill] sm:$0xff] }
0x101f   :  { %v1986_v32 = vpop.f32.mrf.mxu0 }
0x1020   :  { %v1987_v36 = vadd.f32 %v11017_v19, %v1986_v32  ;;  %v1996_v28 = vmax.f32 %v1992_v15, 0.0 }
0x1022   :  { %v1995_v23 = vmax.f32 %v1987_v36, 0.0  ;;  %v1998_v26 = vsel %vm283_vm0, %v1996_v28, %v11107_v8 }
0x1024   :  { %v1997_v16 = vsel %vm283_vm0, %v1995_v23, %v11110_v21 }
0x1025   :  { %9427 = vmatprep.mubr.msk.f32.mxu0 %vm905_vm4, %v1997_v16 }
0x1026   :  { %9428 = vmatmul.mubr.msk.f32.vlgmr.msra.gmra.mxu0 %vm905_vm4, %v1998_v26 }
0x1027   :  { %9434 = vmatprep.mubr.msk.f32.mxu0 %vm10492_vm5, %v12507_v63 }
0x10e6   :  { %v9429_v7 = vpop.f32.mrf.mxu0 }
0x10e7   :  { %v2077_v14 = vadd.f32 %v9429_v7, %v11028_v13 }
0x10e8   :  { %v2071_v11 = vpop.f32.mrf.mxu0 }
0x10e9   :  { %v2072_v17 = vadd.f32 %v11028_v13, %v2071_v11  ;;  %2096 = vrot.lane.b32.xlu0 %v2077_v14, %s10490_s23  ;;  %v8548_v19 = vmul.f32 -1.442695, %v2077_v14 }
0x10eb   :  { %2094 = vrot.lane.b32.xlu1 %v2072_v17, %s10490_s23  ;;  %v8547_v41 = vmul.f32 -1.442695, %v2072_v17  ;;  %9980 = vpow2.f32 %v8548_v19 }
0x10ed   :  { %9982 = vpow2.f32 %v8547_v41 }
0x10f8   :  { %v9981_v18 = vpop.eup %9980 }
0x10f9   :  { %v2087_v2 = vadd.f32 1.0, %v9981_v18 }
0x10fa   :  { %v9983_v20 = vpop.eup %9982 }
0x10fb   :  { %v2086_v29 = vadd.f32 1.0, %v9983_v20  ;;  %9984 = vrcp.f32 %v2087_v2 }
0x10fd   :  { %9986 = vrcp.f32 %v2086_v29 }
0x1108   :  { %v9985_v31 = vpop.eup %9984 }
0x1109   :  { %v2115_v51 = vsub.f32 1.0, %v9985_v31  ;;  %v2127_v53 = vmul.f32 %v9985_v31, %v11107_v8 }
0x110a   :  { %v9987_v43 = vpop.eup %9986 }
0x110b   :  { %v2114_v55 = vsub.f32 1.0, %v9987_v43  ;;  %v2126_v58 = vmul.f32 %v9987_v43, %v11110_v21  ;;  %v2303_v21 = vld [vmem:[%s12521_s7 + $0x8] sm:$0xff] }
0x115b   :  { %v2097_v35 = vpop.permute.xlu0 %2096 }
0x115c   :  { %v2101_v42 = vmul.f32 %v9985_v31, %v2097_v35 }
0x115d   :  { %v2095_v44 = vpop.permute.xlu1 %2094 }
0x115e   :  { %2106 = vrot.lane.b32.xlu0 %v2101_v42, %s10486_s6  ;;  %v2100_v13 = vmul.f32 %v9987_v43, %v2095_v44 }
0x1160   :  { %2104 = vrot.lane.b32.xlu1 %v2100_v13, %s10486_s6 }
0x11d0   :  { %v2107_v45 = vpop.permute.xlu0 %2106 }
0x11d1   :  { %v2111_v46 = vadd.f32 %v2107_v45, %v2077_v14 }
0x11d2   :  { %v2105_v47 = vpop.permute.xlu1 %2104 }
0x11d3   :  { %9988 = vtanh.f32 %v2111_v46  ;;  %v2110_v48 = vadd.f32 %v2105_v47, %v2072_v17 }
0x11d5   :  { %9990 = vtanh.f32 %v2110_v48 }
0x11e0   :  { %v9989_v49 = vpop.eup %9988 }
0x11e1   :  { %2120 = vrot.lane.b32.xlu0 %v9989_v49, %s10491_s28 }
0x11e2   :  { %v9991_v50 = vpop.eup %9990 }
0x11e3   :  { %2118 = vrot.lane.b32.xlu1 %v9991_v50, %s10491_s28 }
0x1253   :  { %v2121_v52 = vpop.permute.xlu0 %2120 }
0x1254   :  { %v2125_v54 = vmul.f32 %v2121_v52, %v2115_v51 }
0x1255   :  { %v2119_v56 = vpop.permute.xlu1 %2118 }
0x1256   :  { %v2129_v57 = vadd.f32 %v2127_v53, %v2125_v54  ;;  %v2124_v59 = vmul.f32 %v2119_v56, %v2114_v55 }
0x1258   :  { %v2128_v60 = vadd.f32 %v2126_v58, %v2124_v59  ;;  %2137 = vrot.lane.b32.xlu0 %v2129_v57, %s10491_s28 }
0x125a   :  { %2135 = vrot.lane.b32.xlu1 %v2128_v60, %s10491_s28 }
0x12ca   :  { %v2138_v61 = vpop.permute.xlu0 %2137 }
0x12cb   :  { %9431 = vmatpush3.msra.mxu0 %v2138_v61 }
0x12cc   :  { %9432 = vmatprep.subr.mxu0 %v12507_v63  ;;  %v2136_v8 = vpop.permute.xlu1 %2135 }
0x12cd   :  { %9433 = vmatpush3.msra.mxu0 %v2136_v8 }
0x12ce   :  { %9435 = vmatmul.mubr.msk.f32.vlgmr.msra.gmra.mxu0 %vm283_vm0, %v225_v62  ;;  %9437 = vmatprep.subr.mxu0 %v2215_v0 }
0x12cf   :  { %9438 = vmatpush3.msra.mxu0 %v2215_v0  ;;  %9441 = vmatprep.mubr.msk.f32.mxu0 %vm283_vm0, %v2136_v8 }
0x12d0   :  { %9439 = vmatprep.subr.mxu0 %v2214_v25 }
0x12d1   :  { %9440 = vmatpush3.msra.mxu0 %v2214_v25 }
0x12d2   :  { %9442 = vmatmul.mubr.msk.f32.vlgmr.msra.gmra.mxu0 %vm283_vm0, %v2138_v61  ;;  %9444 = vmatprep.subr.mxu0 %v2303_v21 }
0x12d3   :  { %9445 = vmatpush3.msra.mxu0 %v2303_v21  ;;  %9448 = vmatprep.mubr.msk.f32.mxu0 %vm283_vm0, %v2136_v8 }
0x12d4   :  { %9446 = vmatprep.subr.mxu0 %v2302_v9 }
0x12d5   :  { %9447 = vmatpush3.msra.mxu0 %v2302_v9  ;;  %v2551_v9 = vld [vmem:[%s12525_s10 + $0x18] sm:$0xff] }
0x12d6   :  { %9449 = vmatmul.mubr.msk.f32.vlgmr.msra.gmra.mxu0 %vm283_vm0, %v2138_v61  ;;  %9451 = vmatprep.subr.mxu0 %v12507_v63 }
0x12d7   :  { %9455 = vmatprep.mubr.msk.f32.mxu0 %vm10492_vm5, %v12507_v63  ;;  %9452 = vmatpush3.msra.mxu0 %v11222_v38 }
0x12d8   :  { %9453 = vmatprep.subr.mxu0 %v12507_v63  ;;  %9459 = vmatpush3.msra.mxu1 %v2551_v9 }
0x12d9   :  { %9454 = vmatpush3.msra.mxu0 %v11227_v30  ;;  %9460 = vmatprep.subr.mxu1 %v12507_v63 }
0x12da   :  { %9469 = vmatprep.subr.mxu0 %v12507_v63 }
0x138e   :  { %v11231_v33 = vpop.f32.mrf.mxu0 }
0x138f   :  { %v2379_v1 = vmax.f32 %v11231_v33, 0.0 }
0x1390   :  { %v9436_v5 = vpop.f32.mrf.mxu0 }
0x1391   :  { %9456 = vmatmul.mubr.msk.f32.vlgmr.msra.gmra.mxu0 %vm283_vm0, %v2379_v1  ;;  %v2550_v1 = vld [vmem:[%s12525_s10 + $0x10] sm:$0xff]  ;;  %v2549_v5 = vld [vmem:[%s12525_s10 + $0x8] sm:$0xff] }
0x1392   :  { %9470 = vmatpush3.msra.mxu0 %v11222_v38  ;;  %9473 = vmatprep.mubr.msk.f32.mxu0 %vm10492_vm5, %v12507_v63  ;;  %v11243_v12 = vpop.f32.mrf.mxu0 }
0x1393   :  { %9471 = vmatprep.subr.mxu0 %v12507_v63  ;;  %9461 = vmatpush3.msra.mxu1 %v2550_v1 }
0x1394   :  { %9472 = vmatpush3.msra.mxu0 %v11227_v30  ;;  %v11245_v37 = vpop.f32.mrf.mxu0  ;;  %9462 = vmatprep.subr.mxu1 %v12507_v63 }
0x1395   :  { %9487 = vmatprep.subr.mxu0 %v12507_v63  ;;  %9463 = vmatpush3.msra.mxu1 %v2549_v5 }
0x1396   :  { %v11247_v4 = vpop.f32.mrf.mxu0  ;;  %9464 = vmatprep.subr.mxu1 %v12507_v63 }
0x1398   :  { %v11249_v3 = vpop.f32.mrf.mxu0 }
0x1451   :  { %v2455_v22 = vpop.f32.mrf.mxu0 }
0x1452   :  { %v2456_v10 = vadd.f32 %v11251_v39, %v2455_v22  ;;  %v2548_v22 = vld [vmem:[%s12525_s10] sm:$0xff] }
0x1453   :  { %v9457_v24 = vpop.f32.mrf.mxu0  ;;  %9465 = vmatpush3.msra.mxu1 %v2548_v22 }
0x1454   :  { %v2462_v34 = vrot.slane %v2456_v10, %v12523_v40  ;;  %v2503_v15 = vrot.slane %v2456_v10, %v12524_v27  ;;  %9476 = vmatprep.subr.mxu1 %v12507_v63  ;;  %v8550_v10 = vld [vmem:[%s12526_s11] ss:$0 sm:$0xff] }
0x1455   :  { %v11274_v24 = vadd.f32 %v8550_v10, %v11245_v37 }
0x1456   :  { %v2463_v32 = vadd.f32 %v2462_v34, %v11249_v3  ;;  %v2504_v36 = vadd.f32 %v11247_v4, %v2503_v15 }
0x1458   :  { %vm2464_vm7 = vcmp.gt.f32.partialorder %v2463_v32, 0.0  ;;  %v2465_v28 = vmul.f32 0.01, %v2463_v32  ;;  %vm2505_vm8 = vcmp.gt.f32.partialorder %v2504_v36, 0.0  ;;  %v2506_v23 = vmul.f32 0.01, %v2504_v36 }
0x145a   :  { %v2466_v16 = vsel %vm2464_vm7, %v2463_v32, %v2465_v28  ;;  %v2507_v26 = vsel %vm2505_vm8, %v2504_v36, %v2506_v23  ;;  %vm3029_vm7 = vcmask 23568  }
0x145b   :  { %v2468_v7 = vsel %vm2467_vm6, %v2466_v16, -inf  ;;  %v2508_v14 = vsel %vm2467_vm6, %v2507_v26, -inf }
0x145c   :  { %v2469_v11 = vrot.slane %v2468_v7, 4  ;;  %v2509_v17 = vrot.slane %v2508_v14, 4 }
0x145e   :  { %v2470_v19 = vmax.f32 %v2468_v7, %v2469_v11  ;;  %v2510_v41 = vmax.f32 %v2508_v14, %v2509_v17 }
0x1460   :  { %v2471_v18 = vrot.slane %v2470_v19, 2  ;;  %v2511_v20 = vrot.slane %v2510_v41, 2 }
0x1462   :  { %v2472_v2 = vmax.f32 %v2470_v19, %v2471_v18  ;;  %v2512_v29 = vmax.f32 %v2510_v41, %v2511_v20 }
0x1464   :  { %v2473_v31 = vrot.slane %v2472_v2, 1  ;;  %v2513_v35 = vrot.slane %v2512_v29, 1 }
0x1466   :  { %v2474_v42 = vmax.f32 %v2472_v2, %v2473_v31  ;;  %v2514_v43 = vmax.f32 %v2512_v29, %v2513_v35 }
0x1468   :  { %v2475_v44 = vsub.f32 %v2466_v16, %v2474_v42  ;;  %v2515_v13 = vsub.f32 %v2507_v26, %v2514_v43 }
0x146a   :  { %v2476_v45 = vmul.f32 1.442695, %v2475_v44  ;;  %v2516_v46 = vmul.f32 1.442695, %v2515_v13 }
0x146c   :  { %9992 = vpow2.f32 %v2476_v45  ;;  %v8558_v45 = vld [vmem:[%s12527_s15] ss:$0 sm:$0xff] }
0x146d   :  { %9994 = vpow2.f32 %v2516_v46 }
0x1479   :  { %v9993_v47 = vpop.eup %9992 }
0x147a   :  { %v9995_v48 = vpop.eup %9994  ;;  %v2478_v49 = vsel %vm2467_vm6, %v9993_v47, 0.0 }
0x147b   :  { %v2518_v50 = vsel %vm2467_vm6, %v9995_v48, 0.0  ;;  %v2479_v51 = vrot.slane %v2478_v49, 4 }
0x147c   :  { %v2519_v52 = vrot.slane %v2518_v50, 4 }
0x147d   :  { %v2480_v53 = vadd.f32 %v2479_v51, %v2478_v49 }
0x147e   :  { %v2520_v54 = vadd.f32 %v2519_v52, %v2518_v50 }
0x147f   :  { %v2481_v55 = vrot.slane %v2480_v53, 2 }
0x1480   :  { %v2521_v56 = vrot.slane %v2520_v54, 2 }
0x1481   :  { %v2482_v57 = vadd.f32 %v2481_v55, %v2480_v53 }
0x1482   :  { %v2522_v58 = vadd.f32 %v2521_v56, %v2520_v54 }
0x1483   :  { %v2483_v59 = vrot.slane %v2482_v57, 1 }
0x1484   :  { %v2523_v60 = vrot.slane %v2522_v58, 1 }
0x1485   :  { %v2484_v61 = vadd.f32 %v2483_v59, %v2482_v57 }
0x1486   :  { %v2524_v62 = vadd.f32 %v2523_v60, %v2522_v58 }
0x1487   :  { %9996 = vrcp.f32 %v2484_v61 }
0x1488   :  { %9998 = vrcp.f32 %v2524_v62 }
0x1494   :  { %v9997_v0 = vpop.eup %9996 }
0x1495   :  { %v9999_v8 = vpop.eup %9998  ;;  %v2486_v25 = vmul.f32 %v9997_v0, %v9993_v47 }
0x1496   :  { %v2526_v21 = vmul.f32 %v9999_v8, %v9995_v48 }
0x1497   :  { %2489 = vperm.xlu0 %9932, %v2486_v25  }
0x1498   :  { %2529 = vperm.xlu1 %9933, %v2526_v21   ;;  %v12449_v21 = vmov 1  }
0x149b   :  { %9934 = vset.pattern.permute.xlu0 %v12449_v21 }
0x149c   :  { %2554 = vrot.lane.b32.xlu1 %v11231_v33, %s10479_s22  ;;  %v11277_v33 = vadd.f32 %v11243_v12, %v8550_v10 }
0x149d   :  { %9935 = vset.pattern.permute.xlu1 %v12449_v21 }
0x1512   :  { %v2490_v34 = vpop.permute.xlu0 %2489 }
0x1513   :  { %v2530_v15 = vpop.permute.xlu1 %2529  ;;  %v2492_v32 = vmul.f32 %v2490_v34, %v11274_v24 }
0x1514   :  { %v2532_v36 = vmul.f32 %v2530_v15, %v11277_v33 }
0x1515   :  { %v2493_v28 = vsel %vm283_vm0, %v2492_v32, 0.0 }
0x1516   :  { %v2533_v23 = vsel %vm283_vm0, %v2532_v36, 0.0  ;;  %v2494_v16 = vrot.slane %v2493_v28, 4 }
0x1517   :  { %v2534_v26 = vrot.slane %v2533_v23, 4  ;;  %v2555_v43 = vpop.permute.xlu1 %2554 }
0x1518   :  { %v2495_v7 = vadd.f32 %v2494_v16, %v2493_v28 }
0x1519   :  { %v2535_v14 = vadd.f32 %v2534_v26, %v2533_v23 }
0x151a   :  { %v2496_v11 = vrot.slane %v2495_v7, 2 }
0x151b   :  { %v2536_v37 = vrot.slane %v2535_v14, 2 }
0x151c   :  { %v2497_v17 = vadd.f32 %v2496_v11, %v2495_v7 }
0x151d   :  { %v2537_v19 = vadd.f32 %v2536_v37, %v2535_v14 }
0x151e   :  { %v2498_v12 = vrot.slane %v2497_v17, 1 }
0x151f   :  { %v2538_v41 = vrot.slane %v2537_v19, 1 }
0x1520   :  { %v2499_v18 = vadd.f32 %v2498_v12, %v2497_v17 }
0x1521   :  { %v2539_v20 = vadd.f32 %v2538_v41, %v2537_v19 }
0x1523   :  { %v2541_v2 = vsel %vm2540_vm9, %v2499_v18, %v2539_v20 }
0x1524   :  { %v2543_v29 = vmin.f32 %v2541_v2, 0.0  ;;  %vm2542_vm10 = vcmp.gt.f32.partialorder %v2541_v2, 0.0 }
0x1526   :  { %v2544_v31 = vmul.f32 1.442695, %v2543_v29 }
0x1528   :  { %10000 = vpow2.f32 %v2544_v31 }
0x1535   :  { %v10001_v35 = vpop.eup %10000 }
0x1536   :  { %v8557_v42 = vadd.f32 -1.0, %v10001_v35 }
0x1538   :  { %v2547_v44 = vsel %vm2542_vm10, %v2541_v2, %v8557_v42 }
0x1539   :  { %v2557_v13 = vsel %vm283_vm0, %v2547_v44, %v2555_v43 }
0x153a   :  { %9467 = vmatmul.mubr.msk.f32.vlgmr.msra.gmra.mxu1 %vm905_vm4, %v2557_v13 }
0x153b   :  { %9484 = vmatprep.mubr.msk.f32.mxu1 %vm10492_vm5, %v12507_v63 }
0x15fa   :  { %v2633_v46 = vpop.f32.mrf.mxu1 }
0x15fb   :  { %v2634_v47 = vadd.f32 %v8558_v45, %v2633_v46 }
0x15fc   :  { %v9468_v48 = vpop.f32.mrf.mxu1 }
0x15fd   :  { %2644 = vrot.lane.b32.xlu0 %v2634_v47, %s10490_s23  ;;  %v8560_v49 = vmul.f32 -1.442695, %v2634_v47 }
0x15ff   :  { %10002 = vpow2.f32 %v8560_v49 }
0x160c   :  { %v10003_v50 = vpop.eup %10002 }
0x160d   :  { %v2640_v51 = vadd.f32 1.0, %v10003_v50 }
0x160f   :  { %10004 = vrcp.f32 %v2640_v51 }
0x161c   :  { %v10005_v52 = vpop.eup %10004 }
0x161d   :  { %v2654_v58 = vsub.f32 1.0, %v10005_v52  ;;  %v2660_v60 = vmul.f32 %v10005_v52, %v2555_v43 }
0x166f   :  { %v2645_v53 = vpop.permute.xlu0 %2644 }
0x1670   :  { %v2647_v54 = vmul.f32 %v10005_v52, %v2645_v53 }
0x1672   :  { %2649 = vrot.lane.b32.xlu1 %v2647_v54, %s10486_s6 }
0x16e4   :  { %v2650_v55 = vpop.permute.xlu1 %2649 }
0x16e5   :  { %v2652_v56 = vadd.f32 %v2650_v55, %v2634_v47 }
0x16e7   :  { %10006 = vtanh.f32 %v2652_v56 }
0x16f4   :  { %v10007_v57 = vpop.eup %10006 }
0x16f5   :  { %2656 = vrot.lane.b32.xlu0 %v10007_v57, %s10491_s28 }
0x1767   :  { %v2657_v59 = vpop.permute.xlu0 %2656 }
0x1768   :  { %v2659_v61 = vmul.f32 %v2657_v59, %v2654_v58 }
0x176a   :  { %v2661_v62 = vadd.f32 %v2660_v60, %v2659_v61 }
0x176c   :  { %v11292_v0 = vmax.f32 %v2661_v62, 0.0 }
0x176e   :  { %v2663_v8 = vmax.f32 %v11292_v0, 0.0 }
0x1770   :  { %2665 = vrot.lane.b32.xlu1 %v2663_v8, %s10491_s28  ;;  %v8566_v8 = vld [vmem:[%s12525_s10 + $0x38] sm:$0xff] }
0x1771   :  { %9477 = vmatpush3.msra.mxu1 %v8566_v8  ;;  %v12447_v8 = vmov 2  }
0x1772   :  { %9478 = vmatprep.subr.mxu1 %v12507_v63 }
0x17e2   :  { %v2666_v25 = vpop.permute.xlu1 %2665 }
0x17e3   :  { %9474 = vmatmul.mubr.msk.f32.vlgmr.msra.gmra.mxu0 %vm283_vm0, %v2666_v25  ;;  %v8565_v25 = vld [vmem:[%s12525_s10 + $0x30] sm:$0xff] }
0x17e4   :  { %9488 = vmatpush3.msra.mxu0 %v11222_v38  ;;  %9491 = vmatprep.mubr.msk.f32.mxu0 %vm10492_vm5, %v12507_v63 }
0x17e5   :  { %9489 = vmatprep.subr.mxu0 %v12507_v63  ;;  %9479 = vmatpush3.msra.mxu1 %v8565_v25 }
0x17e6   :  { %9490 = vmatpush3.msra.mxu0 %v11227_v30  ;;  %9480 = vmatprep.subr.mxu1 %v12507_v63 }
0x17e7   :  { %9494 = vmatprep.subr.mxu0 %v12507_v63 }
0x18a3   :  { %v2735_v9 = vpop.f32.mrf.mxu0 }
0x18a4   :  { %v2736_v1 = vadd.f32 %v11251_v39, %v2735_v9  ;;  %v8564_v9 = vld [vmem:[%s12525_s10 + $0x28] sm:$0xff] }
0x18a5   :  { %v9475_v5 = vpop.f32.mrf.mxu0  ;;  %9481 = vmatpush3.msra.mxu1 %v8564_v9 }
0x18a6   :  { %v2742_v22 = vrot.slane %v2736_v1, %v12523_v40  ;;  %v2784_v10 = vrot.slane %v2736_v1, %v12524_v27  ;;  %9482 = vmatprep.subr.mxu1 %v12507_v63 }
0x18a8   :  { %v2743_v34 = vadd.f32 %v2742_v22, %v11249_v3  ;;  %v2785_v15 = vadd.f32 %v11247_v4, %v2784_v10 }
0x18aa   :  { %vm2744_vm12 = vcmp.gt.f32.partialorder %v2743_v34, 0.0  ;;  %v2745_v32 = vmul.f32 0.01, %v2743_v34  ;;  %vm2786_vm13 = vcmp.gt.f32.partialorder %v2785_v15, 0.0  ;;  %v2787_v36 = vmul.f32 0.01, %v2785_v15 }
0x18ac   :  { %v2746_v28 = vsel %vm2744_vm12, %v2743_v34, %v2745_v32  ;;  %v2788_v23 = vsel %vm2786_vm13, %v2785_v15, %v2787_v36  ;;  %vm3055_vm12 = vcmask 392448  }
0x18ad   :  { %v2748_v16 = vsel %vm2747_vm11, %v2746_v28, -inf  ;;  %v2789_v26 = vsel %vm2747_vm11, %v2788_v23, -inf }
0x18ae   :  { %v2749_v7 = vrot.slane %v2748_v16, 4  ;;  %v2790_v14 = vrot.slane %v2789_v26, 4 }
0x18b0   :  { %v2750_v11 = vmax.f32 %v2748_v16, %v2749_v7  ;;  %v2791_v37 = vmax.f32 %v2789_v26, %v2790_v14 }
0x18b2   :  { %v2751_v17 = vrot.slane %v2750_v11, 2  ;;  %v2792_v19 = vrot.slane %v2791_v37, 2 }
0x18b4   :  { %v2752_v12 = vmax.f32 %v2750_v11, %v2751_v17  ;;  %v2793_v41 = vmax.f32 %v2791_v37, %v2792_v19 }
0x18b6   :  { %v2753_v18 = vrot.slane %v2752_v12, 1  ;;  %v2794_v20 = vrot.slane %v2793_v41, 1 }
0x18b8   :  { %v2754_v2 = vmax.f32 %v2752_v12, %v2753_v18  ;;  %v2795_v29 = vmax.f32 %v2793_v41, %v2794_v20  ;;  %v8563_v20 = vld [vmem:[%s12525_s10 + $0x20] sm:$0xff] }
0x18b9   :  { %9483 = vmatpush3.msra.mxu1 %v8563_v20 }
0x18ba   :  { %v2755_v31 = vsub.f32 %v2746_v28, %v2754_v2  ;;  %v2796_v35 = vsub.f32 %v2788_v23, %v2795_v29  ;;  %9505 = vmatprep.subr.mxu1 %v12507_v63 }
0x18bc   :  { %v2756_v42 = vmul.f32 1.442695, %v2755_v31  ;;  %v2797_v43 = vmul.f32 1.442695, %v2796_v35 }
0x18be   :  { %10008 = vpow2.f32 %v2756_v42 }
0x18bf   :  { %10010 = vpow2.f32 %v2797_v43  ;;  %v8568_v43 = vld [vmem:[%s12527_s15 + $0x1] ss:$0 sm:$0xff] }
0x18cb   :  { %v10009_v44 = vpop.eup %10008 }
0x18cc   :  { %v10011_v13 = vpop.eup %10010  ;;  %v2758_v45 = vsel %vm2747_vm11, %v10009_v44, 0.0 }
0x18cd   :  { %v2799_v46 = vsel %vm2747_vm11, %v10011_v13, 0.0  ;;  %v2759_v47 = vrot.slane %v2758_v45, 4 }
0x18ce   :  { %v2800_v48 = vrot.slane %v2799_v46, 4 }
0x18cf   :  { %v2760_v49 = vadd.f32 %v2759_v47, %v2758_v45 }
0x18d0   :  { %v2801_v50 = vadd.f32 %v2800_v48, %v2799_v46 }
0x18d1   :  { %v2761_v51 = vrot.slane %v2760_v49, 2 }
0x18d2   :  { %v2802_v52 = vrot.slane %v2801_v50, 2 }
0x18d3   :  { %v2762_v53 = vadd.f32 %v2761_v51, %v2760_v49 }
0x18d4   :  { %v2803_v54 = vadd.f32 %v2802_v52, %v2801_v50 }
0x18d5   :  { %v2763_v55 = vrot.slane %v2762_v53, 1 }
0x18d6   :  { %v2804_v56 = vrot.slane %v2803_v54, 1 }
0x18d7   :  { %v2764_v57 = vadd.f32 %v2763_v55, %v2762_v53 }
0x18d8   :  { %v2805_v58 = vadd.f32 %v2804_v56, %v2803_v54 }
0x18d9   :  { %10012 = vrcp.f32 %v2764_v57 }
0x18da   :  { %10014 = vrcp.f32 %v2805_v58 }
0x18e6   :  { %v10013_v59 = vpop.eup %10012 }
0x18e7   :  { %v10015_v60 = vpop.eup %10014  ;;  %v2766_v61 = vmul.f32 %v10013_v59, %v10009_v44 }
0x18e8   :  { %v2807_v62 = vmul.f32 %v10015_v60, %v10011_v13 }
0x18e9   :  { %2769 = vperm.xlu0 %9934, %v2766_v61  }
0x18ea   :  { %2810 = vperm.xlu1 %9935, %v2807_v62  }
0x18ed   :  { %9936 = vset.pattern.permute.xlu0 %v12447_v8 }
0x18ee   :  { %9937 = vset.pattern.permute.xlu1 %v12447_v8 }
0x1964   :  { %v2770_v1 = vpop.permute.xlu0 %2769 }
0x1965   :  { %v2811_v5 = vpop.permute.xlu1 %2810  ;;  %v2772_v22 = vmul.f32 %v2770_v1, %v11274_v24 }
0x1966   :  { %v2813_v10 = vmul.f32 %v2811_v5, %v11277_v33 }
0x1967   :  { %v2774_v34 = vsel %vm2773_vm14, %v2772_v22, 0.0 }
0x1968   :  { %v2814_v15 = vsel %vm2773_vm14, %v2813_v10, 0.0  ;;  %v2775_v32 = vrot.slane %v2774_v34, 4 }
0x1969   :  { %v2815_v36 = vrot.slane %v2814_v15, 4 }
0x196a   :  { %v2776_v28 = vadd.f32 %v2775_v32, %v2774_v34 }
0x196b   :  { %v2816_v23 = vadd.f32 %v2815_v36, %v2814_v15 }
0x196c   :  { %v2777_v16 = vrot.slane %v2776_v28, 2 }
0x196d   :  { %v2817_v26 = vrot.slane %v2816_v23, 2 }
0x196e   :  { %v2778_v7 = vadd.f32 %v2777_v16, %v2776_v28 }
0x196f   :  { %v2818_v14 = vadd.f32 %v2817_v26, %v2816_v23 }
0x1970   :  { %v2779_v11 = vrot.slane %v2778_v7, 1 }
0x1971   :  { %v2819_v37 = vrot.slane %v2818_v14, 1 }
0x1972   :  { %v2780_v17 = vadd.f32 %v2779_v11, %v2778_v7 }
0x1973   :  { %v2820_v19 = vadd.f32 %v2819_v37, %v2818_v14 }
0x1975   :  { %v2821_v12 = vsel %vm2540_vm9, %v2780_v17, %v2820_v19 }
0x1976   :  { %v2823_v41 = vmin.f32 %v2821_v12, 0.0  ;;  %vm2822_vm15 = vcmp.gt.f32.partialorder %v2821_v12, 0.0 }
0x1978   :  { %v2824_v18 = vmul.f32 1.442695, %v2823_v41 }
0x197a   :  { %10016 = vpow2.f32 %v2824_v18 }
0x1987   :  { %v10017_v2 = vpop.eup %10016 }
0x1988   :  { %v8562_v29 = vadd.f32 -1.0, %v10017_v2 }
0x198a   :  { %v2827_v31 = vsel %vm2822_vm15, %v2821_v12, %v8562_v29  ;;  %vm3311_vm15 = vcmask 31768  }
0x198b   :  { %2836 = vrot.lane.b32.xlu1 %v2827_v31, %s10491_s28 }
0x19fd   :  { %v2837_v35 = vpop.permute.xlu1 %2836 }
0x19fe   :  { %v2839_v42 = vsel %vm283_vm0, %v2837_v35, %v11292_v0 }
0x19ff   :  { %9485 = vmatmul.mubr.msk.f32.vlgmr.msra.gmra.mxu1 %vm905_vm4, %v2839_v42 }
0x1a00   :  { %9506 = vmatpush3.msra.mxu1 %v11222_v38  ;;  %9509 = vmatprep.mubr.msk.f32.mxu1 %vm10492_vm5, %v12507_v63 }
0x1a01   :  { %9507 = vmatprep.subr.mxu1 %v12507_v63 }
0x1a02   :  { %9508 = vmatpush3.msra.mxu1 %v11227_v30 }
0x1a03   :  { %9512 = vmatprep.subr.mxu1 %v12507_v63 }
0x1abf   :  { %v2915_v44 = vpop.f32.mrf.mxu1 }
0x1ac0   :  { %v2916_v13 = vadd.f32 %v8568_v43, %v2915_v44 }
0x1ac1   :  { %v9486_v45 = vpop.f32.mrf.mxu1 }
0x1ac2   :  { %2926 = vrot.lane.b32.xlu0 %v2916_v13, %s10490_s23  ;;  %v8570_v46 = vmul.f32 -1.442695, %v2916_v13 }
0x1ac4   :  { %10018 = vpow2.f32 %v8570_v46 }
0x1ad1   :  { %v10019_v47 = vpop.eup %10018 }
0x1ad2   :  { %v2922_v48 = vadd.f32 1.0, %v10019_v47 }
0x1ad4   :  { %10020 = vrcp.f32 %v2922_v48 }
0x1ae1   :  { %v10021_v49 = vpop.eup %10020 }
0x1ae2   :  { %v2936_v55 = vsub.f32 1.0, %v10021_v49  ;;  %v2942_v57 = vmul.f32 %v10021_v49, %v11292_v0 }
0x1b34   :  { %v2927_v50 = vpop.permute.xlu0 %2926 }
0x1b35   :  { %v2929_v51 = vmul.f32 %v10021_v49, %v2927_v50 }
0x1b37   :  { %2931 = vrot.lane.b32.xlu1 %v2929_v51, %s10486_s6 }
0x1ba9   :  { %v2932_v52 = vpop.permute.xlu1 %2931 }
0x1baa   :  { %v2934_v53 = vadd.f32 %v2932_v52, %v2916_v13 }
0x1bac   :  { %10022 = vtanh.f32 %v2934_v53 }
0x1bb9   :  { %v10023_v54 = vpop.eup %10022 }
0x1bba   :  { %2938 = vrot.lane.b32.xlu0 %v10023_v54, %s10491_s28 }
0x1c2c   :  { %v2939_v56 = vpop.permute.xlu0 %2938 }
0x1c2d   :  { %v2941_v58 = vmul.f32 %v2939_v56, %v2936_v55 }
0x1c2f   :  { %v2943_v59 = vadd.f32 %v2942_v57, %v2941_v58 }
0x1c31   :  { %v11342_v60 = vmax.f32 %v2943_v59, 0.0 }
0x1c33   :  { %v2945_v61 = vmax.f32 %v11342_v60, 0.0 }
0x1c35   :  { %2947 = vrot.lane.b32.xlu1 %v2945_v61, %s10491_s28 }
0x1ca7   :  { %v2948_v62 = vpop.permute.xlu1 %2947 }
0x1ca8   :  { %9492 = vmatmul.mubr.msk.f32.vlgmr.msra.gmra.mxu0 %vm283_vm0, %v2948_v62  ;;  %v8576_v62 = vld [vmem:[%s12525_s10 + $0x58] sm:$0xff] }
0x1ca9   :  { %9502 = vmatprep.mubr.msk.f32.mxu0 %vm10492_vm5, %v12507_v63  ;;  %9495 = vmatpush3.msra.mxu0 %v8576_v62 }
0x1caa   :  { %9496 = vmatprep.subr.mxu0 %v12507_v63 }
0x1d68   :  { %v3017_v0 = vpop.f32.mrf.mxu0 }
0x1d69   :  { %v3018_v25 = vadd.f32 %v11251_v39, %v3017_v0  ;;  %v8575_v0 = vld [vmem:[%s12525_s10 + $0x50] sm:$0xff] }
0x1d6a   :  { %v9493_v9 = vpop.f32.mrf.mxu0  ;;  %9497 = vmatpush3.msra.mxu0 %v8575_v0 }
0x1d6b   :  { %v3024_v1 = vrot.slane %v3018_v25, %v12523_v40  ;;  %v3066_v5 = vrot.slane %v3018_v25, %v12524_v27  ;;  %v8574_v25 = vld [vmem:[%s12525_s10 + $0x48] sm:$0xff]  ;;  %9498 = vmatprep.subr.mxu0 %v12507_v63 }
0x1d6c   :  { %9499 = vmatpush3.msra.mxu0 %v8574_v25 }
0x1d6d   :  { %v3025_v22 = vadd.f32 %v3024_v1, %v11249_v3  ;;  %v3067_v10 = vadd.f32 %v11247_v4, %v3066_v5  ;;  %9500 = vmatprep.subr.mxu0 %v12507_v63 }
0x1d6f   :  { %vm3026_vm8 = vcmp.gt.f32.partialorder %v3025_v22, 0.0  ;;  %v3027_v34 = vmul.f32 0.01, %v3025_v22  ;;  %vm3068_vm10 = vcmp.gt.f32.partialorder %v3067_v10, 0.0  ;;  %v3069_v15 = vmul.f32 0.01, %v3067_v10 }
0x1d71   :  { %v3028_v32 = vsel %vm3026_vm8, %v3025_v22, %v3027_v34  ;;  %v3070_v36 = vsel %vm3068_vm10, %v3067_v10, %v3069_v15 }
0x1d72   :  { %v3030_v28 = vsel %vm3029_vm7, %v3028_v32, -inf  ;;  %v3071_v23 = vsel %vm3029_vm7, %v3070_v36, -inf }
0x1d73   :  { %v3031_v16 = vrot.slane %v3030_v28, 4  ;;  %v3072_v26 = vrot.slane %v3071_v23, 4 }
0x1d75   :  { %v3032_v7 = vmax.f32 %v3030_v28, %v3031_v16  ;;  %v3073_v14 = vmax.f32 %v3071_v23, %v3072_v26 }
0x1d77   :  { %v3033_v11 = vrot.slane %v3032_v7, 2  ;;  %v3074_v37 = vrot.slane %v3073_v14, 2 }
0x1d79   :  { %v3034_v17 = vmax.f32 %v3032_v7, %v3033_v11  ;;  %v3075_v19 = vmax.f32 %v3073_v14, %v3074_v37 }
0x1d7b   :  { %v3035_v12 = vrot.slane %v3034_v17, 1  ;;  %v3076_v41 = vrot.slane %v3075_v19, 1 }
0x1d7d   :  { %v3036_v18 = vmax.f32 %v3034_v17, %v3035_v12  ;;  %v3077_v20 = vmax.f32 %v3075_v19, %v3076_v41 }
0x1d7f   :  { %v3037_v2 = vsub.f32 %v3028_v32, %v3036_v18  ;;  %v3078_v29 = vsub.f32 %v3070_v36, %v3077_v20  ;;  %v8573_v18 = vld [vmem:[%s12525_s10 + $0x40] sm:$0xff] }
0x1d80   :  { %9501 = vmatpush3.msra.mxu0 %v8573_v18 }
0x1d81   :  { %v3038_v31 = vmul.f32 1.442695, %v3037_v2  ;;  %v3079_v35 = vmul.f32 1.442695, %v3078_v29  ;;  %9523 = vmatprep.subr.mxu0 %v12507_v63 }
0x1d83   :  { %10024 = vpow2.f32 %v3038_v31 }
0x1d84   :  { %10026 = vpow2.f32 %v3079_v35 }
0x1d90   :  { %v10025_v42 = vpop.eup %10024 }
0x1d91   :  { %v10027_v43 = vpop.eup %10026  ;;  %v3040_v44 = vsel %vm3029_vm7, %v10025_v42, 0.0 }
0x1d92   :  { %v3081_v13 = vsel %vm3029_vm7, %v10027_v43, 0.0  ;;  %v3041_v45 = vrot.slane %v3040_v44, 4 }
0x1d93   :  { %v3082_v46 = vrot.slane %v3081_v13, 4 }
0x1d94   :  { %v3042_v47 = vadd.f32 %v3041_v45, %v3040_v44 }
0x1d95   :  { %v3083_v48 = vadd.f32 %v3082_v46, %v3081_v13 }
0x1d96   :  { %v3043_v49 = vrot.slane %v3042_v47, 2 }
0x1d97   :  { %v3084_v50 = vrot.slane %v3083_v48, 2 }
0x1d98   :  { %v3044_v51 = vadd.f32 %v3043_v49, %v3042_v47 }
0x1d99   :  { %v3085_v52 = vadd.f32 %v3084_v50, %v3083_v48 }
0x1d9a   :  { %v3045_v53 = vrot.slane %v3044_v51, 1 }
0x1d9b   :  { %v3086_v54 = vrot.slane %v3085_v52, 1 }
0x1d9c   :  { %v3046_v55 = vadd.f32 %v3045_v53, %v3044_v51 }
0x1d9d   :  { %v3087_v56 = vadd.f32 %v3086_v54, %v3085_v52 }
0x1d9e   :  { %10028 = vrcp.f32 %v3046_v55 }
0x1d9f   :  { %10030 = vrcp.f32 %v3087_v56 }
0x1dab   :  { %v10029_v57 = vpop.eup %10028 }
0x1dac   :  { %v10031_v58 = vpop.eup %10030  ;;  %v3048_v59 = vmul.f32 %v10029_v57, %v10025_v42  ;;  %v8578_v42 = vld [vmem:[%s12527_s15 + $0x2] ss:$0 sm:$0xff] }
0x1dad   :  { %v3089_v61 = vmul.f32 %v10031_v58, %v10027_v43 }
0x1dae   :  { %3051 = vperm.xlu0 %9936, %v3048_v59  }
0x1daf   :  { %3092 = vperm.xlu1 %9937, %v3089_v61   ;;  %v12445_v61 = vmov 3  }
0x1db2   :  { %9938 = vset.pattern.permute.xlu0 %v12445_v61 }
0x1db3   :  { %9939 = vset.pattern.permute.xlu1 %v12445_v61 }
0x1e29   :  { %v3052_v9 = vpop.permute.xlu0 %3051 }
0x1e2a   :  { %v3093_v1 = vpop.permute.xlu1 %3092  ;;  %v3054_v5 = vmul.f32 %v3052_v9, %v11274_v24 }
0x1e2b   :  { %v3095_v22 = vmul.f32 %v3093_v1, %v11277_v33 }
0x1e2c   :  { %v3056_v10 = vsel %vm3055_vm12, %v3054_v5, 0.0 }
0x1e2d   :  { %v3096_v34 = vsel %vm3055_vm12, %v3095_v22, 0.0  ;;  %v3057_v15 = vrot.slane %v3056_v10, 4 }
0x1e2e   :  { %v3097_v32 = vrot.slane %v3096_v34, 4 }
0x1e2f   :  { %v3058_v36 = vadd.f32 %v3057_v15, %v3056_v10 }
0x1e30   :  { %v3098_v28 = vadd.f32 %v3097_v32, %v3096_v34 }
0x1e31   :  { %v3059_v23 = vrot.slane %v3058_v36, 2 }
0x1e32   :  { %v3099_v16 = vrot.slane %v3098_v28, 2 }
0x1e33   :  { %v3060_v26 = vadd.f32 %v3059_v23, %v3058_v36 }
0x1e34   :  { %v3100_v7 = vadd.f32 %v3099_v16, %v3098_v28 }
0x1e35   :  { %v3061_v14 = vrot.slane %v3060_v26, 1 }
0x1e36   :  { %v3101_v11 = vrot.slane %v3100_v7, 1 }
0x1e37   :  { %v3062_v37 = vadd.f32 %v3061_v14, %v3060_v26 }
0x1e38   :  { %v3102_v17 = vadd.f32 %v3101_v11, %v3100_v7 }
0x1e3a   :  { %v3103_v19 = vsel %vm2540_vm9, %v3062_v37, %v3102_v17 }
0x1e3b   :  { %v3105_v12 = vmin.f32 %v3103_v19, 0.0  ;;  %vm3104_vm13 = vcmp.gt.f32.partialorder %v3103_v19, 0.0 }
0x1e3d   :  { %v3106_v41 = vmul.f32 1.442695, %v3105_v12 }
0x1e3f   :  { %10032 = vpow2.f32 %v3106_v41 }
0x1e4c   :  { %v10033_v20 = vpop.eup %10032 }
0x1e4d   :  { %v8572_v2 = vadd.f32 -1.0, %v10033_v20 }
0x1e4f   :  { %v3109_v29 = vsel %vm3104_vm13, %v3103_v19, %v8572_v2  ;;  %vm12439_vm13 = vcmask 523648  }
0x1e50   :  { %3118 = vrot.lane.b32.xlu1 %v3109_v29, %s10496_s16 }
0x1ec2   :  { %v3119_v31 = vpop.permute.xlu1 %3118 }
0x1ec3   :  { %v3121_v35 = vsel %vm283_vm0, %v3119_v31, %v11342_v60 }
0x1ec4   :  { %9503 = vmatmul.mubr.msk.f32.vlgmr.msra.gmra.mxu0 %vm905_vm4, %v3121_v35 }
0x1ec5   :  { %9524 = vmatpush3.msra.mxu0 %v11222_v38  ;;  %9527 = vmatprep.mubr.msk.f32.mxu0 %vm10492_vm5, %v12507_v63 }
0x1ec6   :  { %9525 = vmatprep.subr.mxu0 %v12507_v63 }
0x1ec7   :  { %9526 = vmatpush3.msra.mxu0 %v11227_v30 }
0x1ec8   :  { %9530 = vmatprep.subr.mxu0 %v12507_v63 }
0x1f84   :  { %v3197_v43 = vpop.f32.mrf.mxu0 }
0x1f85   :  { %v3198_v44 = vadd.f32 %v8578_v42, %v3197_v43 }
0x1f86   :  { %v9504_v13 = vpop.f32.mrf.mxu0 }
0x1f87   :  { %3208 = vrot.lane.b32.xlu0 %v3198_v44, %s10490_s23  ;;  %v8580_v45 = vmul.f32 -1.442695, %v3198_v44 }
0x1f89   :  { %10034 = vpow2.f32 %v8580_v45 }
0x1f96   :  { %v10035_v46 = vpop.eup %10034 }
0x1f97   :  { %v3204_v47 = vadd.f32 1.0, %v10035_v46 }
0x1f99   :  { %10036 = vrcp.f32 %v3204_v47 }
0x1fa6   :  { %v10037_v38 = vpop.eup %10036 }
0x1fa7   :  { %v3218_v52 = vsub.f32 1.0, %v10037_v38  ;;  %v3224_v54 = vmul.f32 %v10037_v38, %v11342_v60 }
0x1ff9   :  { %v3209_v48 = vpop.permute.xlu0 %3208 }
0x1ffa   :  { %v3211_v49 = vmul.f32 %v10037_v38, %v3209_v48 }
0x1ffc   :  { %3213 = vrot.lane.b32.xlu1 %v3211_v49, %s10486_s6 }
0x206e   :  { %v3214_v50 = vpop.permute.xlu1 %3213 }
0x206f   :  { %v3216_v30 = vadd.f32 %v3214_v50, %v3198_v44 }
0x2071   :  { %10038 = vtanh.f32 %v3216_v30 }
0x207e   :  { %v10039_v51 = vpop.eup %10038 }
0x207f   :  { %3220 = vrot.lane.b32.xlu0 %v10039_v51, %s10491_s28 }
0x20f1   :  { %v3221_v53 = vpop.permute.xlu0 %3220 }
0x20f2   :  { %v3223_v55 = vmul.f32 %v3221_v53, %v3218_v52 }
0x20f4   :  { %v3225_v56 = vadd.f32 %v3224_v54, %v3223_v55 }
0x20f6   :  { %v11388_v57 = vmax.f32 %v3225_v56, 0.0  ;;  %v8586_v56 = vld [vmem:[%s12525_s10 + $0x78] sm:$0xff] }
0x20f8   :  { %v3227_v58 = vmax.f32 %v11388_v57, 0.0 }
0x20fa   :  { %3229 = vrot.lane.b32.xlu1 %v3227_v58, %s10491_s28  ;;  %v8585_v58 = vld [vmem:[%s12525_s10 + $0x70] sm:$0xff] }
0x216c   :  { %v3230_v59 = vpop.permute.xlu1 %3229 }
0x216d   :  { %9510 = vmatmul.mubr.msk.f32.vlgmr.msra.gmra.mxu1 %vm283_vm0, %v3230_v59  ;;  %v8584_v59 = vld [vmem:[%s12525_s10 + $0x68] sm:$0xff] }
0x216e   :  { %9520 = vmatprep.mubr.msk.f32.mxu1 %vm10492_vm5, %v12507_v63  ;;  %9513 = vmatpush3.msra.mxu1 %v8586_v56 }
0x216f   :  { %9514 = vmatprep.subr.mxu1 %v12507_v63 }
0x2170   :  { %9515 = vmatpush3.msra.mxu1 %v8585_v58  ;;  %v12443_v58 = vmov 4  }
0x2171   :  { %9516 = vmatprep.subr.mxu1 %v12507_v63 }
0x2172   :  { %9517 = vmatpush3.msra.mxu1 %v8584_v59  ;;  %v11443_v59 = vld [vmem:[#allocation10] ss:$0 sm:$0xff] }
0x2173   :  { %9518 = vmatprep.subr.mxu1 %v12507_v63 }
0x222d   :  { %v3299_v60 = vpop.f32.mrf.mxu1 }
0x222e   :  { %v3300_v62 = vadd.f32 %v11251_v39, %v3299_v60 }
0x222f   :  { %v9511_v0 = vpop.f32.mrf.mxu1 }
0x2230   :  { %v3306_v25 = vrot.slane %v3300_v62, %v12523_v40  ;;  %v3348_v9 = vrot.slane %v3300_v62, %v12524_v27 }
0x2232   :  { %v3307_v1 = vadd.f32 %v3306_v25, %v11249_v3  ;;  %v3349_v5 = vadd.f32 %v11247_v4, %v3348_v9 }
0x2234   :  { %vm3308_vm8 = vcmp.gt.f32.partialorder %v3307_v1, 0.0  ;;  %v3309_v22 = vmul.f32 0.01, %v3307_v1  ;;  %vm3350_vm10 = vcmp.gt.f32.partialorder %v3349_v5, 0.0  ;;  %v3351_v10 = vmul.f32 0.01, %v3349_v5 }
0x2236   :  { %v3310_v34 = vsel %vm3308_vm8, %v3307_v1, %v3309_v22  ;;  %v3352_v15 = vsel %vm3350_vm10, %v3349_v5, %v3351_v10  ;;  %vm3593_vm10 = vcmask 39968  }
0x2237   :  { %v3312_v32 = vsel %vm3311_vm15, %v3310_v34, -inf  ;;  %v3353_v39 = vsel %vm3311_vm15, %v3352_v15, -inf }
0x2238   :  { %v3313_v36 = vrot.slane %v3312_v32, 4  ;;  %v3354_v28 = vrot.slane %v3353_v39, 4 }
0x223a   :  { %v3314_v23 = vmax.f32 %v3312_v32, %v3313_v36  ;;  %v3355_v16 = vmax.f32 %v3353_v39, %v3354_v28 }
0x223c   :  { %v3315_v26 = vrot.slane %v3314_v23, 2  ;;  %v3356_v7 = vrot.slane %v3355_v16, 2 }
0x223e   :  { %v3316_v14 = vmax.f32 %v3314_v23, %v3315_v26  ;;  %v3357_v11 = vmax.f32 %v3355_v16, %v3356_v7 }
0x2240   :  { %v3317_v37 = vrot.slane %v3316_v14, 1  ;;  %v3358_v17 = vrot.slane %v3357_v11, 1 }
0x2242   :  { %v3318_v19 = vmax.f32 %v3316_v14, %v3317_v37  ;;  %v3359_v12 = vmax.f32 %v3357_v11, %v3358_v17  ;;  %v8583_v37 = vld [vmem:[%s12525_s10 + $0x60] sm:$0xff] }
0x2243   :  { %9519 = vmatpush3.msra.mxu1 %v8583_v37 }
0x2244   :  { %v3319_v41 = vsub.f32 %v3310_v34, %v3318_v19  ;;  %v3360_v18 = vsub.f32 %v3352_v15, %v3359_v12  ;;  %9541 = vmatprep.subr.mxu1 %v12507_v63 }
0x2246   :  { %v3320_v20 = vmul.f32 1.442695, %v3319_v41  ;;  %v3361_v2 = vmul.f32 1.442695, %v3360_v18 }
0x2248   :  { %10040 = vpow2.f32 %v3320_v20  ;;  %v10220_v20 = vld [vmem:[%s12522_s19 + $0x8] sm:$0xff] }
0x2249   :  { %10042 = vpow2.f32 %v3361_v2  ;;  %v10221_v2 = vld [vmem:[%s12522_s19] sm:$0xff] }
0x2255   :  { %v10041_v29 = vpop.eup %10040 }
0x2256   :  { %v10043_v31 = vpop.eup %10042  ;;  %v3322_v35 = vsel %vm3311_vm15, %v10041_v29, 0.0 }
0x2257   :  { %v3363_v42 = vsel %vm3311_vm15, %v10043_v31, 0.0  ;;  %v3323_v43 = vrot.slane %v3322_v35, 4 }
0x2258   :  { %v3364_v44 = vrot.slane %v3363_v42, 4 }
0x2259   :  { %v3324_v13 = vadd.f32 %v3323_v43, %v3322_v35 }
0x225a   :  { %v3365_v45 = vadd.f32 %v3364_v44, %v3363_v42 }
0x225b   :  { %v3325_v46 = vrot.slane %v3324_v13, 2 }
0x225c   :  { %v3366_v47 = vrot.slane %v3365_v45, 2 }
0x225d   :  { %v3326_v38 = vadd.f32 %v3325_v46, %v3324_v13 }
0x225e   :  { %v3367_v48 = vadd.f32 %v3366_v47, %v3365_v45 }
0x225f   :  { %v3327_v49 = vrot.slane %v3326_v38, 1 }
0x2260   :  { %v3368_v50 = vrot.slane %v3367_v48, 1 }
0x2261   :  { %v3328_v30 = vadd.f32 %v3327_v49, %v3326_v38 }
0x2262   :  { %v3369_v51 = vadd.f32 %v3368_v50, %v3367_v48 }
0x2263   :  { %10044 = vrcp.f32 %v3328_v30 }
0x2264   :  { %10046 = vrcp.f32 %v3369_v51 }
0x2270   :  { %v10045_v52 = vpop.eup %10044 }
0x2271   :  { %v10047_v53 = vpop.eup %10046  ;;  %v3330_v54 = vmul.f32 %v10045_v52, %v10041_v29  ;;  %v8588_v29 = vld [vmem:[%s12527_s15 + $0x3] ss:$0 sm:$0xff] }
0x2272   :  { %v3371_v55 = vmul.f32 %v10047_v53, %v10043_v31 }
0x2273   :  { %3333 = vperm.xlu0 %9938, %v3330_v54  }
0x2274   :  { %3374 = vperm.xlu1 %9939, %v3371_v55  }
0x2277   :  { %9940 = vset.pattern.permute.xlu0 %v12443_v58 }
0x2278   :  { %9941 = vset.pattern.permute.xlu1 %v12443_v58 }
0x22ee   :  { %v3334_v60 = vpop.permute.xlu0 %3333 }
0x22ef   :  { %v3375_v62 = vpop.permute.xlu1 %3374  ;;  %v3336_v0 = vmul.f32 %v3334_v60, %v11274_v24 }
0x22f0   :  { %v3377_v25 = vmul.f32 %v3375_v62, %v11277_v33 }
0x22f1   :  { %v3338_v9 = vsel %vm12439_vm13, %v3336_v0, 0.0 }
0x22f2   :  { %v3378_v1 = vsel %vm12439_vm13, %v3377_v25, 0.0  ;;  %v3339_v5 = vrot.slane %v3338_v9, 4 }
0x22f3   :  { %v3379_v22 = vrot.slane %v3378_v1, 4 }
0x22f4   :  { %v3340_v10 = vadd.f32 %v3339_v5, %v3338_v9 }
0x22f5   :  { %v3380_v34 = vadd.f32 %v3379_v22, %v3378_v1 }
0x22f6   :  { %v3341_v15 = vrot.slane %v3340_v10, 2 }
0x22f7   :  { %v3381_v32 = vrot.slane %v3380_v34, 2 }
0x22f8   :  { %v3342_v39 = vadd.f32 %v3341_v15, %v3340_v10 }
0x22f9   :  { %v3382_v36 = vadd.f32 %v3381_v32, %v3380_v34 }
0x22fa   :  { %v3343_v28 = vrot.slane %v3342_v39, 1 }
0x22fb   :  { %v3383_v23 = vrot.slane %v3382_v36, 1 }
0x22fc   :  { %v3344_v16 = vadd.f32 %v3343_v28, %v3342_v39 }
0x22fd   :  { %v3384_v26 = vadd.f32 %v3383_v23, %v3382_v36 }
0x22ff   :  { %v3385_v7 = vsel %vm2540_vm9, %v3344_v16, %v3384_v26 }
0x2300   :  { %v3387_v14 = vmin.f32 %v3385_v7, 0.0  ;;  %vm3386_vm8 = vcmp.gt.f32.partialorder %v3385_v7, 0.0 }
0x2302   :  { %v3388_v11 = vmul.f32 1.442695, %v3387_v14 }
0x2304   :  { %10048 = vpow2.f32 %v3388_v11 }
0x2311   :  { %v10049_v17 = vpop.eup %10048 }
0x2312   :  { %v8582_v19 = vadd.f32 -1.0, %v10049_v17 }
0x2314   :  { %v3391_v12 = vsel %vm3386_vm8, %v3385_v7, %v8582_v19 }
0x2315   :  { %3400 = vrot.lane.b32.xlu1 %v3391_v12, %s10490_s23 }
0x2387   :  { %v3401_v41 = vpop.permute.xlu1 %3400 }
0x2388   :  { %v3403_v18 = vsel %vm283_vm0, %v3401_v41, %v11388_v57 }
0x2389   :  { %9521 = vmatmul.mubr.msk.f32.vlgmr.msra.gmra.mxu1 %vm905_vm4, %v3403_v18 }
0x238a   :  { %9542 = vmatpush3.msra.mxu1 %v10220_v20  ;;  %9545 = vmatprep.mubr.msk.f32.mxu1 %vm10492_vm5, %v12507_v63 }
0x238b   :  { %9543 = vmatprep.subr.mxu1 %v12507_v63 }
0x238c   :  { %9544 = vmatpush3.msra.mxu1 %v10221_v2 }
0x238d   :  { %9548 = vmatprep.subr.mxu1 %v12507_v63 }
0x2449   :  { %v3479_v31 = vpop.f32.mrf.mxu1 }
0x244a   :  { %v3480_v35 = vadd.f32 %v8588_v29, %v3479_v31 }
0x244b   :  { %v9522_v42 = vpop.f32.mrf.mxu1 }
0x244c   :  { %3490 = vrot.lane.b32.xlu0 %v3480_v35, %s10490_s23  ;;  %v8590_v43 = vmul.f32 -1.442695, %v3480_v35 }
0x244e   :  { %10050 = vpow2.f32 %v8590_v43 }
0x245b   :  { %v10051_v44 = vpop.eup %10050 }
0x245c   :  { %v3486_v13 = vadd.f32 1.0, %v10051_v44 }
0x245e   :  { %10052 = vrcp.f32 %v3486_v13 }
0x246b   :  { %v10053_v45 = vpop.eup %10052 }
0x246c   :  { %v3500_v50 = vsub.f32 1.0, %v10053_v45  ;;  %v3506_v51 = vmul.f32 %v10053_v45, %v11388_v57 }
0x24be   :  { %v3491_v46 = vpop.permute.xlu0 %3490 }
0x24bf   :  { %v3493_v47 = vmul.f32 %v10053_v45, %v3491_v46 }
0x24c1   :  { %3495 = vrot.lane.b32.xlu1 %v3493_v47, %s10486_s6 }
0x2533   :  { %v3496_v38 = vpop.permute.xlu1 %3495 }
0x2534   :  { %v3498_v48 = vadd.f32 %v3496_v38, %v3480_v35 }
0x2536   :  { %10054 = vtanh.f32 %v3498_v48 }
0x2543   :  { %v10055_v49 = vpop.eup %10054 }
0x2544   :  { %3502 = vrot.lane.b32.xlu0 %v10055_v49, %s10491_s28 }
0x25b6   :  { %v3503_v30 = vpop.permute.xlu0 %3502 }
0x25b7   :  { %v3505_v52 = vmul.f32 %v3503_v30, %v3500_v50 }
0x25b9   :  { %v3507_v53 = vadd.f32 %v3506_v51, %v3505_v52 }
0x25bb   :  { %v11434_v54 = vmax.f32 %v3507_v53, 0.0 }
0x25bd   :  { %v3509_v55 = vmax.f32 %v11434_v54, 0.0 }
0x25bf   :  { %3511 = vrot.lane.b32.xlu1 %v3509_v55, %s10491_s28 }
0x2631   :  { %v3512_v56 = vpop.permute.xlu1 %3511 }
0x2632   :  { %9528 = vmatmul.mubr.msk.f32.vlgmr.msra.gmra.mxu0 %vm283_vm0, %v3512_v56  ;;  %v8596_v56 = vld [vmem:[%s12525_s10 + $0x98] sm:$0xff] }
0x2633   :  { %9538 = vmatprep.mubr.msk.f32.mxu0 %vm10492_vm5, %v12507_v63  ;;  %9531 = vmatpush3.msra.mxu0 %v8596_v56 }
0x2634   :  { %9532 = vmatprep.subr.mxu0 %v12507_v63 }
0x26f2   :  { %v3581_v57 = vpop.f32.mrf.mxu0 }
0x26f3   :  { %v3582_v60 = vadd.f32 %v11443_v59, %v3581_v57  ;;  %v8595_v57 = vld [vmem:[%s12525_s10 + $0x90] sm:$0xff] }
0x26f4   :  { %v9529_v62 = vpop.f32.mrf.mxu0  ;;  %9533 = vmatpush3.msra.mxu0 %v8595_v57 }
0x26f5   :  { %v3588_v0 = vrot.slane %v3582_v60, %v12523_v40  ;;  %v3630_v25 = vrot.slane %v3582_v60, %v12524_v27  ;;  %v8594_v60 = vld [vmem:[%s12525_s10 + $0x88] sm:$0xff]  ;;  %9534 = vmatprep.subr.mxu0 %v12507_v63 }
0x26f6   :  { %9535 = vmatpush3.msra.mxu0 %v8594_v60 }
0x26f7   :  { %v3589_v9 = vadd.f32 %v3588_v0, %v11249_v3  ;;  %v3631_v1 = vadd.f32 %v11247_v4, %v3630_v25  ;;  %9536 = vmatprep.subr.mxu0 %v12507_v63 }
0x26f9   :  { %vm3590_vm8 = vcmp.gt.f32.partialorder %v3589_v9, 0.0  ;;  %v3591_v5 = vmul.f32 0.01, %v3589_v9  ;;  %vm3632_vm13 = vcmp.gt.f32.partialorder %v3631_v1, 0.0  ;;  %v3633_v22 = vmul.f32 0.01, %v3631_v1 }
0x26fb   :  { %v3592_v10 = vsel %vm3590_vm8, %v3589_v9, %v3591_v5  ;;  %v3634_v34 = vsel %vm3632_vm13, %v3631_v1, %v3633_v22  ;;  %vm12440_vm13 = vcmask 654848  }
0x26fc   :  { %v3594_v15 = vsel %vm3593_vm10, %v3592_v10, -inf  ;;  %v3635_v32 = vsel %vm3593_vm10, %v3634_v34, -inf }
0x26fd   :  { %v3595_v39 = vrot.slane %v3594_v15, 4  ;;  %v3636_v36 = vrot.slane %v3635_v32, 4 }
0x26ff   :  { %v3596_v28 = vmax.f32 %v3594_v15, %v3595_v39  ;;  %v3637_v23 = vmax.f32 %v3635_v32, %v3636_v36 }
0x2701   :  { %v3597_v16 = vrot.slane %v3596_v28, 2  ;;  %v3638_v26 = vrot.slane %v3637_v23, 2 }
0x2703   :  { %v3598_v7 = vmax.f32 %v3596_v28, %v3597_v16  ;;  %v3639_v14 = vmax.f32 %v3637_v23, %v3638_v26 }
0x2705   :  { %v3599_v11 = vrot.slane %v3598_v7, 1  ;;  %v3640_v37 = vrot.slane %v3639_v14, 1 }
0x2707   :  { %v3600_v17 = vmax.f32 %v3598_v7, %v3599_v11  ;;  %v3641_v19 = vmax.f32 %v3639_v14, %v3640_v37 }
0x2709   :  { %v3601_v12 = vsub.f32 %v3592_v10, %v3600_v17  ;;  %v3642_v41 = vsub.f32 %v3634_v34, %v3641_v19  ;;  %v8593_v17 = vld [vmem:[%s12525_s10 + $0x80] sm:$0xff] }
0x270a   :  { %9537 = vmatpush3.msra.mxu0 %v8593_v17  ;;  %v11538_v17 = vld [vmem:[%s10538_s25] sm:$0xff] }
0x270b   :  { %v3602_v18 = vmul.f32 1.442695, %v3601_v12  ;;  %v3643_v20 = vmul.f32 1.442695, %v3642_v41 }
0x270d   :  { %10056 = vpow2.f32 %v3602_v18 }
0x270e   :  { %10058 = vpow2.f32 %v3643_v20 }
0x271a   :  { %v10057_v2 = vpop.eup %10056 }
0x271b   :  { %v10059_v29 = vpop.eup %10058  ;;  %v3604_v31 = vsel %vm3593_vm10, %v10057_v2, 0.0 }
0x271c   :  { %v3645_v35 = vsel %vm3593_vm10, %v10059_v29, 0.0  ;;  %v3605_v42 = vrot.slane %v3604_v31, 4 }
0x271d   :  { %v3646_v43 = vrot.slane %v3645_v35, 4 }
0x271e   :  { %v3606_v44 = vadd.f32 %v3605_v42, %v3604_v31 }
0x271f   :  { %v3647_v13 = vadd.f32 %v3646_v43, %v3645_v35 }
0x2720   :  { %v3607_v45 = vrot.slane %v3606_v44, 2 }
0x2721   :  { %v3648_v46 = vrot.slane %v3647_v13, 2 }
0x2722   :  { %v3608_v47 = vadd.f32 %v3607_v45, %v3606_v44 }
0x2723   :  { %v3649_v38 = vadd.f32 %v3648_v46, %v3647_v13 }
0x2724   :  { %v3609_v48 = vrot.slane %v3608_v47, 1 }
0x2725   :  { %v3650_v49 = vrot.slane %v3649_v38, 1 }
0x2726   :  { %v3610_v50 = vadd.f32 %v3609_v48, %v3608_v47 }
0x2727   :  { %v3651_v30 = vadd.f32 %v3650_v49, %v3649_v38  ;;  %v8624_v49 = vld [vmem:[%s10548_s3 + $0x18] sm:$0xff] }
0x2728   :  { %10060 = vrcp.f32 %v3610_v50  ;;  %v8623_v50 = vld [vmem:[%s10548_s3 + $0x10] sm:$0xff]  ;;  %9559 = vmatprep.subr.mxu0 %v8624_v49  ;;  %s12566_s3 = sld [smem:[#allocation31_spill]] }
0x2729   :  { %10062 = vrcp.f32 %v3651_v30  ;;  %v8611_v30 = vld [vmem:[%s10513_s5 + $0x10] sm:$0xff] }
0x2735   :  { %v10061_v51 = vpop.eup %10060 }
0x2736   :  { %v10063_v52 = vpop.eup %10062  ;;  %v3612_v53 = vmul.f32 %v10061_v51, %v10057_v2  ;;  %v8598_v2 = vld [vmem:[%s12527_s15 + $0x4] ss:$0 sm:$0xff]  ;;  %v8612_v51 = vld [vmem:[%s10513_s5 + $0x18] sm:$0xff]  ;;  %s10501_s5 = smov 48  }
0x2737   :  { %v3653_v55 = vmul.f32 %v10063_v52, %v10059_v29 }
0x2738   :  { %3615 = vperm.xlu0 %9940, %v3612_v53  }
0x2739   :  { %3656 = vperm.xlu1 %9941, %v3653_v55  }
0x27b3   :  { %v3616_v62 = vpop.permute.xlu0 %3615 }
0x27b4   :  { %v3657_v0 = vpop.permute.xlu1 %3656  ;;  %v3618_v25 = vmul.f32 %v3616_v62, %v11274_v24 }
0x27b5   :  { %v3659_v9 = vmul.f32 %v3657_v0, %v11277_v33 }
0x27b6   :  { %v3620_v1 = vsel %vm12440_vm13, %v3618_v25, 0.0  ;;  %v4184_v25 = vld [vmem:[#allocation2 + $0x8] sm:$0xff] }
0x27b7   :  { %v3660_v5 = vsel %vm12440_vm13, %v3659_v9, 0.0  ;;  %v3621_v22 = vrot.slane %v3620_v1, 4 }
0x27b8   :  { %v3661_v10 = vrot.slane %v3660_v5, 4 }
0x27b9   :  { %v3622_v34 = vadd.f32 %v3621_v22, %v3620_v1  ;;  %v8626_v1 = vld [vmem:[%s10553_s8 + $0x1] ss:$0 sm:$0xff]  ;;  %s12567_s8 = sld [smem:[#allocation36_spill]] }
0x27ba   :  { %v3662_v15 = vadd.f32 %v3661_v10, %v3660_v5  ;;  %v8613_v5 = vld [vmem:[%s10518_s9 + $0x20] sm:$0xff]  ;;  %v8614_v10 = vld [vmem:[%s10518_s9 + $0x28] sm:$0xff] }
0x27bb   :  { %v3623_v32 = vrot.slane %v3622_v34, 2 }
0x27bc   :  { %v3663_v39 = vrot.slane %v3662_v15, 2 }
0x27bd   :  { %v3624_v36 = vadd.f32 %v3623_v32, %v3622_v34  ;;  %v8615_v34 = vld [vmem:[%s10518_s9 + $0x30] sm:$0xff] }
0x27be   :  { %v3664_v28 = vadd.f32 %v3663_v39, %v3662_v15 }
0x27bf   :  { %v3625_v23 = vrot.slane %v3624_v36, 1 }
0x27c0   :  { %v3665_v16 = vrot.slane %v3664_v28, 1 }
0x27c1   :  { %v3626_v26 = vadd.f32 %v3625_v23, %v3624_v36  ;;  %v8616_v36 = vld [vmem:[%s10518_s9 + $0x38] sm:$0xff]  ;;  %v11504_v23 = vld [vmem:[%s10523_s13 + $0x20] sm:$0xff]  ;;  %s12561_s9 = sld [smem:[#allocation30_spill]] }
0x27c2   :  { %v3666_v7 = vadd.f32 %v3665_v16, %v3664_v28  ;;  %12529 = vst [vmem:[#allocation42_spill] sm:$0xff] %v11504_v23  ;;  %v11513_v16 = vld [vmem:[%s10523_s13 + $0x28] sm:$0xff] }
0x27c4   :  { %v3667_v14 = vsel %vm2540_vm9, %v3626_v26, %v3666_v7  ;;  %v11516_v26 = vld [vmem:[%s10523_s13 + $0x30] sm:$0xff]  ;;  %v11519_v7 = vld [vmem:[%s10538_s25 + $0x18] sm:$0xff] }
0x27c5   :  { %v3669_v11 = vmin.f32 %v3667_v14, 0.0  ;;  %vm3668_vm8 = vcmp.gt.f32.partialorder %v3667_v14, 0.0 }
0x27c7   :  { %v3670_v37 = vmul.f32 1.442695, %v3669_v11  ;;  %v11530_v11 = vld [vmem:[%s10538_s25 + $0x10] sm:$0xff] }
0x27c9   :  { %10064 = vpow2.f32 %v3670_v37  ;;  %v11534_v37 = vld [vmem:[%s10538_s25 + $0x8] sm:$0xff] }
0x27d6   :  { %v10065_v19 = vpop.eup %10064 }
0x27d7   :  { %v8592_v12 = vadd.f32 -1.0, %v10065_v19 }
0x27d9   :  { %v3673_v41 = vsel %vm3668_vm8, %v3667_v14, %v8592_v12  ;;  %v11527_v14 = vld [vmem:[%s10523_s13 + $0x38] sm:$0xff] }
0x27da   :  { %3682 = vrot.lane.b32.xlu1 %v3673_v41, %s10499_s18 }
0x284c   :  { %v3683_v18 = vpop.permute.xlu1 %3682 }
0x284d   :  { %v3685_v20 = vsel %vm283_vm0, %v3683_v18, %v11434_v54 }
0x284e   :  { %9539 = vmatmul.mubr.msk.f32.vlgmr.msra.gmra.mxu0 %vm905_vm4, %v3685_v20 }
0x284f   :  { %9563 = vmatprep.mubr.msk.f32.mxu0 %vm283_vm0, %v8611_v30  ;;  %9560 = vmatpush3.msra.mxu0 %v8624_v49 }
0x2850   :  { %9561 = vmatprep.subr.mxu0 %v8623_v50 }
0x2851   :  { %9562 = vmatpush3.msra.mxu0 %v8623_v50 }
0x2852   :  { %9564 = vmatmul.mubr.msk.f32.vlgmr.msra.gmra.mxu0 %vm283_vm0, %v8612_v51  ;;  %9566 = vmatprep.subr.mxu0 %v4184_v25 }
0x2853   :  { %9568 = vmatprep.mubr.msk.f32.mxu0 %vm375_vm1, %v8613_v5  ;;  %9567 = vmatpush3.msra.mxu0 %v4184_v25 }
0x2856   :  { %9569 = vmatmul.mubr.msk.f32.vlgmr.msra.gmra.mxu0 %vm375_vm1, %v8614_v10 }
0x2857   :  { %9571 = vmatprep.mubr.msk.f32.mxu0 %vm375_vm1, %v8615_v34 }
0x285a   :  { %9572 = vmatmul.mubr.msk.f32.gmra.mxu0 %vm375_vm1, %v8616_v36  ;;  %vm3875_vm1 = vcmask 48168  }
0x285b   :  { %9578 = vmatprep.mubr.msk.f32.mxu0 %vm283_vm0, %v11504_v23 }
0x290e   :  { %v3761_v29 = vpop.f32.mrf.mxu0 }
0x290f   :  { %v3762_v31 = vadd.f32 %v8598_v2, %v3761_v29 }
0x2910   :  { %v9540_v35 = vpop.f32.mrf.mxu0 }
0x2911   :  { %3772 = vrot.lane.b32.xlu0 %v3762_v31, %s10490_s23  ;;  %v8600_v42 = vmul.f32 -1.442695, %v3762_v31 }
0x2912   :  { %v9565_v9 = vpop.f32.mrf.mxu0 }
0x2913   :  { %10066 = vpow2.f32 %v8600_v42  ;;  %v4178_v22 = vadd.f32 %v9565_v9, %v8626_v1 }
0x2914   :  { %v4172_v15 = vpop.f32.mrf.mxu0 }
0x2915   :  { %v11495_v32 = vmax.f32 %v4178_v22, 0.0  ;;  %v4173_v39 = vadd.f32 %v8626_v1, %v4172_v15 }
0x2917   :  { %v11500_v28 = vmax.f32 %v4173_v39, 0.0  ;;  %9574 = vmatprep.subr.mxu0 %v11495_v32 }
0x2918   :  { %9575 = vmatpush3.msra.mxu0 %v11495_v32 }
0x2919   :  { %9576 = vmatprep.subr.mxu0 %v11500_v28 }
0x291a   :  { %9577 = vmatpush3.msra.mxu0 %v11500_v28 }
0x291b   :  { %4565 = vmatprep.subr.mxu0 %v11519_v7  ;;  %9579 = vmatmul.mubr.msk.f32.vlgmr.msra.gmra.mxu0 %vm283_vm0, %v11513_v16 }
0x291c   :  { %9581 = vmatprep.mubr.msk.f32.mxu0 %vm283_vm0, %v11516_v26  ;;  %4566 = vmatpush1.msra.mxu0 %v11530_v11 }
0x291d   :  { %4567 = vmatprep.subr.mxu0 %v11534_v37 }
0x291e   :  { %4568 = vmatpush1.msra.mxu0 %v11538_v17 }
0x291f   :  { %9582 = vmatmul.mubr.msk.f32.gmra.mxu0 %vm283_vm0, %v11527_v14 }
0x2920   :  { %v10067_v43 = vpop.eup %10066  ;;  %4601 = vmatprep.mubr.f32.mxu0 %v12507_v63 }
0x2921   :  { %v3768_v44 = vadd.f32 1.0, %v10067_v43 }
0x2923   :  { %10068 = vrcp.f32 %v3768_v44 }
0x2930   :  { %v10069_v13 = vpop.eup %10068 }
0x2931   :  { %v3782_v52 = vsub.f32 1.0, %v10069_v13  ;;  %v3788_v55 = vmul.f32 %v10069_v13, %v11434_v54  ;;  %v12441_v54 = vmov 5  }
0x2932   :  { %9943 = vset.pattern.permute.xlu1 %v12441_v54  ;;  %9942 = vset.pattern.permute.xlu0 %v12441_v54 }
0x2983   :  { %v3773_v45 = vpop.permute.xlu0 %3772 }
0x2984   :  { %v3775_v46 = vmul.f32 %v10069_v13, %v3773_v45 }
0x2986   :  { %3777 = vrot.lane.b32.xlu1 %v3775_v46, %s10486_s6 }
0x29f8   :  { %v3778_v47 = vpop.permute.xlu1 %3777 }
0x29f9   :  { %v3780_v38 = vadd.f32 %v3778_v47, %v3762_v31 }
0x29fb   :  { %10070 = vtanh.f32 %v3780_v38 }
0x2a08   :  { %v10071_v48 = vpop.eup %10070 }
0x2a09   :  { %3784 = vrot.lane.b32.xlu0 %v10071_v48, %s10491_s28 }
0x2a7b   :  { %v3785_v53 = vpop.permute.xlu0 %3784 }
0x2a7c   :  { %v3787_v56 = vmul.f32 %v3785_v53, %v3782_v52 }
0x2a7e   :  { %v3789_v57 = vadd.f32 %v3788_v55, %v3787_v56 }
0x2a80   :  { %v11481_v60 = vmax.f32 %v3789_v57, 0.0 }
0x2a82   :  { %12528 = vst [vmem:[#allocation41_spill] sm:$0xff] %v11481_v60  ;;  %v3791_v62 = vmax.f32 %v11481_v60, 0.0 }
0x2a84   :  { %3793 = vrot.lane.b32.xlu1 %v3791_v62, %s10491_s28 }
0x2af6   :  { %v3794_v0 = vpop.permute.xlu1 %3793 }
0x2af7   :  { %9546 = vmatmul.mubr.msk.f32.vlgmr.msra.gmra.mxu1 %vm283_vm0, %v3794_v0 }
0x2af8   :  { %9556 = vmatprep.mubr.msk.f32.mxu1 %vm10492_vm5, %v12507_v63 }
0x2bb7   :  { %v3863_v19 = vpop.f32.mrf.mxu1 }
0x2bb8   :  { %v3864_v12 = vadd.f32 %v11443_v59, %v3863_v19 }
0x2bb9   :  { %v9547_v41 = vpop.f32.mrf.mxu1 }
0x2bba   :  { %v3870_v18 = vrot.slane %v3864_v12, %v12523_v40  ;;  %v3912_v20 = vrot.slane %v3864_v12, %v12524_v27 }
0x2bbc   :  { %v3871_v2 = vadd.f32 %v3870_v18, %v11249_v3  ;;  %v3913_v29 = vadd.f32 %v11247_v4, %v3912_v20 }
0x2bbe   :  { %vm3872_vm8 = vcmp.gt.f32.partialorder %v3871_v2, 0.0  ;;  %v3873_v31 = vmul.f32 0.01, %v3871_v2  ;;  %vm3914_vm13 = vcmp.gt.f32.partialorder %v3913_v29, 0.0  ;;  %v3915_v35 = vmul.f32 0.01, %v3913_v29 }
0x2bc0   :  { %v3874_v42 = vsel %vm3872_vm8, %v3871_v2, %v3873_v31  ;;  %v3916_v43 = vsel %vm3914_vm13, %v3913_v29, %v3915_v35  ;;  %v8606_v31 = vld [vmem:[%s12525_s10 + $0xb8] sm:$0xff]  ;;  %v8605_v35 = vld [vmem:[%s12525_s10 + $0xb0] sm:$0xff]  ;;  %vm3901_vm13 = vcmask 786048  }
0x2bc1   :  { %v3876_v44 = vsel %vm3875_vm1, %v3874_v42, -inf  ;;  %v3917_v59 = vsel %vm3875_vm1, %v3916_v43, -inf  ;;  %9549 = vmatpush3.msra.mxu1 %v8606_v31  ;;  %v11600_v31 = vld [vmem:[%s10543_s29 + $0x78] sm:$0xff] }
0x2bc2   :  { %v3877_v13 = vrot.slane %v3876_v44, 4  ;;  %v3918_v45 = vrot.slane %v3917_v59, 4  ;;  %9550 = vmatprep.subr.mxu1 %v12507_v63 }
0x2bc3   :  { %9551 = vmatpush3.msra.mxu1 %v8605_v35 }
0x2bc4   :  { %v3878_v46 = vmax.f32 %v3876_v44, %v3877_v13  ;;  %v3919_v47 = vmax.f32 %v3917_v59, %v3918_v45  ;;  %9552 = vmatprep.subr.mxu1 %v12507_v63 }
0x2bc6   :  { %v3879_v38 = vrot.slane %v3878_v46, 2  ;;  %v3920_v48 = vrot.slane %v3919_v47, 2 }
0x2bc8   :  { %v3880_v3 = vmax.f32 %v3878_v46, %v3879_v38  ;;  %v3921_v49 = vmax.f32 %v3919_v47, %v3920_v48 }
0x2bca   :  { %v3881_v4 = vrot.slane %v3880_v3, 1  ;;  %v3922_v50 = vrot.slane %v3921_v49, 1 }
0x2bcc   :  { %v3882_v30 = vmax.f32 %v3880_v3, %v3881_v4  ;;  %v3923_v51 = vmax.f32 %v3921_v49, %v3922_v50 }
0x2bce   :  { %v3883_v52 = vsub.f32 %v3874_v42, %v3882_v30  ;;  %v3924_v53 = vsub.f32 %v3916_v43, %v3923_v51  ;;  %v8604_v42 = vld [vmem:[%s12525_s10 + $0xa8] sm:$0xff]  ;;  %v9570_v43 = vpop.f32.mrf.mxu0 }
0x2bcf   :  { %9553 = vmatpush3.msra.mxu1 %v8604_v42 }
0x2bd0   :  { %v3884_v55 = vmul.f32 1.442695, %v3883_v52  ;;  %v3925_v56 = vmul.f32 1.442695, %v3924_v53  ;;  %9554 = vmatprep.subr.mxu1 %v12507_v63  ;;  %v4271_v44 = vpop.f32.mrf.mxu0 }
0x2bd2   :  { %10072 = vpow2.f32 %v3884_v55  ;;  %v11563_v59 = vpop.f32.mrf.mxu0 }
0x2bd3   :  { %10074 = vpow2.f32 %v3925_v56 }
0x2bdf   :  { %v10073_v57 = vpop.eup %10072 }
0x2be0   :  { %v10075_v62 = vpop.eup %10074  ;;  %v3886_v0 = vsel %vm3875_vm1, %v10073_v57, 0.0 }
0x2be1   :  { %v3927_v25 = vsel %vm3875_vm1, %v10075_v62, 0.0  ;;  %v3887_v9 = vrot.slane %v3886_v0, 4 }
0x2be2   :  { %v3928_v1 = vrot.slane %v3927_v25, 4 }
0x2be3   :  { %v3888_v5 = vadd.f32 %v3887_v9, %v3886_v0  ;;  %v8603_v9 = vld [vmem:[%s12525_s10 + $0xa0] sm:$0xff] }
0x2be4   :  { %v3929_v22 = vadd.f32 %v3928_v1, %v3927_v25  ;;  %9555 = vmatpush3.msra.mxu1 %v8603_v9  ;;  %v8637_v1 = vld [vmem:[%s10568_s24 + $0x38] sm:$0xf]  ;;  %v11707_v9 = vld [vmem:[%s10543_s29 + $0x90] sm:$0xff] }
0x2be5   :  { %v3889_v10 = vrot.slane %v3888_v5, 2  ;;  %8638 = vmatprep.subr.msk.mxu1 %vm506_vm2, %v8637_v1  ;;  %v11711_v1 = vld [vmem:[%s10543_s29 + $0x10] sm:$0xff] }
0x2be6   :  { %v3930_v34 = vrot.slane %v3929_v22, 2 }
0x2be7   :  { %v3890_v15 = vadd.f32 %v3889_v10, %v3888_v5 }
0x2be8   :  { %v3931_v39 = vadd.f32 %v3930_v34, %v3929_v22 }
0x2be9   :  { %v3891_v36 = vrot.slane %v3890_v15, 1 }
0x2bea   :  { %v3932_v19 = vrot.slane %v3931_v39, 1 }
0x2beb   :  { %v3892_v12 = vadd.f32 %v3891_v36, %v3890_v15 }
0x2bec   :  { %v3933_v41 = vadd.f32 %v3932_v19, %v3931_v39  ;;  %v8629_v39 = vld [vmem:[#allocation5 + $0x1] ss:$0 sm:$0xff] }
0x2bed   :  { %10076 = vrcp.f32 %v3892_v12  ;;  %v4272_v36 = vadd.f32 %v8629_v39, %v4271_v44  ;;  %v8636_v12 = vld [vmem:[%s10568_s24 + $0x30] sm:$0xf] }
0x2bee   :  { %10078 = vrcp.f32 %v3933_v41  ;;  %v11609_v44 = vld [vmem:[%s10543_s29 + $0x70] sm:$0xff] }
0x2bfa   :  { %v10077_v18 = vpop.eup %10076 }
0x2bfb   :  { %v10079_v20 = vpop.eup %10078  ;;  %v3894_v2 = vmul.f32 %v10077_v18, %v10073_v57  ;;  %v8635_v18 = vld [vmem:[%s10568_s24 + $0x28] sm:$0xff] }
0x2bfc   :  { %v3935_v29 = vmul.f32 %v10079_v20, %v10075_v62  ;;  %v8634_v20 = vld [vmem:[%s10568_s24 + $0x20] sm:$0xff]  ;;  %s12568_s24 = sld [smem:[#allocation35_spill]] }
0x2bfd   :  { %3897 = vperm.xlu0 %9942, %v3894_v2   ;;  %v4290_v2 = vmax.f32 %v4272_v36, 0.0  ;;  %v4300_v36 = vld [vmem:[#allocation7 + $0x2] sm:$0x3] }
0x2bfe   :  { %3938 = vperm.xlu1 %9943, %v3935_v29   ;;  %v11595_v29 = vld [vmem:[%s10543_s29 + $0xf8] sm:$0xff] }
0x2c01   :  { %4810 = vrot.lane.b32.xlu0 %v11500_v28, %s10479_s22  ;;  %v11565_v28 = vpop.f32.mrf.mxu0 }
0x2c02   :  { %9945 = vset.pattern.permute.xlu1 %v10493_v6  ;;  %9944 = vset.pattern.permute.xlu0 %v10493_v6  ;;  %v4282_v42 = vadd.f32 %v8629_v39, %v11565_v28  ;;  %v11619_v28 = vld [vmem:[%s10543_s29 + $0x68] sm:$0xff] }
0x2c03   :  { %v9580_v13 = vpop.f32.mrf.mxu0 }
0x2c05   :  { %v4506_v6 = vpop.f32.mrf.mxu0 }
0x2c06   :  { %8653 = vmatmul.mubr.msk.f32.vlgmr.msra.gmra.mxu0 %vm283_vm0, %v4506_v6  ;;  %v4287_v6 = vadd.f32 %v11563_v59, %v8629_v39  ;;  %v11638_v59 = vld [vmem:[%s10543_s29 + $0x58] sm:$0xff] }
0x2c07   :  { %4607 = vmatprep.mubr.f32.mxu0 %v12507_v63  ;;  %v9583_v5 = vpop.f32.mrf.mxu0 }
0x2c09   :  { %v4516_v22 = vpop.f32.mrf.mxu0 }
0x2c0a   :  { %8654 = vmatmul.mubr.msk.f32.gmra.mxu0 %vm283_vm0, %v9580_v13  ;;  %v11614_v13 = vld [vmem:[%s10543_s29 + $0xe8] sm:$0xff] }
0x2c0b   :  { %4613 = vmatprep.mubr.f32.mxu0 %v12507_v63 }
0x2c0e   :  { %8655 = vmatmul.mubr.msk.f32.gmra.mxu0 %vm283_vm0, %v4516_v22  ;;  %v11719_v22 = vld [vmem:[%s10543_s29 + $0x8] sm:$0xff] }
0x2c0f   :  { %4619 = vmatprep.mubr.f32.mxu0 %v12507_v63 }
0x2c12   :  { %8656 = vmatmul.mubr.msk.f32.gmra.mxu0 %vm283_vm0, %v9583_v5  ;;  %v11715_v5 = vld [vmem:[%s10543_s29 + $0x88] sm:$0xff] }
0x2c78   :  { %v3898_v45 = vpop.permute.xlu0 %3897 }
0x2c79   :  { %v3939_v46 = vpop.permute.xlu1 %3938  ;;  %v3900_v47 = vmul.f32 %v3898_v45, %v11274_v24  ;;  %v4292_v45 = vmax.f32 %v4282_v42, 0.0 }
0x2c7a   :  { %v3941_v38 = vmul.f32 %v3939_v46, %v11277_v33  ;;  %v11624_v46 = vld [vmem:[%s10543_s29 + $0xe0] sm:$0xff] }
0x2c7b   :  { %v3902_v48 = vsel %vm3901_vm13, %v3900_v47, 0.0  ;;  %v11628_v47 = vld [vmem:[%s10543_s29 + $0x60] sm:$0xff] }
0x2c7c   :  { %v3942_v3 = vsel %vm3901_vm13, %v3941_v38, 0.0  ;;  %v3903_v49 = vrot.slane %v3902_v48, 4  ;;  %v11633_v38 = vld [vmem:[%s10543_s29 + $0xd8] sm:$0xff] }
0x2c7d   :  { %v3943_v4 = vrot.slane %v3942_v3, 4 }
0x2c7e   :  { %v3904_v50 = vadd.f32 %v3903_v49, %v3902_v48  ;;  %v4293_v48 = vmax.f32 %v4287_v6, 0.0  ;;  %v11646_v49 = vld [vmem:[%s10543_s29 + $0x50] sm:$0xff] }
0x2c7f   :  { %v3944_v30 = vadd.f32 %v3943_v4, %v3942_v3  ;;  %v11642_v3 = vld [vmem:[%s10543_s29 + $0xd0] sm:$0xff]  ;;  %v11651_v4 = vld [vmem:[%s10543_s29 + $0xc8] sm:$0xff] }
0x2c80   :  { %v3905_v51 = vrot.slane %v3904_v50, 2 }
0x2c81   :  { %v3945_v52 = vrot.slane %v3944_v30, 2 }
0x2c82   :  { %v3906_v53 = vadd.f32 %v3905_v51, %v3904_v50  ;;  %v11655_v50 = vld [vmem:[%s10543_s29 + $0x48] sm:$0xff]  ;;  %v11663_v51 = vld [vmem:[%s10543_s29 + $0x40] sm:$0xff] }
0x2c83   :  { %v3946_v55 = vadd.f32 %v3945_v52, %v3944_v30  ;;  %v11659_v30 = vld [vmem:[%s10543_s29 + $0xc0] sm:$0xff]  ;;  %v11667_v52 = vld [vmem:[%s10543_s29 + $0xb8] sm:$0xff] }
0x2c84   :  { %v3907_v56 = vrot.slane %v3906_v53, 1 }
0x2c85   :  { %v3947_v57 = vrot.slane %v3946_v55, 1 }
0x2c86   :  { %v3908_v62 = vadd.f32 %v3907_v56, %v3906_v53  ;;  %v11671_v53 = vld [vmem:[%s10543_s29 + $0x38] sm:$0xff]  ;;  %v11679_v56 = vld [vmem:[%s10543_s29 + $0x30] sm:$0xff] }
0x2c87   :  { %v3948_v24 = vadd.f32 %v3947_v57, %v3946_v55  ;;  %v11675_v55 = vld [vmem:[%s10543_s29 + $0xb0] sm:$0xff]  ;;  %v11683_v57 = vld [vmem:[%s10543_s29 + $0xa8] sm:$0xff] }
0x2c89   :  { %v3949_v33 = vsel %vm2540_vm9, %v3908_v62, %v3948_v24  ;;  %v11687_v62 = vld [vmem:[%s10543_s29 + $0x28] sm:$0xff]  ;;  %v11691_v24 = vld [vmem:[%s10543_s29 + $0xa0] sm:$0xff] }
0x2c8a   :  { %v3951_v0 = vmin.f32 %v3949_v33, 0.0  ;;  %vm3950_vm8 = vcmp.gt.f32.partialorder %v3949_v33, 0.0 }
0x2c8c   :  { %v3952_v25 = vmul.f32 1.442695, %v3951_v0  ;;  %v11699_v0 = vld [vmem:[%s10543_s29 + $0x98] sm:$0xff] }
0x2c8e   :  { %10080 = vpow2.f32 %v3952_v25  ;;  %v11703_v25 = vld [vmem:[%s10543_s29 + $0x18] sm:$0xff] }
0x2c9b   :  { %v10081_v10 = vpop.eup %10080 }
0x2c9c   :  { %v8602_v34 = vadd.f32 -1.0, %v10081_v10  ;;  %v11723_v10 = vld [vmem:[%s10543_s29 + $0x80] sm:$0xff] }
0x2c9e   :  { %v3955_v15 = vsel %vm3950_vm8, %v3949_v33, %v8602_v34  ;;  %v11695_v33 = vld [vmem:[%s10543_s29 + $0x20] sm:$0xff] }
0x2c9f   :  { %3964 = vrot.lane.b32.xlu1 %v3955_v15, %s10501_s5  ;;  %v11727_v34 = vld [vmem:[%s10543_s29] sm:$0xff] }
0x2ca3   :  { %4812 = vrot.lane.b32.xlu1 %v11495_v32, %s10479_s22  ;;  %v4277_v32 = vadd.f32 %v9570_v43, %v8629_v39  ;;  %v11605_v43 = vld [vmem:[%s10543_s29 + $0xf0] sm:$0xff]  ;;  %s12565_s29 = sld [smem:[#allocation38_spill]] }
0x2ca5   :  { %v4291_v35 = vmax.f32 %v4277_v32, 0.0 }
0x2cc6   :  { %v4603_v15 = vpop.f32.mrf.mxu0 }
0x2cc8   :  { %v4605_v39 = vpop.f32.mrf.mxu0 }
0x2d11   :  { %v3965_v19 = vpop.permute.xlu1 %3964 }
0x2d12   :  { %v3967_v41 = vsel %vm283_vm0, %v3965_v19, %v11481_v60 }
0x2d13   :  { %9557 = vmatmul.mubr.msk.f32.vlgmr.msra.gmra.mxu1 %vm905_vm4, %v3967_v41 }
0x2d14   :  { %8639 = vmatpush1.msk.msra.mxu1 %vm506_vm2, %v8636_v12  ;;  %4394 = vmatprep.mubr.f32.mxu1 %v12507_v63  ;;  %v4609_v12 = vpop.f32.mrf.mxu0 }
0x2d15   :  { %4360 = vmatprep.subr.mxu1 %v8635_v18  ;;  %v4305_v18 = vrot.slane %v4300_v36, %v12523_v40 }
0x2d16   :  { %4361 = vmatpush1.msra.mxu1 %v8634_v20  ;;  %v4309_v20 = vrot.slane %v4300_v36, %v12524_v27  ;;  %v11804_v27 = vld [vmem:[%s12506_s27 + $0x1] ss:$0 sm:$0xff] }
0x2d17   :  { %8640 = vmatmul.mubr.msk.f32.vlgmr.msra.gmra.mxu1 %vm493_vm3, %v4290_v2  ;;  %9049 = vmatprep.subr.mxu1 %v11595_v29  ;;  %v4611_v2 = vpop.f32.mrf.mxu0  ;;  %12538 = vst [vmem:[#allocation51_spill] sm:$0xff] %v11804_v27 }
0x2d18   :  { %4400 = vmatprep.mubr.f32.mxu1 %v12507_v63  ;;  %9050 = vmatpush3.msra.mxu1 %v11600_v31 }
0x2d19   :  { %9051 = vmatprep.subr.mxu1 %v11605_v43 }
0x2d1a   :  { %9052 = vmatpush3.msra.mxu1 %v11609_v44 }
0x2d1b   :  { %8641 = vmatmul.mubr.msk.f32.gmra.mxu1 %vm493_vm3, %v4291_v35  ;;  %9053 = vmatprep.subr.mxu1 %v11614_v13 }
0x2d1c   :  { %4406 = vmatprep.mubr.f32.mxu1 %v12507_v63  ;;  %9054 = vmatpush3.msra.mxu1 %v11619_v28 }
0x2d1d   :  { %9055 = vmatprep.subr.mxu1 %v11624_v46 }
0x2d1e   :  { %9056 = vmatpush3.msra.mxu1 %v11628_v47 }
0x2d1f   :  { %8642 = vmatmul.mubr.msk.f32.gmra.mxu1 %vm493_vm3, %v4292_v45  ;;  %9057 = vmatprep.subr.mxu1 %v11633_v38  ;;  %v4615_v45 = vpop.f32.mrf.mxu0 }
0x2d20   :  { %4412 = vmatprep.mubr.f32.mxu1 %v12507_v63  ;;  %9058 = vmatpush3.msra.mxu1 %v11638_v59 }
0x2d21   :  { %9059 = vmatprep.subr.mxu1 %v11642_v3  ;;  %v4617_v36 = vpop.f32.mrf.mxu0 }
0x2d22   :  { %9060 = vmatpush3.msra.mxu1 %v11646_v49 }
0x2d23   :  { %8643 = vmatmul.mubr.msk.f32.gmra.mxu1 %vm493_vm3, %v4293_v48  ;;  %9061 = vmatprep.subr.mxu1 %v11651_v4 }
0x2d24   :  { %9062 = vmatpush3.msra.mxu1 %v11655_v50 }
0x2d25   :  { %9063 = vmatprep.subr.mxu1 %v11659_v30 }
0x2d26   :  { %9064 = vmatpush3.msra.mxu1 %v11663_v51 }
0x2d27   :  { %9065 = vmatprep.subr.mxu1 %v11667_v52 }
0x2d28   :  { %9066 = vmatpush3.msra.mxu1 %v11671_v53 }
0x2d29   :  { %9067 = vmatprep.subr.mxu1 %v11675_v55 }
0x2d2a   :  { %9068 = vmatpush3.msra.mxu1 %v11679_v56 }
0x2d2b   :  { %9069 = vmatprep.subr.mxu1 %v11683_v57 }
0x2d2c   :  { %9070 = vmatpush3.msra.mxu1 %v11687_v62 }
0x2d2d   :  { %9071 = vmatprep.subr.mxu1 %v11691_v24 }
0x2d2e   :  { %9072 = vmatpush3.msra.mxu1 %v11695_v33 }
0x2d2f   :  { %9073 = vmatprep.subr.mxu1 %v11699_v0 }
0x2d30   :  { %9074 = vmatpush3.msra.mxu1 %v11703_v25 }
0x2d31   :  { %9075 = vmatprep.subr.mxu1 %v11707_v9 }
0x2d32   :  { %9076 = vmatpush3.msra.mxu1 %v11711_v1 }
0x2d33   :  { %9077 = vmatprep.subr.mxu1 %v11715_v5 }
0x2d34   :  { %9078 = vmatpush3.msra.mxu1 %v11719_v22 }
0x2d35   :  { %9079 = vmatprep.subr.mxu1 %v11723_v10 }
0x2d36   :  { %9080 = vmatpush3.msra.mxu1 %v11727_v34 }
0x2d37   :  { %5088 = vmatprep.subr.mxu1 %v11519_v7 }
0x2dd3   :  { %v11731_v19 = vpop.f32.mrf.mxu1 }
0x2dd4   :  { %12530 = vst [vmem:[#allocation43_spill] sm:$0xff] %v11731_v19 }
0x2dd5   :  { %v9558_v41 = vpop.f32.mrf.mxu1 }
0x2dd7   :  { %v4396_v32 = vpop.f32.mrf.mxu1 }
0x2dd8   :  { %v11735_v35 = vadd.f32 %v4396_v32, %v4305_v18 }
0x2dd9   :  { %v4398_v42 = vpop.f32.mrf.mxu1 }
0x2dda   :  { %v11737_v6 = vadd.f32 %v4398_v42, %v4309_v20  ;;  %v4626_v54 = vmul.f32 %v4603_v15, %v11735_v35 }
0x2ddb   :  { %v4402_v7 = vpop.f32.mrf.mxu1 }
0x2ddc   :  { %v4627_v48 = vmul.f32 %v4605_v39, %v11737_v6  ;;  %v11741_v58 = vadd.f32 %v4402_v7, %v4305_v18  ;;  %v4621_v7 = vpop.f32.mrf.mxu0 }
0x2ddd   :  { %v4404_v41 = vpop.f32.mrf.mxu1 }
0x2dde   :  { %v11743_v61 = vadd.f32 %v4404_v41, %v4309_v20  ;;  %4698 = vmatprep.mubr.f32.mxu1 %v4627_v48  ;;  %v4628_v39 = vmul.f32 %v4609_v12, %v11741_v58  ;;  %v11764_v12 = vld [vmem:[%s10528_s17 + $0x10] sm:$0xff] }
0x2ddf   :  { %v4408_v8 = vpop.f32.mrf.mxu1  ;;  %4699 = vmatmul.mubr.f32.vlgmr.msra.gmra.mxu1 %v4626_v54  ;;  %9592 = vmatprep.mubr.msk.f32.mxu0 %vm905_vm4, %v11764_v12 }
0x2de0   :  { %v4629_v32 = vmul.f32 %v4611_v2, %v11743_v61  ;;  %5089 = vmatpush1.msra.mxu1 %v11530_v11  ;;  %v11747_v42 = vadd.f32 %v4408_v8, %v4305_v18 }
0x2de1   :  { %v4410_v21 = vpop.f32.mrf.mxu1  ;;  %5090 = vmatprep.subr.mxu1 %v11534_v37  ;;  %v4623_v37 = vpop.f32.mrf.mxu0 }
0x2de2   :  { %v11751_v15 = vadd.f32 %v4410_v21, %v4309_v20  ;;  %4703 = vmatprep.mubr.f32.mxu1 %v4629_v32  ;;  %5091 = vmatpush1.msra.mxu1 %v11538_v17  ;;  %v4630_v11 = vmul.f32 %v4615_v45, %v11747_v42 }
0x2de3   :  { %v4414_v48 = vpop.f32.mrf.mxu1  ;;  %4704 = vmatmul.mubr.f32.gmra.mxu1 %v4628_v39 }
0x2de4   :  { %v4631_v54 = vmul.f32 %v4617_v36, %v11751_v15  ;;  %v11755_v2 = vadd.f32 %v4414_v48, %v4305_v18 }
0x2de5   :  { %v4416_v8 = vpop.f32.mrf.mxu1 }
0x2de6   :  { %12531 = vst [vmem:[#allocation44_spill] sm:$0xff] %v11755_v2  ;;  %v11758_v41 = vadd.f32 %v4416_v8, %v4309_v20  ;;  %4708 = vmatprep.mubr.f32.mxu1 %v4631_v54  ;;  %v4632_v17 = vmul.f32 %v4621_v7, %v11755_v2 }
0x2de7   :  { %4709 = vmatmul.mubr.f32.gmra.mxu1 %v4630_v11 }
0x2de8   :  { %v4633_v21 = vmul.f32 %v4623_v37, %v11758_v41 }
0x2dea   :  { %4713 = vmatprep.mubr.f32.mxu1 %v4633_v21  ;;  %v11769_v21 = vld [vmem:[%s10528_s17 + $0x18] sm:$0xff]  ;;  %s12563_s17 = sld [smem:[#allocation32_spill]] }
0x2deb   :  { %4714 = vmatmul.mubr.f32.gmra.mxu1 %v4632_v17  ;;  %12532 = vst [vmem:[#allocation45_spill] sm:$0xff] %v11769_v21  ;;  %v11774_v17 = vld [vmem:[%s12505_s30 + $0x38] sm:$0xff] }
0x2dec   :  { %5124 = vmatprep.mubr.f32.mxu1 %v12507_v63  ;;  %12533 = vst [vmem:[#allocation46_spill] sm:$0xff] %v11774_v17 }
0x2e9f   :  { %v9081_v18 = vpop.f32.mrf.mxu1 }
0x2ea1   :  { %v9082_v45 = vpop.f32.mrf.mxu1 }
0x2ea2   :  { %v9083_v37 = vadd.f32 %v9082_v45, %v9081_v18  ;;  %v11784_v18 = vld [vmem:[%s12505_s30 + $0x28] sm:$0xff]  ;;  %v11788_v45 = vld [vmem:[%s12505_s30 + $0x20] sm:$0xff] }
0x2ea3   :  { %v9084_v20 = vpop.f32.mrf.mxu1  ;;  %12535 = vst [vmem:[#allocation48_spill] sm:$0xff] %v11784_v18  ;;  %12536 = vst [vmem:[#allocation49_spill] sm:$0xff] %v11788_v45 }
0x2ea5   :  { %v9085_v36 = vpop.f32.mrf.mxu1 }
0x2ea6   :  { %v9086_v11 = vadd.f32 %v9085_v36, %v9084_v20  ;;  %v11779_v20 = vld [vmem:[%s12505_s30 + $0x30] sm:$0xff]  ;;  %s10370_s30 = scalar_lea.vmem %s8416_s14, 32 }
0x2ea7   :  { %v9087_v32 = vpop.f32.mrf.mxu1  ;;  %12534 = vst [vmem:[#allocation47_spill] sm:$0xff] %v11779_v20  ;;  %v11793_v36 = vld [vmem:[#allocation8 + $0x1] ss:$0 sm:$0xff]  ;;  %p10371_p11 = scmp.ne.s32.totalorder %s8416_s14, %s10370_s30  ;;  %p10376_p13 = scmp.lt.s32.totalorder %s10370_s30, %s10370_s30 }
0x2ea8   :  { %12537 = vst [vmem:[#allocation50_spill] sm:$0xff] %v11793_v36 }
0x2ea9   :  { %v9088_v39 = vpop.f32.mrf.mxu1  ;;  %p10377_p0 = por %p10376_p13, %p10375_p12 }
0x2eaa   :  { %v9089_v8 = vadd.f32 %v9088_v39, %v9087_v32 }
0x2eab   :  { %v9090_v48 = vpop.f32.mrf.mxu1  ;;  %p10378_p1 = pnand %p10377_p0, %p10371_p11 }
0x2ead   :  { %v9091_v54 = vpop.f32.mrf.mxu1 }
0x2eae   :  { %v9092_v7 = vadd.f32 %v9091_v54, %v9090_v48 }
0x2eb0   :  { %9584 = vmatprep.subr.mxu0 %v9092_v7 }
0x2eb1   :  { %9585 = vmatpush3.msra.mxu0 %v9092_v7 }
0x2eb2   :  { %9586 = vmatprep.subr.mxu0 %v9089_v8 }
0x2eb3   :  { %9587 = vmatpush3.msra.mxu0 %v9089_v8 }
0x2eb4   :  { %9588 = vmatprep.subr.mxu0 %v9086_v11 }
0x2eb5   :  { %9589 = vmatpush3.msra.mxu0 %v9086_v11  ;;  %v4811_v11 = vpop.permute.xlu0 %4810 }
0x2eb6   :  { %9590 = vmatprep.subr.mxu0 %v9083_v37 }
0x2eb7   :  { %9591 = vmatpush3.msra.mxu0 %v9083_v37  ;;  %v4813_v37 = vpop.permute.xlu1 %4812 }
0x2eb8   :  { %9593 = vmatmul.mubr.msk.f32.vlgmr.msra.gmra.mxu0 %vm905_vm4, %v11769_v21  ;;  %9595 = vmatprep.subr.mxu0 %v11774_v17 }
0x2eb9   :  { %9596 = vmatpush3.msra.mxu0 %v11774_v17 }
0x2eba   :  { %9597 = vmatprep.subr.mxu0 %v11779_v20 }
0x2ebb   :  { %9598 = vmatpush3.msra.mxu0 %v11779_v20 }
0x2ebc   :  { %9599 = vmatprep.subr.mxu0 %v11784_v18 }
0x2ebd   :  { %9600 = vmatpush3.msra.mxu0 %v11784_v18 }
0x2ebe   :  { %9601 = vmatprep.subr.mxu0 %v11788_v45 }
0x2ebf   :  { %9602 = vmatpush3.msra.mxu0 %v11788_v45 }
0x2f78   :  { %v9594_v32 = vpop.f32.mrf.mxu0 }
0x2f79   :  { %v4803_v39 = vadd.f32 %v9594_v32, %v11793_v36 }
0x2f7a   :  { %v4797_v48 = vpop.f32.mrf.mxu0 }
0x2f7b   :  { %v4798_v54 = vadd.f32 %v11793_v36, %v4797_v48  ;;  %v4807_v7 = vmax.f32 %v4803_v39, 0.0 }
0x2f7d   :  { %v4806_v8 = vmax.f32 %v4798_v54, 0.0  ;;  %v4817_v19 = vsel %vm283_vm0, %v4807_v7, %v4813_v37 }
0x2f7f   :  { %v4816_v60 = vsel %vm283_vm0, %v4806_v8, %v4811_v11 }
0x2f80   :  { %9603 = vmatprep.mubr.msk.f32.mxu0 %vm905_vm4, %v4816_v60 }
0x2f81   :  { %9604 = vmatmul.mubr.msk.f32.vlgmr.msra.gmra.mxu0 %vm905_vm4, %v4817_v19 }
0x2f82   :  { %9610 = vmatprep.mubr.msk.f32.mxu0 %vm283_vm0, %v11504_v23 }
0x3041   :  { %v9605_v32 = vpop.f32.mrf.mxu0 }
0x3042   :  { %v4902_v48 = vadd.f32 %v9605_v32, %v11804_v27 }
0x3043   :  { %v4896_v39 = vpop.f32.mrf.mxu0 }
0x3044   :  { %v4897_v54 = vadd.f32 %v11804_v27, %v4896_v39  ;;  %4921 = vrot.lane.b32.xlu0 %v4902_v48, %s10490_s23  ;;  %v8664_v7 = vmul.f32 -1.442695, %v4902_v48 }
0x3046   :  { %4919 = vrot.lane.b32.xlu1 %v4897_v54, %s10490_s23  ;;  %v8663_v8 = vmul.f32 -1.442695, %v4897_v54  ;;  %10082 = vpow2.f32 %v8664_v7 }
0x3048   :  { %10084 = vpow2.f32 %v8663_v8 }
0x3053   :  { %v10083_v60 = vpop.eup %10082 }
0x3054   :  { %v4912_v40 = vadd.f32 1.0, %v10083_v60 }
0x3055   :  { %v10085_v19 = vpop.eup %10084 }
0x3056   :  { %v4911_v23 = vadd.f32 1.0, %v10085_v19  ;;  %10086 = vrcp.f32 %v4912_v40 }
0x3058   :  { %10088 = vrcp.f32 %v4911_v23 }
0x3063   :  { %v10087_v36 = vpop.eup %10086 }
0x3064   :  { %v4940_v23 = vsub.f32 1.0, %v10087_v36  ;;  %v4952_v19 = vmul.f32 %v10087_v36, %v4813_v37 }
0x3065   :  { %v10089_v18 = vpop.eup %10088 }
0x3066   :  { %v4939_v21 = vsub.f32 1.0, %v10089_v18 }
0x30b6   :  { %v4922_v45 = vpop.permute.xlu0 %4921 }
0x30b7   :  { %v4926_v32 = vmul.f32 %v10087_v36, %v4922_v45 }
0x30b8   :  { %v4920_v20 = vpop.permute.xlu1 %4919 }
0x30b9   :  { %v4925_v39 = vmul.f32 %v10089_v18, %v4920_v20  ;;  %4931 = vrot.lane.b32.xlu0 %v4926_v32, %s10486_s6 }
0x30bb   :  { %4929 = vrot.lane.b32.xlu1 %v4925_v39, %s10486_s6  ;;  %v4951_v39 = vmul.f32 %v10089_v18, %v4811_v11 }
0x312b   :  { %v4932_v27 = vpop.permute.xlu0 %4931 }
0x312c   :  { %v4936_v17 = vadd.f32 %v4932_v27, %v4902_v48 }
0x312d   :  { %v4930_v7 = vpop.permute.xlu1 %4929 }
0x312e   :  { %10090 = vtanh.f32 %v4936_v17  ;;  %v4935_v8 = vadd.f32 %v4930_v7, %v4897_v54 }
0x3130   :  { %10092 = vtanh.f32 %v4935_v8 }
0x313b   :  { %v10091_v60 = vpop.eup %10090 }
0x313c   :  { %4945 = vrot.lane.b32.xlu0 %v10091_v60, %s10491_s28 }
0x313d   :  { %v10093_v40 = vpop.eup %10092 }
0x313e   :  { %4943 = vrot.lane.b32.xlu1 %v10093_v40, %s10491_s28 }
0x31ae   :  { %v4946_v45 = vpop.permute.xlu0 %4945 }
0x31af   :  { %v4950_v20 = vmul.f32 %v4946_v45, %v4940_v23 }
0x31b0   :  { %v4944_v32 = vpop.permute.xlu1 %4943 }
0x31b1   :  { %v11814_v2 = vadd.f32 %v4952_v19, %v4950_v20  ;;  %v4949_v27 = vmul.f32 %v4944_v32, %v4939_v21 }
0x31b3   :  { %v11816_v48 = vadd.f32 %v4951_v39, %v4949_v27  ;;  %4959 = vrot.lane.b32.xlu0 %v11814_v2, %s10491_s28  ;;  %v12547_v39 = vld [vmem:[#allocation51_spill] sm:$0xff] }
0x31b5   :  { %4957 = vrot.lane.b32.xlu1 %v11816_v48, %s10491_s28 }
0x3225   :  { %v4960_v17 = vpop.permute.xlu0 %4959 }
0x3226   :  { %9606 = vmatprep.subr.mxu0 %v4960_v17 }
0x3227   :  { %9607 = vmatpush3.msra.mxu0 %v4960_v17  ;;  %v4958_v54 = vpop.permute.xlu1 %4957 }
0x3228   :  { %9608 = vmatprep.subr.mxu0 %v4958_v54 }
0x3229   :  { %9609 = vmatpush3.msra.mxu0 %v4958_v54 }
0x322a   :  { %9611 = vmatmul.mubr.msk.f32.vlgmr.msra.gmra.mxu0 %vm283_vm0, %v11513_v16  ;;  %9111 = vmatprep.subr.mxu0 %v11595_v29 }
0x322b   :  { %9613 = vmatprep.mubr.msk.f32.mxu0 %vm283_vm0, %v11516_v26  ;;  %9112 = vmatpush3.msra.mxu0 %v11600_v31 }
0x322c   :  { %9113 = vmatprep.subr.mxu0 %v11605_v43 }
0x322d   :  { %9114 = vmatpush3.msra.mxu0 %v11609_v44 }
0x322e   :  { %9614 = vmatmul.mubr.msk.f32.gmra.mxu0 %vm283_vm0, %v11527_v14  ;;  %9115 = vmatprep.subr.mxu0 %v11614_v13 }
0x322f   :  { %9116 = vmatpush3.msra.mxu0 %v11619_v28 }
0x3230   :  { %9117 = vmatprep.subr.mxu0 %v11624_v46 }
0x3231   :  { %9118 = vmatpush3.msra.mxu0 %v11628_v47 }
0x3232   :  { %9119 = vmatprep.subr.mxu0 %v11633_v38 }
0x3233   :  { %9120 = vmatpush3.msra.mxu0 %v11638_v59 }
0x3234   :  { %9121 = vmatprep.subr.mxu0 %v11642_v3 }
0x3235   :  { %9122 = vmatpush3.msra.mxu0 %v11646_v49 }
0x3236   :  { %9123 = vmatprep.subr.mxu0 %v11651_v4 }
0x3237   :  { %9124 = vmatpush3.msra.mxu0 %v11655_v50 }
0x3238   :  { %9125 = vmatprep.subr.mxu0 %v11659_v30 }
0x3239   :  { %9126 = vmatpush3.msra.mxu0 %v11663_v51 }
0x323a   :  { %9127 = vmatprep.subr.mxu0 %v11667_v52 }
0x323b   :  { %9128 = vmatpush3.msra.mxu0 %v11671_v53 }
0x323c   :  { %9129 = vmatprep.subr.mxu0 %v11675_v55 }
0x323d   :  { %9130 = vmatpush3.msra.mxu0 %v11679_v56 }
0x323e   :  { %9131 = vmatprep.subr.mxu0 %v11683_v57 }
0x323f   :  { %9132 = vmatpush3.msra.mxu0 %v11687_v62 }
0x3240   :  { %9133 = vmatprep.subr.mxu0 %v11691_v24 }
0x3241   :  { %9134 = vmatpush3.msra.mxu0 %v11695_v33 }
0x3242   :  { %9135 = vmatprep.subr.mxu0 %v11699_v0 }
0x3243   :  { %9136 = vmatpush3.msra.mxu0 %v11703_v25 }
0x3244   :  { %9137 = vmatprep.subr.mxu0 %v11707_v9 }
0x3245   :  { %9138 = vmatpush3.msra.mxu0 %v11711_v1 }
0x3246   :  { %9139 = vmatprep.subr.mxu0 %v11715_v5 }
0x3247   :  { %9140 = vmatpush3.msra.mxu0 %v11719_v22 }
0x3248   :  { %9141 = vmatprep.subr.mxu0 %v11723_v10 }
0x3249   :  { %9142 = vmatpush3.msra.mxu0 %v11727_v34 }
0x324a   :  { %9173 = vmatprep.subr.mxu0 %v11595_v29 }
0x32ea   :  { %v9612_v16 = vpop.f32.mrf.mxu0 }
0x32ec   :  { %v5029_v26 = vpop.f32.mrf.mxu0 }
0x32ed   :  { %8669 = vmatmul.mubr.msk.f32.vlgmr.msra.gmra.mxu1 %vm283_vm0, %v5029_v26 }
0x32ee   :  { %5130 = vmatprep.mubr.f32.mxu1 %v12507_v63  ;;  %v9615_v14 = vpop.f32.mrf.mxu0 }
0x32f0   :  { %v5039_v21 = vpop.f32.mrf.mxu0 }
0x32f1   :  { %8670 = vmatmul.mubr.msk.f32.gmra.mxu1 %vm283_vm0, %v9612_v16 }
0x32f2   :  { %5136 = vmatprep.mubr.f32.mxu1 %v12507_v63 }
0x32f5   :  { %8671 = vmatmul.mubr.msk.f32.gmra.mxu1 %vm283_vm0, %v5039_v21 }
0x32f6   :  { %5142 = vmatprep.mubr.f32.mxu1 %v12507_v63 }
0x32f9   :  { %8672 = vmatmul.mubr.msk.f32.gmra.mxu1 %vm283_vm0, %v9615_v14 }
0x32fa   :  { %9624 = vmatprep.mubr.msk.f32.mxu1 %vm905_vm4, %v11764_v12 }
0x33ad   :  { %v5126_v29 = vpop.f32.mrf.mxu1 }
0x33ae   :  { %v5149_v11 = vmul.f32 %v5126_v29, %v11735_v35 }
0x33af   :  { %v5128_v18 = vpop.f32.mrf.mxu1 }
0x33b0   :  { %v5150_v36 = vmul.f32 %v5128_v18, %v11737_v6 }
0x33b1   :  { %v5132_v37 = vpop.f32.mrf.mxu1 }
0x33b2   :  { %5221 = vmatprep.mubr.f32.mxu0 %v5150_v36  ;;  %v5151_v60 = vmul.f32 %v5132_v37, %v11741_v58 }
0x33b3   :  { %v5134_v7 = vpop.f32.mrf.mxu1  ;;  %5222 = vmatmul.mubr.f32.vlgmr.msra.gmra.mxu0 %v5149_v11 }
0x33b4   :  { %v5152_v8 = vmul.f32 %v5134_v7, %v11743_v61  ;;  %9174 = vmatpush3.msra.mxu0 %v11600_v31 }
0x33b5   :  { %v5138_v40 = vpop.f32.mrf.mxu1  ;;  %9175 = vmatprep.subr.mxu0 %v11605_v43 }
0x33b6   :  { %5226 = vmatprep.mubr.f32.mxu0 %v5152_v8  ;;  %9176 = vmatpush3.msra.mxu0 %v11609_v44  ;;  %v5153_v19 = vmul.f32 %v5138_v40, %v11747_v42  ;;  %v12539_v44 = vld [vmem:[#allocation44_spill] sm:$0xff] }
0x33b7   :  { %v5140_v23 = vpop.f32.mrf.mxu1  ;;  %5227 = vmatmul.mubr.f32.gmra.mxu0 %v5151_v60  ;;  %9177 = vmatprep.subr.mxu0 %v11614_v13 }
0x33b8   :  { %v5154_v45 = vmul.f32 %v5140_v23, %v11751_v15  ;;  %9178 = vmatpush3.msra.mxu0 %v11619_v28 }
0x33b9   :  { %v5144_v20 = vpop.f32.mrf.mxu1  ;;  %9179 = vmatprep.subr.mxu0 %v11624_v46 }
0x33ba   :  { %5231 = vmatprep.mubr.f32.mxu0 %v5154_v45  ;;  %9180 = vmatpush3.msra.mxu0 %v11628_v47  ;;  %v5155_v13 = vmul.f32 %v5144_v20, %v12539_v44 }
0x33bb   :  { %v5146_v31 = vpop.f32.mrf.mxu1  ;;  %5232 = vmatmul.mubr.f32.gmra.mxu0 %v5153_v19  ;;  %9181 = vmatprep.subr.mxu0 %v11633_v38 }
0x33bc   :  { %v5156_v43 = vmul.f32 %v5146_v31, %v11758_v41  ;;  %9182 = vmatpush3.msra.mxu0 %v11638_v59 }
0x33bd   :  { %9183 = vmatprep.subr.mxu0 %v11642_v3 }
0x33be   :  { %5236 = vmatprep.mubr.f32.mxu0 %v5156_v43  ;;  %9184 = vmatpush3.msra.mxu0 %v11646_v49 }
0x33bf   :  { %5237 = vmatmul.mubr.f32.gmra.mxu0 %v5155_v13  ;;  %9185 = vmatprep.subr.mxu0 %v11651_v4 }
0x33c0   :  { %9186 = vmatpush3.msra.mxu0 %v11655_v50 }
0x33c1   :  { %9187 = vmatprep.subr.mxu0 %v11659_v30 }
0x33c2   :  { %9188 = vmatpush3.msra.mxu0 %v11663_v51 }
0x33c3   :  { %9189 = vmatprep.subr.mxu0 %v11667_v52 }
0x33c4   :  { %9190 = vmatpush3.msra.mxu0 %v11671_v53  ;;  %v12540_v53 = vld [vmem:[#allocation45_spill] sm:$0xff] }
0x33c5   :  { %9191 = vmatprep.subr.mxu0 %v11675_v55  ;;  %v12541_v55 = vld [vmem:[#allocation46_spill] sm:$0xff] }
0x33c6   :  { %9192 = vmatpush3.msra.mxu0 %v11679_v56  ;;  %v12542_v56 = vld [vmem:[#allocation47_spill] sm:$0xff] }
0x33c7   :  { %9193 = vmatprep.subr.mxu0 %v11683_v57  ;;  %v12543_v57 = vld [vmem:[#allocation48_spill] sm:$0xff] }
0x33c8   :  { %9194 = vmatpush3.msra.mxu0 %v11687_v62  ;;  %v12544_v62 = vld [vmem:[#allocation49_spill] sm:$0xff] }
0x33c9   :  { %9195 = vmatprep.subr.mxu0 %v11691_v24 }
0x33ca   :  { %9196 = vmatpush3.msra.mxu0 %v11695_v33  ;;  %v12545_v33 = vld [vmem:[#allocation50_spill] sm:$0xff] }
0x33cb   :  { %9197 = vmatprep.subr.mxu0 %v11699_v0 }
0x33cc   :  { %9198 = vmatpush3.msra.mxu0 %v11703_v25 }
0x33cd   :  { %9199 = vmatprep.subr.mxu0 %v11707_v9 }
0x33ce   :  { %9200 = vmatpush3.msra.mxu0 %v11711_v1 }
0x33cf   :  { %9201 = vmatprep.subr.mxu0 %v11715_v5 }
0x33d0   :  { %9202 = vmatpush3.msra.mxu0 %v11719_v22 }
0x33d1   :  { %9203 = vmatprep.subr.mxu0 %v11723_v10 }
0x33d2   :  { %9204 = vmatpush3.msra.mxu0 %v11727_v34  ;;  %v12546_v34 = vld [vmem:[#allocation42_spill] sm:$0xff] }
0x33d3   :  { %9691 = vmatprep.subr.mxu0 %v12507_v63 }
0x3473   :  { %v9143_v28 = vpop.f32.mrf.mxu0 }
0x3475   :  { %v9144_v46 = vpop.f32.mrf.mxu0 }
0x3476   :  { %v9145_v52 = vadd.f32 %v9144_v46, %v9143_v28 }
0x3477   :  { %v9146_v47 = vpop.f32.mrf.mxu0 }
0x3479   :  { %v9147_v38 = vpop.f32.mrf.mxu0 }
0x347a   :  { %v9148_v51 = vadd.f32 %v9147_v38, %v9146_v47 }
0x347b   :  { %v9149_v59 = vpop.f32.mrf.mxu0 }
0x347d   :  { %v9150_v3 = vpop.f32.mrf.mxu0 }
0x347e   :  { %v9151_v30 = vadd.f32 %v9150_v3, %v9149_v59 }
0x347f   :  { %v9152_v49 = vpop.f32.mrf.mxu0 }
0x3481   :  { %v9153_v4 = vpop.f32.mrf.mxu0 }
0x3482   :  { %v9154_v50 = vadd.f32 %v9153_v4, %v9152_v49 }
0x3484   :  { %9616 = vmatprep.subr.mxu1 %v9154_v50 }
0x3485   :  { %9617 = vmatpush3.msra.mxu1 %v9154_v50 }
0x3486   :  { %9618 = vmatprep.subr.mxu1 %v9151_v30 }
0x3487   :  { %9619 = vmatpush3.msra.mxu1 %v9151_v30  ;;  %v10260_v30 = vld [vmem:[%s10538_s25 + $0x18] sm:$0xff] }
0x3488   :  { %9620 = vmatprep.subr.mxu1 %v9148_v51 }
0x3489   :  { %9621 = vmatpush3.msra.mxu1 %v9148_v51  ;;  %v10261_v51 = vld [vmem:[%s10523_s13 + $0x30] sm:$0xff] }
0x348a   :  { %9622 = vmatprep.subr.mxu1 %v9145_v52 }
0x348b   :  { %9623 = vmatpush3.msra.mxu1 %v9145_v52  ;;  %v10262_v52 = vld [vmem:[%s10538_s25 + $0x10] sm:$0xff] }
0x348c   :  { %9625 = vmatmul.mubr.msk.f32.vlgmr.msra.gmra.mxu1 %vm905_vm4, %v12540_v53  ;;  %9627 = vmatprep.subr.mxu1 %v12541_v55 }
0x348d   :  { %9628 = vmatpush3.msra.mxu1 %v12541_v55 }
0x348e   :  { %9629 = vmatprep.subr.mxu1 %v12542_v56 }
0x348f   :  { %9630 = vmatpush3.msra.mxu1 %v12542_v56 }
0x3490   :  { %9631 = vmatprep.subr.mxu1 %v12543_v57 }
0x3491   :  { %9632 = vmatpush3.msra.mxu1 %v12543_v57 }
0x3492   :  { %9633 = vmatprep.subr.mxu1 %v12544_v62 }
0x3493   :  { %9634 = vmatpush3.msra.mxu1 %v12544_v62 }
0x354c   :  { %v9626_v24 = vpop.f32.mrf.mxu1 }
0x354d   :  { %v5314_v0 = vadd.f32 %v9626_v24, %v12545_v33  ;;  %v10263_v24 = vld [vmem:[%s10538_s25 + $0x8] sm:$0xff] }
0x354e   :  { %v5308_v25 = vpop.f32.mrf.mxu1 }
0x354f   :  { %v5309_v9 = vadd.f32 %v12545_v33, %v5308_v25  ;;  %v5318_v1 = vmax.f32 %v5314_v0, 0.0  ;;  %v10264_v0 = vld [vmem:[%s10538_s25] sm:$0xff]  ;;  %v10265_v25 = vld [vmem:[%s10523_s13 + $0x38] sm:$0xff]  ;;  %s12564_s25 = sld [smem:[#allocation34_spill]] }
0x3551   :  { %v5317_v5 = vmax.f32 %v5309_v9, 0.0  ;;  %v5320_v10 = vsel %vm283_vm0, %v5318_v1, %v11814_v2 }
0x3553   :  { %v5319_v22 = vsel %vm283_vm0, %v5317_v5, %v11816_v48 }
0x3554   :  { %9635 = vmatprep.mubr.msk.f32.mxu1 %vm905_vm4, %v5319_v22 }
0x3555   :  { %9636 = vmatmul.mubr.msk.f32.vlgmr.msra.gmra.mxu1 %vm905_vm4, %v5320_v10 }
0x3556   :  { %9642 = vmatprep.mubr.msk.f32.mxu1 %vm283_vm0, %v12546_v34 }
0x3615   :  { %v9637_v32 = vpop.f32.mrf.mxu1 }
0x3616   :  { %v5399_v27 = vadd.f32 %v9637_v32, %v12547_v39 }
0x3617   :  { %v5393_v17 = vpop.f32.mrf.mxu1 }
0x3618   :  { %v5394_v54 = vadd.f32 %v12547_v39, %v5393_v17  ;;  %5418 = vrot.lane.b32.xlu0 %v5399_v27, %s10490_s23  ;;  %v8678_v16 = vmul.f32 -1.442695, %v5399_v27 }
0x361a   :  { %5416 = vrot.lane.b32.xlu1 %v5394_v54, %s10490_s23  ;;  %v8677_v26 = vmul.f32 -1.442695, %v5394_v54  ;;  %10094 = vpow2.f32 %v8678_v16 }
0x361c   :  { %10096 = vpow2.f32 %v8677_v26 }
0x3627   :  { %v10095_v14 = vpop.eup %10094 }
0x3628   :  { %v5409_v29 = vadd.f32 1.0, %v10095_v14 }
0x3629   :  { %v10097_v21 = vpop.eup %10096 }
0x362a   :  { %v5408_v18 = vadd.f32 1.0, %v10097_v21  ;;  %10098 = vrcp.f32 %v5409_v29 }
0x362c   :  { %10100 = vrcp.f32 %v5408_v18 }
0x3637   :  { %v10099_v36 = vpop.eup %10098 }
0x3638   :  { %v5437_v43 = vsub.f32 1.0, %v10099_v36  ;;  %v5449_v28 = vmul.f32 %v10099_v36, %v11814_v2 }
0x3639   :  { %v10101_v7 = vpop.eup %10100 }
0x363a   :  { %v5436_v47 = vsub.f32 1.0, %v10101_v7  ;;  %v5448_v3 = vmul.f32 %v10101_v7, %v11816_v48  ;;  %v10259_v48 = vld [vmem:[%s10523_s13 + $0x28] sm:$0xff]  ;;  %s12562_s13 = sld [smem:[#allocation29_spill]] }
0x368a   :  { %v5419_v11 = vpop.permute.xlu0 %5418 }
0x368b   :  { %v5423_v37 = vmul.f32 %v10099_v36, %v5419_v11 }
0x368c   :  { %v5417_v8 = vpop.permute.xlu1 %5416 }
0x368d   :  { %v5422_v60 = vmul.f32 %v10101_v7, %v5417_v8  ;;  %5428 = vrot.lane.b32.xlu0 %v5423_v37, %s10486_s6 }
0x368f   :  { %5426 = vrot.lane.b32.xlu1 %v5422_v60, %s10486_s6 }
0x36ff   :  { %v5429_v40 = vpop.permute.xlu0 %5428 }
0x3700   :  { %v5433_v23 = vadd.f32 %v5429_v40, %v5399_v27 }
0x3701   :  { %v5427_v45 = vpop.permute.xlu1 %5426 }
0x3702   :  { %10102 = vtanh.f32 %v5433_v23  ;;  %v5432_v19 = vadd.f32 %v5427_v45, %v5394_v54 }
0x3704   :  { %10104 = vtanh.f32 %v5432_v19 }
0x370f   :  { %v10103_v20 = vpop.eup %10102 }
0x3710   :  { %5442 = vrot.lane.b32.xlu0 %v10103_v20, %s10491_s28 }
0x3711   :  { %v10105_v31 = vpop.eup %10104 }
0x3712   :  { %5440 = vrot.lane.b32.xlu1 %v10105_v31, %s10491_s28 }
0x3782   :  { %v5443_v13 = vpop.permute.xlu0 %5442 }
0x3783   :  { %v5447_v46 = vmul.f32 %v5443_v13, %v5437_v43 }
0x3784   :  { %v5441_v38 = vpop.permute.xlu1 %5440 }
0x3785   :  { %v11939_v59 = vadd.f32 %v5449_v28, %v5447_v46  ;;  %v5446_v49 = vmul.f32 %v5441_v38, %v5436_v47 }
0x3787   :  { %v11942_v4 = vadd.f32 %v5448_v3, %v5446_v49  ;;  %5456 = vrot.lane.b32.xlu0 %v11939_v59, %s10491_s28 }
0x3789   :  { %5454 = vrot.lane.b32.xlu1 %v11942_v4, %s10491_s28 }
0x37f9   :  { %v5457_v2 = vpop.permute.xlu0 %5456 }
0x37fa   :  { %9638 = vmatprep.subr.mxu1 %v5457_v2 }
0x37fb   :  { %9639 = vmatpush3.msra.mxu1 %v5457_v2  ;;  %v5455_v50 = vpop.permute.xlu1 %5454 }
0x37fc   :  { %9640 = vmatprep.subr.mxu1 %v5455_v50 }
0x37fd   :  { %9641 = vmatpush3.msra.mxu1 %v5455_v50 }
0x37fe   :  { %9643 = vmatmul.mubr.msk.f32.vlgmr.msra.gmra.mxu1 %vm283_vm0, %v10259_v48  ;;  %5585 = vmatprep.subr.mxu1 %v10260_v30 }
0x37ff   :  { %9645 = vmatprep.mubr.msk.f32.mxu1 %vm283_vm0, %v10261_v51  ;;  %5586 = vmatpush1.msra.mxu1 %v10262_v52 }
0x3800   :  { %5587 = vmatprep.subr.mxu1 %v10263_v24 }
0x3801   :  { %5588 = vmatpush1.msra.mxu1 %v10264_v0 }
0x3802   :  { %9646 = vmatmul.mubr.msk.f32.gmra.mxu1 %vm283_vm0, %v10265_v25 }
0x3803   :  { %5621 = vmatprep.mubr.f32.mxu1 %v12507_v63 }
0x38be   :  { %v9644_v9 = vpop.f32.mrf.mxu1 }
0x38c0   :  { %v5526_v1 = vpop.f32.mrf.mxu1 }
0x38c1   :  { %8683 = vmatmul.mubr.msk.f32.vlgmr.msra.gmra.mxu1 %vm283_vm0, %v5526_v1 }
0x38c2   :  { %5627 = vmatprep.mubr.f32.mxu1 %v12507_v63  ;;  %v9647_v5 = vpop.f32.mrf.mxu1 }
0x38c4   :  { %v5536_v22 = vpop.f32.mrf.mxu1 }
0x38c5   :  { %8684 = vmatmul.mubr.msk.f32.gmra.mxu1 %vm283_vm0, %v9644_v9 }
0x38c6   :  { %5633 = vmatprep.mubr.f32.mxu1 %v12507_v63 }
0x38c9   :  { %8685 = vmatmul.mubr.msk.f32.gmra.mxu1 %vm283_vm0, %v5536_v22 }
0x38ca   :  { %5639 = vmatprep.mubr.f32.mxu1 %v12507_v63 }
0x38cd   :  { %8686 = vmatmul.mubr.msk.f32.gmra.mxu1 %vm283_vm0, %v9647_v5 }
0x38ce   :  { %9656 = vmatprep.mubr.msk.f32.mxu1 %vm905_vm4, %v11764_v12 }
0x3981   :  { %v5623_v10 = vpop.f32.mrf.mxu1 }
0x3982   :  { %v5646_v27 = vmul.f32 %v5623_v10, %v11735_v35 }
0x3983   :  { %v5625_v34 = vpop.f32.mrf.mxu1 }
0x3984   :  { %v5647_v32 = vmul.f32 %v5625_v34, %v11737_v6 }
0x3985   :  { %v5629_v17 = vpop.f32.mrf.mxu1 }
0x3986   :  { %5718 = vmatprep.mubr.f32.mxu0 %v5647_v32  ;;  %v5648_v26 = vmul.f32 %v5629_v17, %v11741_v58 }
0x3987   :  { %v5631_v54 = vpop.f32.mrf.mxu1  ;;  %5719 = vmatmul.mubr.f32.vlgmr.msra.gmra.mxu0 %v5646_v27 }
0x3988   :  { %v5649_v16 = vmul.f32 %v5631_v54, %v11743_v61 }
0x3989   :  { %v5635_v14 = vpop.f32.mrf.mxu1 }
0x398a   :  { %5723 = vmatprep.mubr.f32.mxu0 %v5649_v16  ;;  %v5650_v29 = vmul.f32 %v5635_v14, %v11747_v42  ;;  %v12010_v16 = vld [vmem:[%s12522_s19 + $0x18] sm:$0xff] }
0x398b   :  { %v5637_v21 = vpop.f32.mrf.mxu1  ;;  %5724 = vmatmul.mubr.f32.gmra.mxu0 %v5648_v26  ;;  %v8697_v14 = vld [vmem:[%s12520_s2 + $0x18] sm:$0xff] }
0x398c   :  { %v5651_v12 = vmul.f32 %v5637_v21, %v11751_v15  ;;  %9692 = vmatpush3.msra.mxu0 %v12010_v16  ;;  %v8696_v21 = vld [vmem:[%s12520_s2 + $0x10] sm:$0xff] }
0x398d   :  { %v5641_v18 = vpop.f32.mrf.mxu1  ;;  %9693 = vmatprep.subr.mxu0 %v12507_v63 }
0x398e   :  { %5728 = vmatprep.mubr.f32.mxu0 %v5651_v12  ;;  %v5652_v36 = vmul.f32 %v5641_v18, %v12539_v44  ;;  %v10266_v12 = vld [vmem:[%s12519_s1] sm:$0x3]  ;;  %v8702_v18 = vld [vmem:[%s12521_s7 + $0x10] sm:$0xff] }
0x398f   :  { %v5643_v6 = vpop.f32.mrf.mxu1  ;;  %5729 = vmatmul.mubr.f32.gmra.mxu0 %v5650_v29  ;;  %v8703_v29 = vld [vmem:[%s12521_s7 + $0x18] sm:$0xff] }
0x3990   :  { %v5653_v35 = vmul.f32 %v5643_v6, %v11758_v41  ;;  %v12031_v6 = vld [vmem:[%s12522_s19 + $0x10] sm:$0xff] }
0x3991   :  { %9694 = vmatpush3.msra.mxu0 %v12031_v6 }
0x3992   :  { %5733 = vmatprep.mubr.f32.mxu0 %v5653_v35  ;;  %9709 = vmatprep.subr.mxu0 %v12507_v63 }
0x3993   :  { %5734 = vmatmul.mubr.f32.gmra.mxu0 %v5652_v36 }
0x3994   :  { %9695 = vmatprep.mubr.msk.f32.mxu0 %vm10492_vm5, %v12507_v63 }
0x3a47   :  { %v9205_v61 = vpop.f32.mrf.mxu0 }
0x3a49   :  { %v9206_v58 = vpop.f32.mrf.mxu0 }
0x3a4a   :  { %v9207_v44 = vadd.f32 %v9206_v58, %v9205_v61 }
0x3a4b   :  { %v9208_v11 = vpop.f32.mrf.mxu0 }
0x3a4d   :  { %v9209_v37 = vpop.f32.mrf.mxu0 }
0x3a4e   :  { %v9210_v41 = vadd.f32 %v9209_v37, %v9208_v11  ;;  %v12049_v37 = vld [vmem:[#allocation10 + $0x1] ss:$0 sm:$0xff] }
0x3a4f   :  { %v9211_v15 = vpop.f32.mrf.mxu0 }
0x3a51   :  { %v9212_v7 = vpop.f32.mrf.mxu0 }
0x3a52   :  { %v9213_v40 = vadd.f32 %v9212_v7, %v9211_v15 }
0x3a53   :  { %v9214_v42 = vpop.f32.mrf.mxu0 }
0x3a55   :  { %v9215_v8 = vpop.f32.mrf.mxu0 }
0x3a56   :  { %v9216_v60 = vadd.f32 %v9215_v8, %v9214_v42 }
0x3a58   :  { %9648 = vmatprep.subr.mxu1 %v9216_v60 }
0x3a59   :  { %9649 = vmatpush3.msra.mxu1 %v9216_v60  ;;  %v12548_v60 = vld [vmem:[#allocation53_spill] sm:$0xff] }
0x3a5a   :  { %9650 = vmatprep.subr.mxu1 %v9213_v40 }
0x3a5b   :  { %9651 = vmatpush3.msra.mxu1 %v9213_v40 }
0x3a5c   :  { %9652 = vmatprep.subr.mxu1 %v9210_v41 }
0x3a5d   :  { %9653 = vmatpush3.msra.mxu1 %v9210_v41  ;;  %v12549_v41 = vld [vmem:[#allocation52_spill] sm:$0xff] }
0x3a5e   :  { %9654 = vmatprep.subr.mxu1 %v9207_v44 }
0x3a5f   :  { %9655 = vmatpush3.msra.mxu1 %v9207_v44 }
0x3a60   :  { %9657 = vmatmul.mubr.msk.f32.vlgmr.msra.gmra.mxu1 %vm905_vm4, %v12540_v53  ;;  %9659 = vmatprep.subr.mxu1 %v12541_v55 }
0x3a61   :  { %9660 = vmatpush3.msra.mxu1 %v12541_v55 }
0x3a62   :  { %9661 = vmatprep.subr.mxu1 %v12542_v56 }
0x3a63   :  { %9662 = vmatpush3.msra.mxu1 %v12542_v56 }
0x3a64   :  { %9663 = vmatprep.subr.mxu1 %v12543_v57 }
0x3a65   :  { %9664 = vmatpush3.msra.mxu1 %v12543_v57 }
0x3a66   :  { %9665 = vmatprep.subr.mxu1 %v12544_v62 }
0x3a67   :  { %9666 = vmatpush3.msra.mxu1 %v12544_v62 }
0x3a68   :  { %9670 = vmatprep.subr.mxu1 %v12507_v63 }
0x3b20   :  { %v9658_v23 = vpop.f32.mrf.mxu1 }
0x3b21   :  { %v5811_v53 = vadd.f32 %v9658_v23, %v12545_v33 }
0x3b22   :  { %v5805_v45 = vpop.f32.mrf.mxu1 }
0x3b23   :  { %v5806_v55 = vadd.f32 %v12545_v33, %v5805_v45  ;;  %v5815_v19 = vmax.f32 %v5811_v53, 0.0 }
0x3b25   :  { %v5814_v20 = vmax.f32 %v5806_v55, 0.0  ;;  %v5817_v57 = vsel %vm283_vm0, %v5815_v19, %v11939_v59 }
0x3b27   :  { %v5816_v56 = vsel %vm283_vm0, %v5814_v20, %v11942_v4 }
0x3b28   :  { %9667 = vmatprep.mubr.msk.f32.mxu1 %vm905_vm4, %v5816_v56 }
0x3b29   :  { %9668 = vmatmul.mubr.msk.f32.vlgmr.msra.gmra.mxu1 %vm905_vm4, %v5817_v57 }
0x3b2a   :  { %9674 = vmatprep.mubr.msk.f32.mxu1 %vm10492_vm5, %v12507_v63 }
0x3be9   :  { %v9669_v62 = vpop.f32.mrf.mxu1 }
0x3bea   :  { %v5896_v31 = vadd.f32 %v9669_v62, %v12547_v39 }
0x3beb   :  { %v5890_v43 = vpop.f32.mrf.mxu1 }
0x3bec   :  { %v5891_v33 = vadd.f32 %v12547_v39, %v5890_v43  ;;  %5915 = vrot.lane.b32.xlu0 %v5896_v31, %s10490_s23  ;;  %v8692_v13 = vmul.f32 -1.442695, %v5896_v31 }
0x3bee   :  { %5913 = vrot.lane.b32.xlu1 %v5891_v33, %s10490_s23  ;;  %v8691_v28 = vmul.f32 -1.442695, %v5891_v33  ;;  %10106 = vpow2.f32 %v8692_v13 }
0x3bf0   :  { %10108 = vpow2.f32 %v8691_v28 }
0x3bfb   :  { %v10107_v46 = vpop.eup %10106 }
0x3bfc   :  { %v5906_v38 = vadd.f32 1.0, %v10107_v46 }
0x3bfd   :  { %v10109_v47 = vpop.eup %10108 }
0x3bfe   :  { %v5905_v3 = vadd.f32 1.0, %v10109_v47  ;;  %10110 = vrcp.f32 %v5906_v38 }
0x3c00   :  { %10112 = vrcp.f32 %v5905_v3 }
0x3c0b   :  { %v10111_v49 = vpop.eup %10110 }
0x3c0c   :  { %v5934_v1 = vsub.f32 1.0, %v10111_v49  ;;  %v5946_v22 = vmul.f32 %v10111_v49, %v11939_v59 }
0x3c0d   :  { %v10113_v48 = vpop.eup %10112 }
0x3c0e   :  { %v5933_v34 = vsub.f32 1.0, %v10113_v48  ;;  %v5945_v17 = vmul.f32 %v10113_v48, %v11942_v4 }
0x3c5e   :  { %v5916_v2 = vpop.permute.xlu0 %5915 }
0x3c5f   :  { %v5920_v50 = vmul.f32 %v10111_v49, %v5916_v2 }
0x3c60   :  { %v5914_v30 = vpop.permute.xlu1 %5913 }
0x3c61   :  { %v5919_v39 = vmul.f32 %v10113_v48, %v5914_v30  ;;  %5925 = vrot.lane.b32.xlu0 %v5920_v50, %s10486_s6 }
0x3c63   :  { %5923 = vrot.lane.b32.xlu1 %v5919_v39, %s10486_s6 }
0x3cd3   :  { %v5926_v51 = vpop.permute.xlu0 %5925 }
0x3cd4   :  { %v5930_v52 = vadd.f32 %v5926_v51, %v5896_v31 }
0x3cd5   :  { %v5924_v24 = vpop.permute.xlu1 %5923 }
0x3cd6   :  { %10114 = vtanh.f32 %v5930_v52  ;;  %v5929_v0 = vadd.f32 %v5924_v24, %v5891_v33 }
0x3cd8   :  { %10116 = vtanh.f32 %v5929_v0 }
0x3ce3   :  { %v10115_v25 = vpop.eup %10114 }
0x3ce4   :  { %5939 = vrot.lane.b32.xlu0 %v10115_v25, %s10491_s28 }
0x3ce5   :  { %v10117_v9 = vpop.eup %10116 }
0x3ce6   :  { %5937 = vrot.lane.b32.xlu1 %v10117_v9, %s10491_s28 }
0x3d56   :  { %v5940_v5 = vpop.permute.xlu0 %5939 }
0x3d57   :  { %v5944_v10 = vmul.f32 %v5940_v5, %v5934_v1 }
0x3d58   :  { %v5938_v32 = vpop.permute.xlu1 %5937 }
0x3d59   :  { %v5948_v27 = vadd.f32 %v5946_v22, %v5944_v10  ;;  %v5943_v54 = vmul.f32 %v5938_v32, %v5933_v34 }
0x3d5b   :  { %v5947_v26 = vadd.f32 %v5945_v17, %v5943_v54  ;;  %5958 = vrot.lane.b32.xlu0 %v5948_v27, %s10491_s28 }
0x3d5d   :  { %5956 = vrot.lane.b32.xlu1 %v5947_v26, %s10491_s28 }
0x3dcd   :  { %v5959_v59 = vpop.permute.xlu0 %5958 }
0x3dce   :  { %9671 = vmatpush3.msra.mxu1 %v5959_v59 }
0x3dcf   :  { %9672 = vmatprep.subr.mxu1 %v12507_v63  ;;  %v5957_v4 = vpop.permute.xlu1 %5956 }
0x3dd0   :  { %9673 = vmatpush3.msra.mxu1 %v5957_v4 }
0x3dd1   :  { %9675 = vmatmul.mubr.msk.f32.vlgmr.msra.gmra.mxu1 %vm283_vm0, %v10266_v12  ;;  %9677 = vmatprep.subr.mxu1 %v8697_v14 }
0x3dd2   :  { %9678 = vmatpush3.msra.mxu1 %v8697_v14  ;;  %9681 = vmatprep.mubr.msk.f32.mxu1 %vm283_vm0, %v5957_v4 }
0x3dd3   :  { %9679 = vmatprep.subr.mxu1 %v8696_v21 }
0x3dd4   :  { %9680 = vmatpush3.msra.mxu1 %v8696_v21 }
0x3dd5   :  { %9682 = vmatmul.mubr.msk.f32.vlgmr.msra.gmra.mxu1 %vm283_vm0, %v5959_v59  ;;  %9684 = vmatprep.subr.mxu1 %v8703_v29 }
0x3dd6   :  { %9685 = vmatpush3.msra.mxu1 %v8703_v29  ;;  %9688 = vmatprep.mubr.msk.f32.mxu1 %vm283_vm0, %v5957_v4  ;;  %v12550_v29 = vmov 1  }
0x3dd7   :  { %9686 = vmatprep.subr.mxu1 %v8702_v18 }
0x3dd8   :  { %9687 = vmatpush3.msra.mxu1 %v8702_v18  ;;  %v8712_v18 = vld [vmem:[%s12525_s10 + $0xd8] sm:$0xff] }
0x3dd9   :  { %9689 = vmatmul.mubr.msk.f32.vlgmr.msra.gmra.mxu1 %vm283_vm0, %v5959_v59  ;;  %9698 = vmatprep.subr.mxu1 %v12507_v63 }
0x3dda   :  { %9706 = vmatprep.mubr.msk.f32.mxu1 %vm10492_vm5, %v12507_v63  ;;  %9699 = vmatpush3.msra.mxu1 %v8712_v18 }
0x3ddb   :  { %9700 = vmatprep.subr.mxu1 %v12507_v63 }
0x3e91   :  { %v12035_v35 = vpop.f32.mrf.mxu1 }
0x3e92   :  { %v6200_v36 = vmax.f32 %v12035_v35, 0.0 }
0x3e93   :  { %v9676_v61 = vpop.f32.mrf.mxu1 }
0x3e94   :  { %9696 = vmatmul.mubr.msk.f32.vlgmr.msra.gmra.mxu0 %vm283_vm0, %v6200_v36  ;;  %v8711_v36 = vld [vmem:[%s12525_s10 + $0xd0] sm:$0xff]  ;;  %v8710_v61 = vld [vmem:[%s12525_s10 + $0xc8] sm:$0xff] }
0x3e95   :  { %9710 = vmatpush3.msra.mxu0 %v12010_v16  ;;  %9713 = vmatprep.mubr.msk.f32.mxu0 %vm10492_vm5, %v12507_v63  ;;  %v12045_v58 = vpop.f32.mrf.mxu1 }
0x3e96   :  { %9711 = vmatprep.subr.mxu0 %v12507_v63  ;;  %9701 = vmatpush3.msra.mxu1 %v8711_v36 }
0x3e97   :  { %9712 = vmatpush3.msra.mxu0 %v12031_v6  ;;  %v12047_v11 = vpop.f32.mrf.mxu1  ;;  %9702 = vmatprep.subr.mxu1 %v12507_v63 }
0x3e98   :  { %9716 = vmatprep.subr.mxu0 %v12507_v63  ;;  %9703 = vmatpush3.msra.mxu1 %v8710_v61 }
0x3e99   :  { %v12051_v15 = vpop.f32.mrf.mxu1  ;;  %9704 = vmatprep.subr.mxu1 %v12507_v63 }
0x3e9b   :  { %v12056_v23 = vpop.f32.mrf.mxu1 }
0x3f54   :  { %v6276_v7 = vpop.f32.mrf.mxu0 }
0x3f55   :  { %v6277_v42 = vadd.f32 %v12049_v37, %v6276_v7  ;;  %v8709_v7 = vld [vmem:[%s12525_s10 + $0xc0] sm:$0xff] }
0x3f56   :  { %v9697_v8 = vpop.f32.mrf.mxu0  ;;  %9705 = vmatpush3.msra.mxu1 %v8709_v7 }
0x3f57   :  { %v6283_v40 = vrot.slane %v6277_v42, %v12548_v60  ;;  %v6323_v44 = vrot.slane %v6277_v42, %v12549_v41  ;;  %9727 = vmatprep.subr.mxu1 %v12507_v63  ;;  %v8699_v42 = vld [vmem:[%s12526_s11 + $0x1] ss:$0 sm:$0xff] }
0x3f58   :  { %v12081_v8 = vadd.f32 %v12045_v58, %v8699_v42 }
0x3f59   :  { %v6284_v53 = vadd.f32 %v6283_v40, %v12056_v23  ;;  %v6324_v45 = vadd.f32 %v12051_v15, %v6323_v44 }
0x3f5b   :  { %vm6285_vm3 = vcmp.gt.f32.partialorder %v6284_v53, 0.0  ;;  %v6286_v55 = vmul.f32 0.01, %v6284_v53  ;;  %vm6325_vm8 = vcmp.gt.f32.partialorder %v6324_v45, 0.0  ;;  %v6326_v19 = vmul.f32 0.01, %v6324_v45 }
0x3f5d   :  { %v6287_v20 = vsel %vm6285_vm3, %v6284_v53, %v6286_v55  ;;  %v6327_v56 = vsel %vm6325_vm8, %v6324_v45, %v6326_v19 }
0x3f5e   :  { %v6288_v57 = vsel %vm2467_vm6, %v6287_v20, -inf  ;;  %v6328_v62 = vsel %vm2467_vm6, %v6327_v56, -inf }
0x3f5f   :  { %v6289_v31 = vrot.slane %v6288_v57, 4  ;;  %v6329_v43 = vrot.slane %v6328_v62, 4 }
0x3f61   :  { %v6290_v33 = vmax.f32 %v6288_v57, %v6289_v31  ;;  %v6330_v13 = vmax.f32 %v6328_v62, %v6329_v43 }
0x3f63   :  { %v6291_v28 = vrot.slane %v6290_v33, 2  ;;  %v6331_v46 = vrot.slane %v6330_v13, 2 }
0x3f65   :  { %v6292_v47 = vmax.f32 %v6290_v33, %v6291_v28  ;;  %v6332_v38 = vmax.f32 %v6330_v13, %v6331_v46 }
0x3f67   :  { %v6293_v3 = vrot.slane %v6292_v47, 1  ;;  %v6333_v49 = vrot.slane %v6332_v38, 1 }
0x3f69   :  { %v6294_v2 = vmax.f32 %v6292_v47, %v6293_v3  ;;  %v6334_v50 = vmax.f32 %v6332_v38, %v6333_v49 }
0x3f6b   :  { %v6295_v48 = vsub.f32 %v6287_v20, %v6294_v2  ;;  %v6335_v30 = vsub.f32 %v6327_v56, %v6334_v50 }
0x3f6d   :  { %v6296_v39 = vmul.f32 1.442695, %v6295_v48  ;;  %v6336_v51 = vmul.f32 1.442695, %v6335_v30 }
0x3f6f   :  { %10118 = vpow2.f32 %v6296_v39  ;;  %v8714_v39 = vld [vmem:[%s12527_s15 + $0x6] ss:$0 sm:$0xff] }
0x3f70   :  { %10120 = vpow2.f32 %v6336_v51 }
0x3f7c   :  { %v10119_v52 = vpop.eup %10118 }
0x3f7d   :  { %v10121_v24 = vpop.eup %10120  ;;  %v6298_v0 = vsel %vm2467_vm6, %v10119_v52, 0.0 }
0x3f7e   :  { %v6338_v25 = vsel %vm2467_vm6, %v10121_v24, 0.0  ;;  %v6299_v9 = vrot.slane %v6298_v0, 4 }
0x3f7f   :  { %v6339_v1 = vrot.slane %v6338_v25, 4 }
0x3f80   :  { %v6300_v5 = vadd.f32 %v6299_v9, %v6298_v0 }
0x3f81   :  { %v6340_v22 = vadd.f32 %v6339_v1, %v6338_v25 }
0x3f82   :  { %v6301_v10 = vrot.slane %v6300_v5, 2 }
0x3f83   :  { %v6341_v34 = vrot.slane %v6340_v22, 2 }
0x3f84   :  { %v6302_v32 = vadd.f32 %v6301_v10, %v6300_v5 }
0x3f85   :  { %v6342_v27 = vadd.f32 %v6341_v34, %v6340_v22 }
0x3f86   :  { %v6303_v17 = vrot.slane %v6302_v32, 1 }
0x3f87   :  { %v6343_v54 = vrot.slane %v6342_v27, 1 }
0x3f88   :  { %v6304_v26 = vadd.f32 %v6303_v17, %v6302_v32 }
0x3f89   :  { %v6344_v59 = vadd.f32 %v6343_v54, %v6342_v27 }
0x3f8a   :  { %10122 = vrcp.f32 %v6304_v26 }
0x3f8b   :  { %10124 = vrcp.f32 %v6344_v59 }
0x3f97   :  { %v10123_v14 = vpop.eup %10122 }
0x3f98   :  { %v10125_v4 = vpop.eup %10124  ;;  %v6306_v21 = vmul.f32 %v10123_v14, %v10119_v52 }
0x3f99   :  { %v6346_v12 = vmul.f32 %v10125_v4, %v10121_v24 }
0x3f9a   :  { %6309 = vperm.xlu0 %9944, %v6306_v21  }
0x3f9b   :  { %6349 = vperm.xlu1 %9945, %v6346_v12  }
0x3f9e   :  { %9946 = vset.pattern.permute.xlu0 %v12550_v29 }
0x3f9f   :  { %6375 = vrot.lane.b32.xlu1 %v12035_v35, %s10479_s22  ;;  %v12078_v35 = vadd.f32 %v8699_v42, %v12047_v11  ;;  %s12569_s22 = sld [smem:[#allocation40_spill]] }
0x3fa0   :  { %9947 = vset.pattern.permute.xlu1 %v12550_v29 }
0x4015   :  { %v6310_v40 = vpop.permute.xlu0 %6309 }
0x4016   :  { %v6350_v44 = vpop.permute.xlu1 %6349  ;;  %v6312_v53 = vmul.f32 %v6310_v40, %v12078_v35 }
0x4017   :  { %v6352_v45 = vmul.f32 %v6350_v44, %v12081_v8 }
0x4018   :  { %v6313_v55 = vsel %vm283_vm0, %v6312_v53, 0.0 }
0x4019   :  { %v6353_v19 = vsel %vm283_vm0, %v6352_v45, 0.0  ;;  %v6314_v20 = vrot.slane %v6313_v55, 4 }
0x401a   :  { %v6354_v56 = vrot.slane %v6353_v19, 4  ;;  %v6376_v50 = vpop.permute.xlu1 %6375 }
0x401b   :  { %v6315_v57 = vadd.f32 %v6314_v20, %v6313_v55 }
0x401c   :  { %v6355_v62 = vadd.f32 %v6354_v56, %v6353_v19 }
0x401d   :  { %v6316_v31 = vrot.slane %v6315_v57, 2 }
0x401e   :  { %v6356_v11 = vrot.slane %v6355_v62, 2 }
0x401f   :  { %v6317_v43 = vadd.f32 %v6316_v31, %v6315_v57 }
0x4020   :  { %v6357_v33 = vadd.f32 %v6356_v11, %v6355_v62 }
0x4021   :  { %v6318_v58 = vrot.slane %v6317_v43, 1 }
0x4022   :  { %v6358_v13 = vrot.slane %v6357_v33, 1 }
0x4023   :  { %v6319_v28 = vadd.f32 %v6318_v58, %v6317_v43 }
0x4024   :  { %v6359_v46 = vadd.f32 %v6358_v13, %v6357_v33 }
0x4026   :  { %v6360_v47 = vsel %vm2540_vm9, %v6319_v28, %v6359_v46 }
0x4027   :  { %v6362_v38 = vmin.f32 %v6360_v47, 0.0  ;;  %vm6361_vm6 = vcmp.gt.f32.partialorder %v6360_v47, 0.0 }
0x4029   :  { %v6363_v3 = vmul.f32 1.442695, %v6362_v38 }
0x402b   :  { %10126 = vpow2.f32 %v6363_v3 }
0x4038   :  { %v10127_v49 = vpop.eup %10126 }
0x4039   :  { %v8708_v2 = vadd.f32 -1.0, %v10127_v49 }
0x403b   :  { %v6366_v48 = vsel %vm6361_vm6, %v6360_v47, %v8708_v2 }
0x403c   :  { %v6378_v30 = vsel %vm283_vm0, %v6366_v48, %v6376_v50 }
0x403d   :  { %9707 = vmatmul.mubr.msk.f32.vlgmr.msra.gmra.mxu1 %vm905_vm4, %v6378_v30 }
0x403e   :  { %9728 = vmatpush3.msra.mxu1 %v12010_v16  ;;  %9731 = vmatprep.mubr.msk.f32.mxu1 %vm10492_vm5, %v12507_v63 }
0x403f   :  { %9729 = vmatprep.subr.mxu1 %v12507_v63 }
0x4040   :  { %9730 = vmatpush3.msra.mxu1 %v12031_v6 }
0x4041   :  { %9734 = vmatprep.subr.mxu1 %v12507_v63 }
0x40fd   :  { %v6454_v51 = vpop.f32.mrf.mxu1 }
0x40fe   :  { %v6455_v52 = vadd.f32 %v8714_v39, %v6454_v51 }
0x40ff   :  { %v9708_v24 = vpop.f32.mrf.mxu1 }
0x4100   :  { %6465 = vrot.lane.b32.xlu0 %v6455_v52, %s10490_s23  ;;  %v8716_v0 = vmul.f32 -1.442695, %v6455_v52 }
0x4102   :  { %10128 = vpow2.f32 %v8716_v0 }
0x410f   :  { %v10129_v25 = vpop.eup %10128 }
0x4110   :  { %v6461_v9 = vadd.f32 1.0, %v10129_v25 }
0x4112   :  { %10130 = vrcp.f32 %v6461_v9 }
0x411f   :  { %v10131_v1 = vpop.eup %10130 }
0x4120   :  { %v6475_v27 = vsub.f32 1.0, %v10131_v1  ;;  %v6481_v54 = vmul.f32 %v10131_v1, %v6376_v50 }
0x4172   :  { %v6466_v5 = vpop.permute.xlu0 %6465 }
0x4173   :  { %v6468_v22 = vmul.f32 %v10131_v1, %v6466_v5 }
0x4175   :  { %6470 = vrot.lane.b32.xlu1 %v6468_v22, %s10486_s6 }
0x41e7   :  { %v6471_v10 = vpop.permute.xlu1 %6470 }
0x41e8   :  { %v6473_v34 = vadd.f32 %v6471_v10, %v6455_v52 }
0x41ea   :  { %10132 = vtanh.f32 %v6473_v34 }
0x41f7   :  { %v10133_v32 = vpop.eup %10132 }
0x41f8   :  { %6477 = vrot.lane.b32.xlu0 %v10133_v32, %s10491_s28 }
0x426a   :  { %v6478_v17 = vpop.permute.xlu0 %6477 }
0x426b   :  { %v6480_v26 = vmul.f32 %v6478_v17, %v6475_v27 }
0x426d   :  { %v6482_v59 = vadd.f32 %v6481_v54, %v6480_v26  ;;  %v12551_v26 = vmov 2  }
0x426f   :  { %v12100_v14 = vmax.f32 %v6482_v59, 0.0  ;;  %v8722_v59 = vld [vmem:[%s12525_s10 + $0xf8] sm:$0xff] }
0x4271   :  { %v6484_v4 = vmax.f32 %v12100_v14, 0.0 }
0x4273   :  { %6486 = vrot.lane.b32.xlu1 %v6484_v4, %s10491_s28  ;;  %v8721_v4 = vld [vmem:[%s12525_s10 + $0xf0] sm:$0xff] }
0x42e5   :  { %v6487_v21 = vpop.permute.xlu1 %6486 }
0x42e6   :  { %9714 = vmatmul.mubr.msk.f32.vlgmr.msra.gmra.mxu0 %vm283_vm0, %v6487_v21  ;;  %v8720_v21 = vld [vmem:[%s12525_s10 + $0xe8] sm:$0xff] }
0x42e7   :  { %9724 = vmatprep.mubr.msk.f32.mxu0 %vm10492_vm5, %v12507_v63  ;;  %9717 = vmatpush3.msra.mxu0 %v8722_v59 }
0x42e8   :  { %9718 = vmatprep.subr.mxu0 %v12507_v63 }
0x42e9   :  { %9719 = vmatpush3.msra.mxu0 %v8721_v4 }
0x42ea   :  { %9720 = vmatprep.subr.mxu0 %v12507_v63 }
0x42eb   :  { %9721 = vmatpush3.msra.mxu0 %v8720_v21 }
0x42ec   :  { %9722 = vmatprep.subr.mxu0 %v12507_v63 }
0x43a6   :  { %v6556_v12 = vpop.f32.mrf.mxu0 }
0x43a7   :  { %v6557_v29 = vadd.f32 %v12049_v37, %v6556_v12 }
0x43a8   :  { %v9715_v18 = vpop.f32.mrf.mxu0 }
0x43a9   :  { %v6563_v36 = vrot.slane %v6557_v29, %v12548_v60  ;;  %v6603_v61 = vrot.slane %v6557_v29, %v12549_v41 }
0x43ab   :  { %v6564_v7 = vadd.f32 %v6563_v36, %v12056_v23  ;;  %v6604_v42 = vadd.f32 %v12051_v15, %v6603_v61 }
0x43ad   :  { %vm6565_vm3 = vcmp.gt.f32.partialorder %v6564_v7, 0.0  ;;  %v6566_v40 = vmul.f32 0.01, %v6564_v7  ;;  %vm6605_vm8 = vcmp.gt.f32.partialorder %v6604_v42, 0.0  ;;  %v6606_v44 = vmul.f32 0.01, %v6604_v42 }
0x43af   :  { %v6567_v53 = vsel %vm6565_vm3, %v6564_v7, %v6566_v40  ;;  %v6607_v45 = vsel %vm6605_vm8, %v6604_v42, %v6606_v44 }
0x43b0   :  { %v6568_v55 = vsel %vm2747_vm11, %v6567_v53, -inf  ;;  %v6608_v19 = vsel %vm2747_vm11, %v6607_v45, -inf }
0x43b1   :  { %v6569_v20 = vrot.slane %v6568_v55, 4  ;;  %v6609_v56 = vrot.slane %v6608_v19, 4 }
0x43b3   :  { %v6570_v57 = vmax.f32 %v6568_v55, %v6569_v20  ;;  %v6610_v62 = vmax.f32 %v6608_v19, %v6609_v56 }
0x43b5   :  { %v6571_v31 = vrot.slane %v6570_v57, 2  ;;  %v6611_v11 = vrot.slane %v6610_v62, 2 }
0x43b7   :  { %v6572_v43 = vmax.f32 %v6570_v57, %v6571_v31  ;;  %v6612_v33 = vmax.f32 %v6610_v62, %v6611_v11 }
0x43b9   :  { %v6573_v58 = vrot.slane %v6572_v43, 1  ;;  %v6613_v13 = vrot.slane %v6612_v33, 1 }
0x43bb   :  { %v6574_v28 = vmax.f32 %v6572_v43, %v6573_v58  ;;  %v6614_v46 = vmax.f32 %v6612_v33, %v6613_v13  ;;  %v8719_v58 = vld [vmem:[%s12525_s10 + $0xe0] sm:$0xff] }
0x43bc   :  { %9723 = vmatpush3.msra.mxu0 %v8719_v58 }
0x43bd   :  { %v6575_v47 = vsub.f32 %v6567_v53, %v6574_v28  ;;  %v6615_v38 = vsub.f32 %v6607_v45, %v6614_v46  ;;  %9745 = vmatprep.subr.mxu0 %v12507_v63 }
0x43bf   :  { %v6576_v3 = vmul.f32 1.442695, %v6575_v47  ;;  %v6616_v49 = vmul.f32 1.442695, %v6615_v38 }
0x43c1   :  { %10134 = vpow2.f32 %v6576_v3  ;;  %v8724_v3 = vld [vmem:[%s12527_s15 + $0x7] ss:$0 sm:$0xff] }
0x43c2   :  { %10136 = vpow2.f32 %v6616_v49 }
0x43ce   :  { %v10135_v2 = vpop.eup %10134 }
0x43cf   :  { %v10137_v50 = vpop.eup %10136  ;;  %v6578_v48 = vsel %vm2747_vm11, %v10135_v2, 0.0 }
0x43d0   :  { %v6618_v30 = vsel %vm2747_vm11, %v10137_v50, 0.0  ;;  %v6579_v39 = vrot.slane %v6578_v48, 4 }
0x43d1   :  { %v6619_v51 = vrot.slane %v6618_v30, 4 }
0x43d2   :  { %v6580_v52 = vadd.f32 %v6579_v39, %v6578_v48 }
0x43d3   :  { %v6620_v24 = vadd.f32 %v6619_v51, %v6618_v30 }
0x43d4   :  { %v6581_v0 = vrot.slane %v6580_v52, 2 }
0x43d5   :  { %v6621_v25 = vrot.slane %v6620_v24, 2 }
0x43d6   :  { %v6582_v9 = vadd.f32 %v6581_v0, %v6580_v52 }
0x43d7   :  { %v6622_v1 = vadd.f32 %v6621_v25, %v6620_v24 }
0x43d8   :  { %v6583_v5 = vrot.slane %v6582_v9, 1 }
0x43d9   :  { %v6623_v22 = vrot.slane %v6622_v1, 1 }
0x43da   :  { %v6584_v10 = vadd.f32 %v6583_v5, %v6582_v9 }
0x43db   :  { %v6624_v34 = vadd.f32 %v6623_v22, %v6622_v1 }
0x43dc   :  { %10138 = vrcp.f32 %v6584_v10 }
0x43dd   :  { %10140 = vrcp.f32 %v6624_v34 }
0x43e9   :  { %v10139_v32 = vpop.eup %10138 }
0x43ea   :  { %v10141_v27 = vpop.eup %10140  ;;  %v6586_v17 = vmul.f32 %v10139_v32, %v10135_v2 }
0x43eb   :  { %v6626_v54 = vmul.f32 %v10141_v27, %v10137_v50 }
0x43ec   :  { %6589 = vperm.xlu0 %9946, %v6586_v17  }
0x43ed   :  { %6629 = vperm.xlu1 %9947, %v6626_v54  }
0x43f0   :  { %9948 = vset.pattern.permute.xlu0 %v12551_v26 }
0x43f1   :  { %9949 = vset.pattern.permute.xlu1 %v12551_v26 }
0x4467   :  { %v6590_v12 = vpop.permute.xlu0 %6589 }
0x4468   :  { %v6630_v29 = vpop.permute.xlu1 %6629  ;;  %v6592_v18 = vmul.f32 %v6590_v12, %v12078_v35 }
0x4469   :  { %v6632_v36 = vmul.f32 %v6630_v29, %v12081_v8 }
0x446a   :  { %v6593_v61 = vsel %vm2773_vm14, %v6592_v18, 0.0 }
0x446b   :  { %v6633_v7 = vsel %vm2773_vm14, %v6632_v36, 0.0  ;;  %v6594_v42 = vrot.slane %v6593_v61, 4 }
0x446c   :  { %v6634_v40 = vrot.slane %v6633_v7, 4 }
0x446d   :  { %v6595_v44 = vadd.f32 %v6594_v42, %v6593_v61 }
0x446e   :  { %v6635_v53 = vadd.f32 %v6634_v40, %v6633_v7 }
0x446f   :  { %v6596_v45 = vrot.slane %v6595_v44, 2 }
0x4470   :  { %v6636_v55 = vrot.slane %v6635_v53, 2 }
0x4471   :  { %v6597_v19 = vadd.f32 %v6596_v45, %v6595_v44 }
0x4472   :  { %v6637_v20 = vadd.f32 %v6636_v55, %v6635_v53 }
0x4473   :  { %v6598_v56 = vrot.slane %v6597_v19, 1 }
0x4474   :  { %v6638_v57 = vrot.slane %v6637_v20, 1 }
0x4475   :  { %v6599_v62 = vadd.f32 %v6598_v56, %v6597_v19 }
0x4476   :  { %v6639_v31 = vadd.f32 %v6638_v57, %v6637_v20 }
0x4478   :  { %v6640_v11 = vsel %vm2540_vm9, %v6599_v62, %v6639_v31 }
0x4479   :  { %v6642_v43 = vmin.f32 %v6640_v11, 0.0  ;;  %vm6641_vm11 = vcmp.gt.f32.partialorder %v6640_v11, 0.0 }
0x447b   :  { %v6643_v33 = vmul.f32 1.442695, %v6642_v43 }
0x447d   :  { %10142 = vpow2.f32 %v6643_v33 }
0x448a   :  { %v10143_v13 = vpop.eup %10142 }
0x448b   :  { %v8718_v28 = vadd.f32 -1.0, %v10143_v13 }
0x448d   :  { %v6646_v46 = vsel %vm6641_vm11, %v6640_v11, %v8718_v28 }
0x448e   :  { %6655 = vrot.lane.b32.xlu1 %v6646_v46, %s10491_s28 }
0x4500   :  { %v6656_v47 = vpop.permute.xlu1 %6655 }
0x4501   :  { %v6658_v38 = vsel %vm283_vm0, %v6656_v47, %v12100_v14 }
0x4502   :  { %9725 = vmatmul.mubr.msk.f32.vlgmr.msra.gmra.mxu0 %vm905_vm4, %v6658_v38 }
0x4503   :  { %9746 = vmatpush3.msra.mxu0 %v12010_v16  ;;  %9749 = vmatprep.mubr.msk.f32.mxu0 %vm10492_vm5, %v12507_v63 }
0x4504   :  { %9747 = vmatprep.subr.mxu0 %v12507_v63 }
0x4505   :  { %9748 = vmatpush3.msra.mxu0 %v12031_v6 }
0x4506   :  { %9752 = vmatprep.subr.mxu0 %v12507_v63 }
0x45c2   :  { %v6734_v49 = vpop.f32.mrf.mxu0 }
0x45c3   :  { %v6735_v2 = vadd.f32 %v8724_v3, %v6734_v49 }
0x45c4   :  { %v9726_v50 = vpop.f32.mrf.mxu0 }
0x45c5   :  { %6745 = vrot.lane.b32.xlu0 %v6735_v2, %s10490_s23  ;;  %v8726_v48 = vmul.f32 -1.442695, %v6735_v2 }
0x45c7   :  { %10144 = vpow2.f32 %v8726_v48 }
0x45d4   :  { %v10145_v30 = vpop.eup %10144 }
0x45d5   :  { %v6741_v39 = vadd.f32 1.0, %v10145_v30 }
0x45d7   :  { %10146 = vrcp.f32 %v6741_v39 }
0x45e4   :  { %v10147_v51 = vpop.eup %10146 }
0x45e5   :  { %v6755_v1 = vsub.f32 1.0, %v10147_v51  ;;  %v6761_v22 = vmul.f32 %v10147_v51, %v12100_v14 }
0x4637   :  { %v6746_v52 = vpop.permute.xlu0 %6745 }
0x4638   :  { %v6748_v24 = vmul.f32 %v10147_v51, %v6746_v52 }
0x463a   :  { %6750 = vrot.lane.b32.xlu1 %v6748_v24, %s10486_s6 }
0x46ac   :  { %v6751_v0 = vpop.permute.xlu1 %6750 }
0x46ad   :  { %v6753_v25 = vadd.f32 %v6751_v0, %v6735_v2 }
0x46af   :  { %10148 = vtanh.f32 %v6753_v25 }
0x46bc   :  { %v10149_v9 = vpop.eup %10148 }
0x46bd   :  { %6757 = vrot.lane.b32.xlu0 %v10149_v9, %s10491_s28 }
0x472f   :  { %v6758_v5 = vpop.permute.xlu0 %6757 }
0x4730   :  { %v6760_v10 = vmul.f32 %v6758_v5, %v6755_v1 }
0x4732   :  { %v6762_v34 = vadd.f32 %v6761_v22, %v6760_v10  ;;  %v12552_v10 = vmov 3  }
0x4734   :  { %v12146_v32 = vmax.f32 %v6762_v34, 0.0  ;;  %v8732_v34 = vld [vmem:[%s12525_s10 + $0x118] sm:$0xff] }
0x4736   :  { %v6764_v27 = vmax.f32 %v12146_v32, 0.0 }
0x4738   :  { %6766 = vrot.lane.b32.xlu1 %v6764_v27, %s10491_s28  ;;  %v8731_v27 = vld [vmem:[%s12525_s10 + $0x110] sm:$0xff] }
0x47aa   :  { %v6767_v17 = vpop.permute.xlu1 %6766 }
0x47ab   :  { %9732 = vmatmul.mubr.msk.f32.vlgmr.msra.gmra.mxu1 %vm283_vm0, %v6767_v17  ;;  %v8730_v17 = vld [vmem:[%s12525_s10 + $0x108] sm:$0xff] }
0x47ac   :  { %9742 = vmatprep.mubr.msk.f32.mxu1 %vm10492_vm5, %v12507_v63  ;;  %9735 = vmatpush3.msra.mxu1 %v8732_v34 }
0x47ad   :  { %9736 = vmatprep.subr.mxu1 %v12507_v63 }
0x47ae   :  { %9737 = vmatpush3.msra.mxu1 %v8731_v27 }
0x47af   :  { %9738 = vmatprep.subr.mxu1 %v12507_v63 }
0x47b0   :  { %9739 = vmatpush3.msra.mxu1 %v8730_v17 }
0x47b1   :  { %9740 = vmatprep.subr.mxu1 %v12507_v63 }
0x486b   :  { %v6836_v54 = vpop.f32.mrf.mxu1 }
0x486c   :  { %v6837_v26 = vadd.f32 %v12049_v37, %v6836_v54 }
0x486d   :  { %v9733_v59 = vpop.f32.mrf.mxu1 }
0x486e   :  { %v6843_v14 = vrot.slane %v6837_v26, %v12548_v60  ;;  %v6883_v4 = vrot.slane %v6837_v26, %v12549_v41 }
0x4870   :  { %v6844_v21 = vadd.f32 %v6843_v14, %v12056_v23  ;;  %v6884_v12 = vadd.f32 %v12051_v15, %v6883_v4 }
0x4872   :  { %vm6845_vm14 = vcmp.gt.f32.partialorder %v6844_v21, 0.0  ;;  %v6846_v29 = vmul.f32 0.01, %v6844_v21  ;;  %vm6885_vm6 = vcmp.gt.f32.partialorder %v6884_v12, 0.0  ;;  %v6886_v18 = vmul.f32 0.01, %v6884_v12 }
0x4874   :  { %v6847_v36 = vsel %vm6845_vm14, %v6844_v21, %v6846_v29  ;;  %v6887_v61 = vsel %vm6885_vm6, %v6884_v12, %v6886_v18 }
0x4875   :  { %v6848_v7 = vsel %vm3029_vm7, %v6847_v36, -inf  ;;  %v6888_v42 = vsel %vm3029_vm7, %v6887_v61, -inf }
0x4876   :  { %v6849_v40 = vrot.slane %v6848_v7, 4  ;;  %v6889_v44 = vrot.slane %v6888_v42, 4 }
0x4878   :  { %v6850_v53 = vmax.f32 %v6848_v7, %v6849_v40  ;;  %v6890_v45 = vmax.f32 %v6888_v42, %v6889_v44 }
0x487a   :  { %v6851_v55 = vrot.slane %v6850_v53, 2  ;;  %v6891_v19 = vrot.slane %v6890_v45, 2 }
0x487c   :  { %v6852_v20 = vmax.f32 %v6850_v53, %v6851_v55  ;;  %v6892_v56 = vmax.f32 %v6890_v45, %v6891_v19 }
0x487e   :  { %v6853_v57 = vrot.slane %v6852_v20, 1  ;;  %v6893_v62 = vrot.slane %v6892_v56, 1 }
0x4880   :  { %v6854_v31 = vmax.f32 %v6852_v20, %v6853_v57  ;;  %v6894_v11 = vmax.f32 %v6892_v56, %v6893_v62  ;;  %v8729_v57 = vld [vmem:[%s12525_s10 + $0x100] sm:$0xff] }
0x4881   :  { %9741 = vmatpush3.msra.mxu1 %v8729_v57 }
0x4882   :  { %v6855_v43 = vsub.f32 %v6847_v36, %v6854_v31  ;;  %v6895_v33 = vsub.f32 %v6887_v61, %v6894_v11  ;;  %9763 = vmatprep.subr.mxu1 %v12507_v63 }
0x4884   :  { %v6856_v58 = vmul.f32 1.442695, %v6855_v43  ;;  %v6896_v13 = vmul.f32 1.442695, %v6895_v33 }
0x4886   :  { %10150 = vpow2.f32 %v6856_v58  ;;  %v8734_v58 = vld [vmem:[%s12527_s15 + $0x8] ss:$0 sm:$0xff] }
0x4887   :  { %10152 = vpow2.f32 %v6896_v13 }
0x4893   :  { %v10151_v28 = vpop.eup %10150 }
0x4894   :  { %v10153_v46 = vpop.eup %10152  ;;  %v6858_v47 = vsel %vm3029_vm7, %v10151_v28, 0.0 }
0x4895   :  { %v6898_v38 = vsel %vm3029_vm7, %v10153_v46, 0.0  ;;  %v6859_v3 = vrot.slane %v6858_v47, 4 }
0x4896   :  { %v6899_v49 = vrot.slane %v6898_v38, 4 }
0x4897   :  { %v6860_v2 = vadd.f32 %v6859_v3, %v6858_v47 }
0x4898   :  { %v6900_v50 = vadd.f32 %v6899_v49, %v6898_v38 }
0x4899   :  { %v6861_v48 = vrot.slane %v6860_v2, 2 }
0x489a   :  { %v6901_v30 = vrot.slane %v6900_v50, 2 }
0x489b   :  { %v6862_v39 = vadd.f32 %v6861_v48, %v6860_v2 }
0x489c   :  { %v6902_v51 = vadd.f32 %v6901_v30, %v6900_v50 }
0x489d   :  { %v6863_v52 = vrot.slane %v6862_v39, 1 }
0x489e   :  { %v6903_v24 = vrot.slane %v6902_v51, 1 }
0x489f   :  { %v6864_v0 = vadd.f32 %v6863_v52, %v6862_v39 }
0x48a0   :  { %v6904_v25 = vadd.f32 %v6903_v24, %v6902_v51 }
0x48a1   :  { %10154 = vrcp.f32 %v6864_v0 }
0x48a2   :  { %10156 = vrcp.f32 %v6904_v25 }
0x48ae   :  { %v10155_v9 = vpop.eup %10154 }
0x48af   :  { %v10157_v1 = vpop.eup %10156  ;;  %v6866_v5 = vmul.f32 %v10155_v9, %v10151_v28 }
0x48b0   :  { %v6906_v22 = vmul.f32 %v10157_v1, %v10153_v46 }
0x48b1   :  { %6869 = vperm.xlu0 %9948, %v6866_v5  }
0x48b2   :  { %6909 = vperm.xlu1 %9949, %v6906_v22  }
0x48b5   :  { %9950 = vset.pattern.permute.xlu0 %v12552_v10 }
0x48b6   :  { %9951 = vset.pattern.permute.xlu1 %v12552_v10 }
0x492c   :  { %v6870_v54 = vpop.permute.xlu0 %6869 }
0x492d   :  { %v6910_v26 = vpop.permute.xlu1 %6909  ;;  %v6872_v59 = vmul.f32 %v6870_v54, %v12078_v35 }
0x492e   :  { %v6912_v14 = vmul.f32 %v6910_v26, %v12081_v8 }
0x492f   :  { %v6873_v4 = vsel %vm3055_vm12, %v6872_v59, 0.0 }
0x4930   :  { %v6913_v21 = vsel %vm3055_vm12, %v6912_v14, 0.0  ;;  %v6874_v12 = vrot.slane %v6873_v4, 4 }
0x4931   :  { %v6914_v29 = vrot.slane %v6913_v21, 4 }
0x4932   :  { %v6875_v18 = vadd.f32 %v6874_v12, %v6873_v4 }
0x4933   :  { %v6915_v36 = vadd.f32 %v6914_v29, %v6913_v21 }
0x4934   :  { %v6876_v61 = vrot.slane %v6875_v18, 2 }
0x4935   :  { %v6916_v7 = vrot.slane %v6915_v36, 2 }
0x4936   :  { %v6877_v42 = vadd.f32 %v6876_v61, %v6875_v18 }
0x4937   :  { %v6917_v40 = vadd.f32 %v6916_v7, %v6915_v36 }
0x4938   :  { %v6878_v44 = vrot.slane %v6877_v42, 1 }
0x4939   :  { %v6918_v53 = vrot.slane %v6917_v40, 1 }
0x493a   :  { %v6879_v45 = vadd.f32 %v6878_v44, %v6877_v42 }
0x493b   :  { %v6919_v55 = vadd.f32 %v6918_v53, %v6917_v40 }
0x493d   :  { %v6920_v19 = vsel %vm2540_vm9, %v6879_v45, %v6919_v55 }
0x493e   :  { %v6922_v20 = vmin.f32 %v6920_v19, 0.0  ;;  %vm6921_vm7 = vcmp.gt.f32.partialorder %v6920_v19, 0.0 }
0x4940   :  { %v6923_v56 = vmul.f32 1.442695, %v6922_v20 }
0x4942   :  { %10158 = vpow2.f32 %v6923_v56 }
0x494f   :  { %v10159_v62 = vpop.eup %10158 }
0x4950   :  { %v8728_v31 = vadd.f32 -1.0, %v10159_v62 }
0x4952   :  { %v6926_v11 = vsel %vm6921_vm7, %v6920_v19, %v8728_v31 }
0x4953   :  { %6935 = vrot.lane.b32.xlu1 %v6926_v11, %s10496_s16 }
0x49c5   :  { %v6936_v43 = vpop.permute.xlu1 %6935 }
0x49c6   :  { %v6938_v33 = vsel %vm283_vm0, %v6936_v43, %v12146_v32 }
0x49c7   :  { %9743 = vmatmul.mubr.msk.f32.vlgmr.msra.gmra.mxu1 %vm905_vm4, %v6938_v33 }
0x49c8   :  { %9764 = vmatpush3.msra.mxu1 %v12010_v16  ;;  %9767 = vmatprep.mubr.msk.f32.mxu1 %vm10492_vm5, %v12507_v63 }
0x49c9   :  { %9765 = vmatprep.subr.mxu1 %v12507_v63 }
0x49ca   :  { %9766 = vmatpush3.msra.mxu1 %v12031_v6 }
0x49cb   :  { %9770 = vmatprep.subr.mxu1 %v12507_v63 }
0x4a87   :  { %v7014_v13 = vpop.f32.mrf.mxu1 }
0x4a88   :  { %v7015_v28 = vadd.f32 %v8734_v58, %v7014_v13 }
0x4a89   :  { %v9744_v46 = vpop.f32.mrf.mxu1 }
0x4a8a   :  { %7025 = vrot.lane.b32.xlu0 %v7015_v28, %s10490_s23  ;;  %v8736_v47 = vmul.f32 -1.442695, %v7015_v28 }
0x4a8c   :  { %10160 = vpow2.f32 %v8736_v47 }
0x4a99   :  { %v10161_v38 = vpop.eup %10160 }
0x4a9a   :  { %v7021_v3 = vadd.f32 1.0, %v10161_v38 }
0x4a9c   :  { %10162 = vrcp.f32 %v7021_v3 }
0x4aa9   :  { %v10163_v16 = vpop.eup %10162 }
0x4aaa   :  { %v7035_v30 = vsub.f32 1.0, %v10163_v16  ;;  %v7041_v51 = vmul.f32 %v10163_v16, %v12146_v32 }
0x4afc   :  { %v7026_v49 = vpop.permute.xlu0 %7025 }
0x4afd   :  { %v7028_v2 = vmul.f32 %v10163_v16, %v7026_v49 }
0x4aff   :  { %7030 = vrot.lane.b32.xlu1 %v7028_v2, %s10486_s6 }
0x4b71   :  { %v7031_v50 = vpop.permute.xlu1 %7030 }
0x4b72   :  { %v7033_v6 = vadd.f32 %v7031_v50, %v7015_v28 }
0x4b74   :  { %10164 = vtanh.f32 %v7033_v6 }
0x4b81   :  { %v10165_v48 = vpop.eup %10164 }
0x4b82   :  { %7037 = vrot.lane.b32.xlu0 %v10165_v48, %s10491_s28 }
0x4bf4   :  { %v7038_v39 = vpop.permute.xlu0 %7037 }
0x4bf5   :  { %v7040_v52 = vmul.f32 %v7038_v39, %v7035_v30  ;;  %v12553_v30 = vmov 4   ;;  %v8742_v39 = vld [vmem:[%s12525_s10 + $0x138] sm:$0xff] }
0x4bf7   :  { %v7042_v24 = vadd.f32 %v7041_v51, %v7040_v52  ;;  %v8741_v51 = vld [vmem:[%s12525_s10 + $0x130] sm:$0xff]  ;;  %v8740_v52 = vld [vmem:[%s12525_s10 + $0x128] sm:$0xff] }
0x4bf9   :  { %v12192_v0 = vmax.f32 %v7042_v24, 0.0 }
0x4bfb   :  { %v7044_v25 = vmax.f32 %v12192_v0, 0.0 }
0x4bfd   :  { %7046 = vrot.lane.b32.xlu1 %v7044_v25, %s10491_s28 }
0x4c6f   :  { %v7047_v9 = vpop.permute.xlu1 %7046 }
0x4c70   :  { %9750 = vmatmul.mubr.msk.f32.vlgmr.msra.gmra.mxu0 %vm283_vm0, %v7047_v9 }
0x4c71   :  { %9760 = vmatprep.mubr.msk.f32.mxu0 %vm10492_vm5, %v12507_v63  ;;  %9753 = vmatpush3.msra.mxu0 %v8742_v39 }
0x4c72   :  { %9754 = vmatprep.subr.mxu0 %v12507_v63 }
0x4c73   :  { %9755 = vmatpush3.msra.mxu0 %v8741_v51 }
0x4c74   :  { %9756 = vmatprep.subr.mxu0 %v12507_v63 }
0x4c75   :  { %9757 = vmatpush3.msra.mxu0 %v8740_v52 }
0x4c76   :  { %9758 = vmatprep.subr.mxu0 %v12507_v63 }
0x4d30   :  { %v7116_v1 = vpop.f32.mrf.mxu0 }
0x4d31   :  { %v7117_v5 = vadd.f32 %v12049_v37, %v7116_v1 }
0x4d32   :  { %v9751_v22 = vpop.f32.mrf.mxu0 }
0x4d33   :  { %v7123_v32 = vrot.slane %v7117_v5, %v12548_v60  ;;  %v7163_v10 = vrot.slane %v7117_v5, %v12549_v41 }
0x4d35   :  { %v7124_v34 = vadd.f32 %v7123_v32, %v12056_v23  ;;  %v7164_v27 = vadd.f32 %v12051_v15, %v7163_v10 }
0x4d37   :  { %vm7125_vm12 = vcmp.gt.f32.partialorder %v7124_v34, 0.0  ;;  %v7126_v17 = vmul.f32 0.01, %v7124_v34  ;;  %vm7165_vm3 = vcmp.gt.f32.partialorder %v7164_v27, 0.0  ;;  %v7166_v54 = vmul.f32 0.01, %v7164_v27 }
0x4d39   :  { %v7127_v26 = vsel %vm7125_vm12, %v7124_v34, %v7126_v17  ;;  %v7167_v59 = vsel %vm7165_vm3, %v7164_v27, %v7166_v54 }
0x4d3a   :  { %v7128_v14 = vsel %vm3311_vm15, %v7127_v26, -inf  ;;  %v7168_v4 = vsel %vm3311_vm15, %v7167_v59, -inf }
0x4d3b   :  { %v7129_v37 = vrot.slane %v7128_v14, 4  ;;  %v7169_v21 = vrot.slane %v7168_v4, 4 }
0x4d3d   :  { %v7130_v12 = vmax.f32 %v7128_v14, %v7129_v37  ;;  %v7170_v29 = vmax.f32 %v7168_v4, %v7169_v21 }
0x4d3f   :  { %v7131_v18 = vrot.slane %v7130_v12, 2  ;;  %v7171_v36 = vrot.slane %v7170_v29, 2 }
0x4d41   :  { %v7132_v61 = vmax.f32 %v7130_v12, %v7131_v18  ;;  %v7172_v7 = vmax.f32 %v7170_v29, %v7171_v36  ;;  %v8739_v36 = vld [vmem:[%s12525_s10 + $0x120] sm:$0xff] }
0x4d42   :  { %9759 = vmatpush3.msra.mxu0 %v8739_v36 }
0x4d43   :  { %v7133_v42 = vrot.slane %v7132_v61, 1  ;;  %v7173_v40 = vrot.slane %v7172_v7, 1  ;;  %9781 = vmatprep.subr.mxu0 %v12507_v63 }
0x4d45   :  { %v7134_v44 = vmax.f32 %v7132_v61, %v7133_v42  ;;  %v7174_v53 = vmax.f32 %v7172_v7, %v7173_v40 }
0x4d47   :  { %v7135_v45 = vsub.f32 %v7127_v26, %v7134_v44  ;;  %v7175_v55 = vsub.f32 %v7167_v59, %v7174_v53  ;;  %v10267_v53 = vld [vmem:[%s12522_s19 + $0x18] sm:$0xff] }
0x4d49   :  { %v7136_v19 = vmul.f32 1.442695, %v7135_v45  ;;  %v7176_v20 = vmul.f32 1.442695, %v7175_v55  ;;  %v10268_v45 = vld [vmem:[%s12522_s19 + $0x10] sm:$0xff] }
0x4d4a   :  { %v8744_v55 = vld [vmem:[%s12527_s15 + $0x9] ss:$0 sm:$0xff] }
0x4d4b   :  { %10166 = vpow2.f32 %v7136_v19 }
0x4d4c   :  { %10168 = vpow2.f32 %v7176_v20 }
0x4d58   :  { %v10167_v56 = vpop.eup %10166 }
0x4d59   :  { %v10169_v57 = vpop.eup %10168  ;;  %v7138_v62 = vsel %vm3311_vm15, %v10167_v56, 0.0 }
0x4d5a   :  { %v7139_v31 = vrot.slane %v7138_v62, 4  ;;  %v7178_v11 = vsel %vm3311_vm15, %v10169_v57, 0.0  ;;  %vm12554_vm15 = vcmask 523648  }
0x4d5b   :  { %v7179_v43 = vrot.slane %v7178_v11, 4  ;;  %vm12555_vm8 = vmmov %vm12554_vm15 }
0x4d5c   :  { %v7140_v33 = vadd.f32 %v7139_v31, %v7138_v62 }
0x4d5d   :  { %v7180_v58 = vadd.f32 %v7179_v43, %v7178_v11 }
0x4d5e   :  { %v7141_v13 = vrot.slane %v7140_v33, 2 }
0x4d5f   :  { %v7181_v28 = vrot.slane %v7180_v58, 2 }
0x4d60   :  { %v7142_v46 = vadd.f32 %v7141_v13, %v7140_v33 }
0x4d61   :  { %v7182_v47 = vadd.f32 %v7181_v28, %v7180_v58 }
0x4d62   :  { %v7143_v38 = vrot.slane %v7142_v46, 1 }
0x4d63   :  { %v7183_v3 = vrot.slane %v7182_v47, 1 }
0x4d64   :  { %v7144_v16 = vadd.f32 %v7143_v38, %v7142_v46 }
0x4d65   :  { %v7184_v49 = vadd.f32 %v7183_v3, %v7182_v47 }
0x4d66   :  { %10170 = vrcp.f32 %v7144_v16 }
0x4d67   :  { %10172 = vrcp.f32 %v7184_v49 }
0x4d73   :  { %v10171_v2 = vpop.eup %10170 }
0x4d74   :  { %v10173_v50 = vpop.eup %10172  ;;  %v7146_v6 = vmul.f32 %v10171_v2, %v10167_v56 }
0x4d75   :  { %v7186_v48 = vmul.f32 %v10173_v50, %v10169_v57 }
0x4d76   :  { %7149 = vperm.xlu0 %9950, %v7146_v6  }
0x4d77   :  { %7189 = vperm.xlu1 %9951, %v7186_v48   ;;  %v12245_v48 = vld [vmem:[#allocation10 + $0x1] ss:$0 sm:$0xff] }
0x4d7a   :  { %9952 = vset.pattern.permute.xlu0 %v12553_v30 }
0x4d7b   :  { %9953 = vset.pattern.permute.xlu1 %v12553_v30 }
0x4df1   :  { %v7150_v24 = vpop.permute.xlu0 %7149 }
0x4df2   :  { %v7190_v25 = vpop.permute.xlu1 %7189  ;;  %v7152_v9 = vmul.f32 %v7150_v24, %v12078_v35 }
0x4df3   :  { %v7192_v1 = vmul.f32 %v7190_v25, %v12081_v8 }
0x4df4   :  { %v7153_v5 = vsel %vm12554_vm15, %v7152_v9, 0.0 }
0x4df5   :  { %v7193_v22 = vsel %vm12555_vm8, %v7192_v1, 0.0  ;;  %v7154_v32 = vrot.slane %v7153_v5, 4 }
0x4df6   :  { %v7194_v10 = vrot.slane %v7193_v22, 4 }
0x4df7   :  { %v7155_v34 = vadd.f32 %v7154_v32, %v7153_v5 }
0x4df8   :  { %v7195_v27 = vadd.f32 %v7194_v10, %v7193_v22 }
0x4df9   :  { %v7156_v17 = vrot.slane %v7155_v34, 2 }
0x4dfa   :  { %v7196_v54 = vrot.slane %v7195_v27, 2 }
0x4dfb   :  { %v7157_v26 = vadd.f32 %v7156_v17, %v7155_v34 }
0x4dfc   :  { %v7197_v59 = vadd.f32 %v7196_v54, %v7195_v27 }
0x4dfd   :  { %v7158_v14 = vrot.slane %v7157_v26, 1 }
0x4dfe   :  { %v7198_v4 = vrot.slane %v7197_v59, 1 }
0x4dff   :  { %v7159_v37 = vadd.f32 %v7158_v14, %v7157_v26 }
0x4e00   :  { %v7199_v21 = vadd.f32 %v7198_v4, %v7197_v59 }
0x4e02   :  { %v7200_v12 = vsel %vm2540_vm9, %v7159_v37, %v7199_v21 }
0x4e03   :  { %v7202_v29 = vmin.f32 %v7200_v12, 0.0  ;;  %vm7201_vm11 = vcmp.gt.f32.partialorder %v7200_v12, 0.0 }
0x4e05   :  { %v7203_v18 = vmul.f32 1.442695, %v7202_v29 }
0x4e07   :  { %10174 = vpow2.f32 %v7203_v18 }
0x4e14   :  { %v10175_v61 = vpop.eup %10174 }
0x4e15   :  { %v8738_v7 = vadd.f32 -1.0, %v10175_v61 }
0x4e17   :  { %v7206_v42 = vsel %vm7201_vm11, %v7200_v12, %v8738_v7 }
0x4e18   :  { %7215 = vrot.lane.b32.xlu1 %v7206_v42, %s10490_s23 }
0x4e8a   :  { %v7216_v40 = vpop.permute.xlu1 %7215 }
0x4e8b   :  { %v7218_v44 = vsel %vm283_vm0, %v7216_v40, %v12192_v0 }
0x4e8c   :  { %9761 = vmatmul.mubr.msk.f32.vlgmr.msra.gmra.mxu0 %vm905_vm4, %v7218_v44 }
0x4e8d   :  { %9782 = vmatpush3.msra.mxu0 %v10267_v53  ;;  %9785 = vmatprep.mubr.msk.f32.mxu0 %vm10492_vm5, %v12507_v63 }
0x4e8e   :  { %9783 = vmatprep.subr.mxu0 %v12507_v63 }
0x4e8f   :  { %9784 = vmatpush3.msra.mxu0 %v10268_v45 }
0x4e90   :  { %9788 = vmatprep.subr.mxu0 %v12507_v63 }
0x4f4c   :  { %v7294_v19 = vpop.f32.mrf.mxu0 }
0x4f4d   :  { %v7295_v20 = vadd.f32 %v8744_v55, %v7294_v19 }
0x4f4e   :  { %v9762_v56 = vpop.f32.mrf.mxu0 }
0x4f4f   :  { %7305 = vrot.lane.b32.xlu0 %v7295_v20, %s10490_s23  ;;  %v8746_v57 = vmul.f32 -1.442695, %v7295_v20 }
0x4f51   :  { %10176 = vpow2.f32 %v8746_v57 }
0x4f5e   :  { %v10177_v62 = vpop.eup %10176 }
0x4f5f   :  { %v7301_v31 = vadd.f32 1.0, %v10177_v62 }
0x4f61   :  { %10178 = vrcp.f32 %v7301_v31 }
0x4f6e   :  { %v10179_v11 = vpop.eup %10178 }
0x4f6f   :  { %v7315_v46 = vsub.f32 1.0, %v10179_v11  ;;  %v7321_v38 = vmul.f32 %v10179_v11, %v12192_v0 }
0x4fc1   :  { %v7306_v43 = vpop.permute.xlu0 %7305 }
0x4fc2   :  { %v7308_v33 = vmul.f32 %v10179_v11, %v7306_v43 }
0x4fc4   :  { %7310 = vrot.lane.b32.xlu1 %v7308_v33, %s10486_s6 }
0x5036   :  { %v7311_v58 = vpop.permute.xlu1 %7310 }
0x5037   :  { %v7313_v13 = vadd.f32 %v7311_v58, %v7295_v20 }
0x5039   :  { %10180 = vtanh.f32 %v7313_v13 }
0x5046   :  { %v10181_v28 = vpop.eup %10180 }
0x5047   :  { %7317 = vrot.lane.b32.xlu0 %v10181_v28, %s10491_s28 }
0x50b9   :  { %v7318_v47 = vpop.permute.xlu0 %7317 }
0x50ba   :  { %v7320_v3 = vmul.f32 %v7318_v47, %v7315_v46  ;;  %v12556_v47 = vmov 5  }
0x50bc   :  { %v7322_v16 = vadd.f32 %v7321_v38, %v7320_v3  ;;  %v8752_v38 = vld [vmem:[%s12525_s10 + $0x158] sm:$0xff]  ;;  %v8751_v3 = vld [vmem:[%s12525_s10 + $0x150] sm:$0xff] }
0x50be   :  { %v12238_v49 = vmax.f32 %v7322_v16, 0.0  ;;  %v8750_v16 = vld [vmem:[%s12525_s10 + $0x148] sm:$0xff] }
0x50c0   :  { %v7324_v2 = vmax.f32 %v12238_v49, 0.0 }
0x50c2   :  { %7326 = vrot.lane.b32.xlu1 %v7324_v2, %s10491_s28 }
0x5134   :  { %v7327_v50 = vpop.permute.xlu1 %7326 }
0x5135   :  { %9768 = vmatmul.mubr.msk.f32.vlgmr.msra.gmra.mxu1 %vm283_vm0, %v7327_v50 }
0x5136   :  { %9778 = vmatprep.mubr.msk.f32.mxu1 %vm10492_vm5, %v12507_v63  ;;  %9771 = vmatpush3.msra.mxu1 %v8752_v38 }
0x5137   :  { %9772 = vmatprep.subr.mxu1 %v12507_v63 }
0x5138   :  { %9773 = vmatpush3.msra.mxu1 %v8751_v3 }
0x5139   :  { %9774 = vmatprep.subr.mxu1 %v12507_v63 }
0x513a   :  { %9775 = vmatpush3.msra.mxu1 %v8750_v16 }
0x513b   :  { %9776 = vmatprep.subr.mxu1 %v12507_v63 }
0x51f5   :  { %v7396_v6 = vpop.f32.mrf.mxu1 }
0x51f6   :  { %v7397_v30 = vadd.f32 %v12245_v48, %v7396_v6 }
0x51f7   :  { %v9769_v0 = vpop.f32.mrf.mxu1 }
0x51f8   :  { %v7403_v39 = vrot.slane %v7397_v30, %v12548_v60  ;;  %v7443_v51 = vrot.slane %v7397_v30, %v12549_v41 }
0x51fa   :  { %v7404_v52 = vadd.f32 %v7403_v39, %v12056_v23  ;;  %v7444_v24 = vadd.f32 %v12051_v15, %v7443_v51 }
0x51fc   :  { %vm7405_vm14 = vcmp.gt.f32.partialorder %v7404_v52, 0.0  ;;  %v7406_v25 = vmul.f32 0.01, %v7404_v52  ;;  %vm7445_vm6 = vcmp.gt.f32.partialorder %v7444_v24, 0.0  ;;  %v7446_v9 = vmul.f32 0.01, %v7444_v24 }
0x51fe   :  { %v7407_v1 = vsel %vm7405_vm14, %v7404_v52, %v7406_v25  ;;  %v7447_v5 = vsel %vm7445_vm6, %v7444_v24, %v7446_v9 }
0x51ff   :  { %v7408_v22 = vsel %vm3593_vm10, %v7407_v1, -inf  ;;  %v7448_v32 = vsel %vm3593_vm10, %v7447_v5, -inf }
0x5200   :  { %v7409_v10 = vrot.slane %v7408_v22, 4  ;;  %v7449_v34 = vrot.slane %v7448_v32, 4 }
0x5202   :  { %v7410_v27 = vmax.f32 %v7408_v22, %v7409_v10  ;;  %v7450_v17 = vmax.f32 %v7448_v32, %v7449_v34 }
0x5204   :  { %v7411_v54 = vrot.slane %v7410_v27, 2  ;;  %v7451_v26 = vrot.slane %v7450_v17, 2 }
0x5206   :  { %v7412_v59 = vmax.f32 %v7410_v27, %v7411_v54  ;;  %v7452_v14 = vmax.f32 %v7450_v17, %v7451_v26 }
0x5208   :  { %v7413_v4 = vrot.slane %v7412_v59, 1  ;;  %v7453_v37 = vrot.slane %v7452_v14, 1 }
0x520a   :  { %v7414_v21 = vmax.f32 %v7412_v59, %v7413_v4  ;;  %v7454_v12 = vmax.f32 %v7452_v14, %v7453_v37  ;;  %v8749_v59 = vld [vmem:[%s12525_s10 + $0x140] sm:$0xff] }
0x520b   :  { %9777 = vmatpush3.msra.mxu1 %v8749_v59 }
0x520c   :  { %v7415_v29 = vsub.f32 %v7407_v1, %v7414_v21  ;;  %v7455_v18 = vsub.f32 %v7447_v5, %v7454_v12  ;;  %9799 = vmatprep.subr.mxu1 %v12507_v63 }
0x520e   :  { %v7416_v36 = vmul.f32 1.442695, %v7415_v29  ;;  %v7456_v61 = vmul.f32 1.442695, %v7455_v18  ;;  %v8754_v29 = vld [vmem:[%s12527_s15 + $0xa] ss:$0 sm:$0xff] }
0x5210   :  { %10182 = vpow2.f32 %v7416_v36 }
0x5211   :  { %10184 = vpow2.f32 %v7456_v61 }
0x521d   :  { %v10183_v7 = vpop.eup %10182 }
0x521e   :  { %v10185_v42 = vpop.eup %10184  ;;  %v7418_v40 = vsel %vm3593_vm10, %v10183_v7, 0.0 }
0x521f   :  { %v7419_v44 = vrot.slane %v7418_v40, 4  ;;  %v7458_v53 = vsel %vm3593_vm10, %v10185_v42, 0.0  ;;  %vm12557_vm10 = vcmask 654848  }
0x5220   :  { %v7459_v45 = vrot.slane %v7458_v53, 4  ;;  %vm12558_vm7 = vmmov %vm12557_vm10 }
0x5221   :  { %v7420_v55 = vadd.f32 %v7419_v44, %v7418_v40 }
0x5222   :  { %v7460_v19 = vadd.f32 %v7459_v45, %v7458_v53 }
0x5223   :  { %v7421_v20 = vrot.slane %v7420_v55, 2 }
0x5224   :  { %v7461_v56 = vrot.slane %v7460_v19, 2 }
0x5225   :  { %v7422_v57 = vadd.f32 %v7421_v20, %v7420_v55 }
0x5226   :  { %v7462_v62 = vadd.f32 %v7461_v56, %v7460_v19 }
0x5227   :  { %v7423_v31 = vrot.slane %v7422_v57, 1 }
0x5228   :  { %v7463_v11 = vrot.slane %v7462_v62, 1 }
0x5229   :  { %v7424_v43 = vadd.f32 %v7423_v31, %v7422_v57 }
0x522a   :  { %v7464_v33 = vadd.f32 %v7463_v11, %v7462_v62 }
0x522b   :  { %10186 = vrcp.f32 %v7424_v43 }
0x522c   :  { %10188 = vrcp.f32 %v7464_v33 }
0x5238   :  { %v10187_v58 = vpop.eup %10186 }
0x5239   :  { %v10189_v13 = vpop.eup %10188  ;;  %v7426_v28 = vmul.f32 %v10187_v58, %v10183_v7 }
0x523a   :  { %v7466_v46 = vmul.f32 %v10189_v13, %v10185_v42 }
0x523b   :  { %7429 = vperm.xlu0 %9952, %v7426_v28  }
0x523c   :  { %7469 = vperm.xlu1 %9953, %v7466_v46  }
0x523f   :  { %9954 = vset.pattern.permute.xlu0 %v12556_v47 }
0x5240   :  { %9955 = vset.pattern.permute.xlu1 %v12556_v47 }
0x52b6   :  { %v7430_v2 = vpop.permute.xlu0 %7429 }
0x52b7   :  { %v7470_v50 = vpop.permute.xlu1 %7469  ;;  %v7432_v6 = vmul.f32 %v7430_v2, %v12078_v35 }
0x52b8   :  { %v7472_v30 = vmul.f32 %v7470_v50, %v12081_v8 }
0x52b9   :  { %v7433_v0 = vsel %vm12557_vm10, %v7432_v6, 0.0 }
0x52ba   :  { %v7473_v39 = vsel %vm12558_vm7, %v7472_v30, 0.0  ;;  %v7434_v51 = vrot.slane %v7433_v0, 4 }
0x52bb   :  { %v7474_v52 = vrot.slane %v7473_v39, 4 }
0x52bc   :  { %v7435_v24 = vadd.f32 %v7434_v51, %v7433_v0 }
0x52bd   :  { %v7475_v25 = vadd.f32 %v7474_v52, %v7473_v39 }
0x52be   :  { %v7436_v9 = vrot.slane %v7435_v24, 2 }
0x52bf   :  { %v7476_v1 = vrot.slane %v7475_v25, 2 }
0x52c0   :  { %v7437_v5 = vadd.f32 %v7436_v9, %v7435_v24 }
0x52c1   :  { %v7477_v22 = vadd.f32 %v7476_v1, %v7475_v25 }
0x52c2   :  { %v7438_v32 = vrot.slane %v7437_v5, 1 }
0x52c3   :  { %v7478_v10 = vrot.slane %v7477_v22, 1 }
0x52c4   :  { %v7439_v34 = vadd.f32 %v7438_v32, %v7437_v5 }
0x52c5   :  { %v7479_v27 = vadd.f32 %v7478_v10, %v7477_v22 }
0x52c7   :  { %v7480_v17 = vsel %vm2540_vm9, %v7439_v34, %v7479_v27 }
0x52c8   :  { %v7482_v54 = vmin.f32 %v7480_v17, 0.0  ;;  %vm7481_vm12 = vcmp.gt.f32.partialorder %v7480_v17, 0.0 }
0x52ca   :  { %v7483_v26 = vmul.f32 1.442695, %v7482_v54 }
0x52cc   :  { %10190 = vpow2.f32 %v7483_v26 }
0x52d9   :  { %v10191_v14 = vpop.eup %10190 }
0x52da   :  { %v8748_v4 = vadd.f32 -1.0, %v10191_v14 }
0x52dc   :  { %v7486_v37 = vsel %vm7481_vm12, %v7480_v17, %v8748_v4 }
0x52dd   :  { %7495 = vrot.lane.b32.xlu1 %v7486_v37, %s10499_s18 }
0x534f   :  { %v7496_v21 = vpop.permute.xlu1 %7495 }
0x5350   :  { %v7498_v12 = vsel %vm283_vm0, %v7496_v21, %v12238_v49 }
0x5351   :  { %9779 = vmatmul.mubr.msk.f32.vlgmr.msra.gmra.mxu1 %vm905_vm4, %v7498_v12 }
0x5352   :  { %9807 = vmatprep.mubr.msk.f32.mxu1 %vm10492_vm5, %v12507_v63 }
0x5411   :  { %v7574_v18 = vpop.f32.mrf.mxu1 }
0x5412   :  { %v7575_v36 = vadd.f32 %v8754_v29, %v7574_v18 }
0x5413   :  { %v9780_v61 = vpop.f32.mrf.mxu1 }
0x5414   :  { %7585 = vrot.lane.b32.xlu0 %v7575_v36, %s10490_s23  ;;  %v8756_v7 = vmul.f32 -1.442695, %v7575_v36 }
0x5416   :  { %10192 = vpow2.f32 %v8756_v7 }
0x5423   :  { %v10193_v42 = vpop.eup %10192 }
0x5424   :  { %v7581_v40 = vadd.f32 1.0, %v10193_v42 }
0x5426   :  { %10194 = vrcp.f32 %v7581_v40 }
0x5433   :  { %v10195_v44 = vpop.eup %10194 }
0x5434   :  { %v7595_v56 = vsub.f32 1.0, %v10195_v44  ;;  %v7601_v62 = vmul.f32 %v10195_v44, %v12238_v49 }
0x5486   :  { %v7586_v53 = vpop.permute.xlu0 %7585 }
0x5487   :  { %v7588_v45 = vmul.f32 %v10195_v44, %v7586_v53  ;;  %v8608_v53 = vld [vmem:[%s12527_s15 + $0x5] ss:$0 sm:$0xff] }
0x5489   :  { %7590 = vrot.lane.b32.xlu1 %v7588_v45, %s10486_s6 }
0x54fb   :  { %v7591_v55 = vpop.permute.xlu1 %7590 }
0x54fc   :  { %v7593_v19 = vadd.f32 %v7591_v55, %v7575_v36  ;;  %v12559_v55 = vld [vmem:[#allocation43_spill] sm:$0xff] }
0x54fe   :  { %10196 = vtanh.f32 %v7593_v19  ;;  %v4044_v19 = vadd.f32 %v8608_v53, %v12559_v55  ;;  %v7896_v55 = vld [vmem:[%s12561_s9 + $0x8] sm:$0xff] }
0x550b   :  { %v10197_v20 = vpop.eup %10196 }
0x550c   :  { %7597 = vrot.lane.b32.xlu0 %v10197_v20, %s10491_s28  ;;  %v8610_v20 = vmul.f32 -1.442695, %v4044_v19 }
0x557e   :  { %v7598_v57 = vpop.permute.xlu0 %7597 }
0x557f   :  { %v7600_v31 = vmul.f32 %v7598_v57, %v7595_v56 }
0x5581   :  { %v7602_v11 = vadd.f32 %v7601_v62, %v7600_v31 }
0x5583   :  { %v12282_v43 = vmax.f32 %v7602_v11, 0.0 }
0x5585   :  { %v7604_v33 = vmax.f32 %v12282_v43, 0.0 }
0x5587   :  { %7606 = vrot.lane.b32.xlu1 %v7604_v33, %s10491_s28 }
0x55f9   :  { %v7607_v58 = vpop.permute.xlu1 %7606 }
0x55fa   :  { %9786 = vmatmul.mubr.msk.f32.vlgmr.msra.gmra.mxu0 %vm283_vm0, %v7607_v58 }
0x55fb   :  { %9796 = vmatprep.mubr.msk.f32.mxu0 %vm10492_vm5, %v12507_v63 }
0x56ba   :  { %v7676_v13 = vpop.f32.mrf.mxu0 }
0x56bb   :  { %v7677_v28 = vadd.f32 %v12245_v48, %v7676_v13 }
0x56bc   :  { %v9787_v46 = vpop.f32.mrf.mxu0 }
0x56bd   :  { %v7683_v49 = vrot.slane %v7677_v28, %v12548_v60  ;;  %v7723_v47 = vrot.slane %v7677_v28, %v12549_v41 }
0x56bf   :  { %v7684_v38 = vadd.f32 %v7683_v49, %v12056_v23  ;;  %v7724_v3 = vadd.f32 %v12051_v15, %v7723_v47 }
0x56c1   :  { %vm7685_vm3 = vcmp.gt.f32.partialorder %v7684_v38, 0.0  ;;  %v7686_v16 = vmul.f32 0.01, %v7684_v38  ;;  %vm7725_vm15 = vcmp.gt.f32.partialorder %v7724_v3, 0.0  ;;  %v7726_v2 = vmul.f32 0.01, %v7724_v3 }
0x56c3   :  { %v7687_v50 = vsel %vm7685_vm3, %v7684_v38, %v7686_v16  ;;  %v7727_v6 = vsel %vm7725_vm15, %v7724_v3, %v7726_v2 }
0x56c4   :  { %v7688_v30 = vsel %vm3875_vm1, %v7687_v50, -inf  ;;  %v7728_v0 = vsel %vm3875_vm1, %v7727_v6, -inf }
0x56c5   :  { %v7689_v48 = vrot.slane %v7688_v30, 4  ;;  %v7729_v39 = vrot.slane %v7728_v0, 4 }
0x56c7   :  { %v7690_v51 = vmax.f32 %v7688_v30, %v7689_v48  ;;  %v7730_v60 = vmax.f32 %v7728_v0, %v7729_v39  ;;  %v8761_v30 = vld [vmem:[%s12525_s10 + $0x170] sm:$0xff]  ;;  %v8760_v48 = vld [vmem:[%s12525_s10 + $0x168] sm:$0xff] }
0x56c9   :  { %v7691_v52 = vrot.slane %v7690_v51, 2  ;;  %v7731_v41 = vrot.slane %v7730_v60, 2 }
0x56cb   :  { %v7692_v24 = vmax.f32 %v7690_v51, %v7691_v52  ;;  %v7732_v23 = vmax.f32 %v7730_v60, %v7731_v41 }
0x56cd   :  { %v7693_v25 = vrot.slane %v7692_v24, 1  ;;  %v7733_v15 = vrot.slane %v7732_v23, 1 }
0x56cf   :  { %v7694_v9 = vmax.f32 %v7692_v24, %v7693_v25  ;;  %v7734_v1 = vmax.f32 %v7732_v23, %v7733_v15  ;;  %v8759_v23 = vld [vmem:[%s12525_s10 + $0x160] sm:$0xff] }
0x56d1   :  { %v7695_v5 = vsub.f32 %v7687_v50, %v7694_v9  ;;  %v7735_v22 = vsub.f32 %v7727_v6, %v7734_v1  ;;  %v8762_v6 = vld [vmem:[%s12525_s10 + $0x178] sm:$0xff] }
0x56d2   :  { %9789 = vmatpush3.msra.mxu0 %v8762_v6 }
0x56d3   :  { %v7696_v32 = vmul.f32 1.442695, %v7695_v5  ;;  %v7736_v10 = vmul.f32 1.442695, %v7735_v22  ;;  %9790 = vmatprep.subr.mxu0 %v12507_v63 }
0x56d4   :  { %9791 = vmatpush3.msra.mxu0 %v8761_v30  ;;  %v8234_v30 = vld [vmem:[%s12565_s29] sm:$0xff] }
0x56d5   :  { %10198 = vpow2.f32 %v7696_v32  ;;  %9792 = vmatprep.subr.mxu0 %v12507_v63 }
0x56d6   :  { %10200 = vpow2.f32 %v7736_v10  ;;  %9793 = vmatpush3.msra.mxu0 %v8760_v48  ;;  %v7900_v48 = vld [vmem:[%s12563_s17] sm:$0xff] }
0x56d7   :  { %9794 = vmatprep.subr.mxu0 %v12507_v63 }
0x56d8   :  { %9795 = vmatpush3.msra.mxu0 %v8759_v23  ;;  %v8073_v23 = vld [vmem:[%s12567_s8 + $0x10] sm:$0xff] }
0x56d9   :  { %9810 = vmatprep.subr.mxu0 %v12507_v63 }
0x56e2   :  { %v10199_v34 = vpop.eup %10198 }
0x56e3   :  { %v10201_v27 = vpop.eup %10200  ;;  %v7698_v17 = vsel %vm3875_vm1, %v10199_v34, 0.0 }
0x56e4   :  { %v7699_v54 = vrot.slane %v7698_v17, 4  ;;  %v7738_v26 = vsel %vm3875_vm1, %v10201_v27, 0.0 }
0x56e5   :  { %v7739_v59 = vrot.slane %v7738_v26, 4 }
0x56e6   :  { %v7700_v14 = vadd.f32 %v7699_v54, %v7698_v17  ;;  %v12560_v17 = vld [vmem:[#allocation41_spill] sm:$0xff] }
0x56e7   :  { %v7740_v4 = vadd.f32 %v7739_v59, %v7738_v26 }
0x56e8   :  { %v7701_v37 = vrot.slane %v7700_v14, 2 }
0x56e9   :  { %v7741_v21 = vrot.slane %v7740_v4, 2 }
0x56ea   :  { %v7702_v12 = vadd.f32 %v7701_v37, %v7700_v14 }
0x56eb   :  { %v7742_v29 = vadd.f32 %v7741_v21, %v7740_v4  ;;  %v8764_v4 = vld [vmem:[%s12527_s15 + $0xb] ss:$0 sm:$0xff] }
0x56ec   :  { %v7703_v18 = vrot.slane %v7702_v12, 1 }
0x56ed   :  { %v7743_v36 = vrot.slane %v7742_v29, 1 }
0x56ee   :  { %v7704_v61 = vadd.f32 %v7703_v18, %v7702_v12 }
0x56ef   :  { %v7744_v7 = vadd.f32 %v7743_v36, %v7742_v29 }
0x56f0   :  { %10202 = vrcp.f32 %v7704_v61 }
0x56f1   :  { %10204 = vrcp.f32 %v7744_v7 }
0x56f2   :  { %10206 = vpow2.f32 %v8610_v20 }
0x56fd   :  { %v10203_v42 = vpop.eup %10202 }
0x56fe   :  { %v10205_v40 = vpop.eup %10204  ;;  %v7706_v44 = vmul.f32 %v10203_v42, %v10199_v34 }
0x56ff   :  { %v7746_v45 = vmul.f32 %v10205_v40, %v10201_v27  ;;  %v10207_v56 = vpop.eup %10206  ;;  %v7898_v40 = vld [vmem:[%s12561_s9 + $0x18] sm:$0xff] }
0x5700   :  { %7709 = vperm.xlu0 %9954, %v7706_v44   ;;  %v4050_v57 = vadd.f32 1.0, %v10207_v56  ;;  %9800 = vmatpush3.msra.mxu1 %v7898_v40  ;;  %v7889_v56 = vld [vmem:[%s12562_s13] sm:$0x3] }
0x5701   :  { %7749 = vperm.xlu1 %9955, %v7746_v45   ;;  %9801 = vmatprep.subr.mxu1 %v12507_v63  ;;  %v7897_v45 = vld [vmem:[%s12561_s9 + $0x10] sm:$0xff] }
0x5702   :  { %10208 = vrcp.f32 %v4050_v57  ;;  %9802 = vmatpush3.msra.mxu1 %v7897_v45  ;;  %v7903_v57 = vld [vmem:[%s12563_s17 + $0x18] sm:$0xff] }
0x5703   :  { %9803 = vmatprep.subr.mxu1 %v12507_v63 }
0x5704   :  { %4054 = vrot.lane.b32.xlu0 %v4044_v19, %s10490_s23  ;;  %9804 = vmatpush3.msra.mxu1 %v7896_v55 }
0x5705   :  { %9805 = vmatprep.subr.mxu1 %v12507_v63 }
0x570f   :  { %v10209_v13 = vpop.eup %10208 }
0x5710   :  { %v4064_v34 = vsub.f32 1.0, %v10209_v13  ;;  %v4070_v54 = vmul.f32 %v10209_v13, %v12560_v17 }
0x577b   :  { %v7710_v62 = vpop.permute.xlu0 %7709 }
0x577c   :  { %v7750_v31 = vpop.permute.xlu1 %7749  ;;  %v7712_v11 = vmul.f32 %v7710_v62, %v12078_v35  ;;  %v7902_v62 = vld [vmem:[%s12563_s17 + $0x10] sm:$0xff] }
0x577d   :  { %v7752_v33 = vmul.f32 %v7750_v31, %v12081_v8 }
0x577e   :  { %v7713_v58 = vsel %vm3901_vm13, %v7712_v11, 0.0 }
0x577f   :  { %v7753_v28 = vsel %vm3901_vm13, %v7752_v33, 0.0  ;;  %v7714_v46 = vrot.slane %v7713_v58, 4  ;;  %v4055_v49 = vpop.permute.xlu0 %4054 }
0x5780   :  { %v7754_v47 = vrot.slane %v7753_v28, 4  ;;  %v4057_v38 = vmul.f32 %v10209_v13, %v4055_v49  ;;  %v8069_v49 = vld [vmem:[%s12564_s25 + $0x18] sm:$0xff] }
0x5781   :  { %v7715_v3 = vadd.f32 %v7714_v46, %v7713_v58 }
0x5782   :  { %v7755_v16 = vadd.f32 %v7754_v47, %v7753_v28  ;;  %4059 = vrot.lane.b32.xlu0 %v4057_v38, %s10486_s6  ;;  %v8068_v38 = vld [vmem:[%s12564_s25 + $0x10] sm:$0xff] }
0x5783   :  { %v7716_v2 = vrot.slane %v7715_v3, 2 }
0x5784   :  { %v7756_v50 = vrot.slane %v7755_v16, 2 }
0x5785   :  { %v7717_v35 = vadd.f32 %v7716_v2, %v7715_v3  ;;  %v8066_v3 = vld [vmem:[%s12564_s25] sm:$0xff]  ;;  %v8237_v2 = vld [vmem:[%s12565_s29 + $0x18] sm:$0xff] }
0x5786   :  { %v7757_v8 = vadd.f32 %v7756_v50, %v7755_v16  ;;  %v8238_v16 = vld [vmem:[%s12565_s29 + $0x20] sm:$0xf]  ;;  %v8236_v50 = vld [vmem:[%s12565_s29 + $0x10] sm:$0xff] }
0x5787   :  { %v7718_v0 = vrot.slane %v7717_v35, 1 }
0x5788   :  { %v7758_v39 = vrot.slane %v7757_v8, 1 }
0x5789   :  { %v7719_v51 = vadd.f32 %v7718_v0, %v7717_v35  ;;  %v8235_v35 = vld [vmem:[%s12565_s29 + $0x8] sm:$0xff] }
0x578a   :  { %v7759_v60 = vadd.f32 %v7758_v39, %v7757_v8  ;;  %v7901_v0 = vld [vmem:[%s12563_s17 + $0x8] sm:$0xff]  ;;  %v8767_v39 = vld [vmem:[%s12566_s3] ss:$0 sm:$0xff] }
0x578c   :  { %v7760_v52 = vsel %vm2540_vm9, %v7719_v51, %v7759_v60 }
0x578d   :  { %v7762_v41 = vmin.f32 %v7760_v52, 0.0  ;;  %vm7761_vm1 = vcmp.gt.f32.partialorder %v7760_v52, 0.0 }
0x578f   :  { %v7763_v24 = vmul.f32 1.442695, %v7762_v41 }
0x5791   :  { %10210 = vpow2.f32 %v7763_v24  ;;  %v8074_v24 = vld [vmem:[%s12567_s8 + $0x18] sm:$0xff] }
0x579e   :  { %v10211_v25 = vpop.eup %10210 }
0x579f   :  { %v8758_v15 = vadd.f32 -1.0, %v10211_v25  ;;  %v8771_v25 = vld [vmem:[%s12568_s24] ss:$0 sm:$0xff] }
0x57a1   :  { %v7766_v9 = vsel %vm7761_vm1, %v7760_v52, %v8758_v15  ;;  %v8072_v15 = vld [vmem:[%s12567_s8 + $0x8] sm:$0xff] }
0x57a2   :  { %7775 = vrot.lane.b32.xlu1 %v7766_v9, %s10501_s5 }
0x57f4   :  { %v4060_v1 = vpop.permute.xlu0 %4059 }
0x57f5   :  { %v4062_v5 = vadd.f32 %v4060_v1, %v4044_v19  ;;  %v7895_v19 = vld [vmem:[%s12561_s9] sm:$0xff] }
0x57f6   :  { %9806 = vmatpush3.msra.mxu1 %v7895_v19 }
0x57f7   :  { %10212 = vtanh.f32 %v4062_v5  ;;  %9821 = vmatprep.subr.mxu1 %v12507_v63  ;;  %v8071_v5 = vld [vmem:[%s12567_s8] sm:$0xff] }
0x5804   :  { %v10213_v22 = vpop.eup %10212 }
0x5805   :  { %4066 = vrot.lane.b32.xlu0 %v10213_v22, %s10491_s28 }
0x5814   :  { %v7776_v32 = vpop.permute.xlu1 %7775 }
0x5815   :  { %v7778_v10 = vsel %vm283_vm0, %v7776_v32, %v12282_v43 }
0x5816   :  { %9797 = vmatmul.mubr.msk.f32.vlgmr.msra.gmra.mxu0 %vm905_vm4, %v7778_v10  ;;  %v8243_v10 = vld [vmem:[%s12569_s22 + $0x18] sm:$0xff] }
0x5817   :  { %9818 = vmatprep.mubr.msk.f32.mxu0 %vm10492_vm5, %v12507_v63  ;;  %9811 = vmatpush3.msra.mxu0 %v7903_v57 }
0x5818   :  { %9812 = vmatprep.subr.mxu0 %v12507_v63 }
0x5819   :  { %9813 = vmatpush3.msra.mxu0 %v7902_v62 }
0x581a   :  { %9814 = vmatprep.subr.mxu0 %v12507_v63 }
0x581b   :  { %9815 = vmatpush3.msra.mxu0 %v7901_v0 }
0x581c   :  { %9816 = vmatprep.subr.mxu0 %v12507_v63 }
0x581d   :  { %9817 = vmatpush3.msra.mxu0 %v7900_v48 }
0x581e   :  { %9832 = vmatprep.subr.mxu0 %v12507_v63 }
0x5877   :  { %v4067_v27 = vpop.permute.xlu0 %4066 }
0x5878   :  { %v4069_v26 = vmul.f32 %v4067_v27, %v4064_v34  ;;  %v8242_v34 = vld [vmem:[%s12569_s22 + $0x10] sm:$0xff]  ;;  %v8241_v27 = vld [vmem:[%s12569_s22 + $0x8] sm:$0xff] }
0x587a   :  { %v4071_v59 = vadd.f32 %v4070_v54, %v4069_v26  ;;  %v8240_v54 = vld [vmem:[%s12569_s22] sm:$0xff] }
0x587c   :  { %v4072_v14 = vmax.f32 %v4071_v59, 0.0 }
0x587e   :  { %7885 = vrot.lane.b32.xlu0 %v4072_v14, %s10491_s28 }
0x58d6   :  { %v7854_v37 = vpop.f32.mrf.mxu0 }
0x58d7   :  { %v7855_v21 = vadd.f32 %v8764_v4, %v7854_v37  ;;  %v8769_v37 = vld [vmem:[%s12571_s0] ss:$0 sm:$0xff] }
0x58d8   :  { %v9798_v12 = vpop.f32.mrf.mxu0 }
0x58d9   :  { %7865 = vrot.lane.b32.xlu1 %v7855_v21, %s10490_s23  ;;  %v8766_v29 = vmul.f32 -1.442695, %v7855_v21 }
0x58db   :  { %10214 = vpow2.f32 %v8766_v29 }
0x58e8   :  { %v10215_v18 = vpop.eup %10214 }
0x58e9   :  { %v7861_v36 = vadd.f32 1.0, %v10215_v18 }
0x58eb   :  { %10216 = vrcp.f32 %v7861_v36 }
0x58f0   :  { %v7886_v46 = vpop.permute.xlu0 %7885 }
0x58f8   :  { %v10217_v61 = vpop.eup %10216 }
0x58f9   :  { %v7875_v31 = vsub.f32 1.0, %v10217_v61  ;;  %v7881_v33 = vmul.f32 %v10217_v61, %v12282_v43  ;;  %v8067_v43 = vld [vmem:[%s12564_s25 + $0x8] sm:$0xff] }
0x594b   :  { %v7866_v7 = vpop.permute.xlu1 %7865 }
0x594c   :  { %v7868_v42 = vmul.f32 %v10217_v61, %v7866_v7 }
0x594e   :  { %7870 = vrot.lane.b32.xlu1 %v7868_v42, %s10486_s6 }
0x59c0   :  { %v7871_v44 = vpop.permute.xlu1 %7870 }
0x59c1   :  { %v7873_v53 = vadd.f32 %v7871_v44, %v7855_v21 }
0x59c3   :  { %10218 = vtanh.f32 %v7873_v53 }
0x59d0   :  { %v10219_v20 = vpop.eup %10218 }
0x59d1   :  { %7877 = vrot.lane.b32.xlu1 %v10219_v20, %s10491_s28 }
0x59d5   :  { %7891 = vrot.lane.b32.xlu1 %v7889_v56, %s10486_s6  ;;  %s12570_s6 = sld [smem:[#allocation39_spill]] }
0x59db   :  { %v8775_v17 = vld [vmem:[%s12570_s6] ss:$0 sm:$0xff] }
0x5a43   :  { %v7878_v11 = vpop.permute.xlu1 %7877 }
0x5a44   :  { %v7880_v58 = vmul.f32 %v7878_v11, %v7875_v31 }
0x5a46   :  { %v7882_v13 = vadd.f32 %v7881_v33, %v7880_v58 }
0x5a47   :  { %v7892_v6 = vpop.permute.xlu1 %7891 }
0x5a48   :  { %v7883_v28 = vmax.f32 %v7882_v13, 0.0 }
0x5a4a   :  { %v7888_v47 = vsel %vm283_vm0, %v7886_v46, %v7883_v28  ;;  %vm8251_vm0 = vcmask 293888  }
0x5a4b   :  { %9808 = vmatmul.mubr.msk.f32.vlgmr.msra.gmra.mxu1 %vm905_vm4, %v7888_v47  ;;  %v7894_v8 = vsel %vm905_vm4, %v7888_v47, %v7892_v6 }
0x5a4c   :  { %9822 = vmatpush3.msra.mxu1 %v8069_v49  ;;  %9829 = vmatprep.mubr.msk.f32.mxu1 %vm10492_vm5, %v12507_v63 }
0x5a4d   :  { %9823 = vmatprep.subr.mxu1 %v12507_v63 }
0x5a4e   :  { %9824 = vmatpush3.msra.mxu1 %v8068_v38 }
0x5a4f   :  { %9825 = vmatprep.subr.mxu1 %v12507_v63 }
0x5a50   :  { %9826 = vmatpush3.msra.mxu1 %v8067_v43 }
0x5a51   :  { %9827 = vmatprep.subr.mxu1 %v12507_v63 }
0x5a52   :  { %9828 = vmatpush3.msra.mxu1 %v8066_v3 }
0x5a53   :  { %9830 = vmatmul.mubr.msk.f32.vlgmr.msra.gmra.mxu1 %vm905_vm4, %v7888_v47  ;;  %9843 = vmatprep.subr.mxu1 %v12507_v63 }
0x5a54   :  { %9844 = vmatpush3.msk.msra.mxu1 %vm506_vm2, %v8238_v16  ;;  %9853 = vmatprep.mubr.msk.f32.mxu1 %vm10492_vm5, %v12507_v63  ;;  %vm8064_vm2 = vcmask 25600  }
0x5a55   :  { %9845 = vmatprep.subr.mxu1 %v12507_v63 }
0x5a56   :  { %9846 = vmatpush3.msra.mxu1 %v8237_v2 }
0x5a57   :  { %9847 = vmatprep.subr.mxu1 %v12507_v63 }
0x5a58   :  { %9848 = vmatpush3.msra.mxu1 %v8236_v50 }
0x5a59   :  { %9849 = vmatprep.subr.mxu1 %v12507_v63 }
0x5a5a   :  { %9850 = vmatpush3.msra.mxu1 %v8235_v35 }
0x5a5b   :  { %9851 = vmatprep.subr.mxu1 %v12507_v63 }
0x5a5c   :  { %9852 = vmatpush3.msra.mxu1 %v8234_v30 }
0x5a5d   :  { %9854 = vmatmul.mubr.msk.f32.vlgmr.msra.gmra.mxu1 %vm8251_vm0, %v7894_v8 }
0x5b0b   :  { %v7980_v51 = vpop.f32.mrf.mxu1 }
0x5b0c   :  { %v7981_v60 = vadd.f32 %v8767_v39, %v7980_v51 }
0x5b0d   :  { %v9809_v52 = vpop.f32.mrf.mxu1 }
0x5b0e   :  { %v7984_v41 = vmax.f32 %v7981_v60, 0.0 }
0x5b10   :  { %9819 = vmatmul.mubr.msk.f32.vlgmr.msra.gmra.mxu0 %vm905_vm4, %v7984_v41 }
0x5b11   :  { %9833 = vmatpush3.msra.mxu0 %v8074_v24  ;;  %9840 = vmatprep.mubr.msk.f32.mxu0 %vm10492_vm5, %v12507_v63 }
0x5b12   :  { %9834 = vmatprep.subr.mxu0 %v12507_v63 }
0x5b13   :  { %v8148_v9 = vpop.f32.mrf.mxu1  ;;  %9835 = vmatpush3.msra.mxu0 %v8073_v23 }
0x5b14   :  { %v8149_v1 = vadd.f32 %v8771_v25, %v8148_v9  ;;  %9836 = vmatprep.subr.mxu0 %v12507_v63 }
0x5b15   :  { %v9831_v22 = vpop.f32.mrf.mxu1  ;;  %9837 = vmatpush3.msra.mxu0 %v8072_v15 }
0x5b16   :  { %v8152_v32 = vmax.f32 %v8149_v1, 0.0  ;;  %9838 = vmatprep.subr.mxu0 %v12507_v63 }
0x5b17   :  { %9839 = vmatpush3.msra.mxu0 %v8071_v5 }
0x5b18   :  { %9841 = vmatmul.mubr.msk.f32.vlgmr.msra.gmra.mxu0 %vm905_vm4, %v8152_v32  ;;  %9856 = vmatprep.subr.mxu0 %v12507_v63 }
0x5b19   :  { %9857 = vmatpush3.msra.mxu0 %v8243_v10  ;;  %9864 = vmatprep.mubr.msk.f32.mxu0 %vm10492_vm5, %v12507_v63 }
0x5b1a   :  { %9858 = vmatprep.subr.mxu0 %v12507_v63 }
0x5b1b   :  { %9859 = vmatpush3.msra.mxu0 %v8242_v34 }
0x5b1c   :  { %9860 = vmatprep.subr.mxu0 %v12507_v63 }
0x5b1d   :  { %v8324_v26 = vpop.f32.mrf.mxu1  ;;  %9861 = vmatpush3.msra.mxu0 %v8241_v27 }
0x5b1e   :  { %v8325_v59 = vadd.f32 %v8775_v17, %v8324_v26  ;;  %9862 = vmatprep.subr.mxu0 %v12507_v63 }
0x5b1f   :  { %v9855_v14 = vpop.f32.mrf.mxu1  ;;  %9863 = vmatpush3.msra.mxu0 %v8240_v54 }
0x5b20   :  { %v8328_v4 = vmax.f32 %v8325_v59, 0.0 }
0x5b22   :  { %9865 = vmatmul.mubr.msk.f32.vlgmr.msra.gmra.mxu0 %vm905_vm4, %v8328_v4 }
0x5bd0   :  { %v8060_v21 = vpop.f32.mrf.mxu0 }
0x5bd1   :  { %v8061_v12 = vadd.f32 %v8769_v37, %v8060_v21 }
0x5bd2   :  { %v9820_v29 = vpop.f32.mrf.mxu0 }
0x5bd3   :  { %8065 = vst.msk [vmem:[#allocation11] sm:$0x3] %vm8064_vm2, %v8061_v12 }
0x5bd4   :  { %10381 = shalt.err (!%p10378_p1)
}
0x5bd5   :  { %s12572_s27 = sld [smem:[#allocation37_spill]]  ;;  %s10503_s23 = smov [#allocation12]   ;;  %vm8232_vm4 = vcmask 9216  }
0x5bd6   :  { %8418 = dma.vmem_to_hbm [thread:$0]  %s8416_s14, 32, %s10693_s12, [#allocation4]  }
0x5bd7   :  { %s8425_s28 = sshll.u32 %s10503_s23, 4  ;;  %s8426_s28 = int_to_ptr.vmem [resolvable:$true] %s8425_s28 }
0x5bd8   :  { %v8228_v18 = vpop.f32.mrf.mxu0  ;;  %s10390_s1 = scalar_lea.vmem %s8426_s28, 32  ;;  %p10395_p3 = scmp.lt.s32.totalorder %s8426_s28, %s8426_s28 }
0x5bd9   :  { %p10391_p2 = scmp.ne.s32.totalorder %s8426_s28, %s10390_s1  ;;  %p10396_p4 = scmp.lt.s32.totalorder %s10390_s1, %s10390_s1 }
0x5bda   :  { %v9842_v61 = vpop.f32.mrf.mxu0 }
0x5bdb   :  { %v8773_v63 = vld [vmem:[%s12572_s27] ss:$0 sm:$0xff]  ;;  %p10397_p5 = por %p10396_p4, %p10395_p3 }
0x5bdc   :  { %v8229_v36 = vadd.f32 %v8773_v63, %v8228_v18 }
0x5bdd   :  { %p10398_p6 = pnand %p10397_p5, %p10391_p2 }
0x5bde   :  { %8233 = vst.msk [vmem:[#allocation12] sm:$0x3] %vm8232_vm4, %v8229_v36 }
0x5bdf   :  { %10401 = shalt.err (!%p10398_p6)
}
0x5be0   :  { %8428 = dma.vmem_to_hbm [thread:$0]  %s8426_s28, 32, %s10698_s4, [#allocation13]   ;;  %v8778_v7 = vld [vmem:[%s10688_s20] ss:$0 sm:$0xff] }
0x5be1   :  { %s10504_s12 = smov [#allocation14]  }
0x5be2   :  { %s8435_s2 = sshll.u32 %s10504_s12, 4  ;;  %v8404_v42 = vpop.f32.mrf.mxu0  ;;  %s8436_s2 = int_to_ptr.vmem [resolvable:$true] %s8435_s2 }
0x5be3   :  { %v8405_v40 = vadd.f32 %v8778_v7, %v8404_v42  ;;  %s10410_s7 = scalar_lea.vmem %s8436_s2, 32  ;;  %p10415_p8 = scmp.lt.s32.totalorder %s8436_s2, %s8436_s2 }
0x5be4   :  { %v9866_v44 = vpop.f32.mrf.mxu0  ;;  %p10411_p7 = scmp.ne.s32.totalorder %s8436_s2, %s10410_s7  ;;  %p10416_p9 = scmp.lt.s32.totalorder %s10410_s7, %s10410_s7 }
0x5be5   :  { %8408 = vst.msk [vmem:[#allocation14] sm:$0x3] %vm8232_vm4, %v8405_v40 }
0x5be6   :  { %p10417_p10 = por %p10416_p9, %p10415_p8 }
0x5be8   :  { %p10418_p11 = pnand %p10417_p10, %p10411_p7 }
0x5bea   :  { %10421 = shalt.err (!%p10418_p11)
}
0x5beb   :  { %8438 = dma.vmem_to_hbm [thread:$0]  %s8436_s2, 32, %s10703_s21, [#allocation13]  }
0x5bec   :  { %10436 = dma.done.wait [#allocation4], 32  }
0x5bed   :  { %10437 = vsyncadd [#allocation4], 4294967264 }
0x5bee   :  { %10438 = dma.done.wait [#allocation13], 64  }
0x5bef   :  { %10439 = vsyncadd [#allocation13], 4294967232 }
0x5bf0   :  { %8448 = vsyncpa [#allocation3], 1 }
0x5bf1   :  { %8449 = vsyncpa [#allocation6], 1 }
0x5bf2   :  { %8450 = vsyncpa [#allocation9], 1 }
0x5bf3   :  { %8451 = vsyncpa [#allocation4], 1 }
0x5bf4   :  { %8452 = vsyncpa [#allocation13], 1 }

</bundles_post_ra>
